<compile_context>
chip_gen: v6e
topology: v6e:2x2x1
jax: 0.10.0
libtpu: 0.0.40
codegen_flags: <defaults>
</compile_context>

<pallas_src>
import jax
import jax.numpy as jnp
from jax.experimental import pallas as pl
from jax.experimental.pallas import tpu as pltpu

# ---- module hyper-parameters (from Critic.__init__) ----
LSTM_HIDDEN = 256          # lstm_hidden_dim
MLP_HIDDEN = 512           # mlp_hidden_dims = [512, 512, 512]
N_QUANTILES = 25
N_NETS = 2

# ---- small example shapes ----
BATCH = 2
SEQ = 8
STATE_DIM = 16
ACTION_DIM = 8


def _critic_kernel(gx_ref, action_ref, w_hh_ref,
                   w1h_ref, w1a_ref, b1_ref,
                   w2_ref, b2_ref, w3_ref, b3_ref,
                   w4_ref, b4_ref,
                   out_ref):
    """One grid step == one critic net (qf{i})."""
    H = LSTM_HIDDEN
    bf16 = jnp.bfloat16

    action = action_ref[...]                    # (B, A) f32
    w_hh = w_hh_ref[0]                          # (H, 4H) bf16

    B = gx_ref.shape[2]
    T = gx_ref.shape[1]

    h = jnp.zeros((B, H), jnp.float32)
    c = jnp.zeros((B, H), jnp.float32)

    # LSTM recurrence, fully unrolled (T is static & small).
    # gx_ref[0, t] already holds x_t @ W_ih + (b_ih + b_hh); gate order i,f,g,o.
    for t in range(T):
        gates = gx_ref[0, t] + jnp.dot(h.astype(bf16), w_hh,
                                       preferred_element_type=jnp.float32)
        i_g = jax.nn.sigmoid(gates[:, 0:H])
        f_g = jax.nn.sigmoid(gates[:, H:2 * H])
        g_g = jnp.tanh(gates[:, 2 * H:3 * H])
        o_g = jax.nn.sigmoid(gates[:, 3 * H:4 * H])
        c = f_g * c + i_g * g_g
        h = o_g * jnp.tanh(c)

    # MLP head.  concat(h, action) @ W1 == h @ W1[:H] + action @ W1[H:].
    x = (jnp.dot(h.astype(bf16), w1h_ref[0], preferred_element_type=jnp.float32)
         + jnp.dot(action.astype(bf16), w1a_ref[0],
                   preferred_element_type=jnp.float32)
         + b1_ref[0])
    x = jnp.maximum(x, 0.0)
    x = jnp.maximum(
        jnp.dot(x.astype(bf16), w2_ref[0], preferred_element_type=jnp.float32)
        + b2_ref[0], 0.0)
    x = jnp.maximum(
        jnp.dot(x.astype(bf16), w3_ref[0], preferred_element_type=jnp.float32)
        + b3_ref[0], 0.0)
    q = (jnp.dot(x.astype(bf16), w4_ref[0], preferred_element_type=jnp.float32)
         + b4_ref[0])                                             # (B, Q)

    out_ref[0] = q


def _prepare_params(params):
    """Cast weight matrices to bf16 and pre-split W1 into (h-part, action-part)."""
    bf = jnp.bfloat16
    H = LSTM_HIDDEN
    return {
        "w_ih": params["w_ih"].astype(bf),
        "w_hh": params["w_hh"].astype(bf),
        "b_lstm": params["b_lstm"],                      # f32
        "w1h": params["w1"][:, :H, :].astype(bf),
        "w1a": params["w1"][:, H:, :].astype(bf),
        "b1": params["b1"],
        "w2": params["w2"].astype(bf), "b2": params["b2"],
        "w3": params["w3"].astype(bf), "b3": params["b3"],
        "w4": params["w4"].astype(bf), "b4": params["b4"],
    }


def _lstm_input_gates(state, p):
    """Hoisted input projection: (N, T, B, 4H) f32 = x_t @ W_ih + (b_ih + b_hh)."""
    gx = jnp.einsum("bts,nsg->ntbg", state.astype(jnp.bfloat16), p["w_ih"],
                    preferred_element_type=jnp.float32)
    return gx + p["b_lstm"][:, :, None, :]               # (N,1,1,4H) broadcast


def critic_forward(state, action, params):
    """Pallas wrapper. Returns (B, n_nets, n_quantiles)."""
    B, T, S = state.shape
    A = action.shape[1]
    H = LSTM_HIDDEN
    M = MLP_HIDDEN
    Q = N_QUANTILES

    p = _prepare_params(params)
    gx = _lstm_input_gates(state, p)                     # (N, T, B, 4H) f32

    per_net = lambda blk: pl.BlockSpec(blk, lambda n, _b=len(blk): (n,) + (0,) * (_b - 1))

    grid_spec = pltpu.PrefetchScalarGridSpec(
        num_scalar_prefetch=0,
        grid=(N_NETS,),
        in_specs=[
            per_net((1, T, B, 4 * H)),                   # hoisted input gates
            pl.BlockSpec((B, A), lambda n: (0, 0)),      # action (shared)
            per_net((1, H, 4 * H)),                      # lstm w_hh (bf16)
            per_net((1, H, M)),                          # w1 (hidden part)
            per_net((1, A, M)),                          # w1 (action part)
            per_net((1, 1, M)),                          # b1
            per_net((1, M, M)), per_net((1, 1, M)),      # w2, b2
            per_net((1, M, M)), per_net((1, 1, M)),      # w3, b3
            per_net((1, M, Q)), per_net((1, 1, Q)),      # w4, b4
        ],
        out_specs=pl.BlockSpec((1, B, Q), lambda n: (n, 0, 0)),
    )

    # advisory cost estimate for XLA's scheduler
    flops = N_NETS * (2 * B * T * H * 4 * H
                      + 2 * B * (H * M + A * M + 2 * M * M + M * Q))
    transcendentals = N_NETS * B * T * 5 * H
    weight_keys = ["w_hh", "w1h", "w1a", "b1", "w2", "b2", "w3", "b3", "w4", "b4"]
    bytes_accessed = int(gx.size * 4 + action.size * 4 + N_NETS * B * Q * 4
                         + sum(int(p[k].size) * p[k].dtype.itemsize
                               for k in weight_keys))

    out = pl.pallas_call(
        _critic_kernel,
        grid_spec=grid_spec,
        out_shape=jax.ShapeDtypeStruct((N_NETS, B, Q), jnp.float32),
        compiler_params=pltpu.CompilerParams(
            dimension_semantics=("parallel",)),           # one net per TC on v7x
        cost_estimate=pl.CostEstimate(flops=flops,
                                      transcendentals=transcendentals,
                                      bytes_accessed=bytes_accessed),
    )(gx, action,
      p["w_hh"],
      p["w1h"], p["w1a"], p["b1"],
      p["w2"], p["b2"], p["w3"], p["b3"],
      p["w4"], p["b4"])

    # torch.stack(..., dim=1): (n_nets, B, Q) -> (B, n_nets, Q)  (tiny transpose)
    return jnp.transpose(out, (1, 0, 2))


def init_params(key, state_dim, action_dim):
    """Deterministic synthetic parameters, PyTorch-style uniform ranges.

    Linear/LSTM weights are stored TRANSPOSED (in_dim, out_dim) so the kernel
    can do `x @ W` directly. LSTM biases b_ih and b_hh are pre-summed.
    """
    H = LSTM_HIDDEN
    M = MLP_HIDDEN
    Q = N_QUANTILES
    A = action_dim
    S = state_dim

    def u(key, shape, fan_in):
        bound = 1.0 / jnp.sqrt(jnp.float32(fan_in))
        return jax.random.uniform(key, shape, jnp.float32, -bound, bound)

    keys = jax.random.split(key, 13)
    params = {
        # LSTM (per-net stacks along axis 0)
        "w_ih":   u(keys[0], (N_NETS, S, 4 * H), H),
        "w_hh":   u(keys[1], (N_NETS, H, 4 * H), H),
        "b_lstm": u(keys[2], (N_NETS, 1, 4 * H), H),
        # MLP: Linear(H+A,512) ReLU Linear(512,512) ReLU Linear(512,512) ReLU Linear(512,Q)
        "w1": u(keys[3], (N_NETS, H + A, M), H + A),
        "b1": u(keys[4], (N_NETS, 1, M), H + A),
        "w2": u(keys[5], (N_NETS, M, M), M),
        "b2": u(keys[6], (N_NETS, 1, M), M),
        "w3": u(keys[7], (N_NETS, M, M), M),
        "b3": u(keys[8], (N_NETS, 1, M), M),
        "w4": u(keys[9], (N_NETS, M, Q), M),
        "b4": u(keys[10], (N_NETS, 1, Q), M),
    }
    return params


def critic_reference(state, action, params):
    """Pure-JAX reference mirroring the PyTorch forward (same mixed precision)."""
    H = LSTM_HIDDEN
    bf = jnp.bfloat16
    B, T, _ = state.shape
    p = _prepare_params(params)
    gx = _lstm_input_gates(state, p)          # (N, T, B, 4H) f32
    outs = []
    for n in range(N_NETS):
        h = jnp.zeros((B, H), jnp.float32)
        c = jnp.zeros((B, H), jnp.float32)
        for t in range(T):
            gates = gx[n, t] + jnp.dot(h.astype(bf), p["w_hh"][n],
                                       preferred_element_type=jnp.float32)
            i_g = jax.nn.sigmoid(gates[:, 0:H])
            f_g = jax.nn.sigmoid(gates[:, H:2 * H])
            g_g = jnp.tanh(gates[:, 2 * H:3 * H])
            o_g = jax.nn.sigmoid(gates[:, 3 * H:4 * H])
            c = f_g * c + i_g * g_g
            h = o_g * jnp.tanh(c)
        x = (jnp.dot(h.astype(bf), p["w1h"][n], preferred_element_type=jnp.float32)
             + jnp.dot(action.astype(bf), p["w1a"][n],
                       preferred_element_type=jnp.float32)
             + p["b1"][n, 0])
        x = jax.nn.relu(x)
        x = jax.nn.relu(jnp.dot(x.astype(bf), p["w2"][n],
                                preferred_element_type=jnp.float32) + p["b2"][n, 0])
        x = jax.nn.relu(jnp.dot(x.astype(bf), p["w3"][n],
                                preferred_element_type=jnp.float32) + p["b3"][n, 0])
        q = jnp.dot(x.astype(bf), p["w4"][n],
                    preferred_element_type=jnp.float32) + p["b4"][n, 0]
        outs.append(q)
    return jnp.stack(outs, axis=1)


if __name__ == "__main__":
    key = jax.random.PRNGKey(0)
    k_state, k_action, k_params = jax.random.split(key, 3)

    state = jax.random.normal(k_state, (BATCH, SEQ, STATE_DIM), jnp.float32)
    action = jax.random.normal(k_action, (BATCH, ACTION_DIM), jnp.float32)
    params = init_params(k_params, STATE_DIM, ACTION_DIM)

    out = jax.block_until_ready(critic_forward(state, action, params))
    assert out.shape == (BATCH, N_NETS, N_QUANTILES), out.shape

    ref = jax.block_until_ready(critic_reference(state, action, params))
    assert jnp.allclose(out, ref, atol=1e-3, rtol=1e-3), (
        float(jnp.max(jnp.abs(out - ref))))

    print("KERNEL_OK")
</pallas_src>

<mosaic_0001>
module attributes {stable_mosaic.version = 11 : i64} {
  func.func @_critic_kernel(%arg0: i32, %arg1: memref<1x8x2x1024xf32, #tpu.memory_space<vmem>>, %arg2: memref<2x8xf32, #tpu.memory_space<vmem>>, %arg3: memref<1x256x1024xbf16, #tpu.memory_space<vmem>>, %arg4: memref<1x256x512xbf16, #tpu.memory_space<vmem>>, %arg5: memref<1x8x512xbf16, #tpu.memory_space<vmem>>, %arg6: memref<1x1x512xf32, #tpu.memory_space<vmem>>, %arg7: memref<1x512x512xbf16, #tpu.memory_space<vmem>>, %arg8: memref<1x1x512xf32, #tpu.memory_space<vmem>>, %arg9: memref<1x512x512xbf16, #tpu.memory_space<vmem>>, %arg10: memref<1x1x512xf32, #tpu.memory_space<vmem>>, %arg11: memref<1x512x25xbf16, #tpu.memory_space<vmem>>, %arg12: memref<1x1x25xf32, #tpu.memory_space<vmem>>, %arg13: memref<1x2x25xf32, #tpu.memory_space<vmem>>) attributes {dimension_semantics = [#tpu.dimension_semantics<parallel>], iteration_bounds = array<i64: 2>, scalar_prefetch = 0 : i64, scratch_operands = 0 : i64, tpu.core_type = #tpu.core_type<tc>, window_params = [{transform_indices = @transform_0, window_bounds = array<i64: 1, 8, 2, 1024>}, {pipeline_mode = #tpu.pipeline_mode<synchronous>, transform_indices = @transform_1, window_bounds = array<i64: 2, 8>}, {transform_indices = @transform_2, window_bounds = array<i64: 1, 256, 1024>}, {transform_indices = @transform_3, window_bounds = array<i64: 1, 256, 512>}, {transform_indices = @transform_4, window_bounds = array<i64: 1, 8, 512>}, {transform_indices = @transform_5, window_bounds = array<i64: 1, 1, 512>}, {transform_indices = @transform_6, window_bounds = array<i64: 1, 512, 512>}, {transform_indices = @transform_7, window_bounds = array<i64: 1, 1, 512>}, {transform_indices = @transform_8, window_bounds = array<i64: 1, 512, 512>}, {transform_indices = @transform_9, window_bounds = array<i64: 1, 1, 512>}, {transform_indices = @transform_10, window_bounds = array<i64: 1, 512, 25>}, {transform_indices = @transform_11, window_bounds = array<i64: 1, 1, 25>}, {transform_indices = @transform_12, window_bounds = array<i64: 1, 2, 25>}]} {
    %c0 = arith.constant 0 : index
    %c0_0 = arith.constant 0 : index
    %0 = vector.load %arg2[%c0, %c0_0] : memref<2x8xf32, #tpu.memory_space<vmem>>, vector<2x8xf32>
    %c0_1 = arith.constant 0 : index
    %c0_2 = arith.constant 0 : index
    %c0_3 = arith.constant 0 : index
    %1 = vector.load %arg3[%c0_1, %c0_2, %c0_3] : memref<1x256x1024xbf16, #tpu.memory_space<vmem>>, vector<1x256x1024xbf16>
    %2 = vector.shape_cast %1 : vector<1x256x1024xbf16> to vector<256x1024xbf16>
    %cst = arith.constant 0.000000e+00 : f32
    %3 = vector.broadcast %cst : f32 to vector<2x256xf32>
    %cst_4 = arith.constant 0.000000e+00 : f32
    %4 = vector.broadcast %cst_4 : f32 to vector<2x256xf32>
    %c0_5 = arith.constant 0 : index
    %c0_6 = arith.constant 0 : index
    %c0_7 = arith.constant 0 : index
    %c0_8 = arith.constant 0 : index
    %5 = vector.load %arg1[%c0_5, %c0_6, %c0_7, %c0_8] : memref<1x8x2x1024xf32, #tpu.memory_space<vmem>>, vector<1x1x2x1024xf32>
    %6 = vector.shape_cast %5 : vector<1x1x2x1024xf32> to vector<2x1024xf32>
    %7 = arith.truncf %3 : vector<2x256xf32> to vector<2x256xbf16>
    %cst_9 = arith.constant dense<0.000000e+00> : vector<2x1024xf32>
    %8 = tpu.matmul %7, %2, %cst_9 {dimension_numbers = #tpu.dot_dimension_numbers<[1], [0], [0], [1], [0, 0, 1, 1], [], []>} : vector<2x256xbf16>, vector<256x1024xbf16>, vector<2x1024xf32> -> vector<2x1024xf32>
    %9 = arith.addf %6, %8 : vector<2x1024xf32>
    %10 = vector.extract_strided_slice %9 {offsets = [0, 0], sizes = [2, 256], strides = [1, 1]} : vector<2x1024xf32> to vector<2x256xf32>
    %11 = arith.negf %10 : vector<2x256xf32>
    %12 = math.exp %11 : vector<2x256xf32>
    %cst_10 = arith.constant 1.000000e+00 : f32
    %13 = vector.broadcast %cst_10 : f32 to vector<2x256xf32>
    %14 = arith.addf %13, %12 : vector<2x256xf32>
    %15 = arith.divf %13, %14 : vector<2x256xf32>
    %16 = vector.extract_strided_slice %9 {offsets = [0, 256], sizes = [2, 256], strides = [1, 1]} : vector<2x1024xf32> to vector<2x256xf32>
    %17 = arith.negf %16 : vector<2x256xf32>
    %18 = math.exp %17 : vector<2x256xf32>
    %cst_11 = arith.constant 1.000000e+00 : f32
    %19 = vector.broadcast %cst_11 : f32 to vector<2x256xf32>
    %20 = arith.addf %19, %18 : vector<2x256xf32>
    %21 = arith.divf %19, %20 : vector<2x256xf32>
    %22 = vector.extract_strided_slice %9 {offsets = [0, 512], sizes = [2, 256], strides = [1, 1]} : vector<2x1024xf32> to vector<2x256xf32>
    %23 = math.tanh %22 : vector<2x256xf32>
    %24 = vector.extract_strided_slice %9 {offsets = [0, 768], sizes = [2, 256], strides = [1, 1]} : vector<2x1024xf32> to vector<2x256xf32>
    %25 = arith.negf %24 : vector<2x256xf32>
    %26 = math.exp %25 : vector<2x256xf32>
    %cst_12 = arith.constant 1.000000e+00 : f32
    %27 = vector.broadcast %cst_12 : f32 to vector<2x256xf32>
    %28 = arith.addf %27, %26 : vector<2x256xf32>
    %29 = arith.divf %27, %28 : vector<2x256xf32>
    %30 = arith.mulf %21, %4 : vector<2x256xf32>
    %31 = arith.mulf %15, %23 : vector<2x256xf32>
    %32 = arith.addf %30, %31 : vector<2x256xf32>
    %33 = math.tanh %32 : vector<2x256xf32>
    %34 = arith.mulf %29, %33 : vector<2x256xf32>
    %c0_13 = arith.constant 0 : index
    %c1 = arith.constant 1 : index
    %c0_14 = arith.constant 0 : index
    %c0_15 = arith.constant 0 : index
    %35 = vector.load %arg1[%c0_13, %c1, %c0_14, %c0_15] : memref<1x8x2x1024xf32, #tpu.memory_space<vmem>>, vector<1x1x2x1024xf32>
    %36 = vector.shape_cast %35 : vector<1x1x2x1024xf32> to vector<2x1024xf32>
    %37 = arith.truncf %34 : vector<2x256xf32> to vector<2x256xbf16>
    %cst_16 = arith.constant dense<0.000000e+00> : vector<2x1024xf32>
    %38 = tpu.matmul %37, %2, %cst_16 {dimension_numbers = #tpu.dot_dimension_numbers<[1], [0], [0], [1], [0, 0, 1, 1], [], []>} : vector<2x256xbf16>, vector<256x1024xbf16>, vector<2x1024xf32> -> vector<2x1024xf32>
    %39 = arith.addf %36, %38 : vector<2x1024xf32>
    %40 = vector.extract_strided_slice %39 {offsets = [0, 0], sizes = [2, 256], strides = [1, 1]} : vector<2x1024xf32> to vector<2x256xf32>
    %41 = arith.negf %40 : vector<2x256xf32>
    %42 = math.exp %41 : vector<2x256xf32>
    %cst_17 = arith.constant 1.000000e+00 : f32
    %43 = vector.broadcast %cst_17 : f32 to vector<2x256xf32>
    %44 = arith.addf %43, %42 : vector<2x256xf32>
    %45 = arith.divf %43, %44 : vector<2x256xf32>
    %46 = vector.extract_strided_slice %39 {offsets = [0, 256], sizes = [2, 256], strides = [1, 1]} : vector<2x1024xf32> to vector<2x256xf32>
    %47 = arith.negf %46 : vector<2x256xf32>
    %48 = math.exp %47 : vector<2x256xf32>
    %cst_18 = arith.constant 1.000000e+00 : f32
    %49 = vector.broadcast %cst_18 : f32 to vector<2x256xf32>
    %50 = arith.addf %49, %48 : vector<2x256xf32>
    %51 = arith.divf %49, %50 : vector<2x256xf32>
    %52 = vector.extract_strided_slice %39 {offsets = [0, 512], sizes = [2, 256], strides = [1, 1]} : vector<2x1024xf32> to vector<2x256xf32>
    %53 = math.tanh %52 : vector<2x256xf32>
    %54 = vector.extract_strided_slice %39 {offsets = [0, 768], sizes = [2, 256], strides = [1, 1]} : vector<2x1024xf32> to vector<2x256xf32>
    %55 = arith.negf %54 : vector<2x256xf32>
    %56 = math.exp %55 : vector<2x256xf32>
    %cst_19 = arith.constant 1.000000e+00 : f32
    %57 = vector.broadcast %cst_19 : f32 to vector<2x256xf32>
    %58 = arith.addf %57, %56 : vector<2x256xf32>
    %59 = arith.divf %57, %58 : vector<2x256xf32>
    %60 = arith.mulf %51, %32 : vector<2x256xf32>
    %61 = arith.mulf %45, %53 : vector<2x256xf32>
    %62 = arith.addf %60, %61 : vector<2x256xf32>
    %63 = math.tanh %62 : vector<2x256xf32>
    %64 = arith.mulf %59, %63 : vector<2x256xf32>
    %c0_20 = arith.constant 0 : index
    %c2 = arith.constant 2 : index
    %c0_21 = arith.constant 0 : index
    %c0_22 = arith.constant 0 : index
    %65 = vector.load %arg1[%c0_20, %c2, %c0_21, %c0_22] : memref<1x8x2x1024xf32, #tpu.memory_space<vmem>>, vector<1x1x2x1024xf32>
    %66 = vector.shape_cast %65 : vector<1x1x2x1024xf32> to vector<2x1024xf32>
    %67 = arith.truncf %64 : vector<2x256xf32> to vector<2x256xbf16>
    %cst_23 = arith.constant dense<0.000000e+00> : vector<2x1024xf32>
    %68 = tpu.matmul %67, %2, %cst_23 {dimension_numbers = #tpu.dot_dimension_numbers<[1], [0], [0], [1], [0, 0, 1, 1], [], []>} : vector<2x256xbf16>, vector<256x1024xbf16>, vector<2x1024xf32> -> vector<2x1024xf32>
    %69 = arith.addf %66, %68 : vector<2x1024xf32>
    %70 = vector.extract_strided_slice %69 {offsets = [0, 0], sizes = [2, 256], strides = [1, 1]} : vector<2x1024xf32> to vector<2x256xf32>
    %71 = arith.negf %70 : vector<2x256xf32>
    %72 = math.exp %71 : vector<2x256xf32>
    %cst_24 = arith.constant 1.000000e+00 : f32
    %73 = vector.broadcast %cst_24 : f32 to vector<2x256xf32>
    %74 = arith.addf %73, %72 : vector<2x256xf32>
    %75 = arith.divf %73, %74 : vector<2x256xf32>
    %76 = vector.extract_strided_slice %69 {offsets = [0, 256], sizes = [2, 256], strides = [1, 1]} : vector<2x1024xf32> to vector<2x256xf32>
    %77 = arith.negf %76 : vector<2x256xf32>
    %78 = math.exp %77 : vector<2x256xf32>
    %cst_25 = arith.constant 1.000000e+00 : f32
    %79 = vector.broadcast %cst_25 : f32 to vector<2x256xf32>
    %80 = arith.addf %79, %78 : vector<2x256xf32>
    %81 = arith.divf %79, %80 : vector<2x256xf32>
    %82 = vector.extract_strided_slice %69 {offsets = [0, 512], sizes = [2, 256], strides = [1, 1]} : vector<2x1024xf32> to vector<2x256xf32>
    %83 = math.tanh %82 : vector<2x256xf32>
    %84 = vector.extract_strided_slice %69 {offsets = [0, 768], sizes = [2, 256], strides = [1, 1]} : vector<2x1024xf32> to vector<2x256xf32>
    %85 = arith.negf %84 : vector<2x256xf32>
    %86 = math.exp %85 : vector<2x256xf32>
    %cst_26 = arith.constant 1.000000e+00 : f32
    %87 = vector.broadcast %cst_26 : f32 to vector<2x256xf32>
    %88 = arith.addf %87, %86 : vector<2x256xf32>
    %89 = arith.divf %87, %88 : vector<2x256xf32>
    %90 = arith.mulf %81, %62 : vector<2x256xf32>
    %91 = arith.mulf %75, %83 : vector<2x256xf32>
    %92 = arith.addf %90, %91 : vector<2x256xf32>
    %93 = math.tanh %92 : vector<2x256xf32>
    %94 = arith.mulf %89, %93 : vector<2x256xf32>
    %c0_27 = arith.constant 0 : index
    %c3 = arith.constant 3 : index
    %c0_28 = arith.constant 0 : index
    %c0_29 = arith.constant 0 : index
    %95 = vector.load %arg1[%c0_27, %c3, %c0_28, %c0_29] : memref<1x8x2x1024xf32, #tpu.memory_space<vmem>>, vector<1x1x2x1024xf32>
    %96 = vector.shape_cast %95 : vector<1x1x2x1024xf32> to vector<2x1024xf32>
    %97 = arith.truncf %94 : vector<2x256xf32> to vector<2x256xbf16>
    %cst_30 = arith.constant dense<0.000000e+00> : vector<2x1024xf32>
    %98 = tpu.matmul %97, %2, %cst_30 {dimension_numbers = #tpu.dot_dimension_numbers<[1], [0], [0], [1], [0, 0, 1, 1], [], []>} : vector<2x256xbf16>, vector<256x1024xbf16>, vector<2x1024xf32> -> vector<2x1024xf32>
    %99 = arith.addf %96, %98 : vector<2x1024xf32>
    %100 = vector.extract_strided_slice %99 {offsets = [0, 0], sizes = [2, 256], strides = [1, 1]} : vector<2x1024xf32> to vector<2x256xf32>
    %101 = arith.negf %100 : vector<2x256xf32>
    %102 = math.exp %101 : vector<2x256xf32>
    %cst_31 = arith.constant 1.000000e+00 : f32
    %103 = vector.broadcast %cst_31 : f32 to vector<2x256xf32>
    %104 = arith.addf %103, %102 : vector<2x256xf32>
    %105 = arith.divf %103, %104 : vector<2x256xf32>
    %106 = vector.extract_strided_slice %99 {offsets = [0, 256], sizes = [2, 256], strides = [1, 1]} : vector<2x1024xf32> to vector<2x256xf32>
    %107 = arith.negf %106 : vector<2x256xf32>
    %108 = math.exp %107 : vector<2x256xf32>
    %cst_32 = arith.constant 1.000000e+00 : f32
    %109 = vector.broadcast %cst_32 : f32 to vector<2x256xf32>
    %110 = arith.addf %109, %108 : vector<2x256xf32>
    %111 = arith.divf %109, %110 : vector<2x256xf32>
    %112 = vector.extract_strided_slice %99 {offsets = [0, 512], sizes = [2, 256], strides = [1, 1]} : vector<2x1024xf32> to vector<2x256xf32>
    %113 = math.tanh %112 : vector<2x256xf32>
    %114 = vector.extract_strided_slice %99 {offsets = [0, 768], sizes = [2, 256], strides = [1, 1]} : vector<2x1024xf32> to vector<2x256xf32>
    %115 = arith.negf %114 : vector<2x256xf32>
    %116 = math.exp %115 : vector<2x256xf32>
    %cst_33 = arith.constant 1.000000e+00 : f32
    %117 = vector.broadcast %cst_33 : f32 to vector<2x256xf32>
    %118 = arith.addf %117, %116 : vector<2x256xf32>
    %119 = arith.divf %117, %118 : vector<2x256xf32>
    %120 = arith.mulf %111, %92 : vector<2x256xf32>
    %121 = arith.mulf %105, %113 : vector<2x256xf32>
    %122 = arith.addf %120, %121 : vector<2x256xf32>
    %123 = math.tanh %122 : vector<2x256xf32>
    %124 = arith.mulf %119, %123 : vector<2x256xf32>
    %c0_34 = arith.constant 0 : index
    %c4 = arith.constant 4 : index
    %c0_35 = arith.constant 0 : index
    %c0_36 = arith.constant 0 : index
    %125 = vector.load %arg1[%c0_34, %c4, %c0_35, %c0_36] : memref<1x8x2x1024xf32, #tpu.memory_space<vmem>>, vector<1x1x2x1024xf32>
    %126 = vector.shape_cast %125 : vector<1x1x2x1024xf32> to vector<2x1024xf32>
    %127 = arith.truncf %124 : vector<2x256xf32> to vector<2x256xbf16>
    %cst_37 = arith.constant dense<0.000000e+00> : vector<2x1024xf32>
    %128 = tpu.matmul %127, %2, %cst_37 {dimension_numbers = #tpu.dot_dimension_numbers<[1], [0], [0], [1], [0, 0, 1, 1], [], []>} : vector<2x256xbf16>, vector<256x1024xbf16>, vector<2x1024xf32> -> vector<2x1024xf32>
    %129 = arith.addf %126, %128 : vector<2x1024xf32>
    %130 = vector.extract_strided_slice %129 {offsets = [0, 0], sizes = [2, 256], strides = [1, 1]} : vector<2x1024xf32> to vector<2x256xf32>
    %131 = arith.negf %130 : vector<2x256xf32>
    %132 = math.exp %131 : vector<2x256xf32>
    %cst_38 = arith.constant 1.000000e+00 : f32
    %133 = vector.broadcast %cst_38 : f32 to vector<2x256xf32>
    %134 = arith.addf %133, %132 : vector<2x256xf32>
    %135 = arith.divf %133, %134 : vector<2x256xf32>
    %136 = vector.extract_strided_slice %129 {offsets = [0, 256], sizes = [2, 256], strides = [1, 1]} : vector<2x1024xf32> to vector<2x256xf32>
    %137 = arith.negf %136 : vector<2x256xf32>
    %138 = math.exp %137 : vector<2x256xf32>
    %cst_39 = arith.constant 1.000000e+00 : f32
    %139 = vector.broadcast %cst_39 : f32 to vector<2x256xf32>
    %140 = arith.addf %139, %138 : vector<2x256xf32>
    %141 = arith.divf %139, %140 : vector<2x256xf32>
    %142 = vector.extract_strided_slice %129 {offsets = [0, 512], sizes = [2, 256], strides = [1, 1]} : vector<2x1024xf32> to vector<2x256xf32>
    %143 = math.tanh %142 : vector<2x256xf32>
    %144 = vector.extract_strided_slice %129 {offsets = [0, 768], sizes = [2, 256], strides = [1, 1]} : vector<2x1024xf32> to vector<2x256xf32>
    %145 = arith.negf %144 : vector<2x256xf32>
    %146 = math.exp %145 : vector<2x256xf32>
    %cst_40 = arith.constant 1.000000e+00 : f32
    %147 = vector.broadcast %cst_40 : f32 to vector<2x256xf32>
    %148 = arith.addf %147, %146 : vector<2x256xf32>
    %149 = arith.divf %147, %148 : vector<2x256xf32>
    %150 = arith.mulf %141, %122 : vector<2x256xf32>
    %151 = arith.mulf %135, %143 : vector<2x256xf32>
    %152 = arith.addf %150, %151 : vector<2x256xf32>
    %153 = math.tanh %152 : vector<2x256xf32>
    %154 = arith.mulf %149, %153 : vector<2x256xf32>
    %c0_41 = arith.constant 0 : index
    %c5 = arith.constant 5 : index
    %c0_42 = arith.constant 0 : index
    %c0_43 = arith.constant 0 : index
    %155 = vector.load %arg1[%c0_41, %c5, %c0_42, %c0_43] : memref<1x8x2x1024xf32, #tpu.memory_space<vmem>>, vector<1x1x2x1024xf32>
    %156 = vector.shape_cast %155 : vector<1x1x2x1024xf32> to vector<2x1024xf32>
    %157 = arith.truncf %154 : vector<2x256xf32> to vector<2x256xbf16>
    %cst_44 = arith.constant dense<0.000000e+00> : vector<2x1024xf32>
    %158 = tpu.matmul %157, %2, %cst_44 {dimension_numbers = #tpu.dot_dimension_numbers<[1], [0], [0], [1], [0, 0, 1, 1], [], []>} : vector<2x256xbf16>, vector<256x1024xbf16>, vector<2x1024xf32> -> vector<2x1024xf32>
    %159 = arith.addf %156, %158 : vector<2x1024xf32>
    %160 = vector.extract_strided_slice %159 {offsets = [0, 0], sizes = [2, 256], strides = [1, 1]} : vector<2x1024xf32> to vector<2x256xf32>
    %161 = arith.negf %160 : vector<2x256xf32>
    %162 = math.exp %161 : vector<2x256xf32>
    %cst_45 = arith.constant 1.000000e+00 : f32
    %163 = vector.broadcast %cst_45 : f32 to vector<2x256xf32>
    %164 = arith.addf %163, %162 : vector<2x256xf32>
    %165 = arith.divf %163, %164 : vector<2x256xf32>
    %166 = vector.extract_strided_slice %159 {offsets = [0, 256], sizes = [2, 256], strides = [1, 1]} : vector<2x1024xf32> to vector<2x256xf32>
    %167 = arith.negf %166 : vector<2x256xf32>
    %168 = math.exp %167 : vector<2x256xf32>
    %cst_46 = arith.constant 1.000000e+00 : f32
    %169 = vector.broadcast %cst_46 : f32 to vector<2x256xf32>
    %170 = arith.addf %169, %168 : vector<2x256xf32>
    %171 = arith.divf %169, %170 : vector<2x256xf32>
    %172 = vector.extract_strided_slice %159 {offsets = [0, 512], sizes = [2, 256], strides = [1, 1]} : vector<2x1024xf32> to vector<2x256xf32>
    %173 = math.tanh %172 : vector<2x256xf32>
    %174 = vector.extract_strided_slice %159 {offsets = [0, 768], sizes = [2, 256], strides = [1, 1]} : vector<2x1024xf32> to vector<2x256xf32>
    %175 = arith.negf %174 : vector<2x256xf32>
    %176 = math.exp %175 : vector<2x256xf32>
    %cst_47 = arith.constant 1.000000e+00 : f32
    %177 = vector.broadcast %cst_47 : f32 to vector<2x256xf32>
    %178 = arith.addf %177, %176 : vector<2x256xf32>
    %179 = arith.divf %177, %178 : vector<2x256xf32>
    %180 = arith.mulf %171, %152 : vector<2x256xf32>
    %181 = arith.mulf %165, %173 : vector<2x256xf32>
    %182 = arith.addf %180, %181 : vector<2x256xf32>
    %183 = math.tanh %182 : vector<2x256xf32>
    %184 = arith.mulf %179, %183 : vector<2x256xf32>
    %c0_48 = arith.constant 0 : index
    %c6 = arith.constant 6 : index
    %c0_49 = arith.constant 0 : index
    %c0_50 = arith.constant 0 : index
    %185 = vector.load %arg1[%c0_48, %c6, %c0_49, %c0_50] : memref<1x8x2x1024xf32, #tpu.memory_space<vmem>>, vector<1x1x2x1024xf32>
    %186 = vector.shape_cast %185 : vector<1x1x2x1024xf32> to vector<2x1024xf32>
    %187 = arith.truncf %184 : vector<2x256xf32> to vector<2x256xbf16>
    %cst_51 = arith.constant dense<0.000000e+00> : vector<2x1024xf32>
    %188 = tpu.matmul %187, %2, %cst_51 {dimension_numbers = #tpu.dot_dimension_numbers<[1], [0], [0], [1], [0, 0, 1, 1], [], []>} : vector<2x256xbf16>, vector<256x1024xbf16>, vector<2x1024xf32> -> vector<2x1024xf32>
    %189 = arith.addf %186, %188 : vector<2x1024xf32>
    %190 = vector.extract_strided_slice %189 {offsets = [0, 0], sizes = [2, 256], strides = [1, 1]} : vector<2x1024xf32> to vector<2x256xf32>
    %191 = arith.negf %190 : vector<2x256xf32>
    %192 = math.exp %191 : vector<2x256xf32>
    %cst_52 = arith.constant 1.000000e+00 : f32
    %193 = vector.broadcast %cst_52 : f32 to vector<2x256xf32>
    %194 = arith.addf %193, %192 : vector<2x256xf32>
    %195 = arith.divf %193, %194 : vector<2x256xf32>
    %196 = vector.extract_strided_slice %189 {offsets = [0, 256], sizes = [2, 256], strides = [1, 1]} : vector<2x1024xf32> to vector<2x256xf32>
    %197 = arith.negf %196 : vector<2x256xf32>
    %198 = math.exp %197 : vector<2x256xf32>
    %cst_53 = arith.constant 1.000000e+00 : f32
    %199 = vector.broadcast %cst_53 : f32 to vector<2x256xf32>
    %200 = arith.addf %199, %198 : vector<2x256xf32>
    %201 = arith.divf %199, %200 : vector<2x256xf32>
    %202 = vector.extract_strided_slice %189 {offsets = [0, 512], sizes = [2, 256], strides = [1, 1]} : vector<2x1024xf32> to vector<2x256xf32>
    %203 = math.tanh %202 : vector<2x256xf32>
    %204 = vector.extract_strided_slice %189 {offsets = [0, 768], sizes = [2, 256], strides = [1, 1]} : vector<2x1024xf32> to vector<2x256xf32>
    %205 = arith.negf %204 : vector<2x256xf32>
    %206 = math.exp %205 : vector<2x256xf32>
    %cst_54 = arith.constant 1.000000e+00 : f32
    %207 = vector.broadcast %cst_54 : f32 to vector<2x256xf32>
    %208 = arith.addf %207, %206 : vector<2x256xf32>
    %209 = arith.divf %207, %208 : vector<2x256xf32>
    %210 = arith.mulf %201, %182 : vector<2x256xf32>
    %211 = arith.mulf %195, %203 : vector<2x256xf32>
    %212 = arith.addf %210, %211 : vector<2x256xf32>
    %213 = math.tanh %212 : vector<2x256xf32>
    %214 = arith.mulf %209, %213 : vector<2x256xf32>
    %c0_55 = arith.constant 0 : index
    %c7 = arith.constant 7 : index
    %c0_56 = arith.constant 0 : index
    %c0_57 = arith.constant 0 : index
    %215 = vector.load %arg1[%c0_55, %c7, %c0_56, %c0_57] : memref<1x8x2x1024xf32, #tpu.memory_space<vmem>>, vector<1x1x2x1024xf32>
    %216 = vector.shape_cast %215 : vector<1x1x2x1024xf32> to vector<2x1024xf32>
    %217 = arith.truncf %214 : vector<2x256xf32> to vector<2x256xbf16>
    %cst_58 = arith.constant dense<0.000000e+00> : vector<2x1024xf32>
    %218 = tpu.matmul %217, %2, %cst_58 {dimension_numbers = #tpu.dot_dimension_numbers<[1], [0], [0], [1], [0, 0, 1, 1], [], []>} : vector<2x256xbf16>, vector<256x1024xbf16>, vector<2x1024xf32> -> vector<2x1024xf32>
    %219 = arith.addf %216, %218 : vector<2x1024xf32>
    %220 = vector.extract_strided_slice %219 {offsets = [0, 0], sizes = [2, 256], strides = [1, 1]} : vector<2x1024xf32> to vector<2x256xf32>
    %221 = arith.negf %220 : vector<2x256xf32>
    %222 = math.exp %221 : vector<2x256xf32>
    %cst_59 = arith.constant 1.000000e+00 : f32
    %223 = vector.broadcast %cst_59 : f32 to vector<2x256xf32>
    %224 = arith.addf %223, %222 : vector<2x256xf32>
    %225 = arith.divf %223, %224 : vector<2x256xf32>
    %226 = vector.extract_strided_slice %219 {offsets = [0, 256], sizes = [2, 256], strides = [1, 1]} : vector<2x1024xf32> to vector<2x256xf32>
    %227 = arith.negf %226 : vector<2x256xf32>
    %228 = math.exp %227 : vector<2x256xf32>
    %cst_60 = arith.constant 1.000000e+00 : f32
    %229 = vector.broadcast %cst_60 : f32 to vector<2x256xf32>
    %230 = arith.addf %229, %228 : vector<2x256xf32>
    %231 = arith.divf %229, %230 : vector<2x256xf32>
    %232 = vector.extract_strided_slice %219 {offsets = [0, 512], sizes = [2, 256], strides = [1, 1]} : vector<2x1024xf32> to vector<2x256xf32>
    %233 = math.tanh %232 : vector<2x256xf32>
    %234 = vector.extract_strided_slice %219 {offsets = [0, 768], sizes = [2, 256], strides = [1, 1]} : vector<2x1024xf32> to vector<2x256xf32>
    %235 = arith.negf %234 : vector<2x256xf32>
    %236 = math.exp %235 : vector<2x256xf32>
    %cst_61 = arith.constant 1.000000e+00 : f32
    %237 = vector.broadcast %cst_61 : f32 to vector<2x256xf32>
    %238 = arith.addf %237, %236 : vector<2x256xf32>
    %239 = arith.divf %237, %238 : vector<2x256xf32>
    %240 = arith.mulf %231, %212 : vector<2x256xf32>
    %241 = arith.mulf %225, %233 : vector<2x256xf32>
    %242 = arith.addf %240, %241 : vector<2x256xf32>
    %243 = math.tanh %242 : vector<2x256xf32>
    %244 = arith.mulf %239, %243 : vector<2x256xf32>
    %245 = arith.truncf %244 : vector<2x256xf32> to vector<2x256xbf16>
    %c0_62 = arith.constant 0 : index
    %c0_63 = arith.constant 0 : index
    %c0_64 = arith.constant 0 : index
    %246 = vector.load %arg4[%c0_62, %c0_63, %c0_64] : memref<1x256x512xbf16, #tpu.memory_space<vmem>>, vector<1x256x512xbf16>
    %247 = vector.shape_cast %246 : vector<1x256x512xbf16> to vector<256x512xbf16>
    %cst_65 = arith.constant dense<0.000000e+00> : vector<2x512xf32>
    %248 = tpu.matmul %245, %247, %cst_65 {dimension_numbers = #tpu.dot_dimension_numbers<[1], [0], [0], [1], [0, 0, 1, 1], [], []>} : vector<2x256xbf16>, vector<256x512xbf16>, vector<2x512xf32> -> vector<2x512xf32>
    %249 = arith.truncf %0 : vector<2x8xf32> to vector<2x8xbf16>
    %c0_66 = arith.constant 0 : index
    %c0_67 = arith.constant 0 : index
    %c0_68 = arith.constant 0 : index
    %250 = vector.load %arg5[%c0_66, %c0_67, %c0_68] : memref<1x8x512xbf16, #tpu.memory_space<vmem>>, vector<1x8x512xbf16>
    %251 = vector.shape_cast %250 : vector<1x8x512xbf16> to vector<8x512xbf16>
    %cst_69 = arith.constant dense<0.000000e+00> : vector<2x512xf32>
    %252 = tpu.matmul %249, %251, %cst_69 {dimension_numbers = #tpu.dot_dimension_numbers<[1], [0], [0], [1], [0, 0, 1, 1], [], []>} : vector<2x8xbf16>, vector<8x512xbf16>, vector<2x512xf32> -> vector<2x512xf32>
    %253 = arith.addf %248, %252 : vector<2x512xf32>
    %c0_70 = arith.constant 0 : index
    %c0_71 = arith.constant 0 : index
    %c0_72 = arith.constant 0 : index
    %254 = vector.load %arg6[%c0_70, %c0_71, %c0_72] : memref<1x1x512xf32, #tpu.memory_space<vmem>>, vector<1x1x512xf32>
    %255 = vector.shape_cast %254 : vector<1x1x512xf32> to vector<1x512xf32>
    %256 = vector.broadcast %255 : vector<1x512xf32> to vector<2x512xf32>
    %257 = arith.addf %253, %256 : vector<2x512xf32>
    %cst_73 = arith.constant 0.000000e+00 : f32
    %258 = vector.broadcast %cst_73 : f32 to vector<2x512xf32>
    %259 = arith.maximumf %257, %258 : vector<2x512xf32>
    %260 = arith.truncf %259 : vector<2x512xf32> to vector<2x512xbf16>
    %c0_74 = arith.constant 0 : index
    %c0_75 = arith.constant 0 : index
    %c0_76 = arith.constant 0 : index
    %261 = vector.load %arg7[%c0_74, %c0_75, %c0_76] : memref<1x512x512xbf16, #tpu.memory_space<vmem>>, vector<1x512x512xbf16>
    %262 = vector.shape_cast %261 : vector<1x512x512xbf16> to vector<512x512xbf16>
    %cst_77 = arith.constant dense<0.000000e+00> : vector<2x512xf32>
    %263 = tpu.matmul %260, %262, %cst_77 {dimension_numbers = #tpu.dot_dimension_numbers<[1], [0], [0], [1], [0, 0, 1, 1], [], []>} : vector<2x512xbf16>, vector<512x512xbf16>, vector<2x512xf32> -> vector<2x512xf32>
    %c0_78 = arith.constant 0 : index
    %c0_79 = arith.constant 0 : index
    %c0_80 = arith.constant 0 : index
    %264 = vector.load %arg8[%c0_78, %c0_79, %c0_80] : memref<1x1x512xf32, #tpu.memory_space<vmem>>, vector<1x1x512xf32>
    %265 = vector.shape_cast %264 : vector<1x1x512xf32> to vector<1x512xf32>
    %266 = vector.broadcast %265 : vector<1x512xf32> to vector<2x512xf32>
    %267 = arith.addf %263, %266 : vector<2x512xf32>
    %cst_81 = arith.constant 0.000000e+00 : f32
    %268 = vector.broadcast %cst_81 : f32 to vector<2x512xf32>
    %269 = arith.maximumf %267, %268 : vector<2x512xf32>
    %270 = arith.truncf %269 : vector<2x512xf32> to vector<2x512xbf16>
    %c0_82 = arith.constant 0 : index
    %c0_83 = arith.constant 0 : index
    %c0_84 = arith.constant 0 : index
    %271 = vector.load %arg9[%c0_82, %c0_83, %c0_84] : memref<1x512x512xbf16, #tpu.memory_space<vmem>>, vector<1x512x512xbf16>
    %272 = vector.shape_cast %271 : vector<1x512x512xbf16> to vector<512x512xbf16>
    %cst_85 = arith.constant dense<0.000000e+00> : vector<2x512xf32>
    %273 = tpu.matmul %270, %272, %cst_85 {dimension_numbers = #tpu.dot_dimension_numbers<[1], [0], [0], [1], [0, 0, 1, 1], [], []>} : vector<2x512xbf16>, vector<512x512xbf16>, vector<2x512xf32> -> vector<2x512xf32>
    %c0_86 = arith.constant 0 : index
    %c0_87 = arith.constant 0 : index
    %c0_88 = arith.constant 0 : index
    %274 = vector.load %arg10[%c0_86, %c0_87, %c0_88] : memref<1x1x512xf32, #tpu.memory_space<vmem>>, vector<1x1x512xf32>
    %275 = vector.shape_cast %274 : vector<1x1x512xf32> to vector<1x512xf32>
    %276 = vector.broadcast %275 : vector<1x512xf32> to vector<2x512xf32>
    %277 = arith.addf %273, %276 : vector<2x512xf32>
    %cst_89 = arith.constant 0.000000e+00 : f32
    %278 = vector.broadcast %cst_89 : f32 to vector<2x512xf32>
    %279 = arith.maximumf %277, %278 : vector<2x512xf32>
    %280 = arith.truncf %279 : vector<2x512xf32> to vector<2x512xbf16>
    %c0_90 = arith.constant 0 : index
    %c0_91 = arith.constant 0 : index
    %c0_92 = arith.constant 0 : index
    %281 = vector.load %arg11[%c0_90, %c0_91, %c0_92] : memref<1x512x25xbf16, #tpu.memory_space<vmem>>, vector<1x512x25xbf16>
    %282 = vector.shape_cast %281 : vector<1x512x25xbf16> to vector<512x25xbf16>
    %cst_93 = arith.constant dense<0.000000e+00> : vector<2x25xf32>
    %283 = tpu.matmul %280, %282, %cst_93 {dimension_numbers = #tpu.dot_dimension_numbers<[1], [0], [0], [1], [0, 0, 1, 1], [], []>} : vector<2x512xbf16>, vector<512x25xbf16>, vector<2x25xf32> -> vector<2x25xf32>
    %c0_94 = arith.constant 0 : index
    %c0_95 = arith.constant 0 : index
    %c0_96 = arith.constant 0 : index
    %284 = vector.load %arg12[%c0_94, %c0_95, %c0_96] : memref<1x1x25xf32, #tpu.memory_space<vmem>>, vector<1x1x25xf32>
    %285 = vector.shape_cast %284 : vector<1x1x25xf32> to vector<1x25xf32>
    %286 = vector.broadcast %285 : vector<1x25xf32> to vector<2x25xf32>
    %287 = arith.addf %283, %286 : vector<2x25xf32>
    %c0_97 = arith.constant 0 : index
    %c0_98 = arith.constant 0 : index
    %c0_99 = arith.constant 0 : index
    %288 = vector.load %arg13[%c0_97, %c0_98, %c0_99] : memref<1x2x25xf32, #tpu.memory_space<vmem>>, vector<1x2x25xf32>
    %289 = vector.shape_cast %288 : vector<1x2x25xf32> to vector<2x25xf32>
    %290 = vector.shape_cast %287 : vector<2x25xf32> to vector<1x2x25xf32>
    tpu.vector_store %arg13[%c0_97, %c0_98, %c0_99], %290 {strides = array<i32>} : memref<1x2x25xf32, #tpu.memory_space<vmem>>, vector<1x2x25xf32>,
    return
  }
  func.func @transform_0(%arg0: i32) -> (i32, i32, i32, i32) {
    %c0_i32 = arith.constant 0 : i32
    %c0_i32_0 = arith.constant 0 : i32
    %c0_i32_1 = arith.constant 0 : i32
    %c0_i32_2 = arith.constant 0 : i32
    return %arg0, %c0_i32, %c0_i32_0, %c0_i32_1 : i32, i32, i32, i32
  }
  func.func @transform_1(%arg0: i32) -> (i32, i32) {
    %c0_i32 = arith.constant 0 : i32
    %c0_i32_0 = arith.constant 0 : i32
    %c0_i32_1 = arith.constant 0 : i32
    return %c0_i32, %c0_i32_0 : i32, i32
  }
  func.func @transform_2(%arg0: i32) -> (i32, i32, i32) {
    %c0_i32 = arith.constant 0 : i32
    %c0_i32_0 = arith.constant 0 : i32
    %c0_i32_1 = arith.constant 0 : i32
    return %arg0, %c0_i32, %c0_i32_0 : i32, i32, i32
  }
  func.func @transform_3(%arg0: i32) -> (i32, i32, i32) {
    %c0_i32 = arith.constant 0 : i32
    %c0_i32_0 = arith.constant 0 : i32
    %c0_i32_1 = arith.constant 0 : i32
    return %arg0, %c0_i32, %c0_i32_0 : i32, i32, i32
  }
  func.func @transform_4(%arg0: i32) -> (i32, i32, i32) {
    %c0_i32 = arith.constant 0 : i32
    %c0_i32_0 = arith.constant 0 : i32
    %c0_i32_1 = arith.constant 0 : i32
    return %arg0, %c0_i32, %c0_i32_0 : i32, i32, i32
  }
  func.func @transform_5(%arg0: i32) -> (i32, i32, i32) {
    %c0_i32 = arith.constant 0 : i32
    %c0_i32_0 = arith.constant 0 : i32
    %c0_i32_1 = arith.constant 0 : i32
    return %arg0, %c0_i32, %c0_i32_0 : i32, i32, i32
  }
  func.func @transform_6(%arg0: i32) -> (i32, i32, i32) {
    %c0_i32 = arith.constant 0 : i32
    %c0_i32_0 = arith.constant 0 : i32
    %c0_i32_1 = arith.constant 0 : i32
    return %arg0, %c0_i32, %c0_i32_0 : i32, i32, i32
  }
  func.func @transform_7(%arg0: i32) -> (i32, i32, i32) {
    %c0_i32 = arith.constant 0 : i32
    %c0_i32_0 = arith.constant 0 : i32
    %c0_i32_1 = arith.constant 0 : i32
    return %arg0, %c0_i32, %c0_i32_0 : i32, i32, i32
  }
  func.func @transform_8(%arg0: i32) -> (i32, i32, i32) {
    %c0_i32 = arith.constant 0 : i32
    %c0_i32_0 = arith.constant 0 : i32
    %c0_i32_1 = arith.constant 0 : i32
    return %arg0, %c0_i32, %c0_i32_0 : i32, i32, i32
  }
  func.func @transform_9(%arg0: i32) -> (i32, i32, i32) {
    %c0_i32 = arith.constant 0 : i32
    %c0_i32_0 = arith.constant 0 : i32
    %c0_i32_1 = arith.constant 0 : i32
    return %arg0, %c0_i32, %c0_i32_0 : i32, i32, i32
  }
  func.func @transform_10(%arg0: i32) -> (i32, i32, i32) {
    %c0_i32 = arith.constant 0 : i32
    %c0_i32_0 = arith.constant 0 : i32
    %c0_i32_1 = arith.constant 0 : i32
    return %arg0, %c0_i32, %c0_i32_0 : i32, i32, i32
  }
  func.func @transform_11(%arg0: i32) -> (i32, i32, i32) {
    %c0_i32 = arith.constant 0 : i32
    %c0_i32_0 = arith.constant 0 : i32
    %c0_i32_1 = arith.constant 0 : i32
    return %arg0, %c0_i32, %c0_i32_0 : i32, i32, i32
  }
  func.func @transform_12(%arg0: i32) -> (i32, i32, i32) {
    %c0_i32 = arith.constant 0 : i32
    %c0_i32_0 = arith.constant 0 : i32
    %c0_i32_1 = arith.constant 0 : i32
    return %arg0, %c0_i32, %c0_i32_0 : i32, i32, i32
  }
}

</mosaic_0001>

<bundles_post_ra>
// kernel: tpu_custom_call.1
= control target key start
LH: loop header
LB: loop body
LE: loop exit
PB: predicated region body
PF: predicated region fallthrough
CT: control target
= control target key end

     0   :  { %s10470_s0 = inlined_call_operand.vmem [shape: f32[2,8,2,1024], index: 0, kind: input, shape index: {}]   ;;  %s10471_s1 = inlined_call_operand.vmem [shape: f32[2,8], index: 1, kind: input, shape index: {}]   ;;  %s10472_s2 = inlined_call_operand.hbm [shape: bf16[2,256,1024], index: 2, kind: input, shape index: {}]   ;;  %s10473_s3 = inlined_call_operand.hbm [shape: bf16[2,256,512], index: 3, kind: input, shape index: {}]   ;;  %s10474_s4 = inlined_call_operand.vmem [shape: bf16[2,8,512], index: 4, kind: input, shape index: {}]   ;;  %s10475_s5 = inlined_call_operand.vmem [shape: f32[2,1,512], index: 5, kind: input, shape index: {}]   ;;  %s10476_s6 = inlined_call_operand.hbm [shape: bf16[2,512,512], index: 6, kind: input, shape index: {}]   ;;  %s10477_s7 = inlined_call_operand.vmem [shape: f32[2,1,512], index: 7, kind: input, shape index: {}]   ;;  %s10478_s8 = inlined_call_operand.hbm [shape: bf16[2,512,512], index: 8, kind: input, shape index: {}]   ;;  %s10479_s9 = inlined_call_operand.vmem [shape: f32[2,1,512], index: 9, kind: input, shape index: {}]   ;;  %s10480_s10 = inlined_call_operand.vmem [shape: bf16[2,512,25], index: 10, kind: input, shape index: {}]   ;;  %s10481_s11 = inlined_call_operand.vmem [shape: f32[2,1,25], index: 11, kind: input, shape index: {}]   ;;  %s10482_s12 = inlined_call_operand.hbm [shape: f32[2,2,25], index: 12, kind: output, shape index: {}]  }
   0x1   :  { %10767 = sst [smem:[#allocation151_spill]] %s10472_s2 }
   0x2   :  { %10768 = sst [smem:[#allocation152_spill]] %s10473_s3 }
   0x3   :  { %10769 = sst [smem:[#allocation153_spill]] %s10479_s9 }
   0x4   :  { %10770 = sst [smem:[#allocation154_spill]] %s10481_s11 }
   0x5   :  { %10771 = sst [smem:[#allocation155_spill]] %s10482_s12 }
   0x6   :  { %17 = vsyncpa [#allocation3], 0 }
   0x7   :  { %19 = vsyncpa [#allocation3 + $0x1], 0 }
   0x8   :  { %20 = vsyncpa [#allocation6], 0 }
   0x9   :  { %22 = vsyncpa [#allocation6 + $0x1], 0 }
   0xa   :  { %23 = vsyncpa [#allocation9], 0 }
   0xb   :  { %25 = vsyncpa [#allocation9 + $0x1], 0 }
   0xc   :  { %26 = vsyncpa [#allocation4], 0 }
   0xd   :  { %28 = vsyncpa [#allocation4 + $0x1], 0  ;;  %s8188_s21 = smov 0   ;;  %s8190_s22 = smov 0  }
   0xe   :  { %s8192_s23 = smov 0   ;;  %s8194_s24 = smov 0  }
   0xf LB: > { %10772 = sst [smem:[#allocation15_spill]] %s8098_s21  ;;  %s8209_s25 = sadd.s32 4294967295, %s8110_s24   ;;  %s8110_s24 = sphi %s8194_s24, %s11498_s24   ;;  %s8106_s23 = sphi %s8192_s23, %s11500_s23   ;;  %s8102_s22 = sphi %s8190_s22, %s11502_s22   ;;  %s8098_s21 = sphi %s8188_s21, %s11501_s21  }
  0x10   : > { %10773 = sst [smem:[#allocation16_spill]] %s8106_s23  ;;  %s6603_s26 = sadd.s32 4294967294, %s8110_s24  }
  0x11   : > { %10774 = sst [smem:[#allocation17_spill]] %s8110_s24  ;;  %s8213_s27 = sadd.s32 1, %s8110_s24  }
  0x12   : > { %10775 = sst [smem:[#allocation18_spill]] %s8213_s27  ;;  %s88_s28 = sadd.s32 1, %s8106_s23 }
  0x13   : > { %s85_s29 = ssub.s32 %s8110_s24, %s8213_s27  ;;  %p95_p0 = scmp.ne.s32.totalorder %s8106_s23, %s8102_s22 }
  0x14   : > { %p86_p1 = scmp.eq.s32.totalorder %s85_s29, 0  ;;  %p96_p2 = scmp.eq.s32.totalorder %s8110_s24, 0 }
  0x15   : > { %p101_p3 = scmp.ne.s32.totalorder %s8102_s22, %s8098_s21  ;;  %p102_p4 = scmp.eq.s32.totalorder %s8209_s25, 0 }
  0x16   : > { %s8225_s30 = scalar_select %p86_p1, %s8106_s23, %s88_s28  }
  0x17   : > { %p97_p5 = por %p96_p2, %p95_p0  ;;  %p8227_p6 = por %p102_p4, %p101_p3 }
  0x18   : > { %10776 = sst [smem:[#allocation19_spill]] %s8225_s30  ;;  %p359_p7 = scmp.eq.s32.totalorder %s8209_s25, 1 }
  0x19   : > { %s10777_s13 = scalar_select %p8227_p6, 1, 0 }
  0x1a   : > { %p365_p8 = scmp.eq.s32.totalorder %s6603_s26, 1  ;;  %p7242_p10 = scmp.lt.s32.totalorder %s8110_s24, 2 }
  0x1b   : > { %p8234_p11 = por %p359_p7, %p95_p0  ;;  %s8243_s16 = sand.u32 1, %s8106_s23  }
  0x1c   : > { %p8238_p12 = por %p365_p8, %p101_p3  ;;  %p8245_p13 = pnand %p7242_p10, %p97_p5 }
  0x1d   : > { %s10778_s14 = scalar_select %p8234_p11, 1, 0 }
  0x1e   : > { %s10780_s15 = scalar_select %p8238_p12, 1, 0 }
  0x1f   : > { %10779 = sst [smem:[#allocation20_spill]] %s10778_s14  ;;  %s417_s18 = sand.u32 1, %s8110_s24  }
  0x20   : > { %10781 = sst [smem:[#allocation21_spill]] %s10780_s15  ;;  %s6609_s19 = sshll.u32 %s8243_s16, 9 }
  0x21   : > { %s7165_s20 = sshll.u32 %s8110_s24, 13  ;;  %s10783_s3 = sld [smem:[#allocation152_spill]] }
  0x22   : > { %s421_s30 = scalar_lea.vmem [#allocation5], %s6609_s19  ;;  %s8260_s27 = scalar_lea.sflag [#allocation6], %s417_s18 }
  0x23   : > { %s428_s23 = sshll.u32 %s421_s30, 4  ;;  %p8266_p2 = pneg %p8245_p13  ;;  %s8257_s23 = int_to_ptr.vmem [resolvable:$true] %s428_s23 }
  0x27   : > { %s8255_s29 = scalar_lea.hbm %s10783_s3, %s7165_s20  ;;  %s7931_s30 = scalar_lea.hbm %s10783_s3, 16384 }
  0x28   : > { %s7926_s15 = scalar_lea.hbm %s8255_s29, 8192  ;;  %p7932_p5 = scmp.lt.s32.totalorder %s8255_s29, %s10783_s3 }
  0x29   : > { %p7927_p1 = scmp.ne.s32.totalorder %s8255_s29, %s7926_s15  ;;  %p7933_p7 = scmp.lt.s32.totalorder %s7931_s30, %s7926_s15 }
  0x2b   : > { %p7929_p3 = pnand %p8266_p2, %p7927_p1  ;;  %p7934_p8 = por %p7933_p7, %p7932_p5 }
  0x2d   : > { %p7930_p4 = pneg %p7929_p3 }
  0x2f   : > { %p7935_p10 = pnand %p7934_p8, %p7930_p4 }
  0x31   : > { %7938 = shalt.err (!%p7935_p10)
}
  0x32   : > { %s7939_s18 = scalar_lea.vmem %s8257_s23, 8192  ;;  %s8112_s12 = smov [#allocation5]  }
  0x33   : > { %p7940_p9 = scmp.ne.s32.totalorder %s8257_s23, %s7939_s18  ;;  %s7944_s20 = sshll.u32 %s8112_s12, 4  ;;  %s7945_s20 = int_to_ptr.vmem [resolvable:$false] %s7944_s20 }
  0x34   : > { %s7946_s26 = scalar_lea.vmem %s7945_s20, 16384  ;;  %p7947_p0 = scmp.lt.s32.totalorder %s8257_s23, %s7945_s20 }
  0x35   : > { %p7942_p1 = pnand %p7940_p9, %p8266_p2  ;;  %p7948_p12 = scmp.lt.s32.totalorder %s7946_s26, %s7939_s18 }
  0x37   : > { %p7943_p3 = pneg %p7942_p1  ;;  %p7949_p11 = por %p7948_p12, %p7947_p0 }
  0x39   : > { %p7950_p6 = pnand %p7949_p11, %p7943_p3 }
  0x3b   : > { %7953 = shalt.err (!%p7950_p6)
}
  0x3c   : > { %s10491_s15 = smov 256   ;;  %s10493_s30 = smov 16  }
  0x3d   : > { %7231 = dma.hbm_to_vmem [thread:$0]  (!%p8245_p13), %s8255_s29, 8192, %s8257_s23, %s8260_s27, %s10491_s15, %s10491_s15, %s10493_s30  }
  0x3e   : > { %p521_p9 = scmp.lt.s32.totalorder %s8110_s24, 3  ;;  %s8294_s12 = sshll.u32 %s8243_s16, 10 }
  0x3f   : > { %s8297_s19 = sshll.u32 %s8110_s24, 14  ;;  %p10785_p6 = scmp.ge.s32.totalorder %s8110_s24, 1 }
  0x40   : > { %s10787_s2 = sld [smem:[#allocation151_spill]]  ;;  %s400_s23 = scalar_lea.vmem [#allocation2], %s8294_s12 }
  0x41   : > { %p8301_p11 = pnand %p10785_p6, %p521_p9  ;;  %s407_s29 = sshll.u32 %s400_s23, 4  ;;  %s8312_s29 = int_to_ptr.vmem [resolvable:$true] %s407_s29 }
  0x43   : > { %s10786_s28 = scalar_select %p8301_p11, 1, 0 }
  0x46   : > { %s8309_s26 = scalar_lea.hbm %s10787_s2, %s8297_s19  ;;  %s7959_s14 = scalar_lea.hbm %s10787_s2, 32768 }
  0x47   : > { %s7954_s30 = scalar_lea.hbm %s8309_s26, 16384  ;;  %p7960_p5 = scmp.lt.s32.totalorder %s8309_s26, %s10787_s2 }
  0x48   : > { %p7955_p12 = scmp.ne.s32.totalorder %s8309_s26, %s7954_s30  ;;  %p7961_p7 = scmp.lt.s32.totalorder %s7959_s14, %s7954_s30 }
  0x4a   : > { %p7957_p0 = pnand %p7955_p12, %p8266_p2  ;;  %p7962_p8 = por %p7961_p7, %p7960_p5 }
  0x4c   : > { %p7958_p4 = pneg %p7957_p0 }
  0x4e   : > { %p7963_p10 = pnand %p7962_p8, %p7958_p4 }
  0x50   : > { %7966 = shalt.err (!%p7963_p10)
}
  0x51   : > { %s7967_s23 = scalar_lea.vmem %s8312_s29, 16384  ;;  %s8115_s15 = smov [#allocation2]  }
  0x52   : > { %p7968_p1 = scmp.ne.s32.totalorder %s8312_s29, %s7967_s23  ;;  %s7972_s3 = sshll.u32 %s8115_s15, 4  ;;  %s7973_s3 = int_to_ptr.vmem [resolvable:$false] %s7972_s3 }
  0x53   : > { %s7974_s24 = scalar_lea.vmem %s7973_s3, 32768  ;;  %p7975_p6 = scmp.lt.s32.totalorder %s8312_s29, %s7973_s3 }
  0x54   : > { %p7970_p3 = pnand %p7968_p1, %p8266_p2  ;;  %p7976_p12 = scmp.lt.s32.totalorder %s7974_s24, %s7967_s23 }
  0x56   : > { %p7971_p9 = pneg %p7970_p3  ;;  %p7977_p0 = por %p7976_p12, %p7975_p6 }
  0x58   : > { %p7978_p11 = pnand %p7977_p0, %p7971_p9 }
  0x5a   : > { %7981 = shalt.err (!%p7978_p11)
}
  0x5b   : > { %s8116_s14 = smov 512   ;;  %s8117_s30 = smov 32  }
  0x5c   : > { %s10788_s18 = scalar_lea.sflag [#allocation3], %s8243_s16  ;;  %s8341_s3 = scalar_lea.hbm %s10476_s6, %s8297_s19 }
  0x5d   : > { %7228 = dma.hbm_to_vmem [thread:$0]  (!%p8245_p13), %s8309_s26, 16384, %s8312_s29, %s10788_s18, %s8116_s14, %s8116_s14, %s8117_s30  }
  0x5e   : > { %s457_s23 = scalar_lea.vmem [#allocation7], %s8294_s12  ;;  %s7982_s2 = scalar_lea.hbm %s8341_s3, 16384 }
  0x5f   : > { %s464_s24 = sshll.u32 %s457_s23, 4  ;;  %p7983_p11 = scmp.ne.s32.totalorder %s8341_s3, %s7982_s2  ;;  %s465_s24 = int_to_ptr.vmem [resolvable:$true] %s464_s24 }
  0x60   : > { %s7987_s26 = scalar_lea.hbm %s10476_s6, 32768  ;;  %p7988_p7 = scmp.lt.s32.totalorder %s8341_s3, %s10476_s6 }
  0x61   : > { %p7985_p4 = pnand %p7983_p11, %p8266_p2  ;;  %p7989_p8 = scmp.lt.s32.totalorder %s7987_s26, %s7982_s2 }
  0x63   : > { %p7986_p5 = pneg %p7985_p4  ;;  %p7990_p10 = por %p7989_p8, %p7988_p7 }
  0x65   : > { %p7991_p1 = pnand %p7990_p10, %p7986_p5 }
  0x67   : > { %7994 = shalt.err (!%p7991_p1)
}
  0x68   : > { %s7995_s30 = scalar_lea.vmem %s465_s24, 16384  ;;  %s8118_s18 = smov [#allocation7]  }
  0x69   : > { %p7996_p3 = scmp.ne.s32.totalorder %s465_s24, %s7995_s30  ;;  %s8000_s15 = sshll.u32 %s8118_s18, 4  ;;  %s8001_s15 = int_to_ptr.vmem [resolvable:$false] %s8000_s15 }
  0x6a   : > { %s8002_s20 = scalar_lea.vmem %s8001_s15, 32768  ;;  %p8003_p12 = scmp.lt.s32.totalorder %s465_s24, %s8001_s15 }
  0x6b   : > { %p7998_p9 = pnand %p7996_p3, %p8266_p2  ;;  %p8004_p0 = scmp.lt.s32.totalorder %s8002_s20, %s7995_s30 }
  0x6d   : > { %p7999_p6 = pneg %p7998_p9  ;;  %p8005_p11 = por %p8004_p0, %p8003_p12 }
  0x6f   : > { %p8006_p4 = pnand %p8005_p11, %p7999_p6 }
  0x71   : > { %8009 = shalt.err (!%p8006_p4)
}
  0x72   : > { %s10789_s2 = smov 16   ;;  %s10790_s9 = smov 256  }
  0x73   : > { %7234 = dma.hbm_to_vmem [thread:$0]  (!%p8245_p13), %s8341_s3, 16384, %s465_s24, %s8260_s27, %s10790_s9, %s10790_s9, %s10789_s2  }
  0x74   : > { %s8368_s26 = scalar_lea.hbm %s10478_s8, %s8297_s19  ;;  %s485_s29 = scalar_lea.vmem [#allocation8], %s8294_s12 }
  0x75   : > { %s492_s14 = sshll.u32 %s485_s29, 4  ;;  %s482_s30 = scalar_lea.sflag [#allocation9], %s8243_s16  ;;  %s8371_s14 = int_to_ptr.vmem [resolvable:$true] %s492_s14 }
  0x76   : > { %s8010_s18 = scalar_lea.hbm %s8368_s26, 16384  ;;  %s8015_s3 = scalar_lea.hbm %s10478_s8, 32768 }
  0x77   : > { %p8011_p5 = scmp.ne.s32.totalorder %s8368_s26, %s8010_s18  ;;  %p8016_p10 = scmp.lt.s32.totalorder %s8368_s26, %s10478_s8 }
  0x78   : > { %p8017_p1 = scmp.lt.s32.totalorder %s8015_s3, %s8010_s18 }
  0x79   : > { %p8013_p7 = pnand %p8011_p5, %p8266_p2 }
  0x7a   : > { %p8018_p3 = por %p8017_p1, %p8016_p10 }
  0x7b   : > { %p8014_p8 = pneg %p8013_p7 }
  0x7d   : > { %p8019_p9 = pnand %p8018_p3, %p8014_p8 }
  0x7f   : > { %8022 = shalt.err (!%p8019_p9)
}
  0x80   : > { %s8023_s16 = scalar_lea.vmem %s8371_s14, 16384  ;;  %s8119_s12 = smov [#allocation8]  }
  0x81   : > { %p8024_p6 = scmp.ne.s32.totalorder %s8371_s14, %s8023_s16  ;;  %s8028_s20 = sshll.u32 %s8119_s12, 4  ;;  %s8029_s20 = int_to_ptr.vmem [resolvable:$false] %s8028_s20 }
  0x82   : > { %s8030_s11 = scalar_lea.vmem %s8029_s20, 32768  ;;  %p8031_p11 = scmp.lt.s32.totalorder %s8371_s14, %s8029_s20 }
  0x83   : > { %p8026_p12 = pnand %p8024_p6, %p8266_p2  ;;  %p8032_p4 = scmp.lt.s32.totalorder %s8030_s11, %s8023_s16 }
  0x85   : > { %p8027_p0 = pneg %p8026_p12  ;;  %p8033_p5 = por %p8032_p4, %p8031_p11 }
  0x87   : > { %p8034_p7 = pnand %p8033_p5, %p8027_p0 }
  0x89   : > { %8037 = shalt.err (!%p8034_p7)
}
  0x8a   : > { %7237 = dma.hbm_to_vmem [thread:$0]  (!%p8245_p13), %s8368_s26, 16384, %s8371_s14, %s482_s30, %s10790_s9, %s10790_s9, %s10789_s2  }
  0x8b   : > { %p10791_p2 = scmp.ne.s32.totalorder %s10786_s28, 0 }
  0x8d   : > { %525 = sbr.rel (%p10791_p2) target bundleno = 3654 (0xe46), region = 68 }
  0x92   : > { %s8400_s21 = sand.u32 1, %s8102_s22   ;;  %p10792_p8 = scmp.ne.s32.totalorder %s10777_s13, 0 }
  0x93   : > { %s6619_s23 = sshll.u32 %s8400_s21, 10  ;;  %s528_s29 = scalar_lea.sflag [#allocation3], %s8400_s21 }
  0x94   : > { %s8404_s18 = scalar_lea.vmem [#allocation2], %s6619_s23 }
  0x95   : > { %8081 = dma.done.wait (%p10792_p8), %s528_s29, 16384  }
  0x96   : > { %8083 = vsyncadd (%p10792_p8), %s528_s29, 4294950912  ;;  %s536_s17 = sand.u32 1, %s8209_s25   ;;  %s6620_s28 = sshll.u32 %s8400_s21, 9 }
  0x97   : > { %s537_s2 = scalar_lea.sflag [#allocation6], %s536_s17  ;;  %s8412_s9 = scalar_lea.vmem [#allocation5], %s6620_s28 }
  0x98   : > { %8085 = dma.done.wait (%p10792_p8), %s537_s2, 24576  }
  0x99   : > { %8087 = vsyncadd (%p10792_p8), %s537_s2, 4294942720  ;;  %s8418_s26 = scalar_lea.vmem [#allocation7], %s6619_s23  ;;  %s555_s14 = scalar_lea.sflag [#allocation9], %s8400_s21 }
  0x9a   : > { %s8421_s30 = scalar_lea.vmem [#allocation8], %s6619_s23 }
  0x9b   : > { %8089 = dma.done.wait (%p10792_p8), %s555_s14, 16384  }
  0x9c   : > { %8091 = vsyncadd (%p10792_p8), %s555_s14, 4294950912  ;;  %v10498_v0 = vmov 0   ;;  %v732_v1 = vld [vmem:[%s8404_s18 + $0x1c0] sm:$0xff]  ;;  %v733_v3 = vld [vmem:[%s8404_s18 + $0x1c8] sm:$0xff]  ;;  %p644_p13 = scmp.lt.s32.totalorder %s8209_s25, 1  ;;  %vm3572_vm0 = vcmask 1043456  }
  0x9d   : > { %1478 = vmatprep.mubr.bf16.mxu0 %v10498_v0  ;;  %1519 = vmatprep.mubr.bf16.mxu1 %v10498_v0  ;;  %v736_v2 = vld [vmem:[%s8404_s18 + $0x1e0] sm:$0xff]  ;;  %v737_v5 = vld [vmem:[%s8404_s18 + $0x1e8] sm:$0xff]  ;;  %vm3568_vm1 = vcmask 64512   ;;  %s11488_s16 = sld [smem:[#allocation153_spill]]  ;;  %s7161_s17 = sshll.u32 %s8209_s25, 5  ;;  %vm6370_vm2 = vcmask 197632  }
  0x9e   : > { %v8432_v4 = vcombine.high %v732_v1, %v736_v2  ;;  %v8435_v6 = vcombine.low %v732_v1, %v736_v2  ;;  %v724_v7 = vld [vmem:[%s8404_s18 + $0x180] sm:$0xff]  ;;  %v8439_v9 = vcombine.high %v733_v3, %v737_v5  ;;  %v8441_v10 = vcombine.low %v733_v3, %v737_v5  ;;  %v725_v12 = vld [vmem:[%s8404_s18 + $0x188] sm:$0xff]  ;;  %s8963_s13 = scalar_select %p644_p13, %s8209_s25, 1 }
  0x9f   : > { %v728_v8 = vld [vmem:[%s8404_s18 + $0x1a0] sm:$0xff]  ;;  %v729_v13 = vld [vmem:[%s8404_s18 + $0x1a8] sm:$0xff]  ;;  %s11489_s23 = sld [smem:[#allocation154_spill]]  ;;  %s8122_s25 = smov [#allocation10]  }
  0xa0   : > { %10793 = vst [vmem:[#allocation22_spill] sm:$0xff] %v8432_v4  ;;  %10794 = vst [vmem:[#allocation23_spill] sm:$0xff] %v8435_v6  ;;  %v8443_v11 = vcombine.high %v724_v7, %v728_v8  ;;  %v716_v14 = vld [vmem:[%s8404_s18 + $0x140] sm:$0xff]  ;;  %1446 = vmatprep.subr.bf16.mxu0 %v8432_v4  ;;  %v8449_v15 = vcombine.high %v725_v12, %v729_v13  ;;  %v717_v17 = vld [vmem:[%s8404_s18 + $0x148] sm:$0xff]  ;;  %1487 = vmatprep.subr.bf16.mxu1 %v8439_v9  ;;  %s7170_s15 = sshll.u32 %s8963_s13, 8  ;;  %s7168_s19 = sshll.u32 %s8963_s13, 7 }
  0xa1   : > { %10795 = vst [vmem:[#allocation24_spill] sm:$0xff] %v8439_v9  ;;  %10796 = vst [vmem:[#allocation25_spill] sm:$0xff] %v8441_v10  ;;  %v720_v16 = vld [vmem:[%s8404_s18 + $0x160] sm:$0xff]  ;;  %v721_v18 = vld [vmem:[%s8404_s18 + $0x168] sm:$0xff]  ;;  %1447 = vmatpush1.bf16.msra.mxu0 %v8435_v6  ;;  %v8456_v19 = vcombine.low %v724_v7, %v728_v8  ;;  %1488 = vmatpush1.bf16.msra.mxu1 %v8441_v10  ;;  %v8460_v20 = vcombine.low %v725_v12, %v729_v13  ;;  %s8973_s24 = scalar_lea.vmem %s10480_s10, %s7170_s15  ;;  %s9034_s20 = scalar_lea.vmem %s10470_s0, %s7168_s19 }
  0xa2   : > { %10797 = vst [vmem:[#allocation26_spill] sm:$0xff] %v8443_v11  ;;  %10798 = vst [vmem:[#allocation27_spill] sm:$0xff] %v8449_v15  ;;  %1448 = vmatprep.subr.bf16.mxu0 %v8443_v11  ;;  %v8462_v21 = vcombine.high %v716_v14, %v720_v16  ;;  %1489 = vmatprep.subr.bf16.mxu1 %v8449_v15  ;;  %v8465_v22 = vcombine.high %v717_v17, %v721_v18  ;;  %v708_v23 = vld [vmem:[%s8404_s18 + $0x100] sm:$0xff]  ;;  %v709_v25 = vld [vmem:[%s8404_s18 + $0x108] sm:$0xff]  ;;  %s7169_s11 = sshll.u32 %s8963_s13, 4  ;;  %s10138_s2 = sshll.u32 %s8963_s13, 2 }
  0xa3   : > { %10799 = vst [vmem:[#allocation28_spill] sm:$0xff] %v8456_v19  ;;  %10800 = vst [vmem:[#allocation29_spill] sm:$0xff] %v8460_v20  ;;  %v712_v24 = vld [vmem:[%s8404_s18 + $0x120] sm:$0xff]  ;;  %v713_v26 = vld [vmem:[%s8404_s18 + $0x128] sm:$0xff]  ;;  %v8472_v27 = vcombine.low %v716_v14, %v720_v16  ;;  %v8476_v28 = vcombine.low %v717_v17, %v721_v18  ;;  %s657_s15 = scalar_lea.vmem %s10475_s5, %s10138_s2  ;;  %s661_s3 = scalar_lea.vmem %s10477_s7, %s10138_s2 }
  0xa4   : > { %10801 = vst [vmem:[#allocation30_spill] sm:$0xff] %v8462_v21  ;;  %10802 = vst [vmem:[#allocation31_spill] sm:$0xff] %v8465_v22  ;;  %v8478_v29 = vcombine.high %v708_v23, %v712_v24  ;;  %v8481_v30 = vcombine.high %v709_v25, %v713_v26  ;;  %v700_v31 = vld [vmem:[%s8404_s18 + $0xc0] sm:$0xff]  ;;  %v701_v33 = vld [vmem:[%s8404_s18 + $0xc8] sm:$0xff]  ;;  %v8488_v35 = vcombine.low %v708_v23, %v712_v24  ;;  %s665_s12 = scalar_lea.vmem %s11488_s16, %s10138_s2 }
  0xa5   : > { %1449 = vmatpush1.bf16.msra.mxu0 %v8456_v19  ;;  %10803 = vst [vmem:[#allocation32_spill] sm:$0xff] %v8472_v27  ;;  %1490 = vmatpush1.bf16.msra.mxu1 %v8460_v20  ;;  %10804 = vst [vmem:[#allocation33_spill] sm:$0xff] %v8476_v28  ;;  %v704_v32 = vld [vmem:[%s8404_s18 + $0xe0] sm:$0xff]  ;;  %v705_v34 = vld [vmem:[%s8404_s18 + $0xe8] sm:$0xff]  ;;  %v8492_v36 = vcombine.low %v709_v25, %v713_v26  ;;  %s673_s29 = scalar_lea.vmem %s11489_s23, %s8963_s13  ;;  %s6373_s13 = scalar_lea.sflag [#allocation4], %s8400_s21 }
  0xa6   : > { %1450 = vmatprep.subr.bf16.mxu0 %v8462_v21  ;;  %10805 = vst [vmem:[#allocation34_spill] sm:$0xff] %v8478_v29  ;;  %1491 = vmatprep.subr.bf16.mxu1 %v8465_v22  ;;  %10806 = vst [vmem:[#allocation35_spill] sm:$0xff] %v8481_v30  ;;  %v8494_v37 = vcombine.high %v700_v31, %v704_v32  ;;  %v8497_v38 = vcombine.high %v701_v33, %v705_v34  ;;  %v692_v39 = vld [vmem:[%s8404_s18 + $0x80] sm:$0xff]  ;;  %v693_v41 = vld [vmem:[%s8404_s18 + $0x88] sm:$0xff] }
  0xa7   : > { %10807 = vst [vmem:[#allocation36_spill] sm:$0xff] %v8488_v35  ;;  %10808 = vst [vmem:[#allocation37_spill] sm:$0xff] %v8492_v36  ;;  %v696_v40 = vld [vmem:[%s8404_s18 + $0xa0] sm:$0xff]  ;;  %v697_v42 = vld [vmem:[%s8404_s18 + $0xa8] sm:$0xff]  ;;  %v8504_v43 = vcombine.low %v700_v31, %v704_v32  ;;  %v8508_v44 = vcombine.low %v701_v33, %v705_v34 }
  0xa8   : > { %10809 = vst [vmem:[#allocation38_spill] sm:$0xff] %v8494_v37  ;;  %10810 = vst [vmem:[#allocation39_spill] sm:$0xff] %v8497_v38  ;;  %v8510_v45 = vcombine.high %v692_v39, %v696_v40  ;;  %v8513_v46 = vcombine.high %v693_v41, %v697_v42  ;;  %v684_v47 = vld [vmem:[%s8404_s18 + $0x40] sm:$0xff]  ;;  %v685_v49 = vld [vmem:[%s8404_s18 + $0x48] sm:$0xff]  ;;  %v8520_v51 = vcombine.low %v692_v39, %v696_v40 }
  0xa9   : > { %1451 = vmatpush1.bf16.msra.mxu0 %v8472_v27  ;;  %1492 = vmatpush1.bf16.msra.mxu1 %v8476_v28  ;;  %10811 = vst [vmem:[#allocation40_spill] sm:$0xff] %v8504_v43  ;;  %10812 = vst [vmem:[#allocation41_spill] sm:$0xff] %v8508_v44  ;;  %v688_v48 = vld [vmem:[%s8404_s18 + $0x60] sm:$0xff]  ;;  %v689_v50 = vld [vmem:[%s8404_s18 + $0x68] sm:$0xff]  ;;  %v8524_v52 = vcombine.low %v693_v41, %v697_v42 }
  0xaa   : > { %1452 = vmatprep.subr.bf16.mxu0 %v8478_v29  ;;  %1493 = vmatprep.subr.bf16.mxu1 %v8481_v30  ;;  %10813 = vst [vmem:[#allocation42_spill] sm:$0xff] %v8510_v45  ;;  %10814 = vst [vmem:[#allocation43_spill] sm:$0xff] %v8513_v46  ;;  %v8526_v53 = vcombine.high %v684_v47, %v688_v48  ;;  %v8529_v54 = vcombine.high %v685_v49, %v689_v50  ;;  %v676_v55 = vld [vmem:[%s8404_s18] sm:$0xff]  ;;  %v677_v57 = vld [vmem:[%s8404_s18 + $0x8] sm:$0xff] }
  0xab   : > { %10815 = vst [vmem:[#allocation44_spill] sm:$0xff] %v8520_v51  ;;  %10816 = vst [vmem:[#allocation45_spill] sm:$0xff] %v8524_v52  ;;  %v680_v56 = vld [vmem:[%s8404_s18 + $0x20] sm:$0xff]  ;;  %v681_v58 = vld [vmem:[%s8404_s18 + $0x28] sm:$0xff]  ;;  %v8536_v59 = vcombine.low %v684_v47, %v688_v48  ;;  %v8540_v60 = vcombine.low %v685_v49, %v689_v50 }
  0xac   : > { %10817 = vst [vmem:[#allocation46_spill] sm:$0xff] %v8526_v53  ;;  %10818 = vst [vmem:[#allocation47_spill] sm:$0xff] %v8529_v54  ;;  %v8542_v61 = vcombine.high %v676_v55, %v680_v56  ;;  %v8545_v62 = vcombine.high %v677_v57, %v681_v58  ;;  %v796_v63 = vld [vmem:[%s8404_s18 + $0x3c0] sm:$0xff]  ;;  %v797_v2 = vld [vmem:[%s8404_s18 + $0x3c8] sm:$0xff]  ;;  %v8552_v5 = vcombine.low %v676_v55, %v680_v56 }
  0xad   : > { %1453 = vmatpush1.bf16.msra.mxu0 %v8488_v35  ;;  %1494 = vmatpush1.bf16.msra.mxu1 %v8492_v36  ;;  %10819 = vst [vmem:[#allocation48_spill] sm:$0xff] %v8536_v59  ;;  %10820 = vst [vmem:[#allocation49_spill] sm:$0xff] %v8540_v60  ;;  %v800_v1 = vld [vmem:[%s8404_s18 + $0x3e0] sm:$0xff]  ;;  %v801_v3 = vld [vmem:[%s8404_s18 + $0x3e8] sm:$0xff]  ;;  %v8556_v7 = vcombine.low %v677_v57, %v681_v58 }
  0xae   : > { %1454 = vmatprep.subr.bf16.mxu0 %v8494_v37  ;;  %1495 = vmatprep.subr.bf16.mxu1 %v8497_v38  ;;  %10821 = vst [vmem:[#allocation50_spill] sm:$0xff] %v8542_v61  ;;  %10822 = vst [vmem:[#allocation51_spill] sm:$0xff] %v8545_v62  ;;  %v8558_v8 = vcombine.high %v796_v63, %v800_v1  ;;  %v8561_v12 = vcombine.high %v797_v2, %v801_v3  ;;  %v788_v13 = vld [vmem:[%s8404_s18 + $0x380] sm:$0xff]  ;;  %v789_v16 = vld [vmem:[%s8404_s18 + $0x388] sm:$0xff] }
  0xaf   : > { %10823 = vst [vmem:[#allocation52_spill] sm:$0xff] %v8552_v5  ;;  %10824 = vst [vmem:[#allocation53_spill] sm:$0xff] %v8556_v7  ;;  %v792_v14 = vld [vmem:[%s8404_s18 + $0x3a0] sm:$0xff]  ;;  %v793_v17 = vld [vmem:[%s8404_s18 + $0x3a8] sm:$0xff]  ;;  %v8568_v18 = vcombine.low %v796_v63, %v800_v1  ;;  %v8572_v23 = vcombine.low %v797_v2, %v801_v3 }
  0xb0   : > { %10825 = vst [vmem:[#allocation54_spill] sm:$0xff] %v8558_v8  ;;  %10826 = vst [vmem:[#allocation55_spill] sm:$0xff] %v8561_v12  ;;  %v8574_v24 = vcombine.high %v788_v13, %v792_v14  ;;  %v8577_v25 = vcombine.high %v789_v16, %v793_v17  ;;  %v780_v26 = vld [vmem:[%s8404_s18 + $0x340] sm:$0xff]  ;;  %v781_v32 = vld [vmem:[%s8404_s18 + $0x348] sm:$0xff]  ;;  %v8584_v34 = vcombine.low %v788_v13, %v792_v14 }
  0xb1   : > { %1455 = vmatpush1.bf16.msra.mxu0 %v8504_v43  ;;  %1496 = vmatpush1.bf16.msra.mxu1 %v8508_v44  ;;  %10827 = vst [vmem:[#allocation56_spill] sm:$0xff] %v8568_v18  ;;  %10828 = vst [vmem:[#allocation57_spill] sm:$0xff] %v8572_v23  ;;  %v784_v31 = vld [vmem:[%s8404_s18 + $0x360] sm:$0xff]  ;;  %v785_v33 = vld [vmem:[%s8404_s18 + $0x368] sm:$0xff]  ;;  %v8588_v39 = vcombine.low %v789_v16, %v793_v17 }
  0xb2   : > { %1456 = vmatprep.subr.bf16.mxu0 %v8510_v45  ;;  %1497 = vmatprep.subr.bf16.mxu1 %v8513_v46  ;;  %10829 = vst [vmem:[#allocation58_spill] sm:$0xff] %v8574_v24  ;;  %10830 = vst [vmem:[#allocation59_spill] sm:$0xff] %v8577_v25  ;;  %v8590_v40 = vcombine.high %v780_v26, %v784_v31  ;;  %v8593_v41 = vcombine.high %v781_v32, %v785_v33  ;;  %v772_v42 = vld [vmem:[%s8404_s18 + $0x300] sm:$0xff]  ;;  %v773_v48 = vld [vmem:[%s8404_s18 + $0x308] sm:$0xff] }
  0xb3   : > { %10831 = vst [vmem:[#allocation60_spill] sm:$0xff] %v8584_v34  ;;  %10832 = vst [vmem:[#allocation61_spill] sm:$0xff] %v8588_v39  ;;  %v776_v47 = vld [vmem:[%s8404_s18 + $0x320] sm:$0xff]  ;;  %v777_v49 = vld [vmem:[%s8404_s18 + $0x328] sm:$0xff]  ;;  %v8600_v50 = vcombine.low %v780_v26, %v784_v31  ;;  %v8604_v55 = vcombine.low %v781_v32, %v785_v33 }
  0xb4   : > { %10833 = vst [vmem:[#allocation62_spill] sm:$0xff] %v8590_v40  ;;  %10834 = vst [vmem:[#allocation63_spill] sm:$0xff] %v8593_v41  ;;  %v8606_v56 = vcombine.high %v772_v42, %v776_v47  ;;  %v764_v57 = vld [vmem:[%s8404_s18 + $0x2c0] sm:$0xff]  ;;  %v8611_v63 = vcombine.high %v773_v48, %v777_v49  ;;  %v765_v1 = vld [vmem:[%s8404_s18 + $0x2c8] sm:$0xff]  ;;  %v8616_v3 = vcombine.low %v772_v42, %v776_v47 }
  0xb5   : > { %1457 = vmatpush1.bf16.msra.mxu0 %v8520_v51  ;;  %1498 = vmatpush1.bf16.msra.mxu1 %v8524_v52  ;;  %10835 = vst [vmem:[#allocation64_spill] sm:$0xff] %v8600_v50  ;;  %10836 = vst [vmem:[#allocation65_spill] sm:$0xff] %v8604_v55  ;;  %v768_v58 = vld [vmem:[%s8404_s18 + $0x2e0] sm:$0xff]  ;;  %v769_v2 = vld [vmem:[%s8404_s18 + $0x2e8] sm:$0xff]  ;;  %v8622_v16 = vcombine.low %v773_v48, %v777_v49 }
  0xb6   : > { %1458 = vmatprep.subr.bf16.mxu0 %v8526_v53  ;;  %1499 = vmatprep.subr.bf16.mxu1 %v8529_v54  ;;  %10837 = vst [vmem:[#allocation66_spill] sm:$0xff] %v8606_v56  ;;  %10838 = vst [vmem:[#allocation67_spill] sm:$0xff] %v8611_v63  ;;  %v756_v13 = vld [vmem:[%s8404_s18 + $0x280] sm:$0xff]  ;;  %v8624_v17 = vcombine.high %v764_v57, %v768_v58  ;;  %v757_v26 = vld [vmem:[%s8404_s18 + $0x288] sm:$0xff]  ;;  %v8629_v32 = vcombine.high %v765_v1, %v769_v2 }
  0xb7   : > { %10839 = vst [vmem:[#allocation68_spill] sm:$0xff] %v8616_v3  ;;  %v760_v14 = vld [vmem:[%s8404_s18 + $0x2a0] sm:$0xff]  ;;  %10840 = vst [vmem:[#allocation69_spill] sm:$0xff] %v8622_v16  ;;  %v761_v31 = vld [vmem:[%s8404_s18 + $0x2a8] sm:$0xff]  ;;  %v8632_v33 = vcombine.low %v764_v57, %v768_v58  ;;  %v8638_v48 = vcombine.low %v765_v1, %v769_v2 }
  0xb8   : > { %10841 = vst [vmem:[#allocation70_spill] sm:$0xff] %v8624_v17  ;;  %10842 = vst [vmem:[#allocation71_spill] sm:$0xff] %v8629_v32  ;;  %v748_v42 = vld [vmem:[%s8404_s18 + $0x240] sm:$0xff]  ;;  %v8640_v49 = vcombine.high %v756_v13, %v760_v14  ;;  %v749_v0 = vld [vmem:[%s8404_s18 + $0x248] sm:$0xff]  ;;  %v8648_v57 = vcombine.low %v756_v13, %v760_v14  ;;  %v8654_v1 = vcombine.low %v757_v26, %v761_v31 }
  0xb9   : > { %1459 = vmatpush1.bf16.msra.mxu0 %v8536_v59  ;;  %1500 = vmatpush1.bf16.msra.mxu1 %v8540_v60  ;;  %10843 = vst [vmem:[#allocation72_spill] sm:$0xff] %v8632_v33  ;;  %v752_v47 = vld [vmem:[%s8404_s18 + $0x260] sm:$0xff]  ;;  %10844 = vst [vmem:[#allocation73_spill] sm:$0xff] %v8638_v48  ;;  %v734_v14 = vld [vmem:[%s8404_s18 + $0x1d0] sm:$0xff] }
  0xba   : > { %1460 = vmatprep.subr.bf16.mxu0 %v8542_v61  ;;  %1501 = vmatprep.subr.bf16.mxu1 %v8545_v62  ;;  %10845 = vst [vmem:[#allocation74_spill] sm:$0xff] %v8640_v49  ;;  %10847 = vst [vmem:[#allocation76_spill] sm:$0xff] %v8648_v57  ;;  %v740_v58 = vld [vmem:[%s8404_s18 + $0x200] sm:$0xff]  ;;  %v8656_v2 = vcombine.high %v748_v42, %v752_v47  ;;  %v8664_v13 = vcombine.low %v748_v42, %v752_v47  ;;  %v726_v47 = vld [vmem:[%s8404_s18 + $0x190] sm:$0xff] }
  0xbb   : > { %10848 = vst [vmem:[#allocation77_spill] sm:$0xff] %v8654_v1 }
  0xbc   : > { %10849 = vst [vmem:[#allocation78_spill] sm:$0xff] %v8656_v2  ;;  %10851 = vst [vmem:[#allocation80_spill] sm:$0xff] %v8664_v13 }
  0xbd   : > { %1461 = vmatpush1.bf16.msra.mxu0 %v8552_v5  ;;  %1502 = vmatpush1.bf16.msra.mxu1 %v8556_v7 }
  0xbe   : > { %1462 = vmatprep.subr.bf16.mxu0 %v8558_v8  ;;  %1503 = vmatprep.subr.bf16.mxu1 %v8561_v12 }
  0xc1   : > { %1463 = vmatpush2.bf16.msra.mxu0 %v8568_v18  ;;  %1504 = vmatpush2.bf16.msra.mxu1 %v8572_v23 }
  0xc2   : > { %1464 = vmatprep.subr.bf16.mxu0 %v8574_v24  ;;  %1505 = vmatprep.subr.bf16.mxu1 %v8577_v25 }
  0xc5   : > { %1465 = vmatpush2.bf16.msra.mxu0 %v8584_v34  ;;  %1506 = vmatpush2.bf16.msra.mxu1 %v8588_v39 }
  0xc6   : > { %1466 = vmatprep.subr.bf16.mxu0 %v8590_v40  ;;  %1507 = vmatprep.subr.bf16.mxu1 %v8593_v41 }
  0xc9   : > { %1467 = vmatpush2.bf16.msra.mxu0 %v8600_v50  ;;  %1508 = vmatpush2.bf16.msra.mxu1 %v8604_v55 }
  0xca   : > { %1468 = vmatprep.subr.bf16.mxu0 %v8606_v56  ;;  %1509 = vmatprep.subr.bf16.mxu1 %v8611_v63  ;;  %v753_v63 = vld [vmem:[%s8404_s18 + $0x268] sm:$0xff] }
  0xcd   : > { %1469 = vmatpush2.bf16.msra.mxu0 %v8616_v3  ;;  %1510 = vmatpush2.bf16.msra.mxu1 %v8622_v16  ;;  %v8645_v3 = vcombine.high %v757_v26, %v761_v31  ;;  %v744_v16 = vld [vmem:[%s8404_s18 + $0x220] sm:$0xff]  ;;  %v8670_v26 = vcombine.low %v749_v0, %v753_v63 }
  0xce   : > { %1470 = vmatprep.subr.bf16.mxu0 %v8624_v17  ;;  %1511 = vmatprep.subr.bf16.mxu1 %v8629_v32  ;;  %v741_v32 = vld [vmem:[%s8404_s18 + $0x208] sm:$0xff]  ;;  %v8672_v31 = vcombine.high %v740_v58, %v744_v16  ;;  %v8680_v42 = vcombine.low %v740_v58, %v744_v16  ;;  %v718_v58 = vld [vmem:[%s8404_s18 + $0x150] sm:$0xff] }
  0xcf   : > { %10846 = vst [vmem:[#allocation75_spill] sm:$0xff] %v8645_v3  ;;  %v745_v17 = vld [vmem:[%s8404_s18 + $0x228] sm:$0xff]  ;;  %10852 = vst [vmem:[#allocation81_spill] sm:$0xff] %v8670_v26 }
  0xd0   : > { %10853 = vst [vmem:[#allocation82_spill] sm:$0xff] %v8672_v31  ;;  %10855 = vst [vmem:[#allocation84_spill] sm:$0xff] %v8680_v42 }
  0xd1   : > { %1471 = vmatpush2.bf16.msra.mxu0 %v8632_v33  ;;  %1512 = vmatpush2.bf16.msra.mxu1 %v8638_v48  ;;  %v8661_v33 = vcombine.high %v749_v0, %v753_v63  ;;  %v738_v48 = vld [vmem:[%s8404_s18 + $0x1f0] sm:$0xff]  ;;  %v8686_v0 = vcombine.low %v741_v32, %v745_v17 }
  0xd2   : > { %1472 = vmatprep.subr.bf16.mxu0 %v8640_v49  ;;  %1513 = vmatprep.subr.bf16.mxu1 %v8645_v3  ;;  %v735_v3 = vld [vmem:[%s8404_s18 + $0x1d8] sm:$0xff]  ;;  %v8688_v63 = vcombine.high %v734_v14, %v738_v48  ;;  %v8696_v16 = vcombine.low %v734_v14, %v738_v48  ;;  %v10863_v48 = vmov 0  }
  0xd3   : > { %10850 = vst [vmem:[#allocation79_spill] sm:$0xff] %v8661_v33  ;;  %v739_v49 = vld [vmem:[%s8404_s18 + $0x1f8] sm:$0xff]  ;;  %10856 = vst [vmem:[#allocation85_spill] sm:$0xff] %v8686_v0 }
  0xd4   : > { %10857 = vst [vmem:[#allocation86_spill] sm:$0xff] %v8688_v63  ;;  %v8693_v56 = vcombine.high %v735_v3, %v739_v49  ;;  %10859 = vst [vmem:[#allocation88_spill] sm:$0xff] %v8696_v16 }
  0xd5   : > { %1473 = vmatpush2.bf16.msra.mxu0 %v8648_v57  ;;  %1514 = vmatpush2.bf16.msra.mxu1 %v8654_v1  ;;  %v8677_v57 = vcombine.high %v741_v32, %v745_v17  ;;  %v730_v1 = vld [vmem:[%s8404_s18 + $0x1b0] sm:$0xff]  ;;  %v8702_v17 = vcombine.low %v735_v3, %v739_v49 }
  0xd6   : > { %1474 = vmatprep.subr.bf16.mxu0 %v8656_v2  ;;  %1515 = vmatprep.subr.bf16.mxu1 %v8661_v33  ;;  %v727_v33 = vld [vmem:[%s8404_s18 + $0x198] sm:$0xff]  ;;  %10858 = vst [vmem:[#allocation87_spill] sm:$0xff] %v8693_v56  ;;  %v8704_v32 = vcombine.high %v726_v47, %v730_v1  ;;  %v8714_v14 = vcombine.low %v726_v47, %v730_v1  ;;  %v710_v3 = vld [vmem:[%s8404_s18 + $0x110] sm:$0xff] }
  0xd7   : > { %10854 = vst [vmem:[#allocation83_spill] sm:$0xff] %v8677_v57  ;;  %v731_v2 = vld [vmem:[%s8404_s18 + $0x1b8] sm:$0xff]  ;;  %10860 = vst [vmem:[#allocation89_spill] sm:$0xff] %v8702_v17  ;;  %v714_v49 = vld [vmem:[%s8404_s18 + $0x130] sm:$0xff] }
  0xd8   : > { %10861 = vst [vmem:[#allocation90_spill] sm:$0xff] %v8704_v32  ;;  %10864 = vst [vmem:[#allocation92_spill] sm:$0xff] %v8714_v14  ;;  %v702_v1 = vld [vmem:[%s8404_s18 + $0xd0] sm:$0xff] }
  0xd9   : > { %1475 = vmatpush2.bf16.msra.mxu0 %v8664_v13  ;;  %1516 = vmatpush2.bf16.msra.mxu1 %v8670_v26  ;;  %v722_v26 = vld [vmem:[%s8404_s18 + $0x170] sm:$0xff]  ;;  %v715_v13 = vld [vmem:[%s8404_s18 + $0x138] sm:$0xff] }
  0xda   : > { %1476 = vmatprep.subr.bf16.mxu0 %v8672_v31  ;;  %1517 = vmatprep.subr.bf16.mxu1 %v8677_v57  ;;  %v719_v57 = vld [vmem:[%s8404_s18 + $0x158] sm:$0xff] }
  0xdb   : > { %v723_v31 = vld [vmem:[%s8404_s18 + $0x178] sm:$0xff] }
  0xdc   : > { %v8738_v47 = vcombine.low %v719_v57, %v723_v31 }
  0xdd   : > { %1477 = vmatpush2.bf16.msra.mxu0 %v8680_v42  ;;  %1518 = vmatpush2.bf16.msra.mxu1 %v8686_v0  ;;  %v8709_v42 = vcombine.high %v727_v33, %v731_v2  ;;  %v711_v0 = vld [vmem:[%s8404_s18 + $0x118] sm:$0xff] }
  0xde   : > { %1528 = vmatprep.subr.bf16.mxu0 %v8688_v63  ;;  %1569 = vmatprep.subr.bf16.mxu1 %v8693_v56  ;;  %v8720_v63 = vcombine.low %v727_v33, %v731_v2  ;;  %v8722_v56 = vcombine.high %v718_v58, %v722_v26  ;;  %v8732_v33 = vcombine.low %v718_v58, %v722_v26  ;;  %v706_v2 = vld [vmem:[%s8404_s18 + $0xf0] sm:$0xff] }
  0xdf   : > { %10862 = vst [vmem:[#allocation91_spill] sm:$0xff] %v8709_v42  ;;  %10869 = vst [vmem:[#allocation97_spill] sm:$0xff] %v8738_v47  ;;  %v8748_v26 = vcombine.low %v710_v3, %v714_v49  ;;  %v694_v58 = vld [vmem:[%s8404_s18 + $0x90] sm:$0xff] }
  0xe0   : > { %1479 = vmatmul.mubr.bf16.vlgmr.msra.gmra.mxu0 %v10863_v48  ;;  %1520 = vmatmul.mubr.bf16.vlgmr.msra.gmra.mxu1 %v10863_v48  ;;  %10865 = vst [vmem:[#allocation93_spill] sm:$0xff] %v8720_v63  ;;  %10866 = vst [vmem:[#allocation94_spill] sm:$0xff] %v8722_v56 }
  0xe1   : > { %1529 = vmatpush1.bf16.msra.mxu0 %v8696_v16  ;;  %1570 = vmatpush1.bf16.msra.mxu1 %v8702_v17  ;;  %v8727_v16 = vcombine.high %v719_v57, %v723_v31  ;;  %10868 = vst [vmem:[#allocation96_spill] sm:$0xff] %v8732_v33  ;;  %v707_v17 = vld [vmem:[%s8404_s18 + $0xf8] sm:$0xff]  ;;  %10872 = vst [vmem:[#allocation100_spill] sm:$0xff] %v8748_v26  ;;  %v8754_v57 = vcombine.low %v711_v0, %v715_v13 }
  0xe2   : > { %1530 = vmatprep.subr.bf16.mxu0 %v8704_v32  ;;  %1571 = vmatprep.subr.bf16.mxu1 %v8709_v42  ;;  %v8740_v42 = vcombine.high %v710_v3, %v714_v49  ;;  %v703_v32 = vld [vmem:[%s8404_s18 + $0xd8] sm:$0xff]  ;;  %v8756_v31 = vcombine.high %v702_v1, %v706_v2  ;;  %v8764_v3 = vcombine.low %v702_v1, %v706_v2  ;;  %v686_v49 = vld [vmem:[%s8404_s18 + $0x50] sm:$0xff] }
  0xe3   : > { %10867 = vst [vmem:[#allocation95_spill] sm:$0xff] %v8727_v16  ;;  %1560 = vmatprep.mubr.bf16.mxu0 %v10863_v48  ;;  %1601 = vmatprep.mubr.bf16.mxu1 %v10863_v48  ;;  %10873 = vst [vmem:[#allocation101_spill] sm:$0xff] %v8754_v57  ;;  %v678_v2 = vld [vmem:[%s8404_s18 + $0x10] sm:$0xff] }
  0xe4   : > { %10870 = vst [vmem:[#allocation98_spill] sm:$0xff] %v8740_v42  ;;  %10874 = vst [vmem:[#allocation102_spill] sm:$0xff] %v8756_v31 }
  0xe5   : > { %1531 = vmatpush1.bf16.msra.mxu0 %v8714_v14  ;;  %1572 = vmatpush1.bf16.msra.mxu1 %v8720_v63  ;;  %v8745_v14 = vcombine.high %v711_v0, %v715_v13  ;;  %v698_v63 = vld [vmem:[%s8404_s18 + $0xb0] sm:$0xff]  ;;  %10876 = vst [vmem:[#allocation104_spill] sm:$0xff] %v8764_v3  ;;  %v8770_v13 = vcombine.low %v703_v32, %v707_v17 }
  0xe6   : > { %1532 = vmatprep.subr.bf16.mxu0 %v8722_v56  ;;  %1573 = vmatprep.subr.bf16.mxu1 %v8727_v16  ;;  %v695_v16 = vld [vmem:[%s8404_s18 + $0x98] sm:$0xff]  ;;  %v8772_v0 = vcombine.high %v694_v58, %v698_v63  ;;  %v8780_v1 = vcombine.low %v694_v58, %v698_v63  ;;  %v798_v58 = vld [vmem:[%s8404_s18 + $0x3d0] sm:$0xff] }
  0xe7   : > { %10871 = vst [vmem:[#allocation99_spill] sm:$0xff] %v8745_v14  ;;  %v699_v56 = vld [vmem:[%s8404_s18 + $0xb8] sm:$0xff]  ;;  %10877 = vst [vmem:[#allocation105_spill] sm:$0xff] %v8770_v13 }
  0xe8   : > { %10878 = vst [vmem:[#allocation106_spill] sm:$0xff] %v8772_v0  ;;  %10880 = vst [vmem:[#allocation108_spill] sm:$0xff] %v8780_v1 }
  0xe9   : > { %1533 = vmatpush1.bf16.msra.mxu0 %v8732_v33  ;;  %1574 = vmatpush1.bf16.msra.mxu1 %v8738_v47  ;;  %v8761_v33 = vcombine.high %v703_v32, %v707_v17  ;;  %v690_v47 = vld [vmem:[%s8404_s18 + $0x70] sm:$0xff]  ;;  %v8786_v17 = vcombine.low %v695_v16, %v699_v56 }
  0xea   : > { %1534 = vmatprep.subr.bf16.mxu0 %v8740_v42  ;;  %1575 = vmatprep.subr.bf16.mxu1 %v8745_v14  ;;  %v687_v14 = vld [vmem:[%s8404_s18 + $0x58] sm:$0xff]  ;;  %v8788_v32 = vcombine.high %v686_v49, %v690_v47  ;;  %v8796_v63 = vcombine.low %v686_v49, %v690_v47  ;;  %v790_v49 = vld [vmem:[%s8404_s18 + $0x390] sm:$0xff] }
  0xeb   : > { %10875 = vst [vmem:[#allocation103_spill] sm:$0xff] %v8761_v33  ;;  %v691_v42 = vld [vmem:[%s8404_s18 + $0x78] sm:$0xff]  ;;  %10881 = vst [vmem:[#allocation109_spill] sm:$0xff] %v8786_v17 }
  0xec   : > { %10882 = vst [vmem:[#allocation110_spill] sm:$0xff] %v8788_v32  ;;  %10884 = vst [vmem:[#allocation112_spill] sm:$0xff] %v8796_v63 }
  0xed   : > { %1535 = vmatpush1.bf16.msra.mxu0 %v8748_v26  ;;  %1576 = vmatpush1.bf16.msra.mxu1 %v8754_v57  ;;  %v8777_v26 = vcombine.high %v695_v16, %v699_v56  ;;  %v682_v57 = vld [vmem:[%s8404_s18 + $0x30] sm:$0xff]  ;;  %v8802_v56 = vcombine.low %v687_v14, %v691_v42 }
  0xee   : > { %1536 = vmatprep.subr.bf16.mxu0 %v8756_v31  ;;  %1577 = vmatprep.subr.bf16.mxu1 %v8761_v33  ;;  %v679_v33 = vld [vmem:[%s8404_s18 + $0x18] sm:$0xff]  ;;  %v8804_v16 = vcombine.high %v678_v2, %v682_v57  ;;  %v8812_v47 = vcombine.low %v678_v2, %v682_v57  ;;  %v782_v2 = vld [vmem:[%s8404_s18 + $0x350] sm:$0xff] }
  0xef   : > { %10879 = vst [vmem:[#allocation107_spill] sm:$0xff] %v8777_v26  ;;  %v683_v31 = vld [vmem:[%s8404_s18 + $0x38] sm:$0xff]  ;;  %10885 = vst [vmem:[#allocation113_spill] sm:$0xff] %v8802_v56 }
  0xf0   : > { %10886 = vst [vmem:[#allocation114_spill] sm:$0xff] %v8804_v16  ;;  %10888 = vst [vmem:[#allocation116_spill] sm:$0xff] %v8812_v47 }
  0xf1   : > { %1537 = vmatpush1.bf16.msra.mxu0 %v8764_v3  ;;  %1578 = vmatpush1.bf16.msra.mxu1 %v8770_v13  ;;  %v8793_v3 = vcombine.high %v687_v14, %v691_v42  ;;  %v802_v13 = vld [vmem:[%s8404_s18 + $0x3f0] sm:$0xff]  ;;  %v8818_v42 = vcombine.low %v679_v33, %v683_v31 }
  0xf2   : > { %1538 = vmatprep.subr.bf16.mxu0 %v8772_v0  ;;  %1579 = vmatprep.subr.bf16.mxu1 %v8777_v26  ;;  %v799_v26 = vld [vmem:[%s8404_s18 + $0x3d8] sm:$0xff]  ;;  %v8820_v14 = vcombine.high %v798_v58, %v802_v13  ;;  %v8828_v57 = vcombine.low %v798_v58, %v802_v13  ;;  %v774_v58 = vld [vmem:[%s8404_s18 + $0x310] sm:$0xff] }
  0xf3   : > { %10883 = vst [vmem:[#allocation111_spill] sm:$0xff] %v8793_v3  ;;  %v803_v0 = vld [vmem:[%s8404_s18 + $0x3f8] sm:$0xff]  ;;  %10889 = vst [vmem:[#allocation117_spill] sm:$0xff] %v8818_v42 }
  0xf4   : > { %10890 = vst [vmem:[#allocation118_spill] sm:$0xff] %v8820_v14  ;;  %10892 = vst [vmem:[#allocation120_spill] sm:$0xff] %v8828_v57 }
  0xf5   : > { %1539 = vmatpush1.bf16.msra.mxu0 %v8780_v1  ;;  %1580 = vmatpush1.bf16.msra.mxu1 %v8786_v17  ;;  %v8809_v1 = vcombine.high %v679_v33, %v683_v31  ;;  %v794_v17 = vld [vmem:[%s8404_s18 + $0x3b0] sm:$0xff]  ;;  %v8834_v33 = vcombine.low %v799_v26, %v803_v0 }
  0xf6   : > { %1540 = vmatprep.subr.bf16.mxu0 %v8788_v32  ;;  %1581 = vmatprep.subr.bf16.mxu1 %v8793_v3  ;;  %v791_v3 = vld [vmem:[%s8404_s18 + $0x398] sm:$0xff]  ;;  %v8836_v31 = vcombine.high %v790_v49, %v794_v17  ;;  %v8844_v13 = vcombine.low %v790_v49, %v794_v17  ;;  %v766_v49 = vld [vmem:[%s8404_s18 + $0x2d0] sm:$0xff] }
  0xf7   : > { %10887 = vst [vmem:[#allocation115_spill] sm:$0xff] %v8809_v1  ;;  %v795_v32 = vld [vmem:[%s8404_s18 + $0x3b8] sm:$0xff]  ;;  %10893 = vst [vmem:[#allocation121_spill] sm:$0xff] %v8834_v33 }
  0xf8   : > { %10894 = vst [vmem:[#allocation122_spill] sm:$0xff] %v8836_v31  ;;  %10896 = vst [vmem:[#allocation124_spill] sm:$0xff] %v8844_v13 }
  0xf9   : > { %1541 = vmatpush1.bf16.msra.mxu0 %v8796_v63  ;;  %1582 = vmatpush1.bf16.msra.mxu1 %v8802_v56  ;;  %v8825_v63 = vcombine.high %v799_v26, %v803_v0  ;;  %v786_v56 = vld [vmem:[%s8404_s18 + $0x370] sm:$0xff]  ;;  %v8850_v26 = vcombine.low %v791_v3, %v795_v32 }
  0xfa   : > { %1542 = vmatprep.subr.bf16.mxu0 %v8804_v16  ;;  %1583 = vmatprep.subr.bf16.mxu1 %v8809_v1  ;;  %v783_v1 = vld [vmem:[%s8404_s18 + $0x358] sm:$0xff]  ;;  %v8852_v0 = vcombine.high %v782_v2, %v786_v56  ;;  %v8860_v17 = vcombine.low %v782_v2, %v786_v56  ;;  %v758_v2 = vld [vmem:[%s8404_s18 + $0x290] sm:$0xff] }
  0xfb   : > { %10891 = vst [vmem:[#allocation119_spill] sm:$0xff] %v8825_v63  ;;  %v787_v16 = vld [vmem:[%s8404_s18 + $0x378] sm:$0xff]  ;;  %10897 = vst [vmem:[#allocation125_spill] sm:$0xff] %v8850_v26 }
  0xfc   : > { %10898 = vst [vmem:[#allocation126_spill] sm:$0xff] %v8852_v0  ;;  %10900 = vst [vmem:[#allocation128_spill] sm:$0xff] %v8860_v17 }
  0xfd   : > { %1543 = vmatpush1.bf16.msra.mxu0 %v8812_v47  ;;  %1584 = vmatpush1.bf16.msra.mxu1 %v8818_v42  ;;  %v8841_v47 = vcombine.high %v791_v3, %v795_v32  ;;  %v778_v42 = vld [vmem:[%s8404_s18 + $0x330] sm:$0xff]  ;;  %v8866_v3 = vcombine.low %v783_v1, %v787_v16 }
  0xfe   : > { %1544 = vmatprep.subr.bf16.mxu0 %v8820_v14  ;;  %1585 = vmatprep.subr.bf16.mxu1 %v8825_v63  ;;  %v775_v63 = vld [vmem:[%s8404_s18 + $0x318] sm:$0xff]  ;;  %v8868_v32 = vcombine.high %v774_v58, %v778_v42  ;;  %v8876_v56 = vcombine.low %v774_v58, %v778_v42  ;;  %v750_v58 = vld [vmem:[%s8404_s18 + $0x250] sm:$0xff] }
  0xff   : > { %10895 = vst [vmem:[#allocation123_spill] sm:$0xff] %v8841_v47  ;;  %v779_v14 = vld [vmem:[%s8404_s18 + $0x338] sm:$0xff]  ;;  %10901 = vst [vmem:[#allocation129_spill] sm:$0xff] %v8866_v3 }
 0x100   : > { %10902 = vst [vmem:[#allocation130_spill] sm:$0xff] %v8868_v32  ;;  %10904 = vst [vmem:[#allocation132_spill] sm:$0xff] %v8876_v56 }
 0x101   : > { %1545 = vmatpush2.bf16.msra.mxu0 %v8828_v57  ;;  %1586 = vmatpush2.bf16.msra.mxu1 %v8834_v33  ;;  %v8857_v57 = vcombine.high %v783_v1, %v787_v16  ;;  %v770_v33 = vld [vmem:[%s8404_s18 + $0x2f0] sm:$0xff]  ;;  %v8882_v1 = vcombine.low %v775_v63, %v779_v14 }
 0x102   : > { %1546 = vmatprep.subr.bf16.mxu0 %v8836_v31  ;;  %1587 = vmatprep.subr.bf16.mxu1 %v8841_v47  ;;  %v767_v47 = vld [vmem:[%s8404_s18 + $0x2d8] sm:$0xff]  ;;  %v8884_v16 = vcombine.high %v766_v49, %v770_v33  ;;  %v8892_v42 = vcombine.low %v766_v49, %v770_v33  ;;  %v742_v49 = vld [vmem:[%s8404_s18 + $0x210] sm:$0xff] }
 0x103   : > { %10899 = vst [vmem:[#allocation127_spill] sm:$0xff] %v8857_v57  ;;  %v771_v31 = vld [vmem:[%s8404_s18 + $0x2f8] sm:$0xff]  ;;  %10905 = vst [vmem:[#allocation133_spill] sm:$0xff] %v8882_v1 }
 0x104   : > { %10906 = vst [vmem:[#allocation134_spill] sm:$0xff] %v8884_v16  ;;  %10908 = vst [vmem:[#allocation136_spill] sm:$0xff] %v8892_v42 }
 0x105   : > { %1547 = vmatpush2.bf16.msra.mxu0 %v8844_v13  ;;  %1588 = vmatpush2.bf16.msra.mxu1 %v8850_v26  ;;  %v8873_v13 = vcombine.high %v775_v63, %v779_v14  ;;  %v762_v26 = vld [vmem:[%s8404_s18 + $0x2b0] sm:$0xff]  ;;  %v8898_v63 = vcombine.low %v767_v47, %v771_v31 }
 0x106   : > { %1548 = vmatprep.subr.bf16.mxu0 %v8852_v0  ;;  %1589 = vmatprep.subr.bf16.mxu1 %v8857_v57  ;;  %v759_v57 = vld [vmem:[%s8404_s18 + $0x298] sm:$0xff]  ;;  %v8900_v14 = vcombine.high %v758_v2, %v762_v26  ;;  %v8908_v33 = vcombine.low %v758_v2, %v762_v26 }
 0x107   : > { %10903 = vst [vmem:[#allocation131_spill] sm:$0xff] %v8873_v13  ;;  %v763_v0 = vld [vmem:[%s8404_s18 + $0x2b8] sm:$0xff]  ;;  %10909 = vst [vmem:[#allocation137_spill] sm:$0xff] %v8898_v63 }
 0x108   : > { %10910 = vst [vmem:[#allocation138_spill] sm:$0xff] %v8900_v14  ;;  %v8905_v55 = vcombine.high %v759_v57, %v763_v0  ;;  %10912 = vst [vmem:[#allocation140_spill] sm:$0xff] %v8908_v33 }
 0x109   : > { %1549 = vmatpush2.bf16.msra.mxu0 %v8860_v17  ;;  %1590 = vmatpush2.bf16.msra.mxu1 %v8866_v3  ;;  %v8889_v17 = vcombine.high %v767_v47, %v771_v31  ;;  %v754_v3 = vld [vmem:[%s8404_s18 + $0x270] sm:$0xff]  ;;  %v8914_v47 = vcombine.low %v759_v57, %v763_v0 }
 0x10a   : > { %1550 = vmatprep.subr.bf16.mxu0 %v8868_v32  ;;  %1591 = vmatprep.subr.bf16.mxu1 %v8873_v13  ;;  %v751_v13 = vld [vmem:[%s8404_s18 + $0x258] sm:$0xff]  ;;  %10911 = vst [vmem:[#allocation139_spill] sm:$0xff] %v8905_v55  ;;  %v8916_v31 = vcombine.high %v750_v58, %v754_v3  ;;  %v8924_v26 = vcombine.low %v750_v58, %v754_v3  ;;  %v10927_v58 = vld [vmem:[#allocation70_spill] sm:$0xff] }
 0x10b   : > { %10907 = vst [vmem:[#allocation135_spill] sm:$0xff] %v8889_v17  ;;  %v755_v32 = vld [vmem:[%s8404_s18 + $0x278] sm:$0xff]  ;;  %10913 = vst [vmem:[#allocation141_spill] sm:$0xff] %v8914_v47 }
 0x10c   : > { %10914 = vst [vmem:[#allocation142_spill] sm:$0xff] %v8916_v31  ;;  %10916 = vst [vmem:[#allocation144_spill] sm:$0xff] %v8924_v26  ;;  %v8928_v2 = vcombine.low %v751_v13, %v755_v32 }
 0x10d   : > { %1551 = vmatpush2.bf16.msra.mxu0 %v8876_v56  ;;  %1592 = vmatpush2.bf16.msra.mxu1 %v8882_v1  ;;  %v746_v1 = vld [vmem:[%s8404_s18 + $0x230] sm:$0xff]  ;;  %v747_v56 = vld [vmem:[%s8404_s18 + $0x238] sm:$0xff] }
 0x10e   : > { %1552 = vmatprep.subr.bf16.mxu0 %v8884_v16  ;;  %1593 = vmatprep.subr.bf16.mxu1 %v8889_v17  ;;  %v743_v16 = vld [vmem:[%s8404_s18 + $0x218] sm:$0xff]  ;;  %v8921_v17 = vcombine.high %v751_v13, %v755_v32  ;;  %10917 = vst [vmem:[#allocation145_spill] sm:$0xff] %v8928_v2  ;;  %v8930_v57 = vcombine.high %v742_v49, %v746_v1  ;;  %v10923_v32 = vld [vmem:[#allocation66_spill] sm:$0xff]  ;;  %s653_s18 = scalar_lea.vmem %s10474_s4, %s7169_s11 }
 0x10f   : > { %v8933_v0 = vcombine.high %v743_v16, %v747_v56  ;;  %v8940_v3 = vcombine.low %v743_v16, %v747_v56  ;;  %v10922_v13 = vld [vmem:[#allocation65_spill] sm:$0xff]  ;;  %v10924_v56 = vld [vmem:[#allocation67_spill] sm:$0xff] }
 0x110   : > { %10915 = vst [vmem:[#allocation143_spill] sm:$0xff] %v8921_v17  ;;  %10918 = vst [vmem:[#allocation146_spill] sm:$0xff] %v8930_v57  ;;  %v10926_v16 = vld [vmem:[#allocation69_spill] sm:$0xff] }
 0x111   : > { %1553 = vmatpush2.bf16.msra.mxu0 %v8892_v42  ;;  %1594 = vmatpush2.bf16.msra.mxu1 %v8898_v63  ;;  %10919 = vst [vmem:[#allocation147_spill] sm:$0xff] %v8933_v0  ;;  %10921 = vst [vmem:[#allocation149_spill] sm:$0xff] %v8940_v3 }
 0x112   : > { %1554 = vmatprep.subr.bf16.mxu0 %v8900_v14  ;;  %1595 = vmatprep.subr.bf16.mxu1 %v8905_v55  ;;  %v8936_v55 = vcombine.low %v742_v49, %v746_v1  ;;  %v10925_v1 = vld [vmem:[#allocation68_spill] sm:$0xff]  ;;  %v10928_v49 = vld [vmem:[#allocation71_spill] sm:$0xff] }
 0x114   : > { %10920 = vst [vmem:[#allocation148_spill] sm:$0xff] %v8936_v55 }
 0x115   : > { %1555 = vmatpush2.bf16.msra.mxu0 %v8908_v33  ;;  %1596 = vmatpush2.bf16.msra.mxu1 %v8914_v47 }
 0x116   : > { %1556 = vmatprep.subr.bf16.mxu0 %v8916_v31  ;;  %1597 = vmatprep.subr.bf16.mxu1 %v8921_v17 }
 0x119   : > { %1557 = vmatpush2.bf16.msra.mxu0 %v8924_v26  ;;  %1598 = vmatpush2.bf16.msra.mxu1 %v8928_v2 }
 0x11a   : > { %1558 = vmatprep.subr.bf16.mxu0 %v8930_v57  ;;  %1599 = vmatprep.subr.bf16.mxu1 %v8933_v0 }
 0x11d   : > { %1559 = vmatpush2.bf16.msra.mxu0 %v8936_v55  ;;  %1600 = vmatpush2.bf16.msra.mxu1 %v8940_v3 }
 0x11e   : > { %1702 = vmatprep.subr.bf16.mxu0 %v8432_v4  ;;  %1743 = vmatprep.subr.bf16.mxu1 %v8439_v9 }
 0x120   : > { %1561 = vmatmul.mubr.bf16.vlgmr.msra.gmra.mxu0 %v10863_v48  ;;  %1602 = vmatmul.mubr.bf16.vlgmr.msra.gmra.mxu1 %v10863_v48  ;;  %v10929_v48 = vld [vmem:[#allocation72_spill] sm:$0xff] }
 0x121   : > { %1703 = vmatpush1.bf16.msra.mxu0 %v8435_v6  ;;  %1744 = vmatpush1.bf16.msra.mxu1 %v8441_v10 }
 0x122   : > { %1704 = vmatprep.subr.bf16.mxu0 %v8443_v11  ;;  %1745 = vmatprep.subr.bf16.mxu1 %v8449_v15 }
 0x125   : > { %1705 = vmatpush1.bf16.msra.mxu0 %v8456_v19  ;;  %1746 = vmatpush1.bf16.msra.mxu1 %v8460_v20 }
 0x126   : > { %1706 = vmatprep.subr.bf16.mxu0 %v8462_v21  ;;  %1747 = vmatprep.subr.bf16.mxu1 %v8465_v22 }
 0x129   : > { %1707 = vmatpush1.bf16.msra.mxu0 %v8472_v27  ;;  %1748 = vmatpush1.bf16.msra.mxu1 %v8476_v28 }
 0x12a   : > { %1708 = vmatprep.subr.bf16.mxu0 %v8478_v29  ;;  %1749 = vmatprep.subr.bf16.mxu1 %v8481_v30 }
 0x12d   : > { %1709 = vmatpush1.bf16.msra.mxu0 %v8488_v35  ;;  %1750 = vmatpush1.bf16.msra.mxu1 %v8492_v36 }
 0x12e   : > { %1710 = vmatprep.subr.bf16.mxu0 %v8494_v37  ;;  %1751 = vmatprep.subr.bf16.mxu1 %v8497_v38 }
 0x131   : > { %1711 = vmatpush1.bf16.msra.mxu0 %v8504_v43  ;;  %1752 = vmatpush1.bf16.msra.mxu1 %v8508_v44 }
 0x132   : > { %1712 = vmatprep.subr.bf16.mxu0 %v8510_v45  ;;  %1753 = vmatprep.subr.bf16.mxu1 %v8513_v46 }
 0x135   : > { %1713 = vmatpush1.bf16.msra.mxu0 %v8520_v51  ;;  %1754 = vmatpush1.bf16.msra.mxu1 %v8524_v52 }
 0x136   : > { %1714 = vmatprep.subr.bf16.mxu0 %v8526_v53  ;;  %1755 = vmatprep.subr.bf16.mxu1 %v8529_v54 }
 0x139   : > { %1715 = vmatpush1.bf16.msra.mxu0 %v8536_v59  ;;  %1756 = vmatpush1.bf16.msra.mxu1 %v8540_v60 }
 0x13a   : > { %1716 = vmatprep.subr.bf16.mxu0 %v8542_v61  ;;  %1757 = vmatprep.subr.bf16.mxu1 %v8545_v62 }
 0x13d   : > { %1717 = vmatpush1.bf16.msra.mxu0 %v8552_v5  ;;  %1758 = vmatpush1.bf16.msra.mxu1 %v8556_v7 }
 0x13e   : > { %1718 = vmatprep.subr.bf16.mxu0 %v8558_v8  ;;  %1759 = vmatprep.subr.bf16.mxu1 %v8561_v12 }
 0x141   : > { %1719 = vmatpush2.bf16.msra.mxu0 %v8568_v18  ;;  %1760 = vmatpush2.bf16.msra.mxu1 %v8572_v23 }
 0x142   : > { %1720 = vmatprep.subr.bf16.mxu0 %v8574_v24  ;;  %1761 = vmatprep.subr.bf16.mxu1 %v8577_v25 }
 0x145   : > { %1721 = vmatpush2.bf16.msra.mxu0 %v8584_v34  ;;  %1762 = vmatpush2.bf16.msra.mxu1 %v8588_v39 }
 0x146   : > { %1722 = vmatprep.subr.bf16.mxu0 %v8590_v40  ;;  %1763 = vmatprep.subr.bf16.mxu1 %v8593_v41  ;;  %v10930_v40 = vld [vmem:[#allocation73_spill] sm:$0xff]  ;;  %v10931_v41 = vld [vmem:[#allocation74_spill] sm:$0xff] }
 0x149   : > { %1723 = vmatpush2.bf16.msra.mxu0 %v8600_v50  ;;  %1764 = vmatpush2.bf16.msra.mxu1 %v10922_v13  ;;  %v10932_v50 = vld [vmem:[#allocation75_spill] sm:$0xff]  ;;  %v10933_v13 = vld [vmem:[#allocation76_spill] sm:$0xff] }
 0x14a   : > { %1724 = vmatprep.subr.bf16.mxu0 %v10923_v32  ;;  %1765 = vmatprep.subr.bf16.mxu1 %v10924_v56  ;;  %v10934_v32 = vld [vmem:[#allocation77_spill] sm:$0xff]  ;;  %v10935_v56 = vld [vmem:[#allocation78_spill] sm:$0xff] }
 0x14d   : > { %1725 = vmatpush2.bf16.msra.mxu0 %v10925_v1  ;;  %1766 = vmatpush2.bf16.msra.mxu1 %v10926_v16  ;;  %v10936_v1 = vld [vmem:[#allocation79_spill] sm:$0xff]  ;;  %v10937_v16 = vld [vmem:[#allocation80_spill] sm:$0xff] }
 0x14e   : > { %1726 = vmatprep.subr.bf16.mxu0 %v10927_v58  ;;  %1767 = vmatprep.subr.bf16.mxu1 %v10928_v49  ;;  %v10938_v58 = vld [vmem:[#allocation81_spill] sm:$0xff]  ;;  %v10939_v49 = vld [vmem:[#allocation82_spill] sm:$0xff] }
 0x151   : > { %1727 = vmatpush2.bf16.msra.mxu0 %v10929_v48  ;;  %1768 = vmatpush2.bf16.msra.mxu1 %v10930_v40  ;;  %v10940_v48 = vld [vmem:[#allocation83_spill] sm:$0xff]  ;;  %v10941_v40 = vld [vmem:[#allocation84_spill] sm:$0xff] }
 0x152   : > { %1728 = vmatprep.subr.bf16.mxu0 %v10931_v41  ;;  %1769 = vmatprep.subr.bf16.mxu1 %v10932_v50  ;;  %v10942_v41 = vld [vmem:[#allocation85_spill] sm:$0xff]  ;;  %v10943_v50 = vld [vmem:[#allocation86_spill] sm:$0xff] }
 0x155   : > { %1729 = vmatpush2.bf16.msra.mxu0 %v10933_v13  ;;  %1770 = vmatpush2.bf16.msra.mxu1 %v10934_v32  ;;  %v10944_v13 = vld [vmem:[#allocation87_spill] sm:$0xff] }
 0x156   : > { %1730 = vmatprep.subr.bf16.mxu0 %v10935_v56  ;;  %1771 = vmatprep.subr.bf16.mxu1 %v10936_v1 }
 0x159   : > { %1731 = vmatpush2.bf16.msra.mxu0 %v10937_v16  ;;  %1772 = vmatpush2.bf16.msra.mxu1 %v10938_v58 }
 0x15a   : > { %1732 = vmatprep.subr.bf16.mxu0 %v10939_v49  ;;  %1773 = vmatprep.subr.bf16.mxu1 %v10940_v48  ;;  %v8121_v49 = vmov 1983009808   ;;  %v1623_v48 = vlaneseq }
 0x15b   : > { %v1621_v24 = vunpack.c.l.s4 %v8121_v49 }
 0x15d   : > { %1733 = vmatpush2.bf16.msra.mxu0 %v10941_v40  ;;  %1774 = vmatpush2.bf16.msra.mxu1 %v10942_v41  ;;  %v1622_v23 = vunpack.c.0.s8 %v1621_v24  ;;  %v9023_v40 = vshrl.u32 %v1623_v48, 7  ;;  %v804_v24 = vld [vmem:[%s9034_s20] sm:$0xff] }
 0x15e   : > { %1784 = vmatprep.subr.bf16.mxu0 %v10943_v50  ;;  %1825 = vmatprep.subr.bf16.mxu1 %v10944_v13 }
 0x15f   : > { %10945 = vst [vmem:[#allocation150_spill] sm:$0xff] %v9023_v40  ;;  %v9026_v50 = vsub.s32 %v1622_v23, %v9023_v40 }
 0x1a0   : > { %v1480_v32 = vpop.f32.mrf.mxu0  ;;  %v1521_v56 = vpop.f32.mrf.mxu1 }
 0x1a2   : > { %v1482_v1 = vpop.f32.mrf.mxu0  ;;  %v1523_v39 = vpop.f32.mrf.mxu1 }
 0x1a3   : > { %v1618_v41 = vcombine.low %v1480_v32, %v1482_v1  ;;  %v1619_v13 = vcombine.low %v1521_v56, %v1523_v39 }
 0x1a4   : > { %v1484_v16 = vpop.f32.mrf.mxu0  ;;  %v1525_v34 = vpop.f32.mrf.mxu1 }
 0x1a5   : > { %v1626_v18 = vrot.slane %v1618_v41, %v9026_v50  ;;  %v1633_v12 = vrot.slane %v1619_v13, %v9026_v50 }
 0x1a6   : > { %v1485_v58 = vpop.f32.mrf.mxu0  ;;  %v1526_v25 = vpop.f32.mrf.mxu1 }
 0x1a7   : > { %v1634_v25 = vcombine.low %v1626_v18, %v1633_v12 }
 0x1a9   : > { %v1654_v34 = vadd.f32 %v1634_v25, %v804_v24 }
 0x1ab   : > { %v1663_v48 = vrot.slane %v1654_v34, 4  ;;  %v6761_v1 = vmul.f32 -1.442695, %v1654_v34 }
 0x1ad   : > { %v6762_v32 = vmul.f32 -1.442695, %v1663_v48  ;;  %v805_v48 = vld [vmem:[%s9034_s20 + $0x8] sm:$0xff] }
 0x1af   : > { %7798 = vpow2.f32 %v6762_v32 }
 0x1b0   : > { %7800 = vpow2.f32 %v6761_v1 }
 0x1bc   : > { %v7799_v56 = vpop.eup %7798 }
 0x1bd   : > { %v7801_v58 = vpop.eup %7800  ;;  %v1668_v18 = vadd.f32 1.0, %v7799_v56 }
 0x1be   : > { %v1659_v34 = vadd.f32 1.0, %v7801_v58 }
 0x1bf   : > { %7802 = vrcp.f32 %v1668_v18 }
 0x1c0   : > { %7804 = vrcp.f32 %v1659_v34 }
 0x1e0   : > { %v1562_v23 = vpop.f32.mrf.mxu0  ;;  %v1603_v39 = vpop.f32.mrf.mxu1 }
 0x1e2   : > { %v1564_v41 = vpop.f32.mrf.mxu0  ;;  %v1605_v16 = vpop.f32.mrf.mxu1 }
 0x1e3   : > { %v1635_v13 = vcombine.low %v1562_v23, %v1564_v41  ;;  %v1636_v49 = vcombine.low %v1603_v39, %v1605_v16  ;;  %v7803_v39 = vpop.eup %7802 }
 0x1e4   : > { %v1566_v40 = vpop.f32.mrf.mxu0  ;;  %v1607_v12 = vpop.f32.mrf.mxu1 }
 0x1e5   : > { %v1643_v8 = vrot.slane %v1635_v13, %v9026_v50  ;;  %v1650_v25 = vrot.slane %v1636_v49, %v9026_v50  ;;  %v7805_v40 = vpop.eup %7804  ;;  %v1681_v13 = vmul.f32 0.0, %v7803_v39  ;;  %v10950_v39 = vld [vmem:[#allocation92_spill] sm:$0xff] }
 0x1e6   : > { %v1567_v24 = vpop.f32.mrf.mxu0  ;;  %v1608_v32 = vpop.f32.mrf.mxu1 }
 0x1e7   : > { %v1651_v1 = vcombine.low %v1643_v8, %v1650_v25  ;;  %v10946_v32 = vld [vmem:[#allocation88_spill] sm:$0xff] }
 0x1e9   : > { %v1655_v7 = vadd.f32 %v1651_v1, %v805_v48  ;;  %v10947_v1 = vld [vmem:[#allocation89_spill] sm:$0xff] }
 0x1eb   : > { %7806 = vtanh.f32 %v1655_v7  ;;  %v1673_v23 = vrot.slane %v1655_v7, 4 }
 0x1ed   : > { %v6763_v41 = vmul.f32 -1.442695, %v1673_v23  ;;  %v10948_v23 = vld [vmem:[#allocation90_spill] sm:$0xff] }
 0x1ef   : > { %7808 = vpow2.f32 %v6763_v41  ;;  %v10949_v41 = vld [vmem:[#allocation91_spill] sm:$0xff] }
 0x1f8   : > { %v7807_v16 = vpop.eup %7806 }
 0x1f9   : > { %v1682_v12 = vmul.f32 %v7807_v16, %v7805_v40  ;;  %v10951_v40 = vld [vmem:[#allocation93_spill] sm:$0xff]  ;;  %v10952_v16 = vld [vmem:[#allocation94_spill] sm:$0xff] }
 0x1fb   : > { %v9040_v56 = vadd.f32 %v1682_v12, %v1681_v13  ;;  %v10953_v13 = vld [vmem:[#allocation95_spill] sm:$0xff]  ;;  %v10954_v12 = vld [vmem:[#allocation96_spill] sm:$0xff] }
 0x1fc   : > { %v7809_v49 = vpop.eup %7808 }
 0x1fd   : > { %v1678_v24 = vadd.f32 1.0, %v7809_v49  ;;  %7810 = vtanh.f32 %v9040_v56  ;;  %v10955_v49 = vld [vmem:[#allocation97_spill] sm:$0xff] }
 0x1ff   : > { %7812 = vrcp.f32 %v1678_v24  ;;  %v10956_v24 = vld [vmem:[#allocation98_spill] sm:$0xff] }
 0x20a   : > { %v7811_v8 = vpop.eup %7810 }
 0x20c   : > { %v7813_v58 = vpop.eup %7812 }
 0x20d   : > { %v1685_v18 = vmul.f32 %v7813_v58, %v7811_v8  ;;  %v10957_v8 = vld [vmem:[#allocation99_spill] sm:$0xff]  ;;  %v10958_v58 = vld [vmem:[#allocation100_spill] sm:$0xff] }
 0x20f   : > { %v1696_v25 = vrot.slane %v1685_v18, %v9026_v50  ;;  %v10959_v18 = vld [vmem:[#allocation101_spill] sm:$0xff] }
 0x211   : > { %v1697_v7 = vcombine.high %v1696_v25, %v1696_v25  ;;  %v9044_v48 = vpack.c.bf16 %v1696_v25, %v1696_v25  ;;  %v10960_v25 = vld [vmem:[#allocation102_spill] sm:$0xff] }
 0x213   : > { %v1701_v34 = vpack.c.bf16 %v1697_v7, %v1697_v7  ;;  %v10961_v7 = vld [vmem:[#allocation103_spill] sm:$0xff] }
 0x215   : > { %1734 = vmatprep.mubr.bf16.mxu0 %v1701_v34  ;;  %1775 = vmatprep.mubr.bf16.mxu1 %v1701_v34 }
 0x216   : > { %1735 = vmatmul.mubr.bf16.vlgmr.msra.gmra.mxu0 %v9044_v48  ;;  %1776 = vmatmul.mubr.bf16.vlgmr.msra.gmra.mxu1 %v9044_v48 }
 0x217   : > { %1785 = vmatpush1.bf16.msra.mxu0 %v10946_v32  ;;  %1826 = vmatpush1.bf16.msra.mxu1 %v10947_v1 }
 0x218   : > { %1816 = vmatprep.mubr.bf16.mxu0 %v1701_v34  ;;  %1857 = vmatprep.mubr.bf16.mxu1 %v1701_v34  ;;  %v10962_v34 = vld [vmem:[#allocation104_spill] sm:$0xff] }
 0x219   : > { %1786 = vmatprep.subr.bf16.mxu0 %v10948_v23  ;;  %1827 = vmatprep.subr.bf16.mxu1 %v10949_v41 }
 0x21b   : > { %1787 = vmatpush1.bf16.msra.mxu0 %v10950_v39  ;;  %1828 = vmatpush1.bf16.msra.mxu1 %v10951_v40 }
 0x21c   : > { %1788 = vmatprep.subr.bf16.mxu0 %v10952_v16  ;;  %1829 = vmatprep.subr.bf16.mxu1 %v10953_v13  ;;  %v10963_v16 = vld [vmem:[#allocation105_spill] sm:$0xff]  ;;  %v10964_v13 = vld [vmem:[#allocation106_spill] sm:$0xff] }
 0x21f   : > { %1789 = vmatpush1.bf16.msra.mxu0 %v10954_v12  ;;  %1830 = vmatpush1.bf16.msra.mxu1 %v10955_v49  ;;  %v10965_v12 = vld [vmem:[#allocation107_spill] sm:$0xff]  ;;  %v10966_v49 = vld [vmem:[#allocation108_spill] sm:$0xff] }
 0x220   : > { %1790 = vmatprep.subr.bf16.mxu0 %v10956_v24  ;;  %1831 = vmatprep.subr.bf16.mxu1 %v10957_v8  ;;  %v10967_v24 = vld [vmem:[#allocation109_spill] sm:$0xff]  ;;  %v10968_v8 = vld [vmem:[#allocation110_spill] sm:$0xff] }
 0x223   : > { %1791 = vmatpush1.bf16.msra.mxu0 %v10958_v58  ;;  %1832 = vmatpush1.bf16.msra.mxu1 %v10959_v18  ;;  %v10969_v58 = vld [vmem:[#allocation111_spill] sm:$0xff]  ;;  %v10970_v18 = vld [vmem:[#allocation112_spill] sm:$0xff] }
 0x224   : > { %1792 = vmatprep.subr.bf16.mxu0 %v10960_v25  ;;  %1833 = vmatprep.subr.bf16.mxu1 %v10961_v7  ;;  %v10971_v25 = vld [vmem:[#allocation113_spill] sm:$0xff]  ;;  %v10972_v7 = vld [vmem:[#allocation114_spill] sm:$0xff] }
 0x227   : > { %1793 = vmatpush1.bf16.msra.mxu0 %v10962_v34  ;;  %1834 = vmatpush1.bf16.msra.mxu1 %v10963_v16  ;;  %v10973_v34 = vld [vmem:[#allocation115_spill] sm:$0xff]  ;;  %v10974_v16 = vld [vmem:[#allocation116_spill] sm:$0xff] }
 0x228   : > { %1794 = vmatprep.subr.bf16.mxu0 %v10964_v13  ;;  %1835 = vmatprep.subr.bf16.mxu1 %v10965_v12  ;;  %v10975_v13 = vld [vmem:[#allocation117_spill] sm:$0xff]  ;;  %v10976_v12 = vld [vmem:[#allocation118_spill] sm:$0xff] }
 0x22b   : > { %1795 = vmatpush1.bf16.msra.mxu0 %v10966_v49  ;;  %1836 = vmatpush1.bf16.msra.mxu1 %v10967_v24  ;;  %v10977_v49 = vld [vmem:[#allocation119_spill] sm:$0xff]  ;;  %v10978_v24 = vld [vmem:[#allocation120_spill] sm:$0xff] }
 0x22c   : > { %1796 = vmatprep.subr.bf16.mxu0 %v10968_v8  ;;  %1837 = vmatprep.subr.bf16.mxu1 %v10969_v58  ;;  %v10979_v8 = vld [vmem:[#allocation121_spill] sm:$0xff]  ;;  %v10980_v58 = vld [vmem:[#allocation122_spill] sm:$0xff] }
 0x22f   : > { %1797 = vmatpush1.bf16.msra.mxu0 %v10970_v18  ;;  %1838 = vmatpush1.bf16.msra.mxu1 %v10971_v25  ;;  %v10981_v18 = vld [vmem:[#allocation123_spill] sm:$0xff]  ;;  %v10982_v25 = vld [vmem:[#allocation124_spill] sm:$0xff] }
 0x230   : > { %1798 = vmatprep.subr.bf16.mxu0 %v10972_v7  ;;  %1839 = vmatprep.subr.bf16.mxu1 %v10973_v34  ;;  %v10983_v7 = vld [vmem:[#allocation125_spill] sm:$0xff]  ;;  %v10984_v34 = vld [vmem:[#allocation126_spill] sm:$0xff] }
 0x233   : > { %1799 = vmatpush1.bf16.msra.mxu0 %v10974_v16  ;;  %1840 = vmatpush1.bf16.msra.mxu1 %v10975_v13  ;;  %v10985_v16 = vld [vmem:[#allocation127_spill] sm:$0xff]  ;;  %v10986_v13 = vld [vmem:[#allocation128_spill] sm:$0xff] }
 0x234   : > { %1800 = vmatprep.subr.bf16.mxu0 %v10976_v12  ;;  %1841 = vmatprep.subr.bf16.mxu1 %v10977_v49  ;;  %v10987_v12 = vld [vmem:[#allocation129_spill] sm:$0xff]  ;;  %v10988_v49 = vld [vmem:[#allocation130_spill] sm:$0xff] }
 0x237   : > { %1801 = vmatpush2.bf16.msra.mxu0 %v10978_v24  ;;  %1842 = vmatpush2.bf16.msra.mxu1 %v10979_v8  ;;  %v10989_v24 = vld [vmem:[#allocation131_spill] sm:$0xff]  ;;  %v10990_v8 = vld [vmem:[#allocation132_spill] sm:$0xff] }
 0x238   : > { %1802 = vmatprep.subr.bf16.mxu0 %v10980_v58  ;;  %1843 = vmatprep.subr.bf16.mxu1 %v10981_v18  ;;  %v10991_v58 = vld [vmem:[#allocation133_spill] sm:$0xff]  ;;  %v10992_v18 = vld [vmem:[#allocation134_spill] sm:$0xff] }
 0x23b   : > { %1803 = vmatpush2.bf16.msra.mxu0 %v10982_v25  ;;  %1844 = vmatpush2.bf16.msra.mxu1 %v10983_v7  ;;  %v10993_v25 = vld [vmem:[#allocation135_spill] sm:$0xff] }
 0x23c   : > { %1804 = vmatprep.subr.bf16.mxu0 %v10984_v34  ;;  %1845 = vmatprep.subr.bf16.mxu1 %v10985_v16 }
 0x23f   : > { %1805 = vmatpush2.bf16.msra.mxu0 %v10986_v13  ;;  %1846 = vmatpush2.bf16.msra.mxu1 %v10987_v12  ;;  %v10994_v13 = vld [vmem:[#allocation139_spill] sm:$0xff] }
 0x240   : > { %1806 = vmatprep.subr.bf16.mxu0 %v10988_v49  ;;  %1847 = vmatprep.subr.bf16.mxu1 %v10989_v24 }
 0x243   : > { %1807 = vmatpush2.bf16.msra.mxu0 %v10990_v8  ;;  %1848 = vmatpush2.bf16.msra.mxu1 %v10991_v58 }
 0x244   : > { %1808 = vmatprep.subr.bf16.mxu0 %v10992_v18  ;;  %1849 = vmatprep.subr.bf16.mxu1 %v10993_v25 }
 0x247   : > { %1809 = vmatpush2.bf16.msra.mxu0 %v8892_v42  ;;  %1850 = vmatpush2.bf16.msra.mxu1 %v8898_v63 }
 0x248   : > { %1810 = vmatprep.subr.bf16.mxu0 %v8900_v14  ;;  %1851 = vmatprep.subr.bf16.mxu1 %v10994_v13 }
 0x24b   : > { %1811 = vmatpush2.bf16.msra.mxu0 %v8908_v33  ;;  %1852 = vmatpush2.bf16.msra.mxu1 %v8914_v47 }
 0x24c   : > { %1812 = vmatprep.subr.bf16.mxu0 %v8916_v31  ;;  %1853 = vmatprep.subr.bf16.mxu1 %v8921_v17 }
 0x24f   : > { %1813 = vmatpush2.bf16.msra.mxu0 %v8924_v26  ;;  %1854 = vmatpush2.bf16.msra.mxu1 %v8928_v2 }
 0x250   : > { %1814 = vmatprep.subr.bf16.mxu0 %v8930_v57  ;;  %1855 = vmatprep.subr.bf16.mxu1 %v8933_v0 }
 0x253   : > { %1815 = vmatpush2.bf16.msra.mxu0 %v8936_v55  ;;  %1856 = vmatpush2.bf16.msra.mxu1 %v8940_v3 }
 0x254   : > { %1958 = vmatprep.subr.bf16.mxu0 %v8432_v4  ;;  %1999 = vmatprep.subr.bf16.mxu1 %v8439_v9 }
 0x256   : > { %1817 = vmatmul.mubr.bf16.vlgmr.msra.gmra.mxu0 %v9044_v48  ;;  %1858 = vmatmul.mubr.bf16.vlgmr.msra.gmra.mxu1 %v9044_v48  ;;  %v10995_v48 = vld [vmem:[#allocation53_spill] sm:$0xff] }
 0x257   : > { %1959 = vmatpush1.bf16.msra.mxu0 %v8435_v6  ;;  %2000 = vmatpush1.bf16.msra.mxu1 %v8441_v10 }
 0x258   : > { %1960 = vmatprep.subr.bf16.mxu0 %v8443_v11  ;;  %2001 = vmatprep.subr.bf16.mxu1 %v8449_v15 }
 0x25b   : > { %1961 = vmatpush1.bf16.msra.mxu0 %v8456_v19  ;;  %2002 = vmatpush1.bf16.msra.mxu1 %v8460_v20 }
 0x25c   : > { %1962 = vmatprep.subr.bf16.mxu0 %v8462_v21  ;;  %2003 = vmatprep.subr.bf16.mxu1 %v8465_v22 }
 0x25f   : > { %1963 = vmatpush1.bf16.msra.mxu0 %v8472_v27  ;;  %2004 = vmatpush1.bf16.msra.mxu1 %v8476_v28 }
 0x260   : > { %1964 = vmatprep.subr.bf16.mxu0 %v8478_v29  ;;  %2005 = vmatprep.subr.bf16.mxu1 %v8481_v30 }
 0x263   : > { %1965 = vmatpush1.bf16.msra.mxu0 %v8488_v35  ;;  %2006 = vmatpush1.bf16.msra.mxu1 %v8492_v36 }
 0x264   : > { %1966 = vmatprep.subr.bf16.mxu0 %v8494_v37  ;;  %2007 = vmatprep.subr.bf16.mxu1 %v8497_v38  ;;  %v6764_v37 = vld [vmem:[%s9034_s20 + $0x10] sm:$0xff] }
 0x267   : > { %1967 = vmatpush1.bf16.msra.mxu0 %v8504_v43  ;;  %2008 = vmatpush1.bf16.msra.mxu1 %v8508_v44 }
 0x268   : > { %1968 = vmatprep.subr.bf16.mxu0 %v8510_v45  ;;  %2009 = vmatprep.subr.bf16.mxu1 %v8513_v46  ;;  %v10996_v46 = vld [vmem:[#allocation54_spill] sm:$0xff] }
 0x26b   : > { %1969 = vmatpush1.bf16.msra.mxu0 %v8520_v51  ;;  %2010 = vmatpush1.bf16.msra.mxu1 %v8524_v52  ;;  %v10997_v51 = vld [vmem:[#allocation55_spill] sm:$0xff]  ;;  %v10998_v52 = vld [vmem:[#allocation56_spill] sm:$0xff] }
 0x26c   : > { %1970 = vmatprep.subr.bf16.mxu0 %v8526_v53  ;;  %2011 = vmatprep.subr.bf16.mxu1 %v8529_v54  ;;  %v10999_v53 = vld [vmem:[#allocation57_spill] sm:$0xff]  ;;  %v11000_v54 = vld [vmem:[#allocation58_spill] sm:$0xff] }
 0x26f   : > { %1971 = vmatpush1.bf16.msra.mxu0 %v8536_v59  ;;  %2012 = vmatpush1.bf16.msra.mxu1 %v8540_v60  ;;  %v11001_v59 = vld [vmem:[#allocation59_spill] sm:$0xff]  ;;  %v11002_v60 = vld [vmem:[#allocation60_spill] sm:$0xff] }
 0x270   : > { %1972 = vmatprep.subr.bf16.mxu0 %v8542_v61  ;;  %2013 = vmatprep.subr.bf16.mxu1 %v8545_v62  ;;  %v11003_v61 = vld [vmem:[#allocation61_spill] sm:$0xff]  ;;  %v11004_v62 = vld [vmem:[#allocation62_spill] sm:$0xff] }
 0x273   : > { %1973 = vmatpush1.bf16.msra.mxu0 %v8552_v5  ;;  %2014 = vmatpush1.bf16.msra.mxu1 %v10995_v48  ;;  %v11005_v5 = vld [vmem:[#allocation63_spill] sm:$0xff]  ;;  %v11006_v48 = vld [vmem:[#allocation64_spill] sm:$0xff] }
 0x274   : > { %1974 = vmatprep.subr.bf16.mxu0 %v10996_v46  ;;  %2015 = vmatprep.subr.bf16.mxu1 %v10997_v51  ;;  %v11007_v46 = vld [vmem:[#allocation65_spill] sm:$0xff]  ;;  %v11008_v51 = vld [vmem:[#allocation66_spill] sm:$0xff] }
 0x277   : > { %1975 = vmatpush2.bf16.msra.mxu0 %v10998_v52  ;;  %2016 = vmatpush2.bf16.msra.mxu1 %v10999_v53  ;;  %v11009_v52 = vld [vmem:[#allocation67_spill] sm:$0xff]  ;;  %v11010_v53 = vld [vmem:[#allocation68_spill] sm:$0xff] }
 0x278   : > { %1976 = vmatprep.subr.bf16.mxu0 %v11000_v54  ;;  %2017 = vmatprep.subr.bf16.mxu1 %v11001_v59  ;;  %v11011_v54 = vld [vmem:[#allocation69_spill] sm:$0xff]  ;;  %v11012_v59 = vld [vmem:[#allocation70_spill] sm:$0xff] }
 0x27b   : > { %1977 = vmatpush2.bf16.msra.mxu0 %v11002_v60  ;;  %2018 = vmatpush2.bf16.msra.mxu1 %v11003_v61  ;;  %v11013_v60 = vld [vmem:[#allocation71_spill] sm:$0xff]  ;;  %v11014_v61 = vld [vmem:[#allocation72_spill] sm:$0xff] }
 0x27c   : > { %1978 = vmatprep.subr.bf16.mxu0 %v11004_v62  ;;  %2019 = vmatprep.subr.bf16.mxu1 %v11005_v5  ;;  %v11015_v62 = vld [vmem:[#allocation73_spill] sm:$0xff]  ;;  %v11016_v5 = vld [vmem:[#allocation74_spill] sm:$0xff] }
 0x27f   : > { %1979 = vmatpush2.bf16.msra.mxu0 %v11006_v48  ;;  %2020 = vmatpush2.bf16.msra.mxu1 %v11007_v46  ;;  %v11017_v48 = vld [vmem:[#allocation75_spill] sm:$0xff]  ;;  %v11018_v46 = vld [vmem:[#allocation76_spill] sm:$0xff] }
 0x280   : > { %1980 = vmatprep.subr.bf16.mxu0 %v11008_v51  ;;  %2021 = vmatprep.subr.bf16.mxu1 %v11009_v52  ;;  %v11019_v51 = vld [vmem:[#allocation77_spill] sm:$0xff]  ;;  %v11020_v52 = vld [vmem:[#allocation78_spill] sm:$0xff] }
 0x283   : > { %1981 = vmatpush2.bf16.msra.mxu0 %v11010_v53  ;;  %2022 = vmatpush2.bf16.msra.mxu1 %v11011_v54  ;;  %v11021_v53 = vld [vmem:[#allocation79_spill] sm:$0xff]  ;;  %v11022_v54 = vld [vmem:[#allocation80_spill] sm:$0xff] }
 0x284   : > { %1982 = vmatprep.subr.bf16.mxu0 %v11012_v59  ;;  %2023 = vmatprep.subr.bf16.mxu1 %v11013_v60  ;;  %v11023_v59 = vld [vmem:[#allocation81_spill] sm:$0xff]  ;;  %v11024_v60 = vld [vmem:[#allocation82_spill] sm:$0xff] }
 0x287   : > { %1983 = vmatpush2.bf16.msra.mxu0 %v11014_v61  ;;  %2024 = vmatpush2.bf16.msra.mxu1 %v11015_v62  ;;  %v11025_v61 = vld [vmem:[#allocation83_spill] sm:$0xff]  ;;  %v11026_v62 = vld [vmem:[#allocation84_spill] sm:$0xff] }
 0x288   : > { %1984 = vmatprep.subr.bf16.mxu0 %v11016_v5  ;;  %2025 = vmatprep.subr.bf16.mxu1 %v11017_v48  ;;  %v11027_v5 = vld [vmem:[#allocation85_spill] sm:$0xff]  ;;  %v11028_v48 = vld [vmem:[#allocation86_spill] sm:$0xff] }
 0x28b   : > { %1985 = vmatpush2.bf16.msra.mxu0 %v11018_v46  ;;  %2026 = vmatpush2.bf16.msra.mxu1 %v11019_v51  ;;  %v11029_v51 = vld [vmem:[#allocation87_spill] sm:$0xff] }
 0x28c   : > { %1986 = vmatprep.subr.bf16.mxu0 %v11020_v52  ;;  %2027 = vmatprep.subr.bf16.mxu1 %v11021_v53 }
 0x28f   : > { %1987 = vmatpush2.bf16.msra.mxu0 %v11022_v54  ;;  %2028 = vmatpush2.bf16.msra.mxu1 %v11023_v59 }
 0x290   : > { %1988 = vmatprep.subr.bf16.mxu0 %v11024_v60  ;;  %2029 = vmatprep.subr.bf16.mxu1 %v11025_v61 }
 0x293   : > { %1989 = vmatpush2.bf16.msra.mxu0 %v11026_v62  ;;  %2030 = vmatpush2.bf16.msra.mxu1 %v11027_v5 }
 0x294   : > { %2040 = vmatprep.subr.bf16.mxu0 %v11028_v48  ;;  %2081 = vmatprep.subr.bf16.mxu1 %v11029_v51 }
 0x2d6   : > { %v1736_v52 = vpop.f32.mrf.mxu0  ;;  %v1777_v46 = vpop.f32.mrf.mxu1 }
 0x2d8   : > { %v1738_v53 = vpop.f32.mrf.mxu0  ;;  %v1779_v45 = vpop.f32.mrf.mxu1 }
 0x2d9   : > { %v1874_v60 = vcombine.low %v1736_v52, %v1738_v53  ;;  %v1875_v38 = vcombine.low %v1777_v46, %v1779_v45 }
 0x2da   : > { %v1740_v54 = vpop.f32.mrf.mxu0  ;;  %v1781_v44 = vpop.f32.mrf.mxu1 }
 0x2db   : > { %v1882_v61 = vrot.slane %v1874_v60, %v9026_v50  ;;  %v1889_v62 = vrot.slane %v1875_v38, %v9026_v50 }
 0x2dc   : > { %v1741_v59 = vpop.f32.mrf.mxu0  ;;  %v1782_v43 = vpop.f32.mrf.mxu1 }
 0x2dd   : > { %v1890_v5 = vcombine.low %v1882_v61, %v1889_v62 }
 0x2df   : > { %v1910_v36 = vadd.f32 %v6764_v37, %v1890_v5 }
 0x2e1   : > { %v1919_v48 = vrot.slane %v1910_v36, 4  ;;  %v6766_v51 = vmul.f32 -1.442695, %v1910_v36  ;;  %v6765_v36 = vld [vmem:[%s9034_s20 + $0x18] sm:$0xff] }
 0x2e3   : > { %v6767_v35 = vmul.f32 -1.442695, %v1919_v48 }
 0x2e5   : > { %7814 = vpow2.f32 %v6767_v35 }
 0x2e6   : > { %7816 = vpow2.f32 %v6766_v51 }
 0x2f2   : > { %v7815_v44 = vpop.eup %7814 }
 0x2f3   : > { %v7817_v52 = vpop.eup %7816  ;;  %v1924_v38 = vadd.f32 1.0, %v7815_v44 }
 0x2f4   : > { %v1915_v62 = vadd.f32 1.0, %v7817_v52 }
 0x2f5   : > { %7818 = vrcp.f32 %v1924_v38 }
 0x2f6   : > { %7820 = vrcp.f32 %v1915_v62  ;;  %v11031_v62 = vld [vmem:[#allocation95_spill] sm:$0xff] }
 0x316   : > { %v1818_v30 = vpop.f32.mrf.mxu0  ;;  %v1859_v54 = vpop.f32.mrf.mxu1 }
 0x318   : > { %v1820_v59 = vpop.f32.mrf.mxu0  ;;  %v1861_v43 = vpop.f32.mrf.mxu1 }
 0x319   : > { %v1891_v45 = vcombine.low %v1818_v30, %v1820_v59  ;;  %v1892_v46 = vcombine.low %v1859_v54, %v1861_v43  ;;  %v7819_v30 = vpop.eup %7818 }
 0x31a   : > { %v1822_v53 = vpop.f32.mrf.mxu0  ;;  %v1863_v60 = vpop.f32.mrf.mxu1  ;;  %v1937_v44 = vmul.f32 %v7819_v30, %v9040_v56  ;;  %v11030_v56 = vld [vmem:[#allocation94_spill] sm:$0xff]  ;;  %v11037_v30 = vld [vmem:[#allocation101_spill] sm:$0xff] }
 0x31b   : > { %v1899_v61 = vrot.slane %v1891_v45, %v9026_v50  ;;  %v1906_v37 = vrot.slane %v1892_v46, %v9026_v50  ;;  %v7821_v54 = vpop.eup %7820 }
 0x31c   : > { %v1823_v35 = vpop.f32.mrf.mxu0  ;;  %v1864_v5 = vpop.f32.mrf.mxu1 }
 0x31d   : > { %v1907_v51 = vcombine.low %v1899_v61, %v1906_v37  ;;  %v11033_v35 = vld [vmem:[#allocation97_spill] sm:$0xff]  ;;  %v11034_v5 = vld [vmem:[#allocation98_spill] sm:$0xff] }
 0x31f   : > { %v1911_v48 = vadd.f32 %v6765_v36, %v1907_v51  ;;  %v11032_v36 = vld [vmem:[#allocation96_spill] sm:$0xff]  ;;  %v11035_v51 = vld [vmem:[#allocation99_spill] sm:$0xff] }
 0x321   : > { %7822 = vtanh.f32 %v1911_v48  ;;  %v1929_v29 = vrot.slane %v1911_v48, 4  ;;  %v11036_v48 = vld [vmem:[#allocation100_spill] sm:$0xff] }
 0x323   : > { %v6768_v28 = vmul.f32 -1.442695, %v1929_v29 }
 0x325   : > { %7824 = vpow2.f32 %v6768_v28 }
 0x32e   : > { %v7823_v59 = vpop.eup %7822 }
 0x32f   : > { %v1938_v43 = vmul.f32 %v7823_v59, %v7821_v54  ;;  %v11038_v54 = vld [vmem:[#allocation102_spill] sm:$0xff]  ;;  %v11039_v59 = vld [vmem:[#allocation103_spill] sm:$0xff] }
 0x331   : > { %v9185_v45 = vadd.f32 %v1938_v43, %v1937_v44  ;;  %v11040_v44 = vld [vmem:[#allocation104_spill] sm:$0xff]  ;;  %v11041_v43 = vld [vmem:[#allocation105_spill] sm:$0xff] }
 0x332   : > { %v7825_v52 = vpop.eup %7824 }
 0x333   : > { %v1934_v46 = vadd.f32 1.0, %v7825_v52  ;;  %7826 = vtanh.f32 %v9185_v45  ;;  %v11042_v52 = vld [vmem:[#allocation106_spill] sm:$0xff] }
 0x335   : > { %7828 = vrcp.f32 %v1934_v46  ;;  %v11043_v46 = vld [vmem:[#allocation107_spill] sm:$0xff] }
 0x340   : > { %v7827_v53 = vpop.eup %7826 }
 0x342   : > { %v7829_v60 = vpop.eup %7828 }
 0x343   : > { %v1941_v38 = vmul.f32 %v7829_v60, %v7827_v53  ;;  %v11044_v53 = vld [vmem:[#allocation108_spill] sm:$0xff]  ;;  %v11045_v60 = vld [vmem:[#allocation109_spill] sm:$0xff] }
 0x345   : > { %v1952_v61 = vrot.slane %v1941_v38, %v9026_v50  ;;  %v11046_v38 = vld [vmem:[#allocation110_spill] sm:$0xff] }
 0x347   : > { %v1953_v29 = vcombine.high %v1952_v61, %v1952_v61  ;;  %v9189_v37 = vpack.c.bf16 %v1952_v61, %v1952_v61  ;;  %v11047_v61 = vld [vmem:[#allocation111_spill] sm:$0xff] }
 0x349   : > { %v1957_v28 = vpack.c.bf16 %v1953_v29, %v1953_v29  ;;  %v11048_v29 = vld [vmem:[#allocation112_spill] sm:$0xff] }
 0x34b   : > { %1990 = vmatprep.mubr.bf16.mxu0 %v1957_v28  ;;  %2031 = vmatprep.mubr.bf16.mxu1 %v1957_v28 }
 0x34c   : > { %1991 = vmatmul.mubr.bf16.vlgmr.msra.gmra.mxu0 %v9189_v37  ;;  %2032 = vmatmul.mubr.bf16.vlgmr.msra.gmra.mxu1 %v9189_v37 }
 0x34d   : > { %2041 = vmatpush1.bf16.msra.mxu0 %v10946_v32  ;;  %2082 = vmatpush1.bf16.msra.mxu1 %v10947_v1 }
 0x34e   : > { %2072 = vmatprep.mubr.bf16.mxu0 %v1957_v28  ;;  %2113 = vmatprep.mubr.bf16.mxu1 %v1957_v28  ;;  %v11049_v28 = vld [vmem:[#allocation113_spill] sm:$0xff] }
 0x34f   : > { %2042 = vmatprep.subr.bf16.mxu0 %v10948_v23  ;;  %2083 = vmatprep.subr.bf16.mxu1 %v10949_v41 }
 0x351   : > { %2043 = vmatpush1.bf16.msra.mxu0 %v10950_v39  ;;  %2084 = vmatpush1.bf16.msra.mxu1 %v10951_v40 }
 0x352   : > { %2044 = vmatprep.subr.bf16.mxu0 %v11030_v56  ;;  %2085 = vmatprep.subr.bf16.mxu1 %v11031_v62 }
 0x355   : > { %2045 = vmatpush1.bf16.msra.mxu0 %v11032_v36  ;;  %2086 = vmatpush1.bf16.msra.mxu1 %v11033_v35 }
 0x356   : > { %2046 = vmatprep.subr.bf16.mxu0 %v11034_v5  ;;  %2087 = vmatprep.subr.bf16.mxu1 %v11035_v51 }
 0x359   : > { %2047 = vmatpush1.bf16.msra.mxu0 %v11036_v48  ;;  %2088 = vmatpush1.bf16.msra.mxu1 %v11037_v30 }
 0x35a   : > { %2048 = vmatprep.subr.bf16.mxu0 %v11038_v54  ;;  %2089 = vmatprep.subr.bf16.mxu1 %v11039_v59  ;;  %v11050_v59 = vld [vmem:[#allocation114_spill] sm:$0xff] }
 0x35d   : > { %2049 = vmatpush1.bf16.msra.mxu0 %v11040_v44  ;;  %2090 = vmatpush1.bf16.msra.mxu1 %v11041_v43  ;;  %v11051_v44 = vld [vmem:[#allocation115_spill] sm:$0xff]  ;;  %v11052_v43 = vld [vmem:[#allocation116_spill] sm:$0xff] }
 0x35e   : > { %2050 = vmatprep.subr.bf16.mxu0 %v11042_v52  ;;  %2091 = vmatprep.subr.bf16.mxu1 %v11043_v46  ;;  %v11053_v52 = vld [vmem:[#allocation117_spill] sm:$0xff]  ;;  %v11054_v46 = vld [vmem:[#allocation118_spill] sm:$0xff] }
 0x361   : > { %2051 = vmatpush1.bf16.msra.mxu0 %v11044_v53  ;;  %2092 = vmatpush1.bf16.msra.mxu1 %v11045_v60  ;;  %v11055_v53 = vld [vmem:[#allocation119_spill] sm:$0xff]  ;;  %v11056_v60 = vld [vmem:[#allocation120_spill] sm:$0xff] }
 0x362   : > { %2052 = vmatprep.subr.bf16.mxu0 %v11046_v38  ;;  %2093 = vmatprep.subr.bf16.mxu1 %v11047_v61  ;;  %v11057_v38 = vld [vmem:[#allocation121_spill] sm:$0xff]  ;;  %v11058_v61 = vld [vmem:[#allocation122_spill] sm:$0xff] }
 0x365   : > { %2053 = vmatpush1.bf16.msra.mxu0 %v11048_v29  ;;  %2094 = vmatpush1.bf16.msra.mxu1 %v11049_v28  ;;  %v11059_v29 = vld [vmem:[#allocation123_spill] sm:$0xff]  ;;  %v11060_v28 = vld [vmem:[#allocation124_spill] sm:$0xff] }
 0x366   : > { %2054 = vmatprep.subr.bf16.mxu0 %v11050_v59  ;;  %2095 = vmatprep.subr.bf16.mxu1 %v11051_v44 }
 0x369   : > { %2055 = vmatpush1.bf16.msra.mxu0 %v11052_v43  ;;  %2096 = vmatpush1.bf16.msra.mxu1 %v11053_v52  ;;  %v11061_v52 = vld [vmem:[#allocation128_spill] sm:$0xff] }
 0x36a   : > { %2056 = vmatprep.subr.bf16.mxu0 %v11054_v46  ;;  %2097 = vmatprep.subr.bf16.mxu1 %v11055_v53 }
 0x36d   : > { %2057 = vmatpush2.bf16.msra.mxu0 %v11056_v60  ;;  %2098 = vmatpush2.bf16.msra.mxu1 %v11057_v38 }
 0x36e   : > { %2058 = vmatprep.subr.bf16.mxu0 %v11058_v61  ;;  %2099 = vmatprep.subr.bf16.mxu1 %v11059_v29 }
 0x371   : > { %2059 = vmatpush2.bf16.msra.mxu0 %v11060_v28  ;;  %2100 = vmatpush2.bf16.msra.mxu1 %v10983_v7 }
 0x372   : > { %2060 = vmatprep.subr.bf16.mxu0 %v10984_v34  ;;  %2101 = vmatprep.subr.bf16.mxu1 %v10985_v16 }
 0x375   : > { %2061 = vmatpush2.bf16.msra.mxu0 %v11061_v52  ;;  %2102 = vmatpush2.bf16.msra.mxu1 %v10987_v12 }
 0x376   : > { %2062 = vmatprep.subr.bf16.mxu0 %v10988_v49  ;;  %2103 = vmatprep.subr.bf16.mxu1 %v10989_v24 }
 0x379   : > { %2063 = vmatpush2.bf16.msra.mxu0 %v10990_v8  ;;  %2104 = vmatpush2.bf16.msra.mxu1 %v10991_v58 }
 0x37a   : > { %2064 = vmatprep.subr.bf16.mxu0 %v10992_v18  ;;  %2105 = vmatprep.subr.bf16.mxu1 %v10993_v25 }
 0x37d   : > { %2065 = vmatpush2.bf16.msra.mxu0 %v8892_v42  ;;  %2106 = vmatpush2.bf16.msra.mxu1 %v8898_v63 }
 0x37e   : > { %2066 = vmatprep.subr.bf16.mxu0 %v8900_v14  ;;  %2107 = vmatprep.subr.bf16.mxu1 %v10994_v13 }
 0x381   : > { %2067 = vmatpush2.bf16.msra.mxu0 %v8908_v33  ;;  %2108 = vmatpush2.bf16.msra.mxu1 %v8914_v47 }
 0x382   : > { %2068 = vmatprep.subr.bf16.mxu0 %v8916_v31  ;;  %2109 = vmatprep.subr.bf16.mxu1 %v8921_v17 }
 0x385   : > { %2069 = vmatpush2.bf16.msra.mxu0 %v8924_v26  ;;  %2110 = vmatpush2.bf16.msra.mxu1 %v8928_v2 }
 0x386   : > { %2070 = vmatprep.subr.bf16.mxu0 %v8930_v57  ;;  %2111 = vmatprep.subr.bf16.mxu1 %v8933_v0  ;;  %v6769_v57 = vld [vmem:[%s9034_s20 + $0x20] sm:$0xff] }
 0x389   : > { %2071 = vmatpush2.bf16.msra.mxu0 %v8936_v55  ;;  %2112 = vmatpush2.bf16.msra.mxu1 %v8940_v3 }
 0x38a   : > { %2214 = vmatprep.subr.bf16.mxu0 %v8432_v4  ;;  %2255 = vmatprep.subr.bf16.mxu1 %v8439_v9  ;;  %v11062_v9 = vld [vmem:[#allocation33_spill] sm:$0xff] }
 0x38c   : > { %2073 = vmatmul.mubr.bf16.vlgmr.msra.gmra.mxu0 %v9189_v37  ;;  %2114 = vmatmul.mubr.bf16.vlgmr.msra.gmra.mxu1 %v9189_v37  ;;  %v11063_v37 = vld [vmem:[#allocation34_spill] sm:$0xff] }
 0x38d   : > { %2215 = vmatpush1.bf16.msra.mxu0 %v8435_v6  ;;  %2256 = vmatpush1.bf16.msra.mxu1 %v8441_v10  ;;  %v11064_v6 = vld [vmem:[#allocation35_spill] sm:$0xff]  ;;  %v11065_v10 = vld [vmem:[#allocation36_spill] sm:$0xff] }
 0x38e   : > { %2216 = vmatprep.subr.bf16.mxu0 %v8443_v11  ;;  %2257 = vmatprep.subr.bf16.mxu1 %v8449_v15  ;;  %v11066_v11 = vld [vmem:[#allocation37_spill] sm:$0xff]  ;;  %v11067_v15 = vld [vmem:[#allocation38_spill] sm:$0xff] }
 0x391   : > { %2217 = vmatpush1.bf16.msra.mxu0 %v8456_v19  ;;  %2258 = vmatpush1.bf16.msra.mxu1 %v8460_v20  ;;  %v11068_v19 = vld [vmem:[#allocation39_spill] sm:$0xff]  ;;  %v11069_v20 = vld [vmem:[#allocation40_spill] sm:$0xff] }
 0x392   : > { %2218 = vmatprep.subr.bf16.mxu0 %v8462_v21  ;;  %2259 = vmatprep.subr.bf16.mxu1 %v8465_v22  ;;  %v11070_v21 = vld [vmem:[#allocation41_spill] sm:$0xff]  ;;  %v11071_v22 = vld [vmem:[#allocation42_spill] sm:$0xff] }
 0x395   : > { %2219 = vmatpush1.bf16.msra.mxu0 %v8472_v27  ;;  %2260 = vmatpush1.bf16.msra.mxu1 %v11062_v9  ;;  %v11072_v27 = vld [vmem:[#allocation43_spill] sm:$0xff]  ;;  %v11073_v9 = vld [vmem:[#allocation44_spill] sm:$0xff] }
 0x396   : > { %2220 = vmatprep.subr.bf16.mxu0 %v11063_v37  ;;  %2261 = vmatprep.subr.bf16.mxu1 %v11064_v6  ;;  %v11074_v37 = vld [vmem:[#allocation45_spill] sm:$0xff]  ;;  %v11075_v6 = vld [vmem:[#allocation46_spill] sm:$0xff] }
 0x399   : > { %2221 = vmatpush1.bf16.msra.mxu0 %v11065_v10  ;;  %2262 = vmatpush1.bf16.msra.mxu1 %v11066_v11  ;;  %v11076_v10 = vld [vmem:[#allocation47_spill] sm:$0xff]  ;;  %v11077_v11 = vld [vmem:[#allocation48_spill] sm:$0xff] }
 0x39a   : > { %2222 = vmatprep.subr.bf16.mxu0 %v11067_v15  ;;  %2263 = vmatprep.subr.bf16.mxu1 %v11068_v19  ;;  %v11078_v15 = vld [vmem:[#allocation49_spill] sm:$0xff]  ;;  %v11079_v19 = vld [vmem:[#allocation50_spill] sm:$0xff] }
 0x39d   : > { %2223 = vmatpush1.bf16.msra.mxu0 %v11069_v20  ;;  %2264 = vmatpush1.bf16.msra.mxu1 %v11070_v21  ;;  %v11080_v20 = vld [vmem:[#allocation51_spill] sm:$0xff]  ;;  %v11081_v21 = vld [vmem:[#allocation52_spill] sm:$0xff] }
 0x39e   : > { %2224 = vmatprep.subr.bf16.mxu0 %v11071_v22  ;;  %2265 = vmatprep.subr.bf16.mxu1 %v11072_v27  ;;  %v11082_v22 = vld [vmem:[#allocation53_spill] sm:$0xff]  ;;  %v11083_v27 = vld [vmem:[#allocation54_spill] sm:$0xff] }
 0x3a1   : > { %2225 = vmatpush1.bf16.msra.mxu0 %v11073_v9  ;;  %2266 = vmatpush1.bf16.msra.mxu1 %v11074_v37  ;;  %v11084_v9 = vld [vmem:[#allocation55_spill] sm:$0xff]  ;;  %v11085_v37 = vld [vmem:[#allocation56_spill] sm:$0xff] }
 0x3a2   : > { %2226 = vmatprep.subr.bf16.mxu0 %v11075_v6  ;;  %2267 = vmatprep.subr.bf16.mxu1 %v11076_v10  ;;  %v11086_v6 = vld [vmem:[#allocation57_spill] sm:$0xff]  ;;  %v11087_v10 = vld [vmem:[#allocation58_spill] sm:$0xff] }
 0x3a5   : > { %2227 = vmatpush1.bf16.msra.mxu0 %v11077_v11  ;;  %2268 = vmatpush1.bf16.msra.mxu1 %v11078_v15  ;;  %v11088_v11 = vld [vmem:[#allocation59_spill] sm:$0xff]  ;;  %v11089_v15 = vld [vmem:[#allocation60_spill] sm:$0xff] }
 0x3a6   : > { %2228 = vmatprep.subr.bf16.mxu0 %v11079_v19  ;;  %2269 = vmatprep.subr.bf16.mxu1 %v11080_v20  ;;  %v11090_v19 = vld [vmem:[#allocation61_spill] sm:$0xff]  ;;  %v11091_v20 = vld [vmem:[#allocation62_spill] sm:$0xff] }
 0x3a9   : > { %2229 = vmatpush1.bf16.msra.mxu0 %v11081_v21  ;;  %2270 = vmatpush1.bf16.msra.mxu1 %v11082_v22  ;;  %v11092_v21 = vld [vmem:[#allocation63_spill] sm:$0xff]  ;;  %v11093_v22 = vld [vmem:[#allocation64_spill] sm:$0xff] }
 0x3aa   : > { %2230 = vmatprep.subr.bf16.mxu0 %v11083_v27  ;;  %2271 = vmatprep.subr.bf16.mxu1 %v11084_v9  ;;  %v11094_v27 = vld [vmem:[#allocation65_spill] sm:$0xff]  ;;  %v11095_v9 = vld [vmem:[#allocation66_spill] sm:$0xff] }
 0x3ad   : > { %2231 = vmatpush2.bf16.msra.mxu0 %v11085_v37  ;;  %2272 = vmatpush2.bf16.msra.mxu1 %v11086_v6  ;;  %v11096_v37 = vld [vmem:[#allocation67_spill] sm:$0xff]  ;;  %v11097_v6 = vld [vmem:[#allocation68_spill] sm:$0xff] }
 0x3ae   : > { %2232 = vmatprep.subr.bf16.mxu0 %v11087_v10  ;;  %2273 = vmatprep.subr.bf16.mxu1 %v11088_v11  ;;  %v11098_v10 = vld [vmem:[#allocation69_spill] sm:$0xff]  ;;  %v11099_v11 = vld [vmem:[#allocation70_spill] sm:$0xff] }
 0x3b1   : > { %2233 = vmatpush2.bf16.msra.mxu0 %v11089_v15  ;;  %2274 = vmatpush2.bf16.msra.mxu1 %v11090_v19  ;;  %v11100_v15 = vld [vmem:[#allocation71_spill] sm:$0xff]  ;;  %v11101_v19 = vld [vmem:[#allocation72_spill] sm:$0xff] }
 0x3b2   : > { %2234 = vmatprep.subr.bf16.mxu0 %v11091_v20  ;;  %2275 = vmatprep.subr.bf16.mxu1 %v11092_v21  ;;  %v11102_v20 = vld [vmem:[#allocation73_spill] sm:$0xff]  ;;  %v11103_v21 = vld [vmem:[#allocation74_spill] sm:$0xff] }
 0x3b5   : > { %2235 = vmatpush2.bf16.msra.mxu0 %v11093_v22  ;;  %2276 = vmatpush2.bf16.msra.mxu1 %v11094_v27  ;;  %v11104_v22 = vld [vmem:[#allocation75_spill] sm:$0xff]  ;;  %v11105_v27 = vld [vmem:[#allocation76_spill] sm:$0xff] }
 0x3b6   : > { %2236 = vmatprep.subr.bf16.mxu0 %v11095_v9  ;;  %2277 = vmatprep.subr.bf16.mxu1 %v11096_v37  ;;  %v11106_v9 = vld [vmem:[#allocation77_spill] sm:$0xff]  ;;  %v11107_v37 = vld [vmem:[#allocation78_spill] sm:$0xff] }
 0x3b9   : > { %2237 = vmatpush2.bf16.msra.mxu0 %v11097_v6  ;;  %2278 = vmatpush2.bf16.msra.mxu1 %v11098_v10  ;;  %v11108_v6 = vld [vmem:[#allocation79_spill] sm:$0xff]  ;;  %v11109_v10 = vld [vmem:[#allocation80_spill] sm:$0xff] }
 0x3ba   : > { %2238 = vmatprep.subr.bf16.mxu0 %v11099_v11  ;;  %2279 = vmatprep.subr.bf16.mxu1 %v11100_v15  ;;  %v11110_v11 = vld [vmem:[#allocation81_spill] sm:$0xff]  ;;  %v11111_v15 = vld [vmem:[#allocation82_spill] sm:$0xff] }
 0x3bd   : > { %2239 = vmatpush2.bf16.msra.mxu0 %v11101_v19  ;;  %2280 = vmatpush2.bf16.msra.mxu1 %v11102_v20  ;;  %v11112_v19 = vld [vmem:[#allocation83_spill] sm:$0xff]  ;;  %v11113_v20 = vld [vmem:[#allocation84_spill] sm:$0xff] }
 0x3be   : > { %2240 = vmatprep.subr.bf16.mxu0 %v11103_v21  ;;  %2281 = vmatprep.subr.bf16.mxu1 %v11104_v22  ;;  %v11114_v21 = vld [vmem:[#allocation85_spill] sm:$0xff]  ;;  %v11115_v22 = vld [vmem:[#allocation86_spill] sm:$0xff] }
 0x3c1   : > { %2241 = vmatpush2.bf16.msra.mxu0 %v11105_v27  ;;  %2282 = vmatpush2.bf16.msra.mxu1 %v11106_v9  ;;  %v11116_v9 = vld [vmem:[#allocation87_spill] sm:$0xff] }
 0x3c2   : > { %2242 = vmatprep.subr.bf16.mxu0 %v11107_v37  ;;  %2283 = vmatprep.subr.bf16.mxu1 %v11108_v6 }
 0x3c5   : > { %2243 = vmatpush2.bf16.msra.mxu0 %v11109_v10  ;;  %2284 = vmatpush2.bf16.msra.mxu1 %v11110_v11 }
 0x3c6   : > { %2244 = vmatprep.subr.bf16.mxu0 %v11111_v15  ;;  %2285 = vmatprep.subr.bf16.mxu1 %v11112_v19 }
 0x3c9   : > { %2245 = vmatpush2.bf16.msra.mxu0 %v11113_v20  ;;  %2286 = vmatpush2.bf16.msra.mxu1 %v11114_v21 }
 0x3ca   : > { %2296 = vmatprep.subr.bf16.mxu0 %v11115_v22  ;;  %2337 = vmatprep.subr.bf16.mxu1 %v11116_v9 }
 0x40c   : > { %v1992_v37 = vpop.f32.mrf.mxu0  ;;  %v2033_v27 = vpop.f32.mrf.mxu1 }
 0x40e   : > { %v1994_v6 = vpop.f32.mrf.mxu0  ;;  %v2035_v4 = vpop.f32.mrf.mxu1 }
 0x40f   : > { %v2130_v15 = vcombine.low %v1992_v37, %v1994_v6  ;;  %v2131_v0 = vcombine.low %v2033_v27, %v2035_v4 }
 0x410   : > { %v1996_v10 = vpop.f32.mrf.mxu0  ;;  %v2037_v3 = vpop.f32.mrf.mxu1 }
 0x411   : > { %v2138_v19 = vrot.slane %v2130_v15, %v9026_v50  ;;  %v2145_v20 = vrot.slane %v2131_v0, %v9026_v50 }
 0x412   : > { %v1997_v11 = vpop.f32.mrf.mxu0  ;;  %v2038_v55 = vpop.f32.mrf.mxu1 }
 0x413   : > { %v2146_v21 = vcombine.low %v2138_v19, %v2145_v20 }
 0x415   : > { %v2166_v2 = vadd.f32 %v6769_v57, %v2146_v21 }
 0x417   : > { %v2175_v22 = vrot.slane %v2166_v2, 4  ;;  %v6771_v9 = vmul.f32 -1.442695, %v2166_v2 }
 0x419   : > { %v6772_v26 = vmul.f32 -1.442695, %v2175_v22  ;;  %v6770_v22 = vld [vmem:[%s9034_s20 + $0x28] sm:$0xff] }
 0x41b   : > { %7830 = vpow2.f32 %v6772_v26 }
 0x41c   : > { %7832 = vpow2.f32 %v6771_v9 }
 0x428   : > { %v7831_v3 = vpop.eup %7830 }
 0x429   : > { %v7833_v6 = vpop.eup %7832  ;;  %v2180_v0 = vadd.f32 1.0, %v7831_v3 }
 0x42a   : > { %v2171_v21 = vadd.f32 1.0, %v7833_v6 }
 0x42b   : > { %7834 = vrcp.f32 %v2180_v0 }
 0x42c   : > { %7836 = vrcp.f32 %v2171_v21  ;;  %v11118_v21 = vld [vmem:[#allocation104_spill] sm:$0xff] }
 0x44c   : > { %v2074_v17 = vpop.f32.mrf.mxu0  ;;  %v2115_v10 = vpop.f32.mrf.mxu1 }
 0x44e   : > { %v2076_v11 = vpop.f32.mrf.mxu0  ;;  %v2117_v55 = vpop.f32.mrf.mxu1 }
 0x44f   : > { %v2147_v4 = vcombine.low %v2074_v17, %v2076_v11  ;;  %v2148_v27 = vcombine.low %v2115_v10, %v2117_v55  ;;  %v7835_v17 = vpop.eup %7834 }
 0x450   : > { %v2078_v15 = vpop.f32.mrf.mxu0  ;;  %v2119_v37 = vpop.f32.mrf.mxu1  ;;  %v2193_v3 = vmul.f32 %v7835_v17, %v9185_v45  ;;  %v11117_v45 = vld [vmem:[#allocation103_spill] sm:$0xff]  ;;  %v11124_v17 = vld [vmem:[#allocation110_spill] sm:$0xff] }
 0x451   : > { %v2155_v19 = vrot.slane %v2147_v4, %v9026_v50  ;;  %v2162_v20 = vrot.slane %v2148_v27, %v9026_v50  ;;  %v7837_v10 = vpop.eup %7836 }
 0x452   : > { %v2079_v26 = vpop.f32.mrf.mxu0  ;;  %v2120_v2 = vpop.f32.mrf.mxu1 }
 0x453   : > { %v2163_v9 = vcombine.low %v2155_v19, %v2162_v20  ;;  %v11120_v26 = vld [vmem:[#allocation106_spill] sm:$0xff]  ;;  %v11121_v2 = vld [vmem:[#allocation107_spill] sm:$0xff] }
 0x455   : > { %v2167_v57 = vadd.f32 %v6770_v22, %v2163_v9  ;;  %v11119_v22 = vld [vmem:[#allocation105_spill] sm:$0xff]  ;;  %v11122_v9 = vld [vmem:[#allocation108_spill] sm:$0xff] }
 0x457   : > { %7838 = vtanh.f32 %v2167_v57  ;;  %v2185_v31 = vrot.slane %v2167_v57, 4  ;;  %v11123_v57 = vld [vmem:[#allocation109_spill] sm:$0xff] }
 0x459   : > { %v6773_v47 = vmul.f32 -1.442695, %v2185_v31 }
 0x45b   : > { %7840 = vpow2.f32 %v6773_v47 }
 0x464   : > { %v7839_v11 = vpop.eup %7838 }
 0x465   : > { %v2194_v55 = vmul.f32 %v7839_v11, %v7837_v10  ;;  %v11125_v10 = vld [vmem:[#allocation111_spill] sm:$0xff]  ;;  %v11126_v11 = vld [vmem:[#allocation112_spill] sm:$0xff] }
 0x467   : > { %v9330_v4 = vadd.f32 %v2194_v55, %v2193_v3  ;;  %v11127_v3 = vld [vmem:[#allocation113_spill] sm:$0xff] }
 0x468   : > { %v7841_v6 = vpop.eup %7840  ;;  %v11128_v55 = vld [vmem:[#allocation117_spill] sm:$0xff] }
 0x469   : > { %v2190_v27 = vadd.f32 1.0, %v7841_v6  ;;  %7842 = vtanh.f32 %v9330_v4  ;;  %v11129_v6 = vld [vmem:[#allocation141_spill] sm:$0xff] }
 0x46b   : > { %7844 = vrcp.f32 %v2190_v27  ;;  %v11130_v27 = vld [vmem:[#allocation142_spill] sm:$0xff] }
 0x476   : > { %v7843_v15 = vpop.eup %7842 }
 0x478   : > { %v7845_v37 = vpop.eup %7844 }
 0x479   : > { %v2197_v0 = vmul.f32 %v7845_v37, %v7843_v15  ;;  %v11131_v15 = vld [vmem:[#allocation143_spill] sm:$0xff]  ;;  %v11132_v37 = vld [vmem:[#allocation144_spill] sm:$0xff] }
 0x47b   : > { %v2208_v19 = vrot.slane %v2197_v0, %v9026_v50  ;;  %v11133_v0 = vld [vmem:[#allocation145_spill] sm:$0xff] }
 0x47d   : > { %v2209_v31 = vcombine.high %v2208_v19, %v2208_v19  ;;  %v9334_v20 = vpack.c.bf16 %v2208_v19, %v2208_v19  ;;  %v11134_v19 = vld [vmem:[#allocation146_spill] sm:$0xff] }
 0x47f   : > { %v2213_v47 = vpack.c.bf16 %v2209_v31, %v2209_v31  ;;  %v11135_v31 = vld [vmem:[#allocation147_spill] sm:$0xff] }
 0x481   : > { %2246 = vmatprep.mubr.bf16.mxu0 %v2213_v47  ;;  %2287 = vmatprep.mubr.bf16.mxu1 %v2213_v47 }
 0x482   : > { %2247 = vmatmul.mubr.bf16.vlgmr.msra.gmra.mxu0 %v9334_v20  ;;  %2288 = vmatmul.mubr.bf16.vlgmr.msra.gmra.mxu1 %v9334_v20 }
 0x483   : > { %2297 = vmatpush1.bf16.msra.mxu0 %v10946_v32  ;;  %2338 = vmatpush1.bf16.msra.mxu1 %v10947_v1 }
 0x484   : > { %2328 = vmatprep.mubr.bf16.mxu0 %v2213_v47  ;;  %2369 = vmatprep.mubr.bf16.mxu1 %v2213_v47  ;;  %v11136_v47 = vld [vmem:[#allocation148_spill] sm:$0xff] }
 0x485   : > { %2298 = vmatprep.subr.bf16.mxu0 %v10948_v23  ;;  %2339 = vmatprep.subr.bf16.mxu1 %v10949_v41 }
 0x487   : > { %2299 = vmatpush1.bf16.msra.mxu0 %v10950_v39  ;;  %2340 = vmatpush1.bf16.msra.mxu1 %v10951_v40 }
 0x488   : > { %2300 = vmatprep.subr.bf16.mxu0 %v11030_v56  ;;  %2341 = vmatprep.subr.bf16.mxu1 %v11031_v62 }
 0x48b   : > { %2301 = vmatpush1.bf16.msra.mxu0 %v11032_v36  ;;  %2342 = vmatpush1.bf16.msra.mxu1 %v11033_v35 }
 0x48c   : > { %2302 = vmatprep.subr.bf16.mxu0 %v11034_v5  ;;  %2343 = vmatprep.subr.bf16.mxu1 %v11035_v51 }
 0x48f   : > { %2303 = vmatpush1.bf16.msra.mxu0 %v11036_v48  ;;  %2344 = vmatpush1.bf16.msra.mxu1 %v11037_v30 }
 0x490   : > { %2304 = vmatprep.subr.bf16.mxu0 %v11038_v54  ;;  %2345 = vmatprep.subr.bf16.mxu1 %v11117_v45 }
 0x493   : > { %2305 = vmatpush1.bf16.msra.mxu0 %v11118_v21  ;;  %2346 = vmatpush1.bf16.msra.mxu1 %v11119_v22 }
 0x494   : > { %2306 = vmatprep.subr.bf16.mxu0 %v11120_v26  ;;  %2347 = vmatprep.subr.bf16.mxu1 %v11121_v2 }
 0x497   : > { %2307 = vmatpush1.bf16.msra.mxu0 %v11122_v9  ;;  %2348 = vmatpush1.bf16.msra.mxu1 %v11123_v57 }
 0x498   : > { %2308 = vmatprep.subr.bf16.mxu0 %v11124_v17  ;;  %2349 = vmatprep.subr.bf16.mxu1 %v11125_v10 }
 0x49b   : > { %2309 = vmatpush1.bf16.msra.mxu0 %v11126_v11  ;;  %2350 = vmatpush1.bf16.msra.mxu1 %v11127_v3 }
 0x49c   : > { %2310 = vmatprep.subr.bf16.mxu0 %v11050_v59  ;;  %2351 = vmatprep.subr.bf16.mxu1 %v11051_v44 }
 0x49f   : > { %2311 = vmatpush1.bf16.msra.mxu0 %v11052_v43  ;;  %2352 = vmatpush1.bf16.msra.mxu1 %v11128_v55 }
 0x4a0   : > { %2312 = vmatprep.subr.bf16.mxu0 %v11054_v46  ;;  %2353 = vmatprep.subr.bf16.mxu1 %v11055_v53 }
 0x4a3   : > { %2313 = vmatpush2.bf16.msra.mxu0 %v11056_v60  ;;  %2354 = vmatpush2.bf16.msra.mxu1 %v11057_v38 }
 0x4a4   : > { %2314 = vmatprep.subr.bf16.mxu0 %v11058_v61  ;;  %2355 = vmatprep.subr.bf16.mxu1 %v11059_v29 }
 0x4a7   : > { %2315 = vmatpush2.bf16.msra.mxu0 %v11060_v28  ;;  %2356 = vmatpush2.bf16.msra.mxu1 %v10983_v7 }
 0x4a8   : > { %2316 = vmatprep.subr.bf16.mxu0 %v10984_v34  ;;  %2357 = vmatprep.subr.bf16.mxu1 %v10985_v16 }
 0x4ab   : > { %2317 = vmatpush2.bf16.msra.mxu0 %v11061_v52  ;;  %2358 = vmatpush2.bf16.msra.mxu1 %v10987_v12 }
 0x4ac   : > { %2318 = vmatprep.subr.bf16.mxu0 %v10988_v49  ;;  %2359 = vmatprep.subr.bf16.mxu1 %v10989_v24 }
 0x4af   : > { %2319 = vmatpush2.bf16.msra.mxu0 %v10990_v8  ;;  %2360 = vmatpush2.bf16.msra.mxu1 %v10991_v58 }
 0x4b0   : > { %2320 = vmatprep.subr.bf16.mxu0 %v10992_v18  ;;  %2361 = vmatprep.subr.bf16.mxu1 %v10993_v25  ;;  %v6774_v18 = vld [vmem:[%s9034_s20 + $0x30] sm:$0xff] }
 0x4b3   : > { %2321 = vmatpush2.bf16.msra.mxu0 %v8892_v42  ;;  %2362 = vmatpush2.bf16.msra.mxu1 %v8898_v63 }
 0x4b4   : > { %2322 = vmatprep.subr.bf16.mxu0 %v8900_v14  ;;  %2363 = vmatprep.subr.bf16.mxu1 %v10994_v13  ;;  %v11137_v14 = vld [vmem:[#allocation149_spill] sm:$0xff]  ;;  %v11138_v13 = vld [vmem:[#allocation22_spill] sm:$0xff] }
 0x4b7   : > { %2323 = vmatpush2.bf16.msra.mxu0 %v8908_v33  ;;  %2364 = vmatpush2.bf16.msra.mxu1 %v11129_v6  ;;  %v11139_v33 = vld [vmem:[#allocation24_spill] sm:$0xff] }
 0x4b8   : > { %2324 = vmatprep.subr.bf16.mxu0 %v11130_v27  ;;  %2365 = vmatprep.subr.bf16.mxu1 %v11131_v15  ;;  %v11140_v15 = vld [vmem:[#allocation23_spill] sm:$0xff]  ;;  %v11149_v27 = vld [vmem:[#allocation33_spill] sm:$0xff] }
 0x4bb   : > { %2325 = vmatpush2.bf16.msra.mxu0 %v11132_v37  ;;  %2366 = vmatpush2.bf16.msra.mxu1 %v11133_v0  ;;  %v11141_v37 = vld [vmem:[#allocation25_spill] sm:$0xff]  ;;  %v11142_v0 = vld [vmem:[#allocation26_spill] sm:$0xff] }
 0x4bc   : > { %2326 = vmatprep.subr.bf16.mxu0 %v11134_v19  ;;  %2367 = vmatprep.subr.bf16.mxu1 %v11135_v31  ;;  %v11143_v19 = vld [vmem:[#allocation27_spill] sm:$0xff]  ;;  %v11144_v31 = vld [vmem:[#allocation28_spill] sm:$0xff] }
 0x4bf   : > { %2327 = vmatpush2.bf16.msra.mxu0 %v11136_v47  ;;  %2368 = vmatpush2.bf16.msra.mxu1 %v11137_v14  ;;  %v11145_v47 = vld [vmem:[#allocation29_spill] sm:$0xff]  ;;  %v11146_v14 = vld [vmem:[#allocation30_spill] sm:$0xff] }
 0x4c0   : > { %2470 = vmatprep.subr.bf16.mxu0 %v11138_v13  ;;  %2511 = vmatprep.subr.bf16.mxu1 %v11139_v33  ;;  %v11147_v13 = vld [vmem:[#allocation31_spill] sm:$0xff]  ;;  %v11148_v33 = vld [vmem:[#allocation32_spill] sm:$0xff] }
 0x4c2   : > { %2329 = vmatmul.mubr.bf16.vlgmr.msra.gmra.mxu0 %v9334_v20  ;;  %2370 = vmatmul.mubr.bf16.vlgmr.msra.gmra.mxu1 %v9334_v20  ;;  %v11150_v20 = vld [vmem:[#allocation34_spill] sm:$0xff] }
 0x4c3   : > { %2471 = vmatpush1.bf16.msra.mxu0 %v11140_v15  ;;  %2512 = vmatpush1.bf16.msra.mxu1 %v11141_v37  ;;  %v11151_v15 = vld [vmem:[#allocation35_spill] sm:$0xff]  ;;  %v11152_v37 = vld [vmem:[#allocation36_spill] sm:$0xff] }
 0x4c4   : > { %2472 = vmatprep.subr.bf16.mxu0 %v11142_v0  ;;  %2513 = vmatprep.subr.bf16.mxu1 %v11143_v19  ;;  %v11153_v0 = vld [vmem:[#allocation37_spill] sm:$0xff]  ;;  %v11154_v19 = vld [vmem:[#allocation38_spill] sm:$0xff] }
 0x4c7   : > { %2473 = vmatpush1.bf16.msra.mxu0 %v11144_v31  ;;  %2514 = vmatpush1.bf16.msra.mxu1 %v11145_v47  ;;  %v11155_v31 = vld [vmem:[#allocation39_spill] sm:$0xff]  ;;  %v11156_v47 = vld [vmem:[#allocation40_spill] sm:$0xff] }
 0x4c8   : > { %2474 = vmatprep.subr.bf16.mxu0 %v11146_v14  ;;  %2515 = vmatprep.subr.bf16.mxu1 %v11147_v13  ;;  %v11157_v14 = vld [vmem:[#allocation41_spill] sm:$0xff]  ;;  %v11158_v13 = vld [vmem:[#allocation42_spill] sm:$0xff] }
 0x4cb   : > { %2475 = vmatpush1.bf16.msra.mxu0 %v11148_v33  ;;  %2516 = vmatpush1.bf16.msra.mxu1 %v11149_v27  ;;  %v11159_v33 = vld [vmem:[#allocation43_spill] sm:$0xff]  ;;  %v11160_v27 = vld [vmem:[#allocation44_spill] sm:$0xff] }
 0x4cc   : > { %2476 = vmatprep.subr.bf16.mxu0 %v11150_v20  ;;  %2517 = vmatprep.subr.bf16.mxu1 %v11151_v15  ;;  %v11161_v20 = vld [vmem:[#allocation45_spill] sm:$0xff]  ;;  %v11162_v15 = vld [vmem:[#allocation46_spill] sm:$0xff] }
 0x4cf   : > { %2477 = vmatpush1.bf16.msra.mxu0 %v11152_v37  ;;  %2518 = vmatpush1.bf16.msra.mxu1 %v11153_v0  ;;  %v11163_v37 = vld [vmem:[#allocation47_spill] sm:$0xff]  ;;  %v11164_v0 = vld [vmem:[#allocation48_spill] sm:$0xff] }
 0x4d0   : > { %2478 = vmatprep.subr.bf16.mxu0 %v11154_v19  ;;  %2519 = vmatprep.subr.bf16.mxu1 %v11155_v31  ;;  %v11165_v19 = vld [vmem:[#allocation49_spill] sm:$0xff]  ;;  %v11166_v31 = vld [vmem:[#allocation50_spill] sm:$0xff] }
 0x4d3   : > { %2479 = vmatpush1.bf16.msra.mxu0 %v11156_v47  ;;  %2520 = vmatpush1.bf16.msra.mxu1 %v11157_v14  ;;  %v11167_v47 = vld [vmem:[#allocation51_spill] sm:$0xff]  ;;  %v11168_v14 = vld [vmem:[#allocation52_spill] sm:$0xff] }
 0x4d4   : > { %2480 = vmatprep.subr.bf16.mxu0 %v11158_v13  ;;  %2521 = vmatprep.subr.bf16.mxu1 %v11159_v33  ;;  %v11169_v13 = vld [vmem:[#allocation53_spill] sm:$0xff]  ;;  %v11170_v33 = vld [vmem:[#allocation54_spill] sm:$0xff] }
 0x4d7   : > { %2481 = vmatpush1.bf16.msra.mxu0 %v11160_v27  ;;  %2522 = vmatpush1.bf16.msra.mxu1 %v11161_v20  ;;  %v11171_v27 = vld [vmem:[#allocation55_spill] sm:$0xff]  ;;  %v11172_v20 = vld [vmem:[#allocation56_spill] sm:$0xff] }
 0x4d8   : > { %2482 = vmatprep.subr.bf16.mxu0 %v11162_v15  ;;  %2523 = vmatprep.subr.bf16.mxu1 %v11163_v37  ;;  %v11173_v15 = vld [vmem:[#allocation57_spill] sm:$0xff]  ;;  %v11174_v37 = vld [vmem:[#allocation58_spill] sm:$0xff] }
 0x4db   : > { %2483 = vmatpush1.bf16.msra.mxu0 %v11164_v0  ;;  %2524 = vmatpush1.bf16.msra.mxu1 %v11165_v19  ;;  %v11175_v0 = vld [vmem:[#allocation59_spill] sm:$0xff]  ;;  %v11176_v19 = vld [vmem:[#allocation60_spill] sm:$0xff] }
 0x4dc   : > { %2484 = vmatprep.subr.bf16.mxu0 %v11166_v31  ;;  %2525 = vmatprep.subr.bf16.mxu1 %v11167_v47  ;;  %v11177_v31 = vld [vmem:[#allocation61_spill] sm:$0xff]  ;;  %v11178_v47 = vld [vmem:[#allocation62_spill] sm:$0xff] }
 0x4df   : > { %2485 = vmatpush1.bf16.msra.mxu0 %v11168_v14  ;;  %2526 = vmatpush1.bf16.msra.mxu1 %v11169_v13  ;;  %v11179_v14 = vld [vmem:[#allocation63_spill] sm:$0xff]  ;;  %v11180_v13 = vld [vmem:[#allocation64_spill] sm:$0xff] }
 0x4e0   : > { %2486 = vmatprep.subr.bf16.mxu0 %v11170_v33  ;;  %2527 = vmatprep.subr.bf16.mxu1 %v11171_v27  ;;  %v11181_v33 = vld [vmem:[#allocation65_spill] sm:$0xff]  ;;  %v11182_v27 = vld [vmem:[#allocation66_spill] sm:$0xff] }
 0x4e3   : > { %2487 = vmatpush2.bf16.msra.mxu0 %v11172_v20  ;;  %2528 = vmatpush2.bf16.msra.mxu1 %v11173_v15  ;;  %v11183_v20 = vld [vmem:[#allocation67_spill] sm:$0xff]  ;;  %v11184_v15 = vld [vmem:[#allocation68_spill] sm:$0xff] }
 0x4e4   : > { %2488 = vmatprep.subr.bf16.mxu0 %v11174_v37  ;;  %2529 = vmatprep.subr.bf16.mxu1 %v11175_v0  ;;  %v11185_v37 = vld [vmem:[#allocation69_spill] sm:$0xff]  ;;  %v11186_v0 = vld [vmem:[#allocation70_spill] sm:$0xff] }
 0x4e7   : > { %2489 = vmatpush2.bf16.msra.mxu0 %v11176_v19  ;;  %2530 = vmatpush2.bf16.msra.mxu1 %v11177_v31  ;;  %v11187_v19 = vld [vmem:[#allocation71_spill] sm:$0xff]  ;;  %v11188_v31 = vld [vmem:[#allocation72_spill] sm:$0xff] }
 0x4e8   : > { %2490 = vmatprep.subr.bf16.mxu0 %v11178_v47  ;;  %2531 = vmatprep.subr.bf16.mxu1 %v11179_v14  ;;  %v11189_v47 = vld [vmem:[#allocation73_spill] sm:$0xff]  ;;  %v11190_v14 = vld [vmem:[#allocation74_spill] sm:$0xff] }
 0x4eb   : > { %2491 = vmatpush2.bf16.msra.mxu0 %v11180_v13  ;;  %2532 = vmatpush2.bf16.msra.mxu1 %v11181_v33  ;;  %v11191_v13 = vld [vmem:[#allocation75_spill] sm:$0xff]  ;;  %v11192_v33 = vld [vmem:[#allocation76_spill] sm:$0xff] }
 0x4ec   : > { %2492 = vmatprep.subr.bf16.mxu0 %v11182_v27  ;;  %2533 = vmatprep.subr.bf16.mxu1 %v11183_v20  ;;  %v11193_v27 = vld [vmem:[#allocation77_spill] sm:$0xff]  ;;  %v11194_v20 = vld [vmem:[#allocation78_spill] sm:$0xff] }
 0x4ef   : > { %2493 = vmatpush2.bf16.msra.mxu0 %v11184_v15  ;;  %2534 = vmatpush2.bf16.msra.mxu1 %v11185_v37  ;;  %v11195_v15 = vld [vmem:[#allocation79_spill] sm:$0xff]  ;;  %v11196_v37 = vld [vmem:[#allocation80_spill] sm:$0xff] }
 0x4f0   : > { %2494 = vmatprep.subr.bf16.mxu0 %v11186_v0  ;;  %2535 = vmatprep.subr.bf16.mxu1 %v11187_v19  ;;  %v11197_v0 = vld [vmem:[#allocation81_spill] sm:$0xff]  ;;  %v11198_v19 = vld [vmem:[#allocation82_spill] sm:$0xff] }
 0x4f3   : > { %2495 = vmatpush2.bf16.msra.mxu0 %v11188_v31  ;;  %2536 = vmatpush2.bf16.msra.mxu1 %v11189_v47  ;;  %v11199_v31 = vld [vmem:[#allocation83_spill] sm:$0xff]  ;;  %v11200_v47 = vld [vmem:[#allocation84_spill] sm:$0xff] }
 0x4f4   : > { %2496 = vmatprep.subr.bf16.mxu0 %v11190_v14  ;;  %2537 = vmatprep.subr.bf16.mxu1 %v11191_v13  ;;  %v11201_v14 = vld [vmem:[#allocation85_spill] sm:$0xff]  ;;  %v11202_v13 = vld [vmem:[#allocation86_spill] sm:$0xff] }
 0x4f7   : > { %2497 = vmatpush2.bf16.msra.mxu0 %v11192_v33  ;;  %2538 = vmatpush2.bf16.msra.mxu1 %v11193_v27  ;;  %v11203_v27 = vld [vmem:[#allocation87_spill] sm:$0xff] }
 0x4f8   : > { %2498 = vmatprep.subr.bf16.mxu0 %v11194_v20  ;;  %2539 = vmatprep.subr.bf16.mxu1 %v11195_v15 }
 0x4fb   : > { %2499 = vmatpush2.bf16.msra.mxu0 %v11196_v37  ;;  %2540 = vmatpush2.bf16.msra.mxu1 %v11197_v0 }
 0x4fc   : > { %2500 = vmatprep.subr.bf16.mxu0 %v11198_v19  ;;  %2541 = vmatprep.subr.bf16.mxu1 %v11199_v31 }
 0x4ff   : > { %2501 = vmatpush2.bf16.msra.mxu0 %v11200_v47  ;;  %2542 = vmatpush2.bf16.msra.mxu1 %v11201_v14 }
 0x500   : > { %2552 = vmatprep.subr.bf16.mxu0 %v11202_v13  ;;  %2593 = vmatprep.subr.bf16.mxu1 %v11203_v27 }
 0x542   : > { %v2248_v20 = vpop.f32.mrf.mxu0  ;;  %v2289_v33 = vpop.f32.mrf.mxu1 }
 0x544   : > { %v2250_v15 = vpop.f32.mrf.mxu0  ;;  %v2291_v6 = vpop.f32.mrf.mxu1 }
 0x545   : > { %v2386_v19 = vcombine.low %v2248_v20, %v2250_v15  ;;  %v2387_v25 = vcombine.low %v2289_v33, %v2291_v6 }
 0x546   : > { %v2252_v37 = vpop.f32.mrf.mxu0  ;;  %v2293_v63 = vpop.f32.mrf.mxu1 }
 0x547   : > { %v2394_v31 = vrot.slane %v2386_v19, %v9026_v50  ;;  %v2401_v47 = vrot.slane %v2387_v25, %v9026_v50 }
 0x548   : > { %v2253_v0 = vpop.f32.mrf.mxu0  ;;  %v2294_v42 = vpop.f32.mrf.mxu1 }
 0x549   : > { %v2402_v14 = vcombine.low %v2394_v31, %v2401_v47 }
 0x54b   : > { %v2422_v58 = vadd.f32 %v6774_v18, %v2402_v14 }
 0x54d   : > { %v2431_v13 = vrot.slane %v2422_v58, 4  ;;  %v6776_v27 = vmul.f32 -1.442695, %v2422_v58  ;;  %v6775_v58 = vld [vmem:[%s9034_s20 + $0x38] sm:$0xff] }
 0x54f   : > { %v6777_v8 = vmul.f32 -1.442695, %v2431_v13 }
 0x551   : > { %7846 = vpow2.f32 %v6777_v8 }
 0x552   : > { %7848 = vpow2.f32 %v6776_v27 }
 0x55e   : > { %v7847_v63 = vpop.eup %7846 }
 0x55f   : > { %v7849_v15 = vpop.eup %7848  ;;  %v2436_v25 = vadd.f32 1.0, %v7847_v63 }
 0x560   : > { %v2427_v13 = vadd.f32 1.0, %v7849_v15 }
 0x561   : > { %7850 = vrcp.f32 %v2436_v25 }
 0x562   : > { %7852 = vrcp.f32 %v2427_v13  ;;  %v11205_v13 = vld [vmem:[#allocation130_spill] sm:$0xff] }
 0x582   : > { %v2330_v24 = vpop.f32.mrf.mxu0  ;;  %v2371_v37 = vpop.f32.mrf.mxu1 }
 0x584   : > { %v2332_v0 = vpop.f32.mrf.mxu0  ;;  %v2373_v42 = vpop.f32.mrf.mxu1 }
 0x585   : > { %v2403_v33 = vcombine.low %v2330_v24, %v2332_v0  ;;  %v2404_v6 = vcombine.low %v2371_v37, %v2373_v42  ;;  %v7851_v24 = vpop.eup %7850 }
 0x586   : > { %v2334_v19 = vpop.f32.mrf.mxu0  ;;  %v2375_v20 = vpop.f32.mrf.mxu1  ;;  %v2449_v63 = vmul.f32 %v7851_v24, %v9330_v4  ;;  %v11204_v4 = vld [vmem:[#allocation129_spill] sm:$0xff]  ;;  %v11211_v24 = vld [vmem:[#allocation136_spill] sm:$0xff] }
 0x587   : > { %v2411_v31 = vrot.slane %v2403_v33, %v9026_v50  ;;  %v2418_v14 = vrot.slane %v2404_v6, %v9026_v50  ;;  %v7853_v37 = vpop.eup %7852 }
 0x588   : > { %v2335_v8 = vpop.f32.mrf.mxu0  ;;  %v2376_v18 = vpop.f32.mrf.mxu1 }
 0x589   : > { %v2419_v27 = vcombine.low %v2411_v31, %v2418_v14  ;;  %v11207_v8 = vld [vmem:[#allocation132_spill] sm:$0xff]  ;;  %v11208_v18 = vld [vmem:[#allocation133_spill] sm:$0xff] }
 0x58b   : > { %v2423_v47 = vadd.f32 %v6775_v58, %v2419_v27  ;;  %v11206_v58 = vld [vmem:[#allocation131_spill] sm:$0xff]  ;;  %v11209_v27 = vld [vmem:[#allocation134_spill] sm:$0xff] }
 0x58d   : > { %7854 = vtanh.f32 %v2423_v47  ;;  %v2441_v49 = vrot.slane %v2423_v47, 4  ;;  %v11210_v47 = vld [vmem:[#allocation135_spill] sm:$0xff] }
 0x58f   : > { %v6778_v12 = vmul.f32 -1.442695, %v2441_v49 }
 0x591   : > { %7856 = vpow2.f32 %v6778_v12 }
 0x59a   : > { %v7855_v0 = vpop.eup %7854 }
 0x59b   : > { %v2450_v42 = vmul.f32 %v7855_v0, %v7853_v37  ;;  %v11212_v37 = vld [vmem:[#allocation137_spill] sm:$0xff]  ;;  %v11213_v0 = vld [vmem:[#allocation138_spill] sm:$0xff] }
 0x59d   : > { %v9475_v33 = vadd.f32 %v2450_v42, %v2449_v63  ;;  %v11214_v63 = vld [vmem:[#allocation139_spill] sm:$0xff]  ;;  %v11215_v42 = vld [vmem:[#allocation140_spill] sm:$0xff] }
 0x59e   : > { %v7857_v15 = vpop.eup %7856 }
 0x59f   : > { %v2446_v6 = vadd.f32 1.0, %v7857_v15  ;;  %7858 = vtanh.f32 %v9475_v33  ;;  %v11216_v15 = vld [vmem:[#allocation141_spill] sm:$0xff] }
 0x5a1   : > { %7860 = vrcp.f32 %v2446_v6  ;;  %v11217_v6 = vld [vmem:[#allocation142_spill] sm:$0xff] }
 0x5ac   : > { %v7859_v19 = vpop.eup %7858 }
 0x5ae   : > { %v7861_v20 = vpop.eup %7860 }
 0x5af   : > { %v2453_v25 = vmul.f32 %v7861_v20, %v7859_v19  ;;  %v11218_v19 = vld [vmem:[#allocation143_spill] sm:$0xff]  ;;  %v11219_v20 = vld [vmem:[#allocation144_spill] sm:$0xff] }
 0x5b1   : > { %v2464_v31 = vrot.slane %v2453_v25, %v9026_v50  ;;  %v11220_v25 = vld [vmem:[#allocation145_spill] sm:$0xff] }
 0x5b3   : > { %v2465_v49 = vcombine.high %v2464_v31, %v2464_v31  ;;  %v9479_v14 = vpack.c.bf16 %v2464_v31, %v2464_v31  ;;  %v11221_v31 = vld [vmem:[#allocation146_spill] sm:$0xff] }
 0x5b5   : > { %v2469_v12 = vpack.c.bf16 %v2465_v49, %v2465_v49  ;;  %v11222_v49 = vld [vmem:[#allocation147_spill] sm:$0xff] }
 0x5b7   : > { %2502 = vmatprep.mubr.bf16.mxu0 %v2469_v12  ;;  %2543 = vmatprep.mubr.bf16.mxu1 %v2469_v12 }
 0x5b8   : > { %2503 = vmatmul.mubr.bf16.vlgmr.msra.gmra.mxu0 %v9479_v14  ;;  %2544 = vmatmul.mubr.bf16.vlgmr.msra.gmra.mxu1 %v9479_v14 }
 0x5b9   : > { %2553 = vmatpush1.bf16.msra.mxu0 %v10946_v32  ;;  %2594 = vmatpush1.bf16.msra.mxu1 %v10947_v1 }
 0x5ba   : > { %2584 = vmatprep.mubr.bf16.mxu0 %v2469_v12  ;;  %2625 = vmatprep.mubr.bf16.mxu1 %v2469_v12  ;;  %v11223_v12 = vld [vmem:[#allocation148_spill] sm:$0xff] }
 0x5bb   : > { %2554 = vmatprep.subr.bf16.mxu0 %v10948_v23  ;;  %2595 = vmatprep.subr.bf16.mxu1 %v10949_v41 }
 0x5bd   : > { %2555 = vmatpush1.bf16.msra.mxu0 %v10950_v39  ;;  %2596 = vmatpush1.bf16.msra.mxu1 %v10951_v40 }
 0x5be   : > { %2556 = vmatprep.subr.bf16.mxu0 %v11030_v56  ;;  %2597 = vmatprep.subr.bf16.mxu1 %v11031_v62 }
 0x5c1   : > { %2557 = vmatpush1.bf16.msra.mxu0 %v11032_v36  ;;  %2598 = vmatpush1.bf16.msra.mxu1 %v11033_v35 }
 0x5c2   : > { %2558 = vmatprep.subr.bf16.mxu0 %v11034_v5  ;;  %2599 = vmatprep.subr.bf16.mxu1 %v11035_v51 }
 0x5c5   : > { %2559 = vmatpush1.bf16.msra.mxu0 %v11036_v48  ;;  %2600 = vmatpush1.bf16.msra.mxu1 %v11037_v30 }
 0x5c6   : > { %2560 = vmatprep.subr.bf16.mxu0 %v11038_v54  ;;  %2601 = vmatprep.subr.bf16.mxu1 %v11117_v45 }
 0x5c9   : > { %2561 = vmatpush1.bf16.msra.mxu0 %v11118_v21  ;;  %2602 = vmatpush1.bf16.msra.mxu1 %v11119_v22 }
 0x5ca   : > { %2562 = vmatprep.subr.bf16.mxu0 %v11120_v26  ;;  %2603 = vmatprep.subr.bf16.mxu1 %v11121_v2 }
 0x5cd   : > { %2563 = vmatpush1.bf16.msra.mxu0 %v11122_v9  ;;  %2604 = vmatpush1.bf16.msra.mxu1 %v11123_v57 }
 0x5ce   : > { %2564 = vmatprep.subr.bf16.mxu0 %v11124_v17  ;;  %2605 = vmatprep.subr.bf16.mxu1 %v11125_v10 }
 0x5d1   : > { %2565 = vmatpush1.bf16.msra.mxu0 %v11126_v11  ;;  %2606 = vmatpush1.bf16.msra.mxu1 %v11127_v3 }
 0x5d2   : > { %2566 = vmatprep.subr.bf16.mxu0 %v11050_v59  ;;  %2607 = vmatprep.subr.bf16.mxu1 %v11051_v44 }
 0x5d5   : > { %2567 = vmatpush1.bf16.msra.mxu0 %v11052_v43  ;;  %2608 = vmatpush1.bf16.msra.mxu1 %v11128_v55 }
 0x5d6   : > { %2568 = vmatprep.subr.bf16.mxu0 %v11054_v46  ;;  %2609 = vmatprep.subr.bf16.mxu1 %v11055_v53 }
 0x5d9   : > { %2569 = vmatpush2.bf16.msra.mxu0 %v11056_v60  ;;  %2610 = vmatpush2.bf16.msra.mxu1 %v11057_v38 }
 0x5da   : > { %2570 = vmatprep.subr.bf16.mxu0 %v11058_v61  ;;  %2611 = vmatprep.subr.bf16.mxu1 %v11059_v29 }
 0x5dd   : > { %2571 = vmatpush2.bf16.msra.mxu0 %v11060_v28  ;;  %2612 = vmatpush2.bf16.msra.mxu1 %v10983_v7 }
 0x5de   : > { %2572 = vmatprep.subr.bf16.mxu0 %v10984_v34  ;;  %2613 = vmatprep.subr.bf16.mxu1 %v10985_v16 }
 0x5e1   : > { %2573 = vmatpush2.bf16.msra.mxu0 %v11061_v52  ;;  %2614 = vmatpush2.bf16.msra.mxu1 %v11204_v4 }
 0x5e2   : > { %2574 = vmatprep.subr.bf16.mxu0 %v11205_v13  ;;  %2615 = vmatprep.subr.bf16.mxu1 %v11206_v58 }
 0x5e5   : > { %2575 = vmatpush2.bf16.msra.mxu0 %v11207_v8  ;;  %2616 = vmatpush2.bf16.msra.mxu1 %v11208_v18 }
 0x5e6   : > { %2576 = vmatprep.subr.bf16.mxu0 %v11209_v27  ;;  %2617 = vmatprep.subr.bf16.mxu1 %v11210_v47  ;;  %v6779_v27 = vld [vmem:[%s9034_s20 + $0x40] sm:$0xff] }
 0x5e9   : > { %2577 = vmatpush2.bf16.msra.mxu0 %v11211_v24  ;;  %2618 = vmatpush2.bf16.msra.mxu1 %v11212_v37 }
 0x5ea   : > { %2578 = vmatprep.subr.bf16.mxu0 %v11213_v0  ;;  %2619 = vmatprep.subr.bf16.mxu1 %v11214_v63  ;;  %v11224_v0 = vld [vmem:[#allocation149_spill] sm:$0xff]  ;;  %v11225_v63 = vld [vmem:[#allocation22_spill] sm:$0xff] }
 0x5ed   : > { %2579 = vmatpush2.bf16.msra.mxu0 %v11215_v42  ;;  %2620 = vmatpush2.bf16.msra.mxu1 %v11216_v15  ;;  %v11226_v42 = vld [vmem:[#allocation24_spill] sm:$0xff] }
 0x5ee   : > { %2580 = vmatprep.subr.bf16.mxu0 %v11217_v6  ;;  %2621 = vmatprep.subr.bf16.mxu1 %v11218_v19  ;;  %v11227_v19 = vld [vmem:[#allocation23_spill] sm:$0xff]  ;;  %v11236_v6 = vld [vmem:[#allocation33_spill] sm:$0xff] }
 0x5f1   : > { %2581 = vmatpush2.bf16.msra.mxu0 %v11219_v20  ;;  %2622 = vmatpush2.bf16.msra.mxu1 %v11220_v25  ;;  %v11228_v20 = vld [vmem:[#allocation25_spill] sm:$0xff]  ;;  %v11229_v25 = vld [vmem:[#allocation26_spill] sm:$0xff] }
 0x5f2   : > { %2582 = vmatprep.subr.bf16.mxu0 %v11221_v31  ;;  %2623 = vmatprep.subr.bf16.mxu1 %v11222_v49  ;;  %v11230_v31 = vld [vmem:[#allocation27_spill] sm:$0xff]  ;;  %v11231_v49 = vld [vmem:[#allocation28_spill] sm:$0xff] }
 0x5f5   : > { %2583 = vmatpush2.bf16.msra.mxu0 %v11223_v12  ;;  %2624 = vmatpush2.bf16.msra.mxu1 %v11224_v0  ;;  %v11232_v12 = vld [vmem:[#allocation29_spill] sm:$0xff]  ;;  %v11233_v0 = vld [vmem:[#allocation30_spill] sm:$0xff] }
 0x5f6   : > { %2726 = vmatprep.subr.bf16.mxu0 %v11225_v63  ;;  %2767 = vmatprep.subr.bf16.mxu1 %v11226_v42  ;;  %v11234_v63 = vld [vmem:[#allocation31_spill] sm:$0xff]  ;;  %v11235_v42 = vld [vmem:[#allocation32_spill] sm:$0xff] }
 0x5f8   : > { %2585 = vmatmul.mubr.bf16.vlgmr.msra.gmra.mxu0 %v9479_v14  ;;  %2626 = vmatmul.mubr.bf16.vlgmr.msra.gmra.mxu1 %v9479_v14  ;;  %v11237_v14 = vld [vmem:[#allocation34_spill] sm:$0xff] }
 0x5f9   : > { %2727 = vmatpush1.bf16.msra.mxu0 %v11227_v19  ;;  %2768 = vmatpush1.bf16.msra.mxu1 %v11228_v20  ;;  %v11238_v19 = vld [vmem:[#allocation35_spill] sm:$0xff]  ;;  %v11239_v20 = vld [vmem:[#allocation36_spill] sm:$0xff] }
 0x5fa   : > { %2728 = vmatprep.subr.bf16.mxu0 %v11229_v25  ;;  %2769 = vmatprep.subr.bf16.mxu1 %v11230_v31  ;;  %v11240_v25 = vld [vmem:[#allocation37_spill] sm:$0xff]  ;;  %v11241_v31 = vld [vmem:[#allocation38_spill] sm:$0xff] }
 0x5fd   : > { %2729 = vmatpush1.bf16.msra.mxu0 %v11231_v49  ;;  %2770 = vmatpush1.bf16.msra.mxu1 %v11232_v12  ;;  %v11242_v49 = vld [vmem:[#allocation39_spill] sm:$0xff]  ;;  %v11243_v12 = vld [vmem:[#allocation40_spill] sm:$0xff] }
 0x5fe   : > { %2730 = vmatprep.subr.bf16.mxu0 %v11233_v0  ;;  %2771 = vmatprep.subr.bf16.mxu1 %v11234_v63  ;;  %v11244_v0 = vld [vmem:[#allocation41_spill] sm:$0xff]  ;;  %v11245_v63 = vld [vmem:[#allocation42_spill] sm:$0xff] }
 0x601   : > { %2731 = vmatpush1.bf16.msra.mxu0 %v11235_v42  ;;  %2772 = vmatpush1.bf16.msra.mxu1 %v11236_v6  ;;  %v11246_v42 = vld [vmem:[#allocation43_spill] sm:$0xff]  ;;  %v11247_v6 = vld [vmem:[#allocation44_spill] sm:$0xff] }
 0x602   : > { %2732 = vmatprep.subr.bf16.mxu0 %v11237_v14  ;;  %2773 = vmatprep.subr.bf16.mxu1 %v11238_v19  ;;  %v11248_v14 = vld [vmem:[#allocation45_spill] sm:$0xff]  ;;  %v11249_v19 = vld [vmem:[#allocation46_spill] sm:$0xff] }
 0x605   : > { %2733 = vmatpush1.bf16.msra.mxu0 %v11239_v20  ;;  %2774 = vmatpush1.bf16.msra.mxu1 %v11240_v25  ;;  %v11250_v20 = vld [vmem:[#allocation47_spill] sm:$0xff]  ;;  %v11251_v25 = vld [vmem:[#allocation48_spill] sm:$0xff] }
 0x606   : > { %2734 = vmatprep.subr.bf16.mxu0 %v11241_v31  ;;  %2775 = vmatprep.subr.bf16.mxu1 %v11242_v49  ;;  %v11252_v31 = vld [vmem:[#allocation49_spill] sm:$0xff]  ;;  %v11253_v49 = vld [vmem:[#allocation50_spill] sm:$0xff] }
 0x609   : > { %2735 = vmatpush1.bf16.msra.mxu0 %v11243_v12  ;;  %2776 = vmatpush1.bf16.msra.mxu1 %v11244_v0  ;;  %v11254_v12 = vld [vmem:[#allocation51_spill] sm:$0xff]  ;;  %v11255_v0 = vld [vmem:[#allocation52_spill] sm:$0xff] }
 0x60a   : > { %2736 = vmatprep.subr.bf16.mxu0 %v11245_v63  ;;  %2777 = vmatprep.subr.bf16.mxu1 %v11246_v42  ;;  %v11256_v63 = vld [vmem:[#allocation53_spill] sm:$0xff]  ;;  %v11257_v42 = vld [vmem:[#allocation54_spill] sm:$0xff] }
 0x60d   : > { %2737 = vmatpush1.bf16.msra.mxu0 %v11247_v6  ;;  %2778 = vmatpush1.bf16.msra.mxu1 %v11248_v14  ;;  %v11258_v6 = vld [vmem:[#allocation55_spill] sm:$0xff]  ;;  %v11259_v14 = vld [vmem:[#allocation56_spill] sm:$0xff] }
 0x60e   : > { %2738 = vmatprep.subr.bf16.mxu0 %v11249_v19  ;;  %2779 = vmatprep.subr.bf16.mxu1 %v11250_v20  ;;  %v11260_v19 = vld [vmem:[#allocation57_spill] sm:$0xff]  ;;  %v11261_v20 = vld [vmem:[#allocation58_spill] sm:$0xff] }
 0x611   : > { %2739 = vmatpush1.bf16.msra.mxu0 %v11251_v25  ;;  %2780 = vmatpush1.bf16.msra.mxu1 %v11252_v31  ;;  %v11262_v25 = vld [vmem:[#allocation59_spill] sm:$0xff]  ;;  %v11263_v31 = vld [vmem:[#allocation60_spill] sm:$0xff] }
 0x612   : > { %2740 = vmatprep.subr.bf16.mxu0 %v11253_v49  ;;  %2781 = vmatprep.subr.bf16.mxu1 %v11254_v12  ;;  %v11264_v49 = vld [vmem:[#allocation61_spill] sm:$0xff]  ;;  %v11265_v12 = vld [vmem:[#allocation62_spill] sm:$0xff] }
 0x615   : > { %2741 = vmatpush1.bf16.msra.mxu0 %v11255_v0  ;;  %2782 = vmatpush1.bf16.msra.mxu1 %v11256_v63  ;;  %v11266_v0 = vld [vmem:[#allocation63_spill] sm:$0xff]  ;;  %v11267_v63 = vld [vmem:[#allocation64_spill] sm:$0xff] }
 0x616   : > { %2742 = vmatprep.subr.bf16.mxu0 %v11257_v42  ;;  %2783 = vmatprep.subr.bf16.mxu1 %v11258_v6  ;;  %v11268_v42 = vld [vmem:[#allocation65_spill] sm:$0xff]  ;;  %v11269_v6 = vld [vmem:[#allocation66_spill] sm:$0xff] }
 0x619   : > { %2743 = vmatpush2.bf16.msra.mxu0 %v11259_v14  ;;  %2784 = vmatpush2.bf16.msra.mxu1 %v11260_v19  ;;  %v11270_v14 = vld [vmem:[#allocation67_spill] sm:$0xff]  ;;  %v11271_v19 = vld [vmem:[#allocation68_spill] sm:$0xff] }
 0x61a   : > { %2744 = vmatprep.subr.bf16.mxu0 %v11261_v20  ;;  %2785 = vmatprep.subr.bf16.mxu1 %v11262_v25  ;;  %v11272_v20 = vld [vmem:[#allocation69_spill] sm:$0xff]  ;;  %v11273_v25 = vld [vmem:[#allocation70_spill] sm:$0xff] }
 0x61d   : > { %2745 = vmatpush2.bf16.msra.mxu0 %v11263_v31  ;;  %2786 = vmatpush2.bf16.msra.mxu1 %v11264_v49  ;;  %v11274_v31 = vld [vmem:[#allocation71_spill] sm:$0xff]  ;;  %v11275_v49 = vld [vmem:[#allocation72_spill] sm:$0xff] }
 0x61e   : > { %2746 = vmatprep.subr.bf16.mxu0 %v11265_v12  ;;  %2787 = vmatprep.subr.bf16.mxu1 %v11266_v0  ;;  %v11276_v12 = vld [vmem:[#allocation73_spill] sm:$0xff]  ;;  %v11277_v0 = vld [vmem:[#allocation74_spill] sm:$0xff] }
 0x621   : > { %2747 = vmatpush2.bf16.msra.mxu0 %v11267_v63  ;;  %2788 = vmatpush2.bf16.msra.mxu1 %v11268_v42  ;;  %v11278_v63 = vld [vmem:[#allocation75_spill] sm:$0xff]  ;;  %v11279_v42 = vld [vmem:[#allocation76_spill] sm:$0xff] }
 0x622   : > { %2748 = vmatprep.subr.bf16.mxu0 %v11269_v6  ;;  %2789 = vmatprep.subr.bf16.mxu1 %v11270_v14  ;;  %v11280_v6 = vld [vmem:[#allocation77_spill] sm:$0xff]  ;;  %v11281_v14 = vld [vmem:[#allocation78_spill] sm:$0xff] }
 0x625   : > { %2749 = vmatpush2.bf16.msra.mxu0 %v11271_v19  ;;  %2790 = vmatpush2.bf16.msra.mxu1 %v11272_v20  ;;  %v11282_v19 = vld [vmem:[#allocation79_spill] sm:$0xff]  ;;  %v11283_v20 = vld [vmem:[#allocation80_spill] sm:$0xff] }
 0x626   : > { %2750 = vmatprep.subr.bf16.mxu0 %v11273_v25  ;;  %2791 = vmatprep.subr.bf16.mxu1 %v11274_v31  ;;  %v11284_v25 = vld [vmem:[#allocation81_spill] sm:$0xff]  ;;  %v11285_v31 = vld [vmem:[#allocation82_spill] sm:$0xff] }
 0x629   : > { %2751 = vmatpush2.bf16.msra.mxu0 %v11275_v49  ;;  %2792 = vmatpush2.bf16.msra.mxu1 %v11276_v12  ;;  %v11286_v49 = vld [vmem:[#allocation83_spill] sm:$0xff]  ;;  %v11287_v12 = vld [vmem:[#allocation84_spill] sm:$0xff] }
 0x62a   : > { %2752 = vmatprep.subr.bf16.mxu0 %v11277_v0  ;;  %2793 = vmatprep.subr.bf16.mxu1 %v11278_v63  ;;  %v11288_v0 = vld [vmem:[#allocation85_spill] sm:$0xff]  ;;  %v11289_v63 = vld [vmem:[#allocation86_spill] sm:$0xff] }
 0x62d   : > { %2753 = vmatpush2.bf16.msra.mxu0 %v11279_v42  ;;  %2794 = vmatpush2.bf16.msra.mxu1 %v11280_v6  ;;  %v11290_v6 = vld [vmem:[#allocation87_spill] sm:$0xff] }
 0x62e   : > { %2754 = vmatprep.subr.bf16.mxu0 %v11281_v14  ;;  %2795 = vmatprep.subr.bf16.mxu1 %v11282_v19 }
 0x631   : > { %2755 = vmatpush2.bf16.msra.mxu0 %v11283_v20  ;;  %2796 = vmatpush2.bf16.msra.mxu1 %v11284_v25 }
 0x632   : > { %2756 = vmatprep.subr.bf16.mxu0 %v11285_v31  ;;  %2797 = vmatprep.subr.bf16.mxu1 %v11286_v49 }
 0x635   : > { %2757 = vmatpush2.bf16.msra.mxu0 %v11287_v12  ;;  %2798 = vmatpush2.bf16.msra.mxu1 %v11288_v0 }
 0x636   : > { %2808 = vmatprep.subr.bf16.mxu0 %v11289_v63  ;;  %2849 = vmatprep.subr.bf16.mxu1 %v11290_v6 }
 0x678   : > { %v2504_v14 = vpop.f32.mrf.mxu0  ;;  %v2545_v42 = vpop.f32.mrf.mxu1 }
 0x67a   : > { %v2506_v19 = vpop.f32.mrf.mxu0  ;;  %v2547_v15 = vpop.f32.mrf.mxu1 }
 0x67b   : > { %v2642_v31 = vcombine.low %v2504_v14, %v2506_v19  ;;  %v2643_v47 = vcombine.low %v2545_v42, %v2547_v15 }
 0x67c   : > { %v2508_v20 = vpop.f32.mrf.mxu0  ;;  %v2549_v37 = vpop.f32.mrf.mxu1 }
 0x67d   : > { %v2650_v49 = vrot.slane %v2642_v31, %v9026_v50  ;;  %v2657_v12 = vrot.slane %v2643_v47, %v9026_v50 }
 0x67e   : > { %v2509_v25 = vpop.f32.mrf.mxu0  ;;  %v2550_v24 = vpop.f32.mrf.mxu1 }
 0x67f   : > { %v2658_v0 = vcombine.low %v2650_v49, %v2657_v12 }
 0x681   : > { %v2678_v18 = vadd.f32 %v6779_v27, %v2658_v0 }
 0x683   : > { %v2687_v63 = vrot.slane %v2678_v18, 4  ;;  %v6781_v6 = vmul.f32 -1.442695, %v2678_v18  ;;  %v6780_v18 = vld [vmem:[%s9034_s20 + $0x48] sm:$0xff] }
 0x685   : > { %v6782_v8 = vmul.f32 -1.442695, %v2687_v63 }
 0x687   : > { %7862 = vpow2.f32 %v6782_v8 }
 0x688   : > { %7864 = vpow2.f32 %v6781_v6 }
 0x694   : > { %v7863_v37 = vpop.eup %7862 }
 0x695   : > { %v7865_v19 = vpop.eup %7864  ;;  %v2692_v47 = vadd.f32 1.0, %v7863_v37 }
 0x696   : > { %v2683_v0 = vadd.f32 1.0, %v7865_v19 }
 0x697   : > { %7866 = vrcp.f32 %v2692_v47 }
 0x698   : > { %7868 = vrcp.f32 %v2683_v0  ;;  %v11292_v0 = vld [vmem:[#allocation130_spill] sm:$0xff] }
 0x6b8   : > { %v2586_v58 = vpop.f32.mrf.mxu0  ;;  %v2627_v20 = vpop.f32.mrf.mxu1 }
 0x6ba   : > { %v2588_v25 = vpop.f32.mrf.mxu0  ;;  %v2629_v24 = vpop.f32.mrf.mxu1 }
 0x6bb   : > { %v2659_v42 = vcombine.low %v2586_v58, %v2588_v25  ;;  %v2660_v15 = vcombine.low %v2627_v20, %v2629_v24  ;;  %v7867_v58 = vpop.eup %7866 }
 0x6bc   : > { %v2590_v31 = vpop.f32.mrf.mxu0  ;;  %v2631_v14 = vpop.f32.mrf.mxu1  ;;  %v2705_v37 = vmul.f32 %v7867_v58, %v9475_v33  ;;  %v11291_v33 = vld [vmem:[#allocation129_spill] sm:$0xff]  ;;  %v11298_v58 = vld [vmem:[#allocation136_spill] sm:$0xff] }
 0x6bd   : > { %v2667_v49 = vrot.slane %v2659_v42, %v9026_v50  ;;  %v2674_v27 = vrot.slane %v2660_v15, %v9026_v50  ;;  %v7869_v20 = vpop.eup %7868 }
 0x6be   : > { %v2591_v8 = vpop.f32.mrf.mxu0  ;;  %v2632_v63 = vpop.f32.mrf.mxu1 }
 0x6bf   : > { %v2675_v6 = vcombine.low %v2667_v49, %v2674_v27  ;;  %v11294_v8 = vld [vmem:[#allocation132_spill] sm:$0xff]  ;;  %v11295_v63 = vld [vmem:[#allocation133_spill] sm:$0xff] }
 0x6c1   : > { %v2679_v12 = vadd.f32 %v6780_v18, %v2675_v6  ;;  %v11293_v18 = vld [vmem:[#allocation131_spill] sm:$0xff]  ;;  %v11296_v6 = vld [vmem:[#allocation134_spill] sm:$0xff] }
 0x6c3   : > { %7870 = vtanh.f32 %v2679_v12  ;;  %v2697_v13 = vrot.slane %v2679_v12, 4  ;;  %v11297_v12 = vld [vmem:[#allocation135_spill] sm:$0xff] }
 0x6c5   : > { %v6783_v4 = vmul.f32 -1.442695, %v2697_v13 }
 0x6c7   : > { %7872 = vpow2.f32 %v6783_v4 }
 0x6d0   : > { %v7871_v25 = vpop.eup %7870 }
 0x6d1   : > { %v2706_v24 = vmul.f32 %v7871_v25, %v7869_v20  ;;  %v11299_v20 = vld [vmem:[#allocation137_spill] sm:$0xff]  ;;  %v11300_v25 = vld [vmem:[#allocation138_spill] sm:$0xff] }
 0x6d3   : > { %v9620_v42 = vadd.f32 %v2706_v24, %v2705_v37  ;;  %v11301_v37 = vld [vmem:[#allocation139_spill] sm:$0xff]  ;;  %v11302_v24 = vld [vmem:[#allocation140_spill] sm:$0xff] }
 0x6d4   : > { %v7873_v19 = vpop.eup %7872 }
 0x6d5   : > { %v2702_v15 = vadd.f32 1.0, %v7873_v19  ;;  %7874 = vtanh.f32 %v9620_v42  ;;  %v11303_v19 = vld [vmem:[#allocation141_spill] sm:$0xff] }
 0x6d7   : > { %7876 = vrcp.f32 %v2702_v15  ;;  %v11304_v15 = vld [vmem:[#allocation142_spill] sm:$0xff] }
 0x6e2   : > { %v7875_v31 = vpop.eup %7874 }
 0x6e4   : > { %v7877_v14 = vpop.eup %7876 }
 0x6e5   : > { %v2709_v47 = vmul.f32 %v7877_v14, %v7875_v31  ;;  %v11305_v31 = vld [vmem:[#allocation143_spill] sm:$0xff]  ;;  %v11306_v14 = vld [vmem:[#allocation144_spill] sm:$0xff] }
 0x6e7   : > { %v2720_v49 = vrot.slane %v2709_v47, %v9026_v50  ;;  %v11307_v47 = vld [vmem:[#allocation145_spill] sm:$0xff] }
 0x6e9   : > { %v2721_v13 = vcombine.high %v2720_v49, %v2720_v49  ;;  %v9624_v27 = vpack.c.bf16 %v2720_v49, %v2720_v49  ;;  %v11308_v49 = vld [vmem:[#allocation146_spill] sm:$0xff] }
 0x6eb   : > { %v2725_v4 = vpack.c.bf16 %v2721_v13, %v2721_v13  ;;  %v11309_v13 = vld [vmem:[#allocation147_spill] sm:$0xff] }
 0x6ed   : > { %2758 = vmatprep.mubr.bf16.mxu0 %v2725_v4  ;;  %2799 = vmatprep.mubr.bf16.mxu1 %v2725_v4 }
 0x6ee   : > { %2759 = vmatmul.mubr.bf16.vlgmr.msra.gmra.mxu0 %v9624_v27  ;;  %2800 = vmatmul.mubr.bf16.vlgmr.msra.gmra.mxu1 %v9624_v27 }
 0x6ef   : > { %2809 = vmatpush1.bf16.msra.mxu0 %v10946_v32  ;;  %2850 = vmatpush1.bf16.msra.mxu1 %v10947_v1 }
 0x6f0   : > { %2840 = vmatprep.mubr.bf16.mxu0 %v2725_v4  ;;  %2881 = vmatprep.mubr.bf16.mxu1 %v2725_v4  ;;  %v11310_v4 = vld [vmem:[#allocation148_spill] sm:$0xff] }
 0x6f1   : > { %2810 = vmatprep.subr.bf16.mxu0 %v10948_v23  ;;  %2851 = vmatprep.subr.bf16.mxu1 %v10949_v41 }
 0x6f3   : > { %2811 = vmatpush1.bf16.msra.mxu0 %v10950_v39  ;;  %2852 = vmatpush1.bf16.msra.mxu1 %v10951_v40 }
 0x6f4   : > { %2812 = vmatprep.subr.bf16.mxu0 %v11030_v56  ;;  %2853 = vmatprep.subr.bf16.mxu1 %v11031_v62 }
 0x6f7   : > { %2813 = vmatpush1.bf16.msra.mxu0 %v11032_v36  ;;  %2854 = vmatpush1.bf16.msra.mxu1 %v11033_v35 }
 0x6f8   : > { %2814 = vmatprep.subr.bf16.mxu0 %v11034_v5  ;;  %2855 = vmatprep.subr.bf16.mxu1 %v11035_v51 }
 0x6fb   : > { %2815 = vmatpush1.bf16.msra.mxu0 %v11036_v48  ;;  %2856 = vmatpush1.bf16.msra.mxu1 %v11037_v30 }
 0x6fc   : > { %2816 = vmatprep.subr.bf16.mxu0 %v11038_v54  ;;  %2857 = vmatprep.subr.bf16.mxu1 %v11117_v45 }
 0x6ff   : > { %2817 = vmatpush1.bf16.msra.mxu0 %v11118_v21  ;;  %2858 = vmatpush1.bf16.msra.mxu1 %v11119_v22 }
 0x700   : > { %2818 = vmatprep.subr.bf16.mxu0 %v11120_v26  ;;  %2859 = vmatprep.subr.bf16.mxu1 %v11121_v2 }
 0x703   : > { %2819 = vmatpush1.bf16.msra.mxu0 %v11122_v9  ;;  %2860 = vmatpush1.bf16.msra.mxu1 %v11123_v57 }
 0x704   : > { %2820 = vmatprep.subr.bf16.mxu0 %v11124_v17  ;;  %2861 = vmatprep.subr.bf16.mxu1 %v11125_v10 }
 0x707   : > { %2821 = vmatpush1.bf16.msra.mxu0 %v11126_v11  ;;  %2862 = vmatpush1.bf16.msra.mxu1 %v11127_v3 }
 0x708   : > { %2822 = vmatprep.subr.bf16.mxu0 %v11050_v59  ;;  %2863 = vmatprep.subr.bf16.mxu1 %v11051_v44 }
 0x70b   : > { %2823 = vmatpush1.bf16.msra.mxu0 %v11052_v43  ;;  %2864 = vmatpush1.bf16.msra.mxu1 %v11128_v55 }
 0x70c   : > { %2824 = vmatprep.subr.bf16.mxu0 %v11054_v46  ;;  %2865 = vmatprep.subr.bf16.mxu1 %v11055_v53 }
 0x70f   : > { %2825 = vmatpush2.bf16.msra.mxu0 %v11056_v60  ;;  %2866 = vmatpush2.bf16.msra.mxu1 %v11057_v38 }
 0x710   : > { %2826 = vmatprep.subr.bf16.mxu0 %v11058_v61  ;;  %2867 = vmatprep.subr.bf16.mxu1 %v11059_v29 }
 0x713   : > { %2827 = vmatpush2.bf16.msra.mxu0 %v11060_v28  ;;  %2868 = vmatpush2.bf16.msra.mxu1 %v10983_v7 }
 0x714   : > { %2828 = vmatprep.subr.bf16.mxu0 %v10984_v34  ;;  %2869 = vmatprep.subr.bf16.mxu1 %v10985_v16 }
 0x717   : > { %2829 = vmatpush2.bf16.msra.mxu0 %v11061_v52  ;;  %2870 = vmatpush2.bf16.msra.mxu1 %v11291_v33 }
 0x718   : > { %2830 = vmatprep.subr.bf16.mxu0 %v11292_v0  ;;  %2871 = vmatprep.subr.bf16.mxu1 %v11293_v18 }
 0x71b   : > { %2831 = vmatpush2.bf16.msra.mxu0 %v11294_v8  ;;  %2872 = vmatpush2.bf16.msra.mxu1 %v11295_v63 }
 0x71c   : > { %2832 = vmatprep.subr.bf16.mxu0 %v11296_v6  ;;  %2873 = vmatprep.subr.bf16.mxu1 %v11297_v12  ;;  %v6784_v6 = vld [vmem:[%s9034_s20 + $0x50] sm:$0xff] }
 0x71f   : > { %2833 = vmatpush2.bf16.msra.mxu0 %v11298_v58  ;;  %2874 = vmatpush2.bf16.msra.mxu1 %v11299_v20 }
 0x720   : > { %2834 = vmatprep.subr.bf16.mxu0 %v11300_v25  ;;  %2875 = vmatprep.subr.bf16.mxu1 %v11301_v37  ;;  %v11311_v25 = vld [vmem:[#allocation149_spill] sm:$0xff]  ;;  %v11312_v37 = vld [vmem:[#allocation22_spill] sm:$0xff] }
 0x723   : > { %2835 = vmatpush2.bf16.msra.mxu0 %v11302_v24  ;;  %2876 = vmatpush2.bf16.msra.mxu1 %v11303_v19  ;;  %v11313_v24 = vld [vmem:[#allocation24_spill] sm:$0xff] }
 0x724   : > { %2836 = vmatprep.subr.bf16.mxu0 %v11304_v15  ;;  %2877 = vmatprep.subr.bf16.mxu1 %v11305_v31  ;;  %v11314_v31 = vld [vmem:[#allocation23_spill] sm:$0xff]  ;;  %v11323_v15 = vld [vmem:[#allocation33_spill] sm:$0xff] }
 0x727   : > { %2837 = vmatpush2.bf16.msra.mxu0 %v11306_v14  ;;  %2878 = vmatpush2.bf16.msra.mxu1 %v11307_v47  ;;  %v11315_v14 = vld [vmem:[#allocation25_spill] sm:$0xff]  ;;  %v11316_v47 = vld [vmem:[#allocation26_spill] sm:$0xff] }
 0x728   : > { %2838 = vmatprep.subr.bf16.mxu0 %v11308_v49  ;;  %2879 = vmatprep.subr.bf16.mxu1 %v11309_v13  ;;  %v11317_v49 = vld [vmem:[#allocation27_spill] sm:$0xff]  ;;  %v11318_v13 = vld [vmem:[#allocation28_spill] sm:$0xff] }
 0x72b   : > { %2839 = vmatpush2.bf16.msra.mxu0 %v11310_v4  ;;  %2880 = vmatpush2.bf16.msra.mxu1 %v11311_v25  ;;  %v11319_v4 = vld [vmem:[#allocation29_spill] sm:$0xff]  ;;  %v11320_v25 = vld [vmem:[#allocation30_spill] sm:$0xff] }
 0x72c   : > { %2982 = vmatprep.subr.bf16.mxu0 %v11312_v37  ;;  %3023 = vmatprep.subr.bf16.mxu1 %v11313_v24  ;;  %v11321_v37 = vld [vmem:[#allocation31_spill] sm:$0xff]  ;;  %v11322_v24 = vld [vmem:[#allocation32_spill] sm:$0xff] }
 0x72e   : > { %2841 = vmatmul.mubr.bf16.vlgmr.msra.gmra.mxu0 %v9624_v27  ;;  %2882 = vmatmul.mubr.bf16.vlgmr.msra.gmra.mxu1 %v9624_v27  ;;  %v11324_v27 = vld [vmem:[#allocation34_spill] sm:$0xff] }
 0x72f   : > { %2983 = vmatpush1.bf16.msra.mxu0 %v11314_v31  ;;  %3024 = vmatpush1.bf16.msra.mxu1 %v11315_v14  ;;  %v11325_v31 = vld [vmem:[#allocation35_spill] sm:$0xff]  ;;  %v11326_v14 = vld [vmem:[#allocation36_spill] sm:$0xff] }
 0x730   : > { %2984 = vmatprep.subr.bf16.mxu0 %v11316_v47  ;;  %3025 = vmatprep.subr.bf16.mxu1 %v11317_v49  ;;  %v11327_v47 = vld [vmem:[#allocation37_spill] sm:$0xff]  ;;  %v11328_v49 = vld [vmem:[#allocation38_spill] sm:$0xff] }
 0x733   : > { %2985 = vmatpush1.bf16.msra.mxu0 %v11318_v13  ;;  %3026 = vmatpush1.bf16.msra.mxu1 %v11319_v4  ;;  %v11329_v13 = vld [vmem:[#allocation39_spill] sm:$0xff]  ;;  %v11330_v4 = vld [vmem:[#allocation40_spill] sm:$0xff] }
 0x734   : > { %2986 = vmatprep.subr.bf16.mxu0 %v11320_v25  ;;  %3027 = vmatprep.subr.bf16.mxu1 %v11321_v37  ;;  %v11331_v25 = vld [vmem:[#allocation41_spill] sm:$0xff]  ;;  %v11332_v37 = vld [vmem:[#allocation42_spill] sm:$0xff] }
 0x737   : > { %2987 = vmatpush1.bf16.msra.mxu0 %v11322_v24  ;;  %3028 = vmatpush1.bf16.msra.mxu1 %v11323_v15  ;;  %v11333_v24 = vld [vmem:[#allocation43_spill] sm:$0xff]  ;;  %v11334_v15 = vld [vmem:[#allocation44_spill] sm:$0xff] }
 0x738   : > { %2988 = vmatprep.subr.bf16.mxu0 %v11324_v27  ;;  %3029 = vmatprep.subr.bf16.mxu1 %v11325_v31  ;;  %v11335_v27 = vld [vmem:[#allocation45_spill] sm:$0xff]  ;;  %v11336_v31 = vld [vmem:[#allocation46_spill] sm:$0xff] }
 0x73b   : > { %2989 = vmatpush1.bf16.msra.mxu0 %v11326_v14  ;;  %3030 = vmatpush1.bf16.msra.mxu1 %v11327_v47  ;;  %v11337_v14 = vld [vmem:[#allocation47_spill] sm:$0xff]  ;;  %v11338_v47 = vld [vmem:[#allocation48_spill] sm:$0xff] }
 0x73c   : > { %2990 = vmatprep.subr.bf16.mxu0 %v11328_v49  ;;  %3031 = vmatprep.subr.bf16.mxu1 %v11329_v13  ;;  %v11339_v49 = vld [vmem:[#allocation49_spill] sm:$0xff]  ;;  %v11340_v13 = vld [vmem:[#allocation50_spill] sm:$0xff] }
 0x73f   : > { %2991 = vmatpush1.bf16.msra.mxu0 %v11330_v4  ;;  %3032 = vmatpush1.bf16.msra.mxu1 %v11331_v25  ;;  %v11341_v4 = vld [vmem:[#allocation51_spill] sm:$0xff]  ;;  %v11342_v25 = vld [vmem:[#allocation52_spill] sm:$0xff] }
 0x740   : > { %2992 = vmatprep.subr.bf16.mxu0 %v11332_v37  ;;  %3033 = vmatprep.subr.bf16.mxu1 %v11333_v24  ;;  %v11343_v37 = vld [vmem:[#allocation53_spill] sm:$0xff]  ;;  %v11344_v24 = vld [vmem:[#allocation54_spill] sm:$0xff] }
 0x743   : > { %2993 = vmatpush1.bf16.msra.mxu0 %v11334_v15  ;;  %3034 = vmatpush1.bf16.msra.mxu1 %v11335_v27  ;;  %v11345_v15 = vld [vmem:[#allocation55_spill] sm:$0xff]  ;;  %v11346_v27 = vld [vmem:[#allocation56_spill] sm:$0xff] }
 0x744   : > { %2994 = vmatprep.subr.bf16.mxu0 %v11336_v31  ;;  %3035 = vmatprep.subr.bf16.mxu1 %v11337_v14  ;;  %v11347_v31 = vld [vmem:[#allocation57_spill] sm:$0xff]  ;;  %v11348_v14 = vld [vmem:[#allocation58_spill] sm:$0xff] }
 0x747   : > { %2995 = vmatpush1.bf16.msra.mxu0 %v11338_v47  ;;  %3036 = vmatpush1.bf16.msra.mxu1 %v11339_v49  ;;  %v11349_v47 = vld [vmem:[#allocation59_spill] sm:$0xff]  ;;  %v11350_v49 = vld [vmem:[#allocation60_spill] sm:$0xff] }
 0x748   : > { %2996 = vmatprep.subr.bf16.mxu0 %v11340_v13  ;;  %3037 = vmatprep.subr.bf16.mxu1 %v11341_v4  ;;  %v11351_v13 = vld [vmem:[#allocation61_spill] sm:$0xff]  ;;  %v11352_v4 = vld [vmem:[#allocation62_spill] sm:$0xff] }
 0x74b   : > { %2997 = vmatpush1.bf16.msra.mxu0 %v11342_v25  ;;  %3038 = vmatpush1.bf16.msra.mxu1 %v11343_v37  ;;  %v11353_v25 = vld [vmem:[#allocation63_spill] sm:$0xff]  ;;  %v11354_v37 = vld [vmem:[#allocation64_spill] sm:$0xff] }
 0x74c   : > { %2998 = vmatprep.subr.bf16.mxu0 %v11344_v24  ;;  %3039 = vmatprep.subr.bf16.mxu1 %v11345_v15  ;;  %v11355_v24 = vld [vmem:[#allocation65_spill] sm:$0xff]  ;;  %v11356_v15 = vld [vmem:[#allocation66_spill] sm:$0xff] }
 0x74f   : > { %2999 = vmatpush2.bf16.msra.mxu0 %v11346_v27  ;;  %3040 = vmatpush2.bf16.msra.mxu1 %v11347_v31  ;;  %v11357_v27 = vld [vmem:[#allocation67_spill] sm:$0xff]  ;;  %v11358_v31 = vld [vmem:[#allocation68_spill] sm:$0xff] }
 0x750   : > { %3000 = vmatprep.subr.bf16.mxu0 %v11348_v14  ;;  %3041 = vmatprep.subr.bf16.mxu1 %v11349_v47  ;;  %v11359_v14 = vld [vmem:[#allocation69_spill] sm:$0xff]  ;;  %v11360_v47 = vld [vmem:[#allocation70_spill] sm:$0xff] }
 0x753   : > { %3001 = vmatpush2.bf16.msra.mxu0 %v11350_v49  ;;  %3042 = vmatpush2.bf16.msra.mxu1 %v11351_v13  ;;  %v11361_v49 = vld [vmem:[#allocation71_spill] sm:$0xff]  ;;  %v11362_v13 = vld [vmem:[#allocation72_spill] sm:$0xff] }
 0x754   : > { %3002 = vmatprep.subr.bf16.mxu0 %v11352_v4  ;;  %3043 = vmatprep.subr.bf16.mxu1 %v11353_v25  ;;  %v11363_v4 = vld [vmem:[#allocation73_spill] sm:$0xff]  ;;  %v11364_v25 = vld [vmem:[#allocation74_spill] sm:$0xff] }
 0x757   : > { %3003 = vmatpush2.bf16.msra.mxu0 %v11354_v37  ;;  %3044 = vmatpush2.bf16.msra.mxu1 %v11355_v24  ;;  %v11365_v37 = vld [vmem:[#allocation75_spill] sm:$0xff]  ;;  %v11366_v24 = vld [vmem:[#allocation76_spill] sm:$0xff] }
 0x758   : > { %3004 = vmatprep.subr.bf16.mxu0 %v11356_v15  ;;  %3045 = vmatprep.subr.bf16.mxu1 %v11357_v27  ;;  %v11367_v15 = vld [vmem:[#allocation77_spill] sm:$0xff]  ;;  %v11368_v27 = vld [vmem:[#allocation78_spill] sm:$0xff] }
 0x75b   : > { %3005 = vmatpush2.bf16.msra.mxu0 %v11358_v31  ;;  %3046 = vmatpush2.bf16.msra.mxu1 %v11359_v14  ;;  %v11369_v31 = vld [vmem:[#allocation79_spill] sm:$0xff]  ;;  %v11370_v14 = vld [vmem:[#allocation80_spill] sm:$0xff] }
 0x75c   : > { %3006 = vmatprep.subr.bf16.mxu0 %v11360_v47  ;;  %3047 = vmatprep.subr.bf16.mxu1 %v11361_v49  ;;  %v11371_v47 = vld [vmem:[#allocation81_spill] sm:$0xff]  ;;  %v11372_v49 = vld [vmem:[#allocation82_spill] sm:$0xff] }
 0x75f   : > { %3007 = vmatpush2.bf16.msra.mxu0 %v11362_v13  ;;  %3048 = vmatpush2.bf16.msra.mxu1 %v11363_v4  ;;  %v11373_v13 = vld [vmem:[#allocation83_spill] sm:$0xff]  ;;  %v11374_v4 = vld [vmem:[#allocation84_spill] sm:$0xff] }
 0x760   : > { %3008 = vmatprep.subr.bf16.mxu0 %v11364_v25  ;;  %3049 = vmatprep.subr.bf16.mxu1 %v11365_v37  ;;  %v11375_v25 = vld [vmem:[#allocation85_spill] sm:$0xff]  ;;  %v11376_v37 = vld [vmem:[#allocation86_spill] sm:$0xff] }
 0x763   : > { %3009 = vmatpush2.bf16.msra.mxu0 %v11366_v24  ;;  %3050 = vmatpush2.bf16.msra.mxu1 %v11367_v15  ;;  %v11377_v15 = vld [vmem:[#allocation87_spill] sm:$0xff] }
 0x764   : > { %3010 = vmatprep.subr.bf16.mxu0 %v11368_v27  ;;  %3051 = vmatprep.subr.bf16.mxu1 %v11369_v31 }
 0x767   : > { %3011 = vmatpush2.bf16.msra.mxu0 %v11370_v14  ;;  %3052 = vmatpush2.bf16.msra.mxu1 %v11371_v47 }
 0x768   : > { %3012 = vmatprep.subr.bf16.mxu0 %v11372_v49  ;;  %3053 = vmatprep.subr.bf16.mxu1 %v11373_v13 }
 0x76b   : > { %3013 = vmatpush2.bf16.msra.mxu0 %v11374_v4  ;;  %3054 = vmatpush2.bf16.msra.mxu1 %v11375_v25 }
 0x76c   : > { %3064 = vmatprep.subr.bf16.mxu0 %v11376_v37  ;;  %3105 = vmatprep.subr.bf16.mxu1 %v11377_v15 }
 0x7ae   : > { %v2760_v27 = vpop.f32.mrf.mxu0  ;;  %v2801_v24 = vpop.f32.mrf.mxu1 }
 0x7b0   : > { %v2762_v31 = vpop.f32.mrf.mxu0  ;;  %v2803_v19 = vpop.f32.mrf.mxu1 }
 0x7b1   : > { %v2898_v49 = vcombine.low %v2760_v27, %v2762_v31  ;;  %v2899_v12 = vcombine.low %v2801_v24, %v2803_v19 }
 0x7b2   : > { %v2764_v14 = vpop.f32.mrf.mxu0  ;;  %v2805_v20 = vpop.f32.mrf.mxu1 }
 0x7b3   : > { %v2906_v13 = vrot.slane %v2898_v49, %v9026_v50  ;;  %v2913_v4 = vrot.slane %v2899_v12, %v9026_v50 }
 0x7b4   : > { %v2765_v47 = vpop.f32.mrf.mxu0  ;;  %v2806_v58 = vpop.f32.mrf.mxu1 }
 0x7b5   : > { %v2914_v25 = vcombine.low %v2906_v13, %v2913_v4 }
 0x7b7   : > { %v2934_v63 = vadd.f32 %v6784_v6, %v2914_v25 }
 0x7b9   : > { %v2943_v37 = vrot.slane %v2934_v63, 4  ;;  %v6786_v15 = vmul.f32 -1.442695, %v2934_v63  ;;  %v6785_v63 = vld [vmem:[%s9034_s20 + $0x58] sm:$0xff] }
 0x7bb   : > { %v6787_v8 = vmul.f32 -1.442695, %v2943_v37 }
 0x7bd   : > { %7878 = vpow2.f32 %v6787_v8 }
 0x7be   : > { %7880 = vpow2.f32 %v6786_v15 }
 0x7ca   : > { %v7879_v20 = vpop.eup %7878 }
 0x7cb   : > { %v7881_v31 = vpop.eup %7880  ;;  %v2948_v12 = vadd.f32 1.0, %v7879_v20 }
 0x7cc   : > { %v2939_v25 = vadd.f32 1.0, %v7881_v31 }
 0x7cd   : > { %7882 = vrcp.f32 %v2948_v12 }
 0x7ce   : > { %7884 = vrcp.f32 %v2939_v25  ;;  %v11379_v25 = vld [vmem:[#allocation130_spill] sm:$0xff] }
 0x7ee   : > { %v2842_v18 = vpop.f32.mrf.mxu0  ;;  %v2883_v14 = vpop.f32.mrf.mxu1 }
 0x7f0   : > { %v2844_v47 = vpop.f32.mrf.mxu0  ;;  %v2885_v58 = vpop.f32.mrf.mxu1 }
 0x7f1   : > { %v2915_v24 = vcombine.low %v2842_v18, %v2844_v47  ;;  %v2916_v19 = vcombine.low %v2883_v14, %v2885_v58  ;;  %v7883_v18 = vpop.eup %7882 }
 0x7f2   : > { %v2846_v49 = vpop.f32.mrf.mxu0  ;;  %v2887_v27 = vpop.f32.mrf.mxu1  ;;  %v2961_v20 = vmul.f32 %v7883_v18, %v9620_v42  ;;  %v11378_v42 = vld [vmem:[#allocation129_spill] sm:$0xff]  ;;  %v11385_v18 = vld [vmem:[#allocation136_spill] sm:$0xff] }
 0x7f3   : > { %v2923_v13 = vrot.slane %v2915_v24, %v9026_v50  ;;  %v2930_v6 = vrot.slane %v2916_v19, %v9026_v50  ;;  %v7885_v14 = vpop.eup %7884 }
 0x7f4   : > { %v2847_v8 = vpop.f32.mrf.mxu0  ;;  %v2888_v37 = vpop.f32.mrf.mxu1 }
 0x7f5   : > { %v2931_v15 = vcombine.low %v2923_v13, %v2930_v6  ;;  %v11381_v8 = vld [vmem:[#allocation132_spill] sm:$0xff]  ;;  %v11382_v37 = vld [vmem:[#allocation133_spill] sm:$0xff] }
 0x7f7   : > { %v2935_v4 = vadd.f32 %v6785_v63, %v2931_v15  ;;  %v11380_v63 = vld [vmem:[#allocation131_spill] sm:$0xff]  ;;  %v11383_v15 = vld [vmem:[#allocation134_spill] sm:$0xff] }
 0x7f9   : > { %7886 = vtanh.f32 %v2935_v4  ;;  %v2953_v0 = vrot.slane %v2935_v4, 4  ;;  %v11384_v4 = vld [vmem:[#allocation135_spill] sm:$0xff] }
 0x7fb   : > { %v6788_v33 = vmul.f32 -1.442695, %v2953_v0 }
 0x7fd   : > { %7888 = vpow2.f32 %v6788_v33 }
 0x806   : > { %v7887_v47 = vpop.eup %7886 }
 0x807   : > { %v2962_v58 = vmul.f32 %v7887_v47, %v7885_v14  ;;  %v11386_v14 = vld [vmem:[#allocation137_spill] sm:$0xff]  ;;  %v11387_v47 = vld [vmem:[#allocation138_spill] sm:$0xff] }
 0x809   : > { %v9765_v24 = vadd.f32 %v2962_v58, %v2961_v20  ;;  %v11388_v20 = vld [vmem:[#allocation139_spill] sm:$0xff]  ;;  %v11389_v58 = vld [vmem:[#allocation140_spill] sm:$0xff] }
 0x80a   : > { %v7889_v31 = vpop.eup %7888 }
 0x80b   : > { %v2958_v19 = vadd.f32 1.0, %v7889_v31  ;;  %7890 = vtanh.f32 %v9765_v24  ;;  %v11390_v31 = vld [vmem:[#allocation141_spill] sm:$0xff] }
 0x80d   : > { %7892 = vrcp.f32 %v2958_v19  ;;  %v11391_v19 = vld [vmem:[#allocation142_spill] sm:$0xff] }
 0x818   : > { %v7891_v49 = vpop.eup %7890 }
 0x81a   : > { %v7893_v27 = vpop.eup %7892 }
 0x81b   : > { %v2965_v12 = vmul.f32 %v7893_v27, %v7891_v49  ;;  %v11392_v49 = vld [vmem:[#allocation143_spill] sm:$0xff]  ;;  %v11393_v27 = vld [vmem:[#allocation144_spill] sm:$0xff] }
 0x81d   : > { %v2976_v13 = vrot.slane %v2965_v12, %v9026_v50  ;;  %v11394_v12 = vld [vmem:[#allocation145_spill] sm:$0xff] }
 0x81f   : > { %v2977_v0 = vcombine.high %v2976_v13, %v2976_v13  ;;  %v9769_v6 = vpack.c.bf16 %v2976_v13, %v2976_v13  ;;  %v11395_v13 = vld [vmem:[#allocation146_spill] sm:$0xff] }
 0x821   : > { %v2981_v33 = vpack.c.bf16 %v2977_v0, %v2977_v0  ;;  %v11396_v0 = vld [vmem:[#allocation147_spill] sm:$0xff] }
 0x823   : > { %3014 = vmatprep.mubr.bf16.mxu0 %v2981_v33  ;;  %3055 = vmatprep.mubr.bf16.mxu1 %v2981_v33 }
 0x824   : > { %3015 = vmatmul.mubr.bf16.vlgmr.msra.gmra.mxu0 %v9769_v6  ;;  %3056 = vmatmul.mubr.bf16.vlgmr.msra.gmra.mxu1 %v9769_v6 }
 0x825   : > { %3065 = vmatpush1.bf16.msra.mxu0 %v10946_v32  ;;  %3106 = vmatpush1.bf16.msra.mxu1 %v10947_v1 }
 0x826   : > { %3096 = vmatprep.mubr.bf16.mxu0 %v2981_v33  ;;  %3137 = vmatprep.mubr.bf16.mxu1 %v2981_v33  ;;  %v11397_v33 = vld [vmem:[#allocation148_spill] sm:$0xff] }
 0x827   : > { %3066 = vmatprep.subr.bf16.mxu0 %v10948_v23  ;;  %3107 = vmatprep.subr.bf16.mxu1 %v10949_v41 }
 0x829   : > { %3067 = vmatpush1.bf16.msra.mxu0 %v10950_v39  ;;  %3108 = vmatpush1.bf16.msra.mxu1 %v10951_v40 }
 0x82a   : > { %3068 = vmatprep.subr.bf16.mxu0 %v11030_v56  ;;  %3109 = vmatprep.subr.bf16.mxu1 %v11031_v62 }
 0x82d   : > { %3069 = vmatpush1.bf16.msra.mxu0 %v11032_v36  ;;  %3110 = vmatpush1.bf16.msra.mxu1 %v11033_v35 }
 0x82e   : > { %3070 = vmatprep.subr.bf16.mxu0 %v11034_v5  ;;  %3111 = vmatprep.subr.bf16.mxu1 %v11035_v51 }
 0x831   : > { %3071 = vmatpush1.bf16.msra.mxu0 %v11036_v48  ;;  %3112 = vmatpush1.bf16.msra.mxu1 %v11037_v30 }
 0x832   : > { %3072 = vmatprep.subr.bf16.mxu0 %v11038_v54  ;;  %3113 = vmatprep.subr.bf16.mxu1 %v11117_v45 }
 0x835   : > { %3073 = vmatpush1.bf16.msra.mxu0 %v11118_v21  ;;  %3114 = vmatpush1.bf16.msra.mxu1 %v11119_v22 }
 0x836   : > { %3074 = vmatprep.subr.bf16.mxu0 %v11120_v26  ;;  %3115 = vmatprep.subr.bf16.mxu1 %v11121_v2 }
 0x839   : > { %3075 = vmatpush1.bf16.msra.mxu0 %v11122_v9  ;;  %3116 = vmatpush1.bf16.msra.mxu1 %v11123_v57 }
 0x83a   : > { %3076 = vmatprep.subr.bf16.mxu0 %v11124_v17  ;;  %3117 = vmatprep.subr.bf16.mxu1 %v11125_v10 }
 0x83d   : > { %3077 = vmatpush1.bf16.msra.mxu0 %v11126_v11  ;;  %3118 = vmatpush1.bf16.msra.mxu1 %v11127_v3 }
 0x83e   : > { %3078 = vmatprep.subr.bf16.mxu0 %v11050_v59  ;;  %3119 = vmatprep.subr.bf16.mxu1 %v11051_v44 }
 0x841   : > { %3079 = vmatpush1.bf16.msra.mxu0 %v11052_v43  ;;  %3120 = vmatpush1.bf16.msra.mxu1 %v11128_v55 }
 0x842   : > { %3080 = vmatprep.subr.bf16.mxu0 %v11054_v46  ;;  %3121 = vmatprep.subr.bf16.mxu1 %v11055_v53 }
 0x845   : > { %3081 = vmatpush2.bf16.msra.mxu0 %v11056_v60  ;;  %3122 = vmatpush2.bf16.msra.mxu1 %v11057_v38 }
 0x846   : > { %3082 = vmatprep.subr.bf16.mxu0 %v11058_v61  ;;  %3123 = vmatprep.subr.bf16.mxu1 %v11059_v29 }
 0x849   : > { %3083 = vmatpush2.bf16.msra.mxu0 %v11060_v28  ;;  %3124 = vmatpush2.bf16.msra.mxu1 %v10983_v7 }
 0x84a   : > { %3084 = vmatprep.subr.bf16.mxu0 %v10984_v34  ;;  %3125 = vmatprep.subr.bf16.mxu1 %v10985_v16 }
 0x84d   : > { %3085 = vmatpush2.bf16.msra.mxu0 %v11061_v52  ;;  %3126 = vmatpush2.bf16.msra.mxu1 %v11378_v42 }
 0x84e   : > { %3086 = vmatprep.subr.bf16.mxu0 %v11379_v25  ;;  %3127 = vmatprep.subr.bf16.mxu1 %v11380_v63 }
 0x851   : > { %3087 = vmatpush2.bf16.msra.mxu0 %v11381_v8  ;;  %3128 = vmatpush2.bf16.msra.mxu1 %v11382_v37 }
 0x852   : > { %3088 = vmatprep.subr.bf16.mxu0 %v11383_v15  ;;  %3129 = vmatprep.subr.bf16.mxu1 %v11384_v4  ;;  %v6789_v15 = vld [vmem:[%s9034_s20 + $0x60] sm:$0xff] }
 0x855   : > { %3089 = vmatpush2.bf16.msra.mxu0 %v11385_v18  ;;  %3130 = vmatpush2.bf16.msra.mxu1 %v11386_v14 }
 0x856   : > { %3090 = vmatprep.subr.bf16.mxu0 %v11387_v47  ;;  %3131 = vmatprep.subr.bf16.mxu1 %v11388_v20  ;;  %v11398_v47 = vld [vmem:[#allocation149_spill] sm:$0xff]  ;;  %v11399_v20 = vld [vmem:[#allocation22_spill] sm:$0xff] }
 0x859   : > { %3091 = vmatpush2.bf16.msra.mxu0 %v11389_v58  ;;  %3132 = vmatpush2.bf16.msra.mxu1 %v11390_v31  ;;  %v11400_v58 = vld [vmem:[#allocation24_spill] sm:$0xff] }
 0x85a   : > { %3092 = vmatprep.subr.bf16.mxu0 %v11391_v19  ;;  %3133 = vmatprep.subr.bf16.mxu1 %v11392_v49  ;;  %v11401_v49 = vld [vmem:[#allocation23_spill] sm:$0xff]  ;;  %v11410_v19 = vld [vmem:[#allocation33_spill] sm:$0xff] }
 0x85d   : > { %3093 = vmatpush2.bf16.msra.mxu0 %v11393_v27  ;;  %3134 = vmatpush2.bf16.msra.mxu1 %v11394_v12  ;;  %v11402_v27 = vld [vmem:[#allocation25_spill] sm:$0xff]  ;;  %v11403_v12 = vld [vmem:[#allocation26_spill] sm:$0xff] }
 0x85e   : > { %3094 = vmatprep.subr.bf16.mxu0 %v11395_v13  ;;  %3135 = vmatprep.subr.bf16.mxu1 %v11396_v0  ;;  %v11404_v13 = vld [vmem:[#allocation27_spill] sm:$0xff]  ;;  %v11405_v0 = vld [vmem:[#allocation28_spill] sm:$0xff] }
 0x861   : > { %3095 = vmatpush2.bf16.msra.mxu0 %v11397_v33  ;;  %3136 = vmatpush2.bf16.msra.mxu1 %v11398_v47  ;;  %v11406_v33 = vld [vmem:[#allocation29_spill] sm:$0xff]  ;;  %v11407_v47 = vld [vmem:[#allocation30_spill] sm:$0xff] }
 0x862   : > { %3238 = vmatprep.subr.bf16.mxu0 %v11399_v20  ;;  %3279 = vmatprep.subr.bf16.mxu1 %v11400_v58  ;;  %v11408_v20 = vld [vmem:[#allocation31_spill] sm:$0xff]  ;;  %v11409_v58 = vld [vmem:[#allocation32_spill] sm:$0xff] }
 0x864   : > { %3097 = vmatmul.mubr.bf16.vlgmr.msra.gmra.mxu0 %v9769_v6  ;;  %3138 = vmatmul.mubr.bf16.vlgmr.msra.gmra.mxu1 %v9769_v6  ;;  %v11411_v6 = vld [vmem:[#allocation34_spill] sm:$0xff] }
 0x865   : > { %3239 = vmatpush1.bf16.msra.mxu0 %v11401_v49  ;;  %3280 = vmatpush1.bf16.msra.mxu1 %v11402_v27  ;;  %v11412_v49 = vld [vmem:[#allocation35_spill] sm:$0xff]  ;;  %v11413_v27 = vld [vmem:[#allocation36_spill] sm:$0xff] }
 0x866   : > { %3240 = vmatprep.subr.bf16.mxu0 %v11403_v12  ;;  %3281 = vmatprep.subr.bf16.mxu1 %v11404_v13  ;;  %v11414_v12 = vld [vmem:[#allocation37_spill] sm:$0xff]  ;;  %v11415_v13 = vld [vmem:[#allocation38_spill] sm:$0xff] }
 0x869   : > { %3241 = vmatpush1.bf16.msra.mxu0 %v11405_v0  ;;  %3282 = vmatpush1.bf16.msra.mxu1 %v11406_v33  ;;  %v11416_v0 = vld [vmem:[#allocation39_spill] sm:$0xff]  ;;  %v11417_v33 = vld [vmem:[#allocation40_spill] sm:$0xff] }
 0x86a   : > { %3242 = vmatprep.subr.bf16.mxu0 %v11407_v47  ;;  %3283 = vmatprep.subr.bf16.mxu1 %v11408_v20  ;;  %v11418_v47 = vld [vmem:[#allocation41_spill] sm:$0xff]  ;;  %v11419_v20 = vld [vmem:[#allocation42_spill] sm:$0xff] }
 0x86d   : > { %3243 = vmatpush1.bf16.msra.mxu0 %v11409_v58  ;;  %3284 = vmatpush1.bf16.msra.mxu1 %v11410_v19  ;;  %v11420_v58 = vld [vmem:[#allocation43_spill] sm:$0xff]  ;;  %v11421_v19 = vld [vmem:[#allocation44_spill] sm:$0xff] }
 0x86e   : > { %3244 = vmatprep.subr.bf16.mxu0 %v11411_v6  ;;  %3285 = vmatprep.subr.bf16.mxu1 %v11412_v49  ;;  %v11422_v6 = vld [vmem:[#allocation45_spill] sm:$0xff]  ;;  %v11423_v49 = vld [vmem:[#allocation46_spill] sm:$0xff] }
 0x871   : > { %3245 = vmatpush1.bf16.msra.mxu0 %v11413_v27  ;;  %3286 = vmatpush1.bf16.msra.mxu1 %v11414_v12  ;;  %v11424_v27 = vld [vmem:[#allocation47_spill] sm:$0xff]  ;;  %v11425_v12 = vld [vmem:[#allocation48_spill] sm:$0xff] }
 0x872   : > { %3246 = vmatprep.subr.bf16.mxu0 %v11415_v13  ;;  %3287 = vmatprep.subr.bf16.mxu1 %v11416_v0  ;;  %v11426_v13 = vld [vmem:[#allocation49_spill] sm:$0xff]  ;;  %v11427_v0 = vld [vmem:[#allocation50_spill] sm:$0xff] }
 0x875   : > { %3247 = vmatpush1.bf16.msra.mxu0 %v11417_v33  ;;  %3288 = vmatpush1.bf16.msra.mxu1 %v11418_v47  ;;  %v11428_v33 = vld [vmem:[#allocation51_spill] sm:$0xff]  ;;  %v11429_v47 = vld [vmem:[#allocation52_spill] sm:$0xff] }
 0x876   : > { %3248 = vmatprep.subr.bf16.mxu0 %v11419_v20  ;;  %3289 = vmatprep.subr.bf16.mxu1 %v11420_v58  ;;  %v11430_v20 = vld [vmem:[#allocation53_spill] sm:$0xff]  ;;  %v11431_v58 = vld [vmem:[#allocation54_spill] sm:$0xff] }
 0x879   : > { %3249 = vmatpush1.bf16.msra.mxu0 %v11421_v19  ;;  %3290 = vmatpush1.bf16.msra.mxu1 %v11422_v6  ;;  %v11432_v19 = vld [vmem:[#allocation55_spill] sm:$0xff]  ;;  %v11433_v6 = vld [vmem:[#allocation56_spill] sm:$0xff] }
 0x87a   : > { %3250 = vmatprep.subr.bf16.mxu0 %v11423_v49  ;;  %3291 = vmatprep.subr.bf16.mxu1 %v11424_v27  ;;  %v11434_v49 = vld [vmem:[#allocation57_spill] sm:$0xff]  ;;  %v11435_v27 = vld [vmem:[#allocation58_spill] sm:$0xff] }
 0x87d   : > { %3251 = vmatpush1.bf16.msra.mxu0 %v11425_v12  ;;  %3292 = vmatpush1.bf16.msra.mxu1 %v11426_v13  ;;  %v11436_v12 = vld [vmem:[#allocation59_spill] sm:$0xff]  ;;  %v11437_v13 = vld [vmem:[#allocation60_spill] sm:$0xff] }
 0x87e   : > { %3252 = vmatprep.subr.bf16.mxu0 %v11427_v0  ;;  %3293 = vmatprep.subr.bf16.mxu1 %v11428_v33  ;;  %v11438_v0 = vld [vmem:[#allocation61_spill] sm:$0xff]  ;;  %v11439_v33 = vld [vmem:[#allocation62_spill] sm:$0xff] }
 0x881   : > { %3253 = vmatpush1.bf16.msra.mxu0 %v11429_v47  ;;  %3294 = vmatpush1.bf16.msra.mxu1 %v11430_v20  ;;  %v11440_v47 = vld [vmem:[#allocation63_spill] sm:$0xff]  ;;  %v11441_v20 = vld [vmem:[#allocation64_spill] sm:$0xff] }
 0x882   : > { %3254 = vmatprep.subr.bf16.mxu0 %v11431_v58  ;;  %3295 = vmatprep.subr.bf16.mxu1 %v11432_v19  ;;  %v11442_v58 = vld [vmem:[#allocation65_spill] sm:$0xff]  ;;  %v11443_v19 = vld [vmem:[#allocation66_spill] sm:$0xff] }
 0x885   : > { %3255 = vmatpush2.bf16.msra.mxu0 %v11433_v6  ;;  %3296 = vmatpush2.bf16.msra.mxu1 %v11434_v49  ;;  %v11444_v6 = vld [vmem:[#allocation67_spill] sm:$0xff]  ;;  %v11445_v49 = vld [vmem:[#allocation68_spill] sm:$0xff] }
 0x886   : > { %3256 = vmatprep.subr.bf16.mxu0 %v11435_v27  ;;  %3297 = vmatprep.subr.bf16.mxu1 %v11436_v12  ;;  %v11446_v27 = vld [vmem:[#allocation69_spill] sm:$0xff]  ;;  %v11447_v12 = vld [vmem:[#allocation70_spill] sm:$0xff] }
 0x889   : > { %3257 = vmatpush2.bf16.msra.mxu0 %v11437_v13  ;;  %3298 = vmatpush2.bf16.msra.mxu1 %v11438_v0  ;;  %v11448_v13 = vld [vmem:[#allocation71_spill] sm:$0xff]  ;;  %v11449_v0 = vld [vmem:[#allocation72_spill] sm:$0xff] }
 0x88a   : > { %3258 = vmatprep.subr.bf16.mxu0 %v11439_v33  ;;  %3299 = vmatprep.subr.bf16.mxu1 %v11440_v47  ;;  %v11450_v33 = vld [vmem:[#allocation73_spill] sm:$0xff]  ;;  %v11451_v47 = vld [vmem:[#allocation74_spill] sm:$0xff] }
 0x88d   : > { %3259 = vmatpush2.bf16.msra.mxu0 %v11441_v20  ;;  %3300 = vmatpush2.bf16.msra.mxu1 %v11442_v58  ;;  %v11452_v20 = vld [vmem:[#allocation75_spill] sm:$0xff]  ;;  %v11453_v58 = vld [vmem:[#allocation76_spill] sm:$0xff] }
 0x88e   : > { %3260 = vmatprep.subr.bf16.mxu0 %v11443_v19  ;;  %3301 = vmatprep.subr.bf16.mxu1 %v11444_v6  ;;  %v11454_v19 = vld [vmem:[#allocation77_spill] sm:$0xff]  ;;  %v11455_v6 = vld [vmem:[#allocation78_spill] sm:$0xff] }
 0x891   : > { %3261 = vmatpush2.bf16.msra.mxu0 %v11445_v49  ;;  %3302 = vmatpush2.bf16.msra.mxu1 %v11446_v27  ;;  %v11456_v49 = vld [vmem:[#allocation79_spill] sm:$0xff]  ;;  %v11457_v27 = vld [vmem:[#allocation80_spill] sm:$0xff] }
 0x892   : > { %3262 = vmatprep.subr.bf16.mxu0 %v11447_v12  ;;  %3303 = vmatprep.subr.bf16.mxu1 %v11448_v13  ;;  %v11458_v12 = vld [vmem:[#allocation81_spill] sm:$0xff]  ;;  %v11459_v13 = vld [vmem:[#allocation82_spill] sm:$0xff] }
 0x895   : > { %3263 = vmatpush2.bf16.msra.mxu0 %v11449_v0  ;;  %3304 = vmatpush2.bf16.msra.mxu1 %v11450_v33  ;;  %v11460_v0 = vld [vmem:[#allocation83_spill] sm:$0xff]  ;;  %v11461_v33 = vld [vmem:[#allocation84_spill] sm:$0xff] }
 0x896   : > { %3264 = vmatprep.subr.bf16.mxu0 %v11451_v47  ;;  %3305 = vmatprep.subr.bf16.mxu1 %v11452_v20  ;;  %v11462_v47 = vld [vmem:[#allocation85_spill] sm:$0xff]  ;;  %v11463_v20 = vld [vmem:[#allocation86_spill] sm:$0xff] }
 0x899   : > { %3265 = vmatpush2.bf16.msra.mxu0 %v11453_v58  ;;  %3306 = vmatpush2.bf16.msra.mxu1 %v11454_v19  ;;  %v11464_v58 = vld [vmem:[#allocation87_spill] sm:$0xff] }
 0x89a   : > { %3266 = vmatprep.subr.bf16.mxu0 %v11455_v6  ;;  %3307 = vmatprep.subr.bf16.mxu1 %v11456_v49 }
 0x89d   : > { %3267 = vmatpush2.bf16.msra.mxu0 %v11457_v27  ;;  %3308 = vmatpush2.bf16.msra.mxu1 %v11458_v12 }
 0x89e   : > { %3268 = vmatprep.subr.bf16.mxu0 %v11459_v13  ;;  %3309 = vmatprep.subr.bf16.mxu1 %v11460_v0 }
 0x8a1   : > { %3269 = vmatpush2.bf16.msra.mxu0 %v11461_v33  ;;  %3310 = vmatpush2.bf16.msra.mxu1 %v11462_v47 }
 0x8a2   : > { %3320 = vmatprep.subr.bf16.mxu0 %v11463_v20  ;;  %3361 = vmatprep.subr.bf16.mxu1 %v11464_v58 }
 0x8e4   : > { %v3016_v19 = vpop.f32.mrf.mxu0  ;;  %v3057_v6 = vpop.f32.mrf.mxu1 }
 0x8e6   : > { %v3018_v49 = vpop.f32.mrf.mxu0  ;;  %v3059_v31 = vpop.f32.mrf.mxu1 }
 0x8e7   : > { %v3154_v13 = vcombine.low %v3016_v19, %v3018_v49  ;;  %v3155_v4 = vcombine.low %v3057_v6, %v3059_v31 }
 0x8e8   : > { %v3020_v27 = vpop.f32.mrf.mxu0  ;;  %v3061_v14 = vpop.f32.mrf.mxu1 }
 0x8e9   : > { %v3162_v0 = vrot.slane %v3154_v13, %v9026_v50  ;;  %v3169_v33 = vrot.slane %v3155_v4, %v9026_v50 }
 0x8ea   : > { %v3021_v12 = vpop.f32.mrf.mxu0  ;;  %v3062_v18 = vpop.f32.mrf.mxu1 }
 0x8eb   : > { %v3170_v47 = vcombine.low %v3162_v0, %v3169_v33 }
 0x8ed   : > { %v3190_v37 = vadd.f32 %v6789_v15, %v3170_v47 }
 0x8ef   : > { %v3199_v20 = vrot.slane %v3190_v37, 4  ;;  %v6791_v58 = vmul.f32 -1.442695, %v3190_v37  ;;  %v6790_v37 = vld [vmem:[%s9034_s20 + $0x68] sm:$0xff] }
 0x8f1   : > { %v6792_v8 = vmul.f32 -1.442695, %v3199_v20 }
 0x8f3   : > { %7894 = vpow2.f32 %v6792_v8 }
 0x8f4   : > { %7896 = vpow2.f32 %v6791_v58 }
 0x900   : > { %v7895_v14 = vpop.eup %7894 }
 0x901   : > { %v7897_v19 = vpop.eup %7896  ;;  %v3204_v4 = vadd.f32 1.0, %v7895_v14 }
 0x902   : > { %v3195_v33 = vadd.f32 1.0, %v7897_v19 }
 0x903   : > { %7898 = vrcp.f32 %v3204_v4 }
 0x904   : > { %7900 = vrcp.f32 %v3195_v33  ;;  %v7298_v33 = vld [vmem:[%s8412_s9 + $0xa0] ss:$16 sps:$4 sm:$0xff]  }
 0x924   : > { %v3098_v63 = vpop.f32.mrf.mxu0  ;;  %v3139_v27 = vpop.f32.mrf.mxu1 }
 0x926   : > { %v3100_v12 = vpop.f32.mrf.mxu0  ;;  %v3141_v18 = vpop.f32.mrf.mxu1 }
 0x927   : > { %v3171_v31 = vcombine.low %v3098_v63, %v3100_v12  ;;  %v3172_v6 = vcombine.low %v3139_v27, %v3141_v18  ;;  %v7899_v63 = vpop.eup %7898 }
 0x928   : > { %v3102_v49 = vpop.f32.mrf.mxu0  ;;  %v3143_v13 = vpop.f32.mrf.mxu1  ;;  %v3217_v14 = vmul.f32 %v7899_v63, %v9765_v24  ;;  %v7303_v24 = vld [vmem:[%s8412_s9 + $0xac] ss:$16 sps:$4 sm:$0xff]   ;;  %v7312_v63 = vld [vmem:[%s8412_s9 + $0x64] ss:$16 sps:$4 sm:$0xff]  }
 0x929   : > { %v3179_v0 = vrot.slane %v3171_v31, %v9026_v50  ;;  %v3186_v15 = vrot.slane %v3172_v6, %v9026_v50  ;;  %v7901_v27 = vpop.eup %7900 }
 0x92a   : > { %v3103_v8 = vpop.f32.mrf.mxu0  ;;  %v3144_v47 = vpop.f32.mrf.mxu1 }
 0x92b   : > { %v3187_v20 = vcombine.low %v3179_v0, %v3186_v15  ;;  %v7306_v8 = vld [vmem:[%s8412_s9 + $0x84] ss:$16 sps:$4 sm:$0xff]   ;;  %v7309_v47 = vld [vmem:[%s8412_s9 + $0x8c] ss:$16 sps:$4 sm:$0xff]  }
 0x92d   : > { %v3191_v58 = vadd.f32 %v6790_v37, %v3187_v20  ;;  %v7301_v37 = vld [vmem:[%s8412_s9 + $0xa8] ss:$16 sps:$4 sm:$0xff]   ;;  %v7304_v20 = vld [vmem:[%s8412_s9 + $0x80] ss:$16 sps:$4 sm:$0xff]  }
 0x92f   : > { %7902 = vtanh.f32 %v3191_v58  ;;  %v3209_v25 = vrot.slane %v3191_v58, 4  ;;  %v7307_v58 = vld [vmem:[%s8412_s9 + $0x88] ss:$16 sps:$4 sm:$0xff]  }
 0x931   : > { %v6793_v42 = vmul.f32 -1.442695, %v3209_v25 }
 0x933   : > { %7904 = vpow2.f32 %v6793_v42 }
 0x93c   : > { %v7903_v12 = vpop.eup %7902 }
 0x93d   : > { %v3218_v18 = vmul.f32 %v7903_v12, %v7901_v27  ;;  %v7315_v27 = vld [vmem:[%s8412_s9 + $0x6c] ss:$16 sps:$4 sm:$0xff]   ;;  %v7310_v12 = vld [vmem:[%s8412_s9 + $0x60] ss:$16 sps:$4 sm:$0xff]  }
 0x93f   : > { %v9910_v31 = vadd.f32 %v3218_v18, %v3217_v14  ;;  %v7313_v14 = vld [vmem:[%s8412_s9 + $0x68] ss:$16 sps:$4 sm:$0xff]   ;;  %v7318_v18 = vld [vmem:[%s8412_s9 + $0x44] ss:$16 sps:$4 sm:$0xff]  }
 0x940   : > { %v7905_v19 = vpop.eup %7904 }
 0x941   : > { %v3214_v6 = vadd.f32 1.0, %v7905_v19  ;;  %7906 = vtanh.f32 %v9910_v31  ;;  %v7321_v19 = vld [vmem:[%s8412_s9 + $0x4c] ss:$16 sps:$4 sm:$0xff]  }
 0x943   : > { %7908 = vrcp.f32 %v3214_v6  ;;  %v7316_v6 = vld [vmem:[%s8412_s9 + $0x40] ss:$16 sps:$4 sm:$0xff]  }
 0x94e   : > { %v7907_v49 = vpop.eup %7906 }
 0x950   : > { %v7909_v13 = vpop.eup %7908 }
 0x951   : > { %v3221_v4 = vmul.f32 %v7909_v13, %v7907_v49  ;;  %v7319_v49 = vld [vmem:[%s8412_s9 + $0x48] ss:$16 sps:$4 sm:$0xff]   ;;  %v7324_v13 = vld [vmem:[%s8412_s9 + $0x24] ss:$16 sps:$4 sm:$0xff]  }
 0x953   : > { %v3232_v0 = vrot.slane %v3221_v4, %v9026_v50  ;;  %v7327_v4 = vld [vmem:[%s8412_s9 + $0x2c] ss:$16 sps:$4 sm:$0xff]  }
 0x955   : > { %v3233_v25 = vcombine.high %v3232_v0, %v3232_v0  ;;  %v9914_v15 = vpack.c.bf16 %v3232_v0, %v3232_v0  ;;  %v7322_v0 = vld [vmem:[%s8412_s9 + $0x20] ss:$16 sps:$4 sm:$0xff]  }
 0x957   : > { %v3237_v42 = vpack.c.bf16 %v3233_v25, %v3233_v25  ;;  %v7325_v25 = vld [vmem:[%s8412_s9 + $0x28] ss:$16 sps:$4 sm:$0xff]  }
 0x959   : > { %3270 = vmatprep.mubr.bf16.mxu0 %v3237_v42  ;;  %3311 = vmatprep.mubr.bf16.mxu1 %v3237_v42 }
 0x95a   : > { %3271 = vmatmul.mubr.bf16.vlgmr.msra.gmra.mxu0 %v9914_v15  ;;  %3312 = vmatmul.mubr.bf16.vlgmr.msra.gmra.mxu1 %v9914_v15 }
 0x95b   : > { %3321 = vmatpush1.bf16.msra.mxu0 %v10946_v32  ;;  %3362 = vmatpush1.bf16.msra.mxu1 %v10947_v1  ;;  %v11465_v32 = vld [vmem:[#allocation129_spill] sm:$0xff]  ;;  %v11466_v1 = vld [vmem:[#allocation130_spill] sm:$0xff] }
 0x95c   : > { %3352 = vmatprep.mubr.bf16.mxu0 %v3237_v42  ;;  %3393 = vmatprep.mubr.bf16.mxu1 %v3237_v42  ;;  %v7330_v42 = vld [vmem:[%s8412_s9 + $0x4] ss:$16 sps:$4 sm:$0xff]  }
 0x95d   : > { %3322 = vmatprep.subr.bf16.mxu0 %v10948_v23  ;;  %3363 = vmatprep.subr.bf16.mxu1 %v10949_v41  ;;  %v11467_v23 = vld [vmem:[#allocation131_spill] sm:$0xff]  ;;  %v11468_v41 = vld [vmem:[#allocation132_spill] sm:$0xff] }
 0x95f   : > { %3323 = vmatpush1.bf16.msra.mxu0 %v10950_v39  ;;  %3364 = vmatpush1.bf16.msra.mxu1 %v10951_v40  ;;  %v11469_v39 = vld [vmem:[#allocation133_spill] sm:$0xff]  ;;  %v11470_v40 = vld [vmem:[#allocation134_spill] sm:$0xff] }
 0x960   : > { %3324 = vmatprep.subr.bf16.mxu0 %v11030_v56  ;;  %3365 = vmatprep.subr.bf16.mxu1 %v11031_v62  ;;  %v11471_v56 = vld [vmem:[#allocation135_spill] sm:$0xff] }
 0x961   : > { %v11475_v62 = vld [vmem:[#allocation139_spill] sm:$0xff] }
 0x963   : > { %3325 = vmatpush1.bf16.msra.mxu0 %v11032_v36  ;;  %3366 = vmatpush1.bf16.msra.mxu1 %v11033_v35  ;;  %v11476_v36 = vld [vmem:[#allocation140_spill] sm:$0xff]  ;;  %v11477_v35 = vld [vmem:[#allocation141_spill] sm:$0xff] }
 0x964   : > { %3326 = vmatprep.subr.bf16.mxu0 %v11034_v5  ;;  %3367 = vmatprep.subr.bf16.mxu1 %v11035_v51  ;;  %v11478_v5 = vld [vmem:[#allocation142_spill] sm:$0xff]  ;;  %v11479_v51 = vld [vmem:[#allocation143_spill] sm:$0xff] }
 0x967   : > { %3327 = vmatpush1.bf16.msra.mxu0 %v11036_v48  ;;  %3368 = vmatpush1.bf16.msra.mxu1 %v11037_v30  ;;  %v11480_v48 = vld [vmem:[#allocation144_spill] sm:$0xff]  ;;  %v11481_v30 = vld [vmem:[#allocation145_spill] sm:$0xff] }
 0x968   : > { %3328 = vmatprep.subr.bf16.mxu0 %v11038_v54  ;;  %3369 = vmatprep.subr.bf16.mxu1 %v11117_v45  ;;  %v11482_v54 = vld [vmem:[#allocation146_spill] sm:$0xff] }
 0x969   : > { %v7288_v45 = vld [vmem:[%s8412_s9 + $0xe4] ss:$16 sps:$4 sm:$0xff]  }
 0x96b   : > { %3329 = vmatpush1.bf16.msra.mxu0 %v11118_v21  ;;  %3370 = vmatpush1.bf16.msra.mxu1 %v11119_v22  ;;  %v7291_v21 = vld [vmem:[%s8412_s9 + $0xec] ss:$16 sps:$4 sm:$0xff]  }
 0x96c   : > { %3330 = vmatprep.subr.bf16.mxu0 %v11120_v26  ;;  %3371 = vmatprep.subr.bf16.mxu1 %v11121_v2 }
 0x96f   : > { %3331 = vmatpush1.bf16.msra.mxu0 %v11122_v9  ;;  %3372 = vmatpush1.bf16.msra.mxu1 %v11123_v57  ;;  %v7286_v9 = vld [vmem:[%s8412_s9 + $0xe0] ss:$16 sps:$4 sm:$0xff]   ;;  %v7289_v57 = vld [vmem:[%s8412_s9 + $0xe8] ss:$16 sps:$4 sm:$0xff]  }
 0x970   : > { %3332 = vmatprep.subr.bf16.mxu0 %v11124_v17  ;;  %3373 = vmatprep.subr.bf16.mxu1 %v11125_v10  ;;  %v7294_v17 = vld [vmem:[%s8412_s9 + $0xc4] ss:$16 sps:$4 sm:$0xff]   ;;  %v7297_v10 = vld [vmem:[%s8412_s9 + $0xcc] ss:$16 sps:$4 sm:$0xff]  }
 0x973   : > { %3333 = vmatpush1.bf16.msra.mxu0 %v11126_v11  ;;  %3374 = vmatpush1.bf16.msra.mxu1 %v11127_v3  ;;  %v7292_v11 = vld [vmem:[%s8412_s9 + $0xc0] ss:$16 sps:$4 sm:$0xff]   ;;  %v7295_v3 = vld [vmem:[%s8412_s9 + $0xc8] ss:$16 sps:$4 sm:$0xff]  }
 0x974   : > { %3334 = vmatprep.subr.bf16.mxu0 %v11050_v59  ;;  %3375 = vmatprep.subr.bf16.mxu1 %v11051_v44  ;;  %v11483_v59 = vld [vmem:[#allocation147_spill] sm:$0xff]  ;;  %v11484_v44 = vld [vmem:[#allocation148_spill] sm:$0xff] }
 0x977   : > { %3335 = vmatpush1.bf16.msra.mxu0 %v11052_v43  ;;  %3376 = vmatpush1.bf16.msra.mxu1 %v11128_v55  ;;  %v11485_v43 = vld [vmem:[#allocation149_spill] sm:$0xff]  ;;  %v7300_v55 = vld [vmem:[%s8412_s9 + $0xa4] ss:$16 sps:$4 sm:$0xff]  }
 0x978   : > { %3336 = vmatprep.subr.bf16.mxu0 %v11054_v46  ;;  %3377 = vmatprep.subr.bf16.mxu1 %v11055_v53  ;;  %v3556_v46 = vld [vmem:[%s653_s18] sm:$0xff]  ;;  %v3557_v53 = vld [vmem:[%s653_s18 + $0x8] sm:$0xff]  ;;  %s11490_s18 = sld [smem:[#allocation20_spill]] }
 0x97b   : > { %3337 = vmatpush2.bf16.msra.mxu0 %v11056_v60  ;;  %3378 = vmatpush2.bf16.msra.mxu1 %v11057_v38  ;;  %v675_v60 = vld [vmem:[%s10471_s1] sm:$0x3]  ;;  %v6800_v38 = vcombine.high %v3556_v46, %v3556_v46 }
 0x97c   : > { %3338 = vmatprep.subr.bf16.mxu0 %v11058_v61  ;;  %3379 = vmatprep.subr.bf16.mxu1 %v11059_v29  ;;  %v6799_v61 = vcombine.low %v3556_v46, %v3556_v46  ;;  %v6802_v29 = vcombine.high %v3557_v53, %v3557_v53  ;;  %v3555_v2 = vpack.c.bf16 %v675_v60, %v675_v60  ;;  %v7366_v46 = vld [vmem:[%s8412_s9 + $0x144] ss:$16 sps:$4 sm:$0xff]   ;;  %v7364_v60 = vld [vmem:[%s8412_s9 + $0x140] ss:$16 sps:$4 sm:$0xff]  }
 0x97e   : > { %v3574_v22 = vsel %vm3572_vm0, %v6799_v61, 0  ;;  %v7372_v61 = vld [vmem:[%s8412_s9 + $0x124] ss:$16 sps:$4 sm:$0xff]   ;;  %p11492_p1 = scmp.ne.s32.totalorder %s11490_s18, 0 }
 0x97f   : > { %3339 = vmatpush2.bf16.msra.mxu0 %v11060_v28  ;;  %3380 = vmatpush2.bf16.msra.mxu1 %v10983_v7  ;;  %v11472_v7 = vld [vmem:[#allocation136_spill] sm:$0xff]  ;;  %v6801_v28 = vcombine.low %v3557_v53, %v3557_v53  ;;  %v7369_v53 = vld [vmem:[%s8412_s9 + $0x14c] ss:$16 sps:$4 sm:$0xff]  }
 0x980   : > { %3340 = vmatprep.subr.bf16.mxu0 %v10984_v34  ;;  %3381 = vmatprep.subr.bf16.mxu1 %v10985_v16  ;;  %v11473_v34 = vld [vmem:[#allocation137_spill] sm:$0xff]  ;;  %v11474_v16 = vld [vmem:[#allocation138_spill] sm:$0xff] }
 0x981   : > { %v3580_v26 = vsel %vm3572_vm0, %v6801_v28, 0  ;;  %v7370_v28 = vld [vmem:[%s8412_s9 + $0x120] ss:$16 sps:$4 sm:$0xff]  }
 0x983   : > { %3341 = vmatpush2.bf16.msra.mxu0 %v11061_v52  ;;  %3382 = vmatpush2.bf16.msra.mxu1 %v11465_v32  ;;  %v11486_v52 = vmov 0   ;;  %v7328_v32 = vld [vmem:[%s8412_s9] ss:$16 sps:$4 sm:$0xff]  }
 0x984   : > { %3342 = vmatprep.subr.bf16.mxu0 %v11466_v1  ;;  %3383 = vmatprep.subr.bf16.mxu1 %v11467_v23  ;;  %v7331_v1 = vld [vmem:[%s8412_s9 + $0x8] ss:$16 sps:$4 sm:$0xff]   ;;  %v7336_v23 = vld [vmem:[%s8412_s9 + $0x1e4] ss:$16 sps:$4 sm:$0xff]  }
 0x987   : > { %3343 = vmatpush2.bf16.msra.mxu0 %v11468_v41  ;;  %3384 = vmatpush2.bf16.msra.mxu1 %v11469_v39  ;;  %v7339_v41 = vld [vmem:[%s8412_s9 + $0x1ec] ss:$16 sps:$4 sm:$0xff]   ;;  %v7334_v39 = vld [vmem:[%s8412_s9 + $0x1e0] ss:$16 sps:$4 sm:$0xff]  }
 0x988   : > { %3344 = vmatprep.subr.bf16.mxu0 %v11470_v40  ;;  %3385 = vmatprep.subr.bf16.mxu1 %v11471_v56  ;;  %v7337_v40 = vld [vmem:[%s8412_s9 + $0x1e8] ss:$16 sps:$4 sm:$0xff]   ;;  %v7342_v56 = vld [vmem:[%s8412_s9 + $0x1c4] ss:$16 sps:$4 sm:$0xff]  }
 0x98b   : > { %3345 = vmatpush2.bf16.msra.mxu0 %v11472_v7  ;;  %3386 = vmatpush2.bf16.msra.mxu1 %v11473_v34  ;;  %v7345_v7 = vld [vmem:[%s8412_s9 + $0x1cc] ss:$16 sps:$4 sm:$0xff]   ;;  %v7340_v34 = vld [vmem:[%s8412_s9 + $0x1c0] ss:$16 sps:$4 sm:$0xff]  }
 0x98c   : > { %3346 = vmatprep.subr.bf16.mxu0 %v11474_v16  ;;  %3387 = vmatprep.subr.bf16.mxu1 %v11475_v62  ;;  %v7343_v16 = vld [vmem:[%s8412_s9 + $0x1c8] ss:$16 sps:$4 sm:$0xff]   ;;  %v7348_v62 = vld [vmem:[%s8412_s9 + $0x1a4] ss:$16 sps:$4 sm:$0xff]  }
 0x98f   : > { %3347 = vmatpush2.bf16.msra.mxu0 %v11476_v36  ;;  %3388 = vmatpush2.bf16.msra.mxu1 %v11477_v35  ;;  %v7351_v36 = vld [vmem:[%s8412_s9 + $0x1ac] ss:$16 sps:$4 sm:$0xff]   ;;  %v7346_v35 = vld [vmem:[%s8412_s9 + $0x1a0] ss:$16 sps:$4 sm:$0xff]  }
 0x990   : > { %3348 = vmatprep.subr.bf16.mxu0 %v11478_v5  ;;  %3389 = vmatprep.subr.bf16.mxu1 %v11479_v51  ;;  %v7349_v5 = vld [vmem:[%s8412_s9 + $0x1a8] ss:$16 sps:$4 sm:$0xff]   ;;  %v7352_v51 = vld [vmem:[%s8412_s9 + $0x180] ss:$16 sps:$4 sm:$0xff]  }
 0x993   : > { %3349 = vmatpush2.bf16.msra.mxu0 %v11480_v48  ;;  %3390 = vmatpush2.bf16.msra.mxu1 %v11481_v30  ;;  %v7354_v48 = vld [vmem:[%s8412_s9 + $0x184] ss:$16 sps:$4 sm:$0xff]   ;;  %v7355_v30 = vld [vmem:[%s8412_s9 + $0x188] ss:$16 sps:$4 sm:$0xff]  }
 0x994   : > { %3350 = vmatprep.subr.bf16.mxu0 %v11482_v54  ;;  %3391 = vmatprep.subr.bf16.mxu1 %v11483_v59  ;;  %v7357_v54 = vld [vmem:[%s8412_s9 + $0x18c] ss:$16 sps:$4 sm:$0xff]   ;;  %v7360_v59 = vld [vmem:[%s8412_s9 + $0x164] ss:$16 sps:$4 sm:$0xff]  }
 0x997   : > { %3351 = vmatpush2.bf16.msra.mxu0 %v11484_v44  ;;  %3392 = vmatpush2.bf16.msra.mxu1 %v11485_v43  ;;  %v7363_v44 = vld [vmem:[%s8412_s9 + $0x16c] ss:$16 sps:$4 sm:$0xff]   ;;  %v7358_v43 = vld [vmem:[%s8412_s9 + $0x160] ss:$16 sps:$4 sm:$0xff]  }
 0x998   : > { %6803 = vmatprep.subr.msk.bf16.mxu0 %vm3572_vm0, %v6800_v38  ;;  %6805 = vmatprep.subr.msk.bf16.mxu1 %vm3572_vm0, %v6802_v29  ;;  %v7367_v38 = vld [vmem:[%s8412_s9 + $0x148] ss:$16 sps:$4 sm:$0xff]   ;;  %v7375_v29 = vld [vmem:[%s8412_s9 + $0x12c] ss:$16 sps:$4 sm:$0xff]  }
 0x99a   : > { %3353 = vmatmul.mubr.bf16.vlgmr.msra.gmra.mxu0 %v9914_v15  ;;  %3394 = vmatmul.mubr.bf16.vlgmr.msra.gmra.mxu1 %v9914_v15  ;;  %v7333_v15 = vld [vmem:[%s8412_s9 + $0xc] ss:$16 sps:$4 sm:$0xff]  }
 0x99b   : > { %3617 = vmatprep.mubr.bf16.mxu0 %v11486_v52  ;;  %3658 = vmatprep.mubr.bf16.mxu1 %v11486_v52  ;;  %v7361_v52 = vld [vmem:[%s8412_s9 + $0x168] ss:$16 sps:$4 sm:$0xff]  }
 0x99c   : > { %3600 = vmatpush1.bf16.msra.mxu0 %v3574_v22  ;;  %3641 = vmatpush1.bf16.msra.mxu1 %v3580_v26  ;;  %v7381_v22 = vld [vmem:[%s8412_s9 + $0x10c] ss:$16 sps:$4 sm:$0xff]   ;;  %v7376_v26 = vld [vmem:[%s8412_s9 + $0x100] ss:$16 sps:$4 sm:$0xff]  }
 0x99d   : > { %3987 = vmatprep.subr.bf16.mxu0 %v7288_v45  ;;  %4028 = vmatprep.subr.bf16.mxu1 %v7291_v21  ;;  %v7373_v45 = vld [vmem:[%s8412_s9 + $0x128] ss:$16 sps:$4 sm:$0xff]   ;;  %v7378_v21 = vld [vmem:[%s8412_s9 + $0x104] ss:$16 sps:$4 sm:$0xff]  }
 0x9a2   : > { %6804 = vmatmul.mubr.msk.bf16.vlgmr.msra.gmra.mxu0 %vm3568_vm1, %v3555_v2  ;;  %6806 = vmatmul.mubr.msk.bf16.vlgmr.msra.gmra.mxu1 %vm3568_vm1, %v3555_v2  ;;  %v7379_v2 = vld [vmem:[%s8412_s9 + $0x108] ss:$16 sps:$4 sm:$0xff]  }
 0x9a3   : > { %3988 = vmatpush1.bf16.msra.mxu0 %v7286_v9  ;;  %4029 = vmatpush1.bf16.msra.mxu1 %v7289_v57  ;;  %v7384_v9 = vld [vmem:[%s8418_s26 + $0xe4] ss:$16 sps:$4 sm:$0xff]  }
 0x9a4   : > { %3989 = vmatprep.subr.bf16.mxu0 %v7294_v17  ;;  %4030 = vmatprep.subr.bf16.mxu1 %v7297_v10  ;;  %v7387_v57 = vld [vmem:[%s8418_s26 + $0x2e4] ss:$16 sps:$4 sm:$0xff]  }
 0x9a7   : > { %3990 = vmatpush1.bf16.msra.mxu0 %v7292_v11  ;;  %4031 = vmatpush1.bf16.msra.mxu1 %v7295_v3 }
 0x9a8   : > { %3991 = vmatprep.subr.bf16.mxu0 %v7300_v55  ;;  %4032 = vmatprep.subr.bf16.mxu1 %v7303_v24 }
 0x9ab   : > { %3992 = vmatpush1.bf16.msra.mxu0 %v7298_v33  ;;  %4033 = vmatpush1.bf16.msra.mxu1 %v7301_v37 }
 0x9ac   : > { %3993 = vmatprep.subr.bf16.mxu0 %v7306_v8  ;;  %4034 = vmatprep.subr.bf16.mxu1 %v7309_v47 }
 0x9af   : > { %3994 = vmatpush1.bf16.msra.mxu0 %v7304_v20  ;;  %4035 = vmatpush1.bf16.msra.mxu1 %v7307_v58 }
 0x9b0   : > { %3995 = vmatprep.subr.bf16.mxu0 %v7312_v63  ;;  %4036 = vmatprep.subr.bf16.mxu1 %v7315_v27  ;;  %v6794_v27 = vld [vmem:[%s9034_s20 + $0x70] sm:$0xff] }
 0x9b3   : > { %3996 = vmatpush1.bf16.msra.mxu0 %v7310_v12  ;;  %4037 = vmatpush1.bf16.msra.mxu1 %v7313_v14 }
 0x9b4   : > { %3997 = vmatprep.subr.bf16.mxu0 %v7318_v18  ;;  %4038 = vmatprep.subr.bf16.mxu1 %v7321_v19 }
 0x9b7   : > { %3998 = vmatpush1.bf16.msra.mxu0 %v7316_v6  ;;  %4039 = vmatpush1.bf16.msra.mxu1 %v7319_v49 }
 0x9b8   : > { %3999 = vmatprep.subr.bf16.mxu0 %v7324_v13  ;;  %4040 = vmatprep.subr.bf16.mxu1 %v7327_v4 }
 0x9bb   : > { %4000 = vmatpush1.bf16.msra.mxu0 %v7322_v0  ;;  %4041 = vmatpush1.bf16.msra.mxu1 %v7325_v25 }
 0x9bc   : > { %4001 = vmatprep.subr.bf16.mxu0 %v7330_v42  ;;  %4042 = vmatprep.subr.bf16.mxu1 %v7333_v15 }
 0x9bf   : > { %4002 = vmatpush1.bf16.msra.mxu0 %v7328_v32  ;;  %4043 = vmatpush1.bf16.msra.mxu1 %v7331_v1 }
 0x9c0   : > { %4003 = vmatprep.subr.bf16.mxu0 %v7336_v23  ;;  %4044 = vmatprep.subr.bf16.mxu1 %v7339_v41 }
 0x9c3   : > { %4004 = vmatpush2.bf16.msra.mxu0 %v7334_v39  ;;  %4045 = vmatpush2.bf16.msra.mxu1 %v7337_v40 }
 0x9c4   : > { %4005 = vmatprep.subr.bf16.mxu0 %v7342_v56  ;;  %4046 = vmatprep.subr.bf16.mxu1 %v7345_v7  ;;  %v6795_v56 = vld [vmem:[%s9034_s20 + $0x78] sm:$0xff] }
 0x9c7   : > { %4006 = vmatpush2.bf16.msra.mxu0 %v7340_v34  ;;  %4047 = vmatpush2.bf16.msra.mxu1 %v7343_v16 }
 0x9c8   : > { %4007 = vmatprep.subr.bf16.mxu0 %v7348_v62  ;;  %4048 = vmatprep.subr.bf16.mxu1 %v7351_v36 }
 0x9cb   : > { %4008 = vmatpush2.bf16.msra.mxu0 %v7346_v35  ;;  %4049 = vmatpush2.bf16.msra.mxu1 %v7349_v5 }
 0x9cc   : > { %4009 = vmatprep.subr.bf16.mxu0 %v7354_v48  ;;  %4050 = vmatprep.subr.bf16.mxu1 %v7357_v54 }
 0x9cf   : > { %4010 = vmatpush2.bf16.msra.mxu0 %v7352_v51  ;;  %4051 = vmatpush2.bf16.msra.mxu1 %v7355_v30 }
 0x9d0   : > { %4011 = vmatprep.subr.bf16.mxu0 %v7360_v59  ;;  %4052 = vmatprep.subr.bf16.mxu1 %v7363_v44 }
 0x9d3   : > { %4012 = vmatpush2.bf16.msra.mxu0 %v7358_v43  ;;  %4053 = vmatpush2.bf16.msra.mxu1 %v7361_v52 }
 0x9d4   : > { %4013 = vmatprep.subr.bf16.mxu0 %v7366_v46  ;;  %4054 = vmatprep.subr.bf16.mxu1 %v7369_v53 }
 0x9d7   : > { %4014 = vmatpush2.bf16.msra.mxu0 %v7364_v60  ;;  %4055 = vmatpush2.bf16.msra.mxu1 %v7367_v38 }
 0x9d8   : > { %4015 = vmatprep.subr.bf16.mxu0 %v7372_v61  ;;  %4056 = vmatprep.subr.bf16.mxu1 %v7375_v29 }
 0x9db   : > { %4016 = vmatpush2.bf16.msra.mxu0 %v7370_v28  ;;  %4057 = vmatpush2.bf16.msra.mxu1 %v7373_v45 }
 0x9dc   : > { %4017 = vmatprep.subr.bf16.mxu0 %v7378_v21  ;;  %4058 = vmatprep.subr.bf16.mxu1 %v7381_v22 }
 0x9df   : > { %4018 = vmatpush2.bf16.msra.mxu0 %v7376_v26  ;;  %4059 = vmatpush2.bf16.msra.mxu1 %v7379_v2 }
 0x9e0   : > { %4893 = vmatprep.subr.bf16.mxu0 %v7384_v9  ;;  %4934 = vmatprep.subr.bf16.mxu1 %v7387_v57  ;;  %v7382_v9 = vld [vmem:[%s8418_s26 + $0xe0] ss:$16 sps:$4 sm:$0xff]  }
 0x9e1   : > { %v7385_v57 = vld [vmem:[%s8418_s26 + $0x2e0] ss:$16 sps:$4 sm:$0xff]  }
 0xa1a   : > { %v3272_v17 = vpop.f32.mrf.mxu0  ;;  %v3313_v10 = vpop.f32.mrf.mxu1 }
 0xa1c   : > { %v3274_v11 = vpop.f32.mrf.mxu0  ;;  %v3315_v3 = vpop.f32.mrf.mxu1 }
 0xa1d   : > { %v3410_v8 = vcombine.low %v3272_v17, %v3274_v11  ;;  %v3411_v47 = vcombine.low %v3313_v10, %v3315_v3  ;;  %v7390_v10 = vld [vmem:[%s8418_s26 + $0xc4] ss:$16 sps:$4 sm:$0xff]   ;;  %v7391_v3 = vld [vmem:[%s8418_s26 + $0x2c0] ss:$16 sps:$4 sm:$0xff]  }
 0xa1e   : > { %v3276_v55 = vpop.f32.mrf.mxu0  ;;  %v3317_v24 = vpop.f32.mrf.mxu1  ;;  %v7393_v11 = vld [vmem:[%s8418_s26 + $0x2c4] ss:$16 sps:$4 sm:$0xff]  }
 0xa1f   : > { %v3418_v20 = vrot.slane %v3410_v8, %v9026_v50  ;;  %v3425_v58 = vrot.slane %v3411_v47, %v9026_v50  ;;  %v7396_v55 = vld [vmem:[%s8418_s26 + $0xa4] ss:$16 sps:$4 sm:$0xff]  }
 0xa20   : > { %v3277_v33 = vpop.f32.mrf.mxu0  ;;  %v3318_v37 = vpop.f32.mrf.mxu1  ;;  %v7399_v24 = vld [vmem:[%s8418_s26 + $0x2a4] ss:$16 sps:$4 sm:$0xff]  }
 0xa21   : > { %v3426_v63 = vcombine.low %v3418_v20, %v3425_v58  ;;  %v7394_v33 = vld [vmem:[%s8418_s26 + $0xa0] ss:$16 sps:$4 sm:$0xff]   ;;  %v7402_v8 = vld [vmem:[%s8418_s26 + $0x84] ss:$16 sps:$4 sm:$0xff]  }
 0xa22   : > { %v7397_v37 = vld [vmem:[%s8418_s26 + $0x2a0] ss:$16 sps:$4 sm:$0xff]   ;;  %v7405_v47 = vld [vmem:[%s8418_s26 + $0x284] ss:$16 sps:$4 sm:$0xff]  }
 0xa23   : > { %v3446_v12 = vadd.f32 %v6794_v27, %v3426_v63  ;;  %v7400_v20 = vld [vmem:[%s8418_s26 + $0x80] ss:$16 sps:$4 sm:$0xff]   ;;  %v7408_v63 = vld [vmem:[%s8418_s26 + $0x64] ss:$16 sps:$4 sm:$0xff]  }
 0xa24   : > { %v7403_v58 = vld [vmem:[%s8418_s26 + $0x280] ss:$16 sps:$4 sm:$0xff]   ;;  %v7411_v27 = vld [vmem:[%s8418_s26 + $0x264] ss:$16 sps:$4 sm:$0xff]  }
 0xa25   : > { %v3455_v14 = vrot.slane %v3446_v12, 4  ;;  %v6796_v19 = vmul.f32 -1.442695, %v3446_v12  ;;  %v7406_v12 = vld [vmem:[%s8418_s26 + $0x60] ss:$16 sps:$4 sm:$0xff]  }
 0xa27   : > { %v6797_v18 = vmul.f32 -1.442695, %v3455_v14  ;;  %v7409_v14 = vld [vmem:[%s8418_s26 + $0x260] ss:$16 sps:$4 sm:$0xff]  }
 0xa29   : > { %7910 = vpow2.f32 %v6797_v18  ;;  %v7414_v18 = vld [vmem:[%s8418_s26 + $0x44] ss:$16 sps:$4 sm:$0xff]  }
 0xa2a   : > { %7912 = vpow2.f32 %v6796_v19  ;;  %v7417_v19 = vld [vmem:[%s8418_s26 + $0x244] ss:$16 sps:$4 sm:$0xff]  }
 0xa36   : > { %v7911_v13 = vpop.eup %7910 }
 0xa37   : > { %v7913_v25 = vpop.eup %7912  ;;  %v3460_v23 = vadd.f32 1.0, %v7911_v13  ;;  %v7420_v13 = vld [vmem:[%s8418_s26 + $0x24] ss:$16 sps:$4 sm:$0xff]  }
 0xa38   : > { %v3451_v40 = vadd.f32 1.0, %v7913_v25  ;;  %v7421_v25 = vld [vmem:[%s8418_s26 + $0x220] ss:$16 sps:$4 sm:$0xff]  }
 0xa39   : > { %7914 = vrcp.f32 %v3460_v23  ;;  %v7432_v23 = vld [vmem:[%s8418_s26 + $0x1e4] ss:$16 sps:$4 sm:$0xff]  }
 0xa3a   : > { %7916 = vrcp.f32 %v3451_v40  ;;  %v7433_v40 = vld [vmem:[%s8418_s26 + $0x3e0] ss:$16 sps:$4 sm:$0xff]  }
 0xa46   : > { %v7915_v5 = vpop.eup %7914 }
 0xa47   : > { %v7917_v51 = vpop.eup %7916  ;;  %v3473_v54 = vmul.f32 %v7915_v5, %v9910_v31  ;;  %v7445_v5 = vld [vmem:[%s8418_s26 + $0x3a0] ss:$16 sps:$4 sm:$0xff]  }
 0xa5a   : > { %v3354_v6 = vpop.f32.mrf.mxu0  ;;  %v3395_v49 = vpop.f32.mrf.mxu1 }
 0xa5c   : > { %v3356_v4 = vpop.f32.mrf.mxu0  ;;  %v3397_v0 = vpop.f32.mrf.mxu1 }
 0xa5d   : > { %v3427_v42 = vcombine.low %v3354_v6, %v3356_v4  ;;  %v3428_v15 = vcombine.low %v3395_v49, %v3397_v0  ;;  %v7412_v6 = vld [vmem:[%s8418_s26 + $0x40] ss:$16 sps:$4 sm:$0xff]   ;;  %v7423_v4 = vld [vmem:[%s8418_s26 + $0x224] ss:$16 sps:$4 sm:$0xff]  }
 0xa5e   : > { %v3358_v32 = vpop.f32.mrf.mxu0  ;;  %v3399_v1 = vpop.f32.mrf.mxu1  ;;  %v7415_v49 = vld [vmem:[%s8418_s26 + $0x240] ss:$16 sps:$4 sm:$0xff]  }
 0xa5f   : > { %v3435_v41 = vrot.slane %v3427_v42, %v9026_v50  ;;  %v3442_v39 = vrot.slane %v3428_v15, %v9026_v50  ;;  %v7418_v0 = vld [vmem:[%s8418_s26 + $0x20] ss:$16 sps:$4 sm:$0xff]   ;;  %v7426_v42 = vld [vmem:[%s8418_s26 + $0x4] ss:$16 sps:$4 sm:$0xff]  }
 0xa60   : > { %v3359_v7 = vpop.f32.mrf.mxu0  ;;  %v3400_v34 = vpop.f32.mrf.mxu1  ;;  %v7429_v15 = vld [vmem:[%s8418_s26 + $0x204] ss:$16 sps:$4 sm:$0xff]   ;;  %v7424_v32 = vld [vmem:[%s8418_s26] ss:$16 sps:$4 sm:$0xff]  }
 0xa61   : > { %v3443_v16 = vcombine.low %v3435_v41, %v3442_v39  ;;  %v7427_v1 = vld [vmem:[%s8418_s26 + $0x200] ss:$16 sps:$4 sm:$0xff]   ;;  %v7435_v41 = vld [vmem:[%s8418_s26 + $0x3e4] ss:$16 sps:$4 sm:$0xff]  }
 0xa62   : > { %v10064_v52 = vpop.f32.mrf.mxu0  ;;  %v10066_v46 = vpop.f32.mrf.mxu1  ;;  %v7430_v39 = vld [vmem:[%s8418_s26 + $0x1e0] ss:$16 sps:$4 sm:$0xff]   ;;  %v7441_v7 = vld [vmem:[%s8418_s26 + $0x3c4] ss:$16 sps:$4 sm:$0xff]  }
 0xa63   : > { %v3447_v62 = vadd.f32 %v6795_v56, %v3443_v16  ;;  %v7438_v56 = vld [vmem:[%s8418_s26 + $0x1c4] ss:$16 sps:$4 sm:$0xff]   ;;  %v7436_v34 = vld [vmem:[%s8418_s26 + $0x1c0] ss:$16 sps:$4 sm:$0xff]  }
 0xa64   : > { %v10068_v53 = vpop.f32.mrf.mxu0  ;;  %v10070_v60 = vpop.f32.mrf.mxu1  ;;  %v7439_v16 = vld [vmem:[%s8418_s26 + $0x3c0] ss:$16 sps:$4 sm:$0xff]  }
 0xa65   : > { %7918 = vtanh.f32 %v3447_v62  ;;  %v3465_v36 = vrot.slane %v3447_v62, 4  ;;  %v7444_v62 = vld [vmem:[%s8418_s26 + $0x1a4] ss:$16 sps:$4 sm:$0xff]  }
 0xa66   : > { %v3623_v31 = vpop.f32.mrf.mxu0  ;;  %v3664_v29 = vpop.f32.mrf.mxu1 }
 0xa67   : > { %v6798_v35 = vmul.f32 -1.442695, %v3465_v36  ;;  %v7447_v36 = vld [vmem:[%s8418_s26 + $0x3a4] ss:$16 sps:$4 sm:$0xff]   ;;  %v7460_v29 = vld [vmem:[%s8418_s26 + $0x140] ss:$16 sps:$4 sm:$0xff]  }
 0xa68   : > { %v3624_v45 = vpop.f32.mrf.mxu0  ;;  %v3665_v21 = vpop.f32.mrf.mxu1  ;;  %v7465_v31 = vld [vmem:[%s8418_s26 + $0x344] ss:$16 sps:$4 sm:$0xff]  }
 0xa69   : > { %7920 = vpow2.f32 %v6798_v35  ;;  %v7442_v35 = vld [vmem:[%s8418_s26 + $0x1a0] ss:$16 sps:$4 sm:$0xff]   ;;  %v7468_v45 = vld [vmem:[%s8418_s26 + $0x124] ss:$16 sps:$4 sm:$0xff]  }
 0xa6a   : > { %v7471_v21 = vld [vmem:[%s8418_s26 + $0x324] ss:$16 sps:$4 sm:$0xff]  }
 0xa72   : > { %v7919_v48 = vpop.eup %7918 }
 0xa73   : > { %v3474_v30 = vmul.f32 %v7919_v48, %v7917_v51  ;;  %v7450_v51 = vld [vmem:[%s8418_s26 + $0x184] ss:$16 sps:$4 sm:$0xff]  }
 0xa74   : > { %v7453_v48 = vld [vmem:[%s8418_s26 + $0x384] ss:$16 sps:$4 sm:$0xff]  }
 0xa75   : > { %v3475_v59 = vadd.f32 %v3474_v30, %v3473_v54  ;;  %v7448_v30 = vld [vmem:[%s8418_s26 + $0x180] ss:$16 sps:$4 sm:$0xff]  }
 0xa76   : > { %v7921_v44 = vpop.eup %7920  ;;  %v7451_v54 = vld [vmem:[%s8418_s26 + $0x380] ss:$16 sps:$4 sm:$0xff]  }
 0xa77   : > { %v3470_v43 = vadd.f32 1.0, %v7921_v44  ;;  %7922 = vtanh.f32 %v3475_v59  ;;  %v7456_v59 = vld [vmem:[%s8418_s26 + $0x164] ss:$16 sps:$4 sm:$0xff]  }
 0xa78   : > { %v7459_v44 = vld [vmem:[%s8418_s26 + $0x364] ss:$16 sps:$4 sm:$0xff]  }
 0xa79   : > { %7924 = vrcp.f32 %v3470_v43  ;;  %v7454_v43 = vld [vmem:[%s8418_s26 + $0x160] ss:$16 sps:$4 sm:$0xff]  }
 0xa84   : > { %v7923_v38 = vpop.eup %7922 }
 0xa86   : > { %v7925_v61 = vpop.eup %7924 }
 0xa87   : > { %v3477_v28 = vmul.f32 %v7925_v61, %v7923_v38  ;;  %v7457_v38 = vld [vmem:[%s8418_s26 + $0x360] ss:$16 sps:$4 sm:$0xff]   ;;  %v7462_v61 = vld [vmem:[%s8418_s26 + $0x144] ss:$16 sps:$4 sm:$0xff]  }
 0xa89   : > { %v3485_v22 = vrot.slane %v3477_v28, %v9026_v50  ;;  %v7388_v50 = vld [vmem:[%s8418_s26 + $0xc0] ss:$16 sps:$4 sm:$0xff]  }
 0xa8a   : > { %v7463_v28 = vld [vmem:[%s8418_s26 + $0x340] ss:$16 sps:$4 sm:$0xff]  }
 0xa8b   : > { %v3486_v26 = vcombine.high %v3485_v22, %v3485_v22  ;;  %v3489_v17 = vpack.c.bf16 %v3485_v22, %v3485_v22  ;;  %v7466_v22 = vld [vmem:[%s8418_s26 + $0x120] ss:$16 sps:$4 sm:$0xff]  }
 0xa8d   : > { %v3490_v2 = vpack.c.bf16 %v3486_v26, %v3486_v26  ;;  %v7469_v26 = vld [vmem:[%s8418_s26 + $0x320] ss:$16 sps:$4 sm:$0xff]  }
 0xa8f   : > { %4019 = vmatprep.mubr.bf16.mxu0 %v3490_v2  ;;  %4060 = vmatprep.mubr.bf16.mxu1 %v3490_v2  ;;  %v7474_v2 = vld [vmem:[%s8418_s26 + $0x104] ss:$16 sps:$4 sm:$0xff]  }
 0xa90   : > { %4020 = vmatmul.mubr.bf16.vlgmr.msra.gmra.mxu0 %v3489_v17  ;;  %4061 = vmatmul.mubr.bf16.vlgmr.msra.gmra.mxu1 %v3489_v17  ;;  %v7475_v17 = vld [vmem:[%s8418_s26 + $0x300] ss:$16 sps:$4 sm:$0xff]  }
 0xa91   : > { %4894 = vmatpush1.bf16.msra.mxu0 %v7382_v9  ;;  %4935 = vmatpush1.bf16.msra.mxu1 %v7385_v57  ;;  %v7477_v9 = vld [vmem:[%s8418_s26 + $0x304] ss:$16 sps:$4 sm:$0xff]   ;;  %v7472_v57 = vld [vmem:[%s8418_s26 + $0x100] ss:$16 sps:$4 sm:$0xff]  }
 0xa92   : > { %4895 = vmatprep.subr.bf16.mxu0 %v7390_v10  ;;  %4936 = vmatprep.subr.bf16.mxu1 %v7393_v11  ;;  %v7480_v10 = vld [vmem:[%s8418_s26 + $0xec] ss:$16 sps:$4 sm:$0xff]  }
 0xa93   : > { %v7483_v11 = vld [vmem:[%s8418_s26 + $0x2ec] ss:$16 sps:$4 sm:$0xff]  }
 0xa95   : > { %4896 = vmatpush1.bf16.msra.mxu0 %v7388_v50  ;;  %4937 = vmatpush1.bf16.msra.mxu1 %v7391_v3  ;;  %v11487_v50 = vld [vmem:[#allocation150_spill] sm:$0xff] }
 0xa96   : > { %4897 = vmatprep.subr.bf16.mxu0 %v7396_v55  ;;  %4938 = vmatprep.subr.bf16.mxu1 %v7399_v24  ;;  %v10145_v3 = vsub.s32 0, %v11487_v50  ;;  %v10148_v55 = vsub.s32 2, %v11487_v50  ;;  %v4069_v24 = vld [vmem:[%s657_s15] sm:$0xf]  ;;  %s11491_s15 = sld [smem:[#allocation155_spill]] }
 0xa99   : > { %4898 = vmatpush1.bf16.msra.mxu0 %v7394_v33  ;;  %4939 = vmatpush1.bf16.msra.mxu1 %v7397_v37  ;;  %v10151_v33 = vsub.s32 1, %v11487_v50  ;;  %v10154_v37 = vsub.s32 3, %v11487_v50  ;;  %v7528_v50 = vld [vmem:[%s8418_s26 + $0x1ec] ss:$16 sps:$4 sm:$0xff]  }
 0xa9a   : > { %4899 = vmatprep.subr.bf16.mxu0 %v7402_v8  ;;  %4940 = vmatprep.subr.bf16.mxu1 %v7405_v47  ;;  %v4074_v8 = vrot.slane %v4069_v24, %v10145_v3  ;;  %v4082_v47 = vrot.slane %v4069_v24, %v10148_v55 }
 0xa9d   : > { %4900 = vmatpush1.bf16.msra.mxu0 %v7400_v20  ;;  %4941 = vmatpush1.bf16.msra.mxu1 %v7403_v58 }
 0xa9e   : > { %4901 = vmatprep.subr.bf16.mxu0 %v7408_v63  ;;  %4942 = vmatprep.subr.bf16.mxu1 %v7411_v27 }
 0xaa1   : > { %4902 = vmatpush1.bf16.msra.mxu0 %v7406_v12  ;;  %4943 = vmatpush1.bf16.msra.mxu1 %v7409_v14  ;;  %v4078_v12 = vrot.slane %v4069_v24, %v10151_v33  ;;  %v4086_v14 = vrot.slane %v4069_v24, %v10154_v37  ;;  %v7531_v24 = vld [vmem:[%s8418_s26 + $0x3ec] ss:$16 sps:$4 sm:$0xff]  }
 0xaa2   : > { %4903 = vmatprep.subr.bf16.mxu0 %v7414_v18  ;;  %4944 = vmatprep.subr.bf16.mxu1 %v7417_v19 }
 0xaa5   : > { %4904 = vmatpush1.bf16.msra.mxu0 %v7412_v6  ;;  %4945 = vmatpush1.bf16.msra.mxu1 %v7415_v49 }
 0xaa6   : > { %4905 = vmatprep.subr.bf16.mxu0 %v7420_v13  ;;  %4946 = vmatprep.subr.bf16.mxu1 %v7423_v4 }
 0xaa9   : > { %4906 = vmatpush1.bf16.msra.mxu0 %v7418_v0  ;;  %4947 = vmatpush1.bf16.msra.mxu1 %v7421_v25 }
 0xaaa   : > { %4907 = vmatprep.subr.bf16.mxu0 %v7426_v42  ;;  %4948 = vmatprep.subr.bf16.mxu1 %v7429_v15 }
 0xaad   : > { %4908 = vmatpush1.bf16.msra.mxu0 %v7424_v32  ;;  %4949 = vmatpush1.bf16.msra.mxu1 %v7427_v1 }
 0xaae   : > { %4909 = vmatprep.subr.bf16.mxu0 %v7432_v23  ;;  %4950 = vmatprep.subr.bf16.mxu1 %v7435_v41 }
 0xab1   : > { %4910 = vmatpush2.bf16.msra.mxu0 %v7430_v39  ;;  %4951 = vmatpush2.bf16.msra.mxu1 %v7433_v40 }
 0xab2   : > { %4911 = vmatprep.subr.bf16.mxu0 %v7438_v56  ;;  %4952 = vmatprep.subr.bf16.mxu1 %v7441_v7  ;;  %v7478_v56 = vld [vmem:[%s8418_s26 + $0xe8] ss:$16 sps:$4 sm:$0xff]  }
 0xab5   : > { %4912 = vmatpush2.bf16.msra.mxu0 %v7436_v34  ;;  %4953 = vmatpush2.bf16.msra.mxu1 %v7439_v16  ;;  %v7486_v34 = vld [vmem:[%s8418_s26 + $0xcc] ss:$16 sps:$4 sm:$0xff]  }
 0xab6   : > { %4913 = vmatprep.subr.bf16.mxu0 %v7444_v62  ;;  %4954 = vmatprep.subr.bf16.mxu1 %v7447_v36  ;;  %v7489_v16 = vld [vmem:[%s8418_s26 + $0x2cc] ss:$16 sps:$4 sm:$0xff]   ;;  %v7484_v62 = vld [vmem:[%s8418_s26 + $0xc8] ss:$16 sps:$4 sm:$0xff]  }
 0xab7   : > { %v7487_v36 = vld [vmem:[%s8418_s26 + $0x2c8] ss:$16 sps:$4 sm:$0xff]  }
 0xab9   : > { %4914 = vmatpush2.bf16.msra.mxu0 %v7442_v35  ;;  %4955 = vmatpush2.bf16.msra.mxu1 %v7445_v5  ;;  %v7492_v35 = vld [vmem:[%s8418_s26 + $0xac] ss:$16 sps:$4 sm:$0xff]  }
 0xaba   : > { %4915 = vmatprep.subr.bf16.mxu0 %v7450_v51  ;;  %4956 = vmatprep.subr.bf16.mxu1 %v7453_v48  ;;  %v7495_v5 = vld [vmem:[%s8418_s26 + $0x2ac] ss:$16 sps:$4 sm:$0xff]   ;;  %v7490_v51 = vld [vmem:[%s8418_s26 + $0xa8] ss:$16 sps:$4 sm:$0xff]  }
 0xabb   : > { %v7493_v48 = vld [vmem:[%s8418_s26 + $0x2a8] ss:$16 sps:$4 sm:$0xff]  }
 0xabd   : > { %4916 = vmatpush2.bf16.msra.mxu0 %v7448_v30  ;;  %4957 = vmatpush2.bf16.msra.mxu1 %v7451_v54  ;;  %v7498_v30 = vld [vmem:[%s8418_s26 + $0x8c] ss:$16 sps:$4 sm:$0xff]  }
 0xabe   : > { %4917 = vmatprep.subr.bf16.mxu0 %v7456_v59  ;;  %4958 = vmatprep.subr.bf16.mxu1 %v7459_v44  ;;  %v7501_v54 = vld [vmem:[%s8418_s26 + $0x28c] ss:$16 sps:$4 sm:$0xff]   ;;  %v7496_v59 = vld [vmem:[%s8418_s26 + $0x88] ss:$16 sps:$4 sm:$0xff]  }
 0xabf   : > { %v7499_v44 = vld [vmem:[%s8418_s26 + $0x288] ss:$16 sps:$4 sm:$0xff]  }
 0xac1   : > { %4918 = vmatpush2.bf16.msra.mxu0 %v7454_v43  ;;  %4959 = vmatpush2.bf16.msra.mxu1 %v7457_v38  ;;  %v7504_v43 = vld [vmem:[%s8418_s26 + $0x6c] ss:$16 sps:$4 sm:$0xff]  }
 0xac2   : > { %4919 = vmatprep.subr.bf16.mxu0 %v7462_v61  ;;  %4960 = vmatprep.subr.bf16.mxu1 %v7465_v31  ;;  %v7507_v38 = vld [vmem:[%s8418_s26 + $0x26c] ss:$16 sps:$4 sm:$0xff]   ;;  %v7502_v61 = vld [vmem:[%s8418_s26 + $0x68] ss:$16 sps:$4 sm:$0xff]  }
 0xac3   : > { %v7505_v31 = vld [vmem:[%s8418_s26 + $0x268] ss:$16 sps:$4 sm:$0xff]  }
 0xac5   : > { %4920 = vmatpush2.bf16.msra.mxu0 %v7460_v29  ;;  %4961 = vmatpush2.bf16.msra.mxu1 %v7463_v28  ;;  %v7510_v29 = vld [vmem:[%s8418_s26 + $0x4c] ss:$16 sps:$4 sm:$0xff]  }
 0xac6   : > { %4921 = vmatprep.subr.bf16.mxu0 %v7468_v45  ;;  %4962 = vmatprep.subr.bf16.mxu1 %v7471_v21  ;;  %v7513_v28 = vld [vmem:[%s8418_s26 + $0x24c] ss:$16 sps:$4 sm:$0xff]   ;;  %v7508_v45 = vld [vmem:[%s8418_s26 + $0x48] ss:$16 sps:$4 sm:$0xff]  }
 0xac7   : > { %v7511_v21 = vld [vmem:[%s8418_s26 + $0x248] ss:$16 sps:$4 sm:$0xff]  }
 0xac9   : > { %4922 = vmatpush2.bf16.msra.mxu0 %v7466_v22  ;;  %4963 = vmatpush2.bf16.msra.mxu1 %v7469_v26  ;;  %v7516_v22 = vld [vmem:[%s8418_s26 + $0x2c] ss:$16 sps:$4 sm:$0xff]  }
 0xaca   : > { %4923 = vmatprep.subr.bf16.mxu0 %v7474_v2  ;;  %4964 = vmatprep.subr.bf16.mxu1 %v7477_v9  ;;  %v7519_v26 = vld [vmem:[%s8418_s26 + $0x22c] ss:$16 sps:$4 sm:$0xff]   ;;  %v7514_v2 = vld [vmem:[%s8418_s26 + $0x28] ss:$16 sps:$4 sm:$0xff]  }
 0xacb   : > { %v7517_v9 = vld [vmem:[%s8418_s26 + $0x228] ss:$16 sps:$4 sm:$0xff]  }
 0xacd   : > { %4924 = vmatpush2.bf16.msra.mxu0 %v7472_v57  ;;  %4965 = vmatpush2.bf16.msra.mxu1 %v7475_v17  ;;  %v7522_v57 = vld [vmem:[%s8418_s26 + $0xc] ss:$16 sps:$4 sm:$0xff]  }
 0xace   : > { %4975 = vmatprep.subr.bf16.mxu0 %v7480_v10  ;;  %5016 = vmatprep.subr.bf16.mxu1 %v7483_v11  ;;  %v7525_v17 = vld [vmem:[%s8418_s26 + $0x20c] ss:$16 sps:$4 sm:$0xff]   ;;  %v7520_v10 = vld [vmem:[%s8418_s26 + $0x8] ss:$16 sps:$4 sm:$0xff]  }
 0xacf   : > { %v7523_v11 = vld [vmem:[%s8418_s26 + $0x208] ss:$16 sps:$4 sm:$0xff]  }
 0xb50   : > { %v4021_v20 = vpop.f32.mrf.mxu0  ;;  %v4062_v58 = vpop.f32.mrf.mxu1 }
 0xb51   : > { %v4022_v63 = vadd.f32 %v4021_v20, %v10064_v52  ;;  %v4063_v27 = vadd.f32 %v4062_v58, %v10066_v46  ;;  %v7534_v20 = vld [vmem:[%s8418_s26 + $0x1cc] ss:$16 sps:$4 sm:$0xff]  }
 0xb52   : > { %v4023_v18 = vpop.f32.mrf.mxu0  ;;  %v4064_v19 = vpop.f32.mrf.mxu1  ;;  %v7537_v58 = vld [vmem:[%s8418_s26 + $0x3cc] ss:$16 sps:$4 sm:$0xff]  }
 0xb53   : > { %v4091_v6 = vadd.f32 %v4074_v8, %v4022_v63  ;;  %v4093_v49 = vadd.f32 %v4082_v47, %v4063_v27  ;;  %v4024_v13 = vadd.f32 %v4023_v18, %v10068_v53  ;;  %v4065_v4 = vadd.f32 %v4064_v19, %v10070_v60  ;;  %v7481_v53 = vld [vmem:[%s8418_s26 + $0x2e8] ss:$16 sps:$4 sm:$0xff]  }
 0xb54   : > { %v4025_v0 = vpop.f32.mrf.mxu0  ;;  %v4066_v25 = vpop.f32.mrf.mxu1  ;;  %v7526_v8 = vld [vmem:[%s8418_s26 + $0x1e8] ss:$16 sps:$4 sm:$0xff]  }
 0xb55   : > { %v4092_v42 = vadd.f32 %v4078_v12, %v4024_v13  ;;  %v4094_v52 = vadd.f32 %v4086_v14, %v4065_v4  ;;  %v4095_v46 = vmax.f32 %v4091_v6, 0.0  ;;  %v4097_v15 = vmax.f32 %v4093_v49, 0.0  ;;  %v7529_v47 = vld [vmem:[%s8418_s26 + $0x3e8] ss:$16 sps:$4 sm:$0xff]   ;;  %v7540_v12 = vld [vmem:[%s8418_s26 + $0x1ac] ss:$16 sps:$4 sm:$0xff]  }
 0xb56   : > { %v4026_v32 = vpop.f32.mrf.mxu0  ;;  %v4067_v1 = vpop.f32.mrf.mxu1  ;;  %v7532_v63 = vld [vmem:[%s8418_s26 + $0x1c8] ss:$16 sps:$4 sm:$0xff]   ;;  %v7543_v14 = vld [vmem:[%s8418_s26 + $0x3ac] ss:$16 sps:$4 sm:$0xff]  }
 0xb57   : > { %v4096_v23 = vmax.f32 %v4092_v42, 0.0  ;;  %v4098_v41 = vmax.f32 %v4094_v52, 0.0  ;;  %v10166_v60 = vpack.c.bf16 %v4095_v46, %v4095_v46  ;;  %v10168_v7 = vpack.c.bf16 %v4097_v15, %v4097_v15  ;;  %v7535_v27 = vld [vmem:[%s8418_s26 + $0x3c8] ss:$16 sps:$4 sm:$0xff]   ;;  %v7546_v6 = vld [vmem:[%s8418_s26 + $0x18c] ss:$16 sps:$4 sm:$0xff]  }
 0xb58   : > { %v7538_v18 = vld [vmem:[%s8418_s26 + $0x1a8] ss:$16 sps:$4 sm:$0xff]   ;;  %v7549_v49 = vld [vmem:[%s8418_s26 + $0x38c] ss:$16 sps:$4 sm:$0xff]  }
 0xb59   : > { %v4100_v39 = vpack.c.bf16 %v4096_v23, %v4096_v23  ;;  %v4102_v40 = vpack.c.bf16 %v4098_v41, %v4098_v41  ;;  %v7541_v19 = vld [vmem:[%s8418_s26 + $0x3a8] ss:$16 sps:$4 sm:$0xff]   ;;  %v7552_v0 = vld [vmem:[%s8418_s26 + $0x16c] ss:$16 sps:$4 sm:$0xff]  }
 0xb5a   : > { %v7544_v13 = vld [vmem:[%s8418_s26 + $0x188] ss:$16 sps:$4 sm:$0xff]   ;;  %v7555_v25 = vld [vmem:[%s8418_s26 + $0x36c] ss:$16 sps:$4 sm:$0xff]  }
 0xb5b   : > { %4925 = vmatprep.mubr.bf16.mxu0 %v4100_v39  ;;  %4966 = vmatprep.mubr.bf16.mxu1 %v4102_v40  ;;  %v7547_v4 = vld [vmem:[%s8418_s26 + $0x388] ss:$16 sps:$4 sm:$0xff]   ;;  %v7558_v46 = vld [vmem:[%s8418_s26 + $0x14c] ss:$16 sps:$4 sm:$0xff]  }
 0xb5c   : > { %4926 = vmatmul.mubr.bf16.vlgmr.msra.gmra.mxu0 %v10166_v60  ;;  %4967 = vmatmul.mubr.bf16.vlgmr.msra.gmra.mxu1 %v10168_v7  ;;  %v7550_v42 = vld [vmem:[%s8418_s26 + $0x168] ss:$16 sps:$4 sm:$0xff]   ;;  %v7561_v15 = vld [vmem:[%s8418_s26 + $0x34c] ss:$16 sps:$4 sm:$0xff]  }
 0xb5d   : > { %4976 = vmatpush1.bf16.msra.mxu0 %v7478_v56  ;;  %5017 = vmatpush1.bf16.msra.mxu1 %v7481_v53  ;;  %v7553_v52 = vld [vmem:[%s8418_s26 + $0x368] ss:$16 sps:$4 sm:$0xff]   ;;  %v7564_v23 = vld [vmem:[%s8418_s26 + $0x12c] ss:$16 sps:$4 sm:$0xff]  }
 0xb5e   : > { %5007 = vmatprep.mubr.bf16.mxu0 %v4100_v39  ;;  %5048 = vmatprep.mubr.bf16.mxu1 %v4102_v40  ;;  %v7556_v32 = vld [vmem:[%s8418_s26 + $0x148] ss:$16 sps:$4 sm:$0xff]   ;;  %v7567_v41 = vld [vmem:[%s8418_s26 + $0x32c] ss:$16 sps:$4 sm:$0xff]  }
 0xb5f   : > { %4977 = vmatprep.subr.bf16.mxu0 %v7486_v34  ;;  %5018 = vmatprep.subr.bf16.mxu1 %v7489_v16  ;;  %v7559_v1 = vld [vmem:[%s8418_s26 + $0x348] ss:$16 sps:$4 sm:$0xff]   ;;  %v7570_v56 = vld [vmem:[%s8418_s26 + $0x10c] ss:$16 sps:$4 sm:$0xff]  }
 0xb60   : > { %v7562_v39 = vld [vmem:[%s8418_s26 + $0x128] ss:$16 sps:$4 sm:$0xff]   ;;  %v7573_v53 = vld [vmem:[%s8418_s26 + $0x30c] ss:$16 sps:$4 sm:$0xff]  }
 0xb61   : > { %4978 = vmatpush1.bf16.msra.mxu0 %v7484_v62  ;;  %5019 = vmatpush1.bf16.msra.mxu1 %v7487_v36  ;;  %v7565_v40 = vld [vmem:[%s8418_s26 + $0x328] ss:$16 sps:$4 sm:$0xff]   ;;  %v7576_v62 = vld [vmem:[%s8421_s30 + $0xe4] ss:$16 sps:$4 sm:$0xff]   ;;  %v7574_v36 = vld [vmem:[%s8421_s30 + $0xe0] ss:$16 sps:$4 sm:$0xff]  }
 0xb62   : > { %4979 = vmatprep.subr.bf16.mxu0 %v7492_v35  ;;  %5020 = vmatprep.subr.bf16.mxu1 %v7495_v5  ;;  %v7568_v34 = vld [vmem:[%s8418_s26 + $0x108] ss:$16 sps:$4 sm:$0xff]   ;;  %v7579_v35 = vld [vmem:[%s8421_s30 + $0xc4] ss:$16 sps:$4 sm:$0xff]   ;;  %v7577_v5 = vld [vmem:[%s8421_s30 + $0xc0] ss:$16 sps:$4 sm:$0xff]  }
 0xb63   : > { %v7571_v16 = vld [vmem:[%s8418_s26 + $0x308] ss:$16 sps:$4 sm:$0xff]   ;;  %s10433_s26 = scalar_lea.hbm %s11491_s15, %s7161_s17 }
 0xb65   : > { %4980 = vmatpush1.bf16.msra.mxu0 %v7490_v51  ;;  %5021 = vmatpush1.bf16.msra.mxu1 %v7493_v48  ;;  %v7582_v51 = vld [vmem:[%s8421_s30 + $0xa4] ss:$16 sps:$4 sm:$0xff]   ;;  %v7580_v48 = vld [vmem:[%s8421_s30 + $0xa0] ss:$16 sps:$4 sm:$0xff]  }
 0xb66   : > { %4981 = vmatprep.subr.bf16.mxu0 %v7498_v30  ;;  %5022 = vmatprep.subr.bf16.mxu1 %v7501_v54  ;;  %v7585_v30 = vld [vmem:[%s8421_s30 + $0x84] ss:$16 sps:$4 sm:$0xff]   ;;  %v7583_v54 = vld [vmem:[%s8421_s30 + $0x80] ss:$16 sps:$4 sm:$0xff]  }
 0xb69   : > { %4982 = vmatpush1.bf16.msra.mxu0 %v7496_v59  ;;  %5023 = vmatpush1.bf16.msra.mxu1 %v7499_v44  ;;  %v7622_v59 = vld [vmem:[%s8421_s30 + $0x2e0] ss:$16 sps:$4 sm:$0xff]  }
 0xb6a   : > { %4983 = vmatprep.subr.bf16.mxu0 %v7504_v43  ;;  %5024 = vmatprep.subr.bf16.mxu1 %v7507_v38  ;;  %v7586_v44 = vld [vmem:[%s8421_s30 + $0x60] ss:$16 sps:$4 sm:$0xff]   ;;  %v7630_v38 = vld [vmem:[%s8421_s30 + $0x2c4] ss:$16 sps:$4 sm:$0xff]  }
 0xb6b   : > { %v7628_v43 = vld [vmem:[%s8421_s30 + $0x2c0] ss:$16 sps:$4 sm:$0xff]  }
 0xb6d   : > { %4984 = vmatpush1.bf16.msra.mxu0 %v7502_v61  ;;  %5025 = vmatpush1.bf16.msra.mxu1 %v7505_v31  ;;  %v7591_v61 = vld [vmem:[%s8421_s30 + $0x44] ss:$16 sps:$4 sm:$0xff]   ;;  %v7589_v31 = vld [vmem:[%s8421_s30 + $0x40] ss:$16 sps:$4 sm:$0xff]  }
 0xb6e   : > { %4985 = vmatprep.subr.bf16.mxu0 %v7510_v29  ;;  %5026 = vmatprep.subr.bf16.mxu1 %v7513_v28  ;;  %v7634_v29 = vld [vmem:[%s8421_s30 + $0x2a0] ss:$16 sps:$4 sm:$0xff]   ;;  %v7636_v28 = vld [vmem:[%s8421_s30 + $0x2a4] ss:$16 sps:$4 sm:$0xff]  }
 0xb71   : > { %4986 = vmatpush1.bf16.msra.mxu0 %v7508_v45  ;;  %5027 = vmatpush1.bf16.msra.mxu1 %v7511_v21  ;;  %v7594_v45 = vld [vmem:[%s8421_s30 + $0x24] ss:$16 sps:$4 sm:$0xff]   ;;  %v7592_v21 = vld [vmem:[%s8421_s30 + $0x20] ss:$16 sps:$4 sm:$0xff]  }
 0xb72   : > { %4987 = vmatprep.subr.bf16.mxu0 %v7516_v22  ;;  %5028 = vmatprep.subr.bf16.mxu1 %v7519_v26  ;;  %v7640_v22 = vld [vmem:[%s8421_s30 + $0x280] ss:$16 sps:$4 sm:$0xff]   ;;  %v7642_v26 = vld [vmem:[%s8421_s30 + $0x284] ss:$16 sps:$4 sm:$0xff]  }
 0xb75   : > { %4988 = vmatpush1.bf16.msra.mxu0 %v7514_v2  ;;  %5029 = vmatpush1.bf16.msra.mxu1 %v7517_v9  ;;  %v7597_v2 = vld [vmem:[%s8421_s30 + $0x4] ss:$16 sps:$4 sm:$0xff]   ;;  %v7595_v9 = vld [vmem:[%s8421_s30] ss:$16 sps:$4 sm:$0xff]  }
 0xb76   : > { %4989 = vmatprep.subr.bf16.mxu0 %v7522_v57  ;;  %5030 = vmatprep.subr.bf16.mxu1 %v7525_v17  ;;  %v7646_v57 = vld [vmem:[%s8421_s30 + $0x260] ss:$16 sps:$4 sm:$0xff]   ;;  %v7648_v17 = vld [vmem:[%s8421_s30 + $0x264] ss:$16 sps:$4 sm:$0xff]  }
 0xb79   : > { %4990 = vmatpush1.bf16.msra.mxu0 %v7520_v10  ;;  %5031 = vmatpush1.bf16.msra.mxu1 %v7523_v11  ;;  %v7600_v10 = vld [vmem:[%s8421_s30 + $0x1e4] ss:$16 sps:$4 sm:$0xff]   ;;  %v7598_v11 = vld [vmem:[%s8421_s30 + $0x1e0] ss:$16 sps:$4 sm:$0xff]  }
 0xb7a   : > { %4991 = vmatprep.subr.bf16.mxu0 %v7528_v50  ;;  %5032 = vmatprep.subr.bf16.mxu1 %v7531_v24  ;;  %v7652_v50 = vld [vmem:[%s8421_s30 + $0x240] ss:$16 sps:$4 sm:$0xff]   ;;  %v7654_v24 = vld [vmem:[%s8421_s30 + $0x244] ss:$16 sps:$4 sm:$0xff]  }
 0xb7d   : > { %4992 = vmatpush2.bf16.msra.mxu0 %v7526_v8  ;;  %5033 = vmatpush2.bf16.msra.mxu1 %v7529_v47  ;;  %v7603_v8 = vld [vmem:[%s8421_s30 + $0x1c4] ss:$16 sps:$4 sm:$0xff]   ;;  %v7601_v47 = vld [vmem:[%s8421_s30 + $0x1c0] ss:$16 sps:$4 sm:$0xff]  }
 0xb7e   : > { %4993 = vmatprep.subr.bf16.mxu0 %v7534_v20  ;;  %5034 = vmatprep.subr.bf16.mxu1 %v7537_v58  ;;  %v7658_v20 = vld [vmem:[%s8421_s30 + $0x220] ss:$16 sps:$4 sm:$0xff]   ;;  %v7660_v58 = vld [vmem:[%s8421_s30 + $0x224] ss:$16 sps:$4 sm:$0xff]  }
 0xb81   : > { %4994 = vmatpush2.bf16.msra.mxu0 %v7532_v63  ;;  %5035 = vmatpush2.bf16.msra.mxu1 %v7535_v27  ;;  %v7606_v63 = vld [vmem:[%s8421_s30 + $0x1a4] ss:$16 sps:$4 sm:$0xff]   ;;  %v7604_v27 = vld [vmem:[%s8421_s30 + $0x1a0] ss:$16 sps:$4 sm:$0xff]  }
 0xb82   : > { %4995 = vmatprep.subr.bf16.mxu0 %v7540_v12  ;;  %5036 = vmatprep.subr.bf16.mxu1 %v7543_v14  ;;  %v7664_v12 = vld [vmem:[%s8421_s30 + $0x200] ss:$16 sps:$4 sm:$0xff]   ;;  %v7666_v14 = vld [vmem:[%s8421_s30 + $0x204] ss:$16 sps:$4 sm:$0xff]  }
 0xb85   : > { %4996 = vmatpush2.bf16.msra.mxu0 %v7538_v18  ;;  %5037 = vmatpush2.bf16.msra.mxu1 %v7541_v19  ;;  %v7609_v18 = vld [vmem:[%s8421_s30 + $0x184] ss:$16 sps:$4 sm:$0xff]   ;;  %v7607_v19 = vld [vmem:[%s8421_s30 + $0x180] ss:$16 sps:$4 sm:$0xff]  }
 0xb86   : > { %4997 = vmatprep.subr.bf16.mxu0 %v7546_v6  ;;  %5038 = vmatprep.subr.bf16.mxu1 %v7549_v49  ;;  %v7670_v6 = vld [vmem:[%s8421_s30 + $0x3e0] ss:$16 sps:$4 sm:$0xff]   ;;  %v7672_v49 = vld [vmem:[%s8421_s30 + $0x3e4] ss:$16 sps:$4 sm:$0xff]  }
 0xb89   : > { %4998 = vmatpush2.bf16.msra.mxu0 %v7544_v13  ;;  %5039 = vmatpush2.bf16.msra.mxu1 %v7547_v4  ;;  %v7612_v13 = vld [vmem:[%s8421_s30 + $0x164] ss:$16 sps:$4 sm:$0xff]   ;;  %v7610_v4 = vld [vmem:[%s8421_s30 + $0x160] ss:$16 sps:$4 sm:$0xff]  }
 0xb8a   : > { %4999 = vmatprep.subr.bf16.mxu0 %v7552_v0  ;;  %5040 = vmatprep.subr.bf16.mxu1 %v7555_v25  ;;  %v7676_v0 = vld [vmem:[%s8421_s30 + $0x3c0] ss:$16 sps:$4 sm:$0xff]   ;;  %v7678_v25 = vld [vmem:[%s8421_s30 + $0x3c4] ss:$16 sps:$4 sm:$0xff]  }
 0xb8d   : > { %5000 = vmatpush2.bf16.msra.mxu0 %v7550_v42  ;;  %5041 = vmatpush2.bf16.msra.mxu1 %v7553_v52  ;;  %v7615_v42 = vld [vmem:[%s8421_s30 + $0x144] ss:$16 sps:$4 sm:$0xff]   ;;  %v7613_v52 = vld [vmem:[%s8421_s30 + $0x140] ss:$16 sps:$4 sm:$0xff]  }
 0xb8e   : > { %5001 = vmatprep.subr.bf16.mxu0 %v7558_v46  ;;  %5042 = vmatprep.subr.bf16.mxu1 %v7561_v15  ;;  %v7682_v46 = vld [vmem:[%s8421_s30 + $0x3a0] ss:$16 sps:$4 sm:$0xff]   ;;  %v7684_v15 = vld [vmem:[%s8421_s30 + $0x3a4] ss:$16 sps:$4 sm:$0xff]  }
 0xb91   : > { %5002 = vmatpush2.bf16.msra.mxu0 %v7556_v32  ;;  %5043 = vmatpush2.bf16.msra.mxu1 %v7559_v1  ;;  %v7618_v32 = vld [vmem:[%s8421_s30 + $0x124] ss:$16 sps:$4 sm:$0xff]   ;;  %v7616_v1 = vld [vmem:[%s8421_s30 + $0x120] ss:$16 sps:$4 sm:$0xff]  }
 0xb92   : > { %5003 = vmatprep.subr.bf16.mxu0 %v7564_v23  ;;  %5044 = vmatprep.subr.bf16.mxu1 %v7567_v41  ;;  %v7688_v23 = vld [vmem:[%s8421_s30 + $0x380] ss:$16 sps:$4 sm:$0xff]   ;;  %v7690_v41 = vld [vmem:[%s8421_s30 + $0x384] ss:$16 sps:$4 sm:$0xff]  }
 0xb95   : > { %5004 = vmatpush2.bf16.msra.mxu0 %v7562_v39  ;;  %5045 = vmatpush2.bf16.msra.mxu1 %v7565_v40  ;;  %v7621_v39 = vld [vmem:[%s8421_s30 + $0x104] ss:$16 sps:$4 sm:$0xff]   ;;  %v7619_v40 = vld [vmem:[%s8421_s30 + $0x100] ss:$16 sps:$4 sm:$0xff]  }
 0xb96   : > { %5005 = vmatprep.subr.bf16.mxu0 %v7570_v56  ;;  %5046 = vmatprep.subr.bf16.mxu1 %v7573_v53  ;;  %v7694_v56 = vld [vmem:[%s8421_s30 + $0x360] ss:$16 sps:$4 sm:$0xff]   ;;  %v7696_v53 = vld [vmem:[%s8421_s30 + $0x364] ss:$16 sps:$4 sm:$0xff]  }
 0xb99   : > { %5006 = vmatpush2.bf16.msra.mxu0 %v7568_v34  ;;  %5047 = vmatpush2.bf16.msra.mxu1 %v7571_v16  ;;  %v7627_v34 = vld [vmem:[%s8421_s30 + $0xec] ss:$16 sps:$4 sm:$0xff]   ;;  %v7700_v16 = vld [vmem:[%s8421_s30 + $0x340] ss:$16 sps:$4 sm:$0xff]  }
 0xb9a   : > { %5855 = vmatprep.subr.bf16.mxu0 %v7576_v62  ;;  %v7702_v62 = vld [vmem:[%s8421_s30 + $0x344] ss:$16 sps:$4 sm:$0xff]  }
 0xb9c   : > { %5008 = vmatmul.mubr.bf16.vlgmr.msra.gmra.mxu0 %v10166_v60  ;;  %5049 = vmatmul.mubr.bf16.vlgmr.msra.gmra.mxu1 %v10168_v7  ;;  %v7624_v60 = vld [vmem:[%s8421_s30 + $0x2e4] ss:$16 sps:$4 sm:$0xff]  }
 0xb9d   : > { %5856 = vmatpush1.bf16.msra.mxu0 %v7574_v36  ;;  %v7588_v7 = vld [vmem:[%s8421_s30 + $0x64] ss:$16 sps:$4 sm:$0xff]   ;;  %5896 = vmatprep.subr.bf16.mxu1 %v7624_v60 }
 0xb9e   : > { %5857 = vmatprep.subr.bf16.mxu0 %v7579_v35  ;;  %5897 = vmatpush1.bf16.msra.mxu1 %v7622_v59  ;;  %v7708_v36 = vld [vmem:[%s8421_s30 + $0x324] ss:$16 sps:$4 sm:$0xff]   ;;  %v7706_v35 = vld [vmem:[%s8421_s30 + $0x320] ss:$16 sps:$4 sm:$0xff]  }
 0xb9f   : > { %5898 = vmatprep.subr.bf16.mxu1 %v7630_v38 }
 0xba1   : > { %5858 = vmatpush1.bf16.msra.mxu0 %v7577_v5  ;;  %v7714_v5 = vld [vmem:[%s8421_s30 + $0x304] ss:$16 sps:$4 sm:$0xff]  }
 0xba2   : > { %5859 = vmatprep.subr.bf16.mxu0 %v7582_v51  ;;  %5899 = vmatpush1.bf16.msra.mxu1 %v7628_v43  ;;  %v7712_v51 = vld [vmem:[%s8421_s30 + $0x300] ss:$16 sps:$4 sm:$0xff]  }
 0xba3   : > { %5900 = vmatprep.subr.bf16.mxu1 %v7636_v28 }
 0xba5   : > { %5860 = vmatpush1.bf16.msra.mxu0 %v7580_v48  ;;  %v7720_v48 = vld [vmem:[%s8421_s30 + $0x2ec] ss:$16 sps:$4 sm:$0xff]  }
 0xba6   : > { %5861 = vmatprep.subr.bf16.mxu0 %v7585_v30  ;;  %5901 = vmatpush1.bf16.msra.mxu1 %v7634_v29  ;;  %v10304_v30 = vld [vmem:[%s661_s3] sm:$0xf]  ;;  %s8042_s3 = sshll.u32 %s8122_s25, 4  ;;  %s8043_s3 = int_to_ptr.vmem [resolvable:$false] %s8042_s3 }
 0xba7   : > { %5902 = vmatprep.subr.bf16.mxu1 %v7642_v26  ;;  %v4240_v59 = vrot.slane %v10304_v30, %v10151_v33 }
 0xba9   : > { %5862 = vmatpush1.bf16.msra.mxu0 %v7583_v54  ;;  %v4236_v54 = vrot.slane %v10304_v30, %v10145_v3 }
 0xbaa   : > { %5863 = vmatprep.subr.bf16.mxu0 %v7588_v7  ;;  %5903 = vmatpush1.bf16.msra.mxu1 %v7640_v22 }
 0xbab   : > { %5904 = vmatprep.subr.bf16.mxu1 %v7648_v17 }
 0xbad   : > { %5864 = vmatpush1.bf16.msra.mxu0 %v7586_v44 }
 0xbae   : > { %5865 = vmatprep.subr.bf16.mxu0 %v7591_v61  ;;  %5905 = vmatpush1.bf16.msra.mxu1 %v7646_v57  ;;  %v7625_v57 = vld [vmem:[%s8421_s30 + $0xe8] ss:$16 sps:$4 sm:$0xff]  }
 0xbaf   : > { %5906 = vmatprep.subr.bf16.mxu1 %v7654_v24  ;;  %v7637_v24 = vld [vmem:[%s8421_s30 + $0xa8] ss:$16 sps:$4 sm:$0xff]  }
 0xbb1   : > { %5866 = vmatpush1.bf16.msra.mxu0 %v7589_v31 }
 0xbb2   : > { %5867 = vmatprep.subr.bf16.mxu0 %v7594_v45  ;;  %5907 = vmatpush1.bf16.msra.mxu1 %v7652_v50  ;;  %v7639_v50 = vld [vmem:[%s8421_s30 + $0xac] ss:$16 sps:$4 sm:$0xff]  }
 0xbb3   : > { %5908 = vmatprep.subr.bf16.mxu1 %v7660_v58  ;;  %v7649_v58 = vld [vmem:[%s8421_s30 + $0x68] ss:$16 sps:$4 sm:$0xff]  }
 0xbb5   : > { %5868 = vmatpush1.bf16.msra.mxu0 %v7592_v21 }
 0xbb6   : > { %5869 = vmatprep.subr.bf16.mxu0 %v7597_v2  ;;  %5909 = vmatpush1.bf16.msra.mxu1 %v7658_v20  ;;  %v7651_v20 = vld [vmem:[%s8421_s30 + $0x6c] ss:$16 sps:$4 sm:$0xff]  }
 0xbb7   : > { %5910 = vmatprep.subr.bf16.mxu1 %v7666_v14  ;;  %v7661_v14 = vld [vmem:[%s8421_s30 + $0x28] ss:$16 sps:$4 sm:$0xff]  }
 0xbb9   : > { %5870 = vmatpush1.bf16.msra.mxu0 %v7595_v9 }
 0xbba   : > { %5871 = vmatprep.subr.bf16.mxu0 %v7600_v10  ;;  %5911 = vmatpush1.bf16.msra.mxu1 %v7664_v12  ;;  %v7633_v10 = vld [vmem:[%s8421_s30 + $0xcc] ss:$16 sps:$4 sm:$0xff]  }
 0xbbb   : > { %5912 = vmatprep.subr.bf16.mxu1 %v7672_v49  ;;  %v7663_v12 = vld [vmem:[%s8421_s30 + $0x2c] ss:$16 sps:$4 sm:$0xff]   ;;  %v7673_v49 = vld [vmem:[%s8421_s30 + $0x1e8] ss:$16 sps:$4 sm:$0xff]  }
 0xbbd   : > { %5872 = vmatpush2.bf16.msra.mxu0 %v7598_v11  ;;  %v7631_v11 = vld [vmem:[%s8421_s30 + $0xc8] ss:$16 sps:$4 sm:$0xff]  }
 0xbbe   : > { %5873 = vmatprep.subr.bf16.mxu0 %v7603_v8  ;;  %5913 = vmatpush2.bf16.msra.mxu1 %v7670_v6  ;;  %v7645_v8 = vld [vmem:[%s8421_s30 + $0x8c] ss:$16 sps:$4 sm:$0xff]  }
 0xbbf   : > { %5914 = vmatprep.subr.bf16.mxu1 %v7678_v25  ;;  %v7675_v6 = vld [vmem:[%s8421_s30 + $0x1ec] ss:$16 sps:$4 sm:$0xff]   ;;  %v7685_v25 = vld [vmem:[%s8421_s30 + $0x1a8] ss:$16 sps:$4 sm:$0xff]  }
 0xbc1   : > { %5874 = vmatpush2.bf16.msra.mxu0 %v7601_v47  ;;  %v7643_v47 = vld [vmem:[%s8421_s30 + $0x88] ss:$16 sps:$4 sm:$0xff]  }
 0xbc2   : > { %5875 = vmatprep.subr.bf16.mxu0 %v7606_v63  ;;  %5915 = vmatpush2.bf16.msra.mxu1 %v7676_v0  ;;  %v7657_v63 = vld [vmem:[%s8421_s30 + $0x4c] ss:$16 sps:$4 sm:$0xff]  }
 0xbc3   : > { %5916 = vmatprep.subr.bf16.mxu1 %v7684_v15  ;;  %v7687_v0 = vld [vmem:[%s8421_s30 + $0x1ac] ss:$16 sps:$4 sm:$0xff]   ;;  %v7697_v15 = vld [vmem:[%s8421_s30 + $0x168] ss:$16 sps:$4 sm:$0xff]  }
 0xbc5   : > { %5876 = vmatpush2.bf16.msra.mxu0 %v7604_v27  ;;  %v7655_v27 = vld [vmem:[%s8421_s30 + $0x48] ss:$16 sps:$4 sm:$0xff]  }
 0xbc6   : > { %5877 = vmatprep.subr.bf16.mxu0 %v7609_v18  ;;  %5917 = vmatpush2.bf16.msra.mxu1 %v7682_v46  ;;  %v7669_v18 = vld [vmem:[%s8421_s30 + $0xc] ss:$16 sps:$4 sm:$0xff]  }
 0xbc7   : > { %5918 = vmatprep.subr.bf16.mxu1 %v7690_v41  ;;  %v7699_v46 = vld [vmem:[%s8421_s30 + $0x16c] ss:$16 sps:$4 sm:$0xff]  }
 0xbc8   : > { %v7711_v41 = vld [vmem:[%s8421_s30 + $0x12c] ss:$16 sps:$4 sm:$0xff]  }
 0xbc9   : > { %5878 = vmatpush2.bf16.msra.mxu0 %v7607_v19  ;;  %v7667_v19 = vld [vmem:[%s8421_s30 + $0x8] ss:$16 sps:$4 sm:$0xff]  }
 0xbca   : > { %5879 = vmatprep.subr.bf16.mxu0 %v7612_v13  ;;  %5919 = vmatpush2.bf16.msra.mxu1 %v7688_v23  ;;  %v7681_v13 = vld [vmem:[%s8421_s30 + $0x1cc] ss:$16 sps:$4 sm:$0xff]   ;;  %v7703_v23 = vld [vmem:[%s8421_s30 + $0x148] ss:$16 sps:$4 sm:$0xff]  }
 0xbcb   : > { %5920 = vmatprep.subr.bf16.mxu1 %v7696_v53 }
 0xbcd   : > { %5880 = vmatpush2.bf16.msra.mxu0 %v7610_v4  ;;  %v7679_v4 = vld [vmem:[%s8421_s30 + $0x1c8] ss:$16 sps:$4 sm:$0xff]  }
 0xbce   : > { %5881 = vmatprep.subr.bf16.mxu0 %v7615_v42  ;;  %5921 = vmatpush2.bf16.msra.mxu1 %v7694_v56  ;;  %v7693_v42 = vld [vmem:[%s8421_s30 + $0x18c] ss:$16 sps:$4 sm:$0xff]  }
 0xbcf   : > { %5922 = vmatprep.subr.bf16.mxu1 %v7702_v62 }
 0xbd1   : > { %5882 = vmatpush2.bf16.msra.mxu0 %v7613_v52  ;;  %v7691_v52 = vld [vmem:[%s8421_s30 + $0x188] ss:$16 sps:$4 sm:$0xff]  }
 0xbd2   : > { %5883 = vmatprep.subr.bf16.mxu0 %v7618_v32  ;;  %5923 = vmatpush2.bf16.msra.mxu1 %v7700_v16  ;;  %v7705_v32 = vld [vmem:[%s8421_s30 + $0x14c] ss:$16 sps:$4 sm:$0xff]  }
 0xbd3   : > { %5924 = vmatprep.subr.bf16.mxu1 %v7708_v36  ;;  %v7717_v36 = vld [vmem:[%s8421_s30 + $0x10c] ss:$16 sps:$4 sm:$0xff]  }
 0xbd5   : > { %5884 = vmatpush2.bf16.msra.mxu0 %v7616_v1  ;;  %v4244_v1 = vrot.slane %v10304_v30, %v10148_v55 }
 0xbd6   : > { %5885 = vmatprep.subr.bf16.mxu0 %v7621_v39  ;;  %5925 = vmatpush2.bf16.msra.mxu1 %v7706_v35  ;;  %v4248_v39 = vrot.slane %v10304_v30, %v10154_v37 }
 0xbd7   : > { %5926 = vmatprep.subr.bf16.mxu1 %v7714_v5 }
 0xbd9   : > { %5886 = vmatpush2.bf16.msra.mxu0 %v7619_v40 }
 0xbda   : > { %5937 = vmatprep.subr.bf16.mxu0 %v7627_v34  ;;  %5927 = vmatpush2.bf16.msra.mxu1 %v7712_v51  ;;  %v7709_v34 = vld [vmem:[%s8421_s30 + $0x128] ss:$16 sps:$4 sm:$0xff]  }
 0xbdb   : > { %5978 = vmatprep.subr.bf16.mxu1 %v7720_v48 }
 0xc1c   : > { %v4927_v60 = vpop.f32.mrf.mxu0  ;;  %v4968_v7 = vpop.f32.mrf.mxu1 }
 0xc1d   : > { %v4928_v44 = vadd.f32 %v4927_v60, %v4236_v54 }
 0xc1e   : > { %v4929_v43 = vpop.f32.mrf.mxu0  ;;  %v4970_v38 = vpop.f32.mrf.mxu1 }
 0xc1f   : > { %v4969_v61 = vadd.f32 %v4968_v7, %v4928_v44  ;;  %v4930_v31 = vadd.f32 %v4929_v43, %v4240_v59  ;;  %v7715_v59 = vld [vmem:[%s8421_s30 + $0x108] ss:$16 sps:$4 sm:$0xff]  }
 0xc20   : > { %v4931_v29 = vpop.f32.mrf.mxu0  ;;  %v4972_v28 = vpop.f32.mrf.mxu1 }
 0xc21   : > { %v4971_v45 = vadd.f32 %v4970_v38, %v4930_v31  ;;  %v5057_v21 = vmax.f32 %v4969_v61, 0.0  ;;  %v7718_v38 = vld [vmem:[%s8421_s30 + $0x2e8] ss:$16 sps:$4 sm:$0xff]   ;;  %v7723_v31 = vld [vmem:[%s8421_s30 + $0x2cc] ss:$16 sps:$4 sm:$0xff]  }
 0xc22   : > { %v4932_v22 = vpop.f32.mrf.mxu0  ;;  %v4973_v26 = vpop.f32.mrf.mxu1  ;;  %v7721_v29 = vld [vmem:[%s8421_s30 + $0x2c8] ss:$16 sps:$4 sm:$0xff]   ;;  %v7726_v28 = vld [vmem:[%s8421_s30 + $0x2ac] ss:$16 sps:$4 sm:$0xff]  }
 0xc23   : > { %v5058_v2 = vmax.f32 %v4971_v45, 0.0  ;;  %v10311_v17 = vpack.c.bf16 %v5057_v21, %v5057_v21  ;;  %v7724_v45 = vld [vmem:[%s8421_s30 + $0x2a8] ss:$16 sps:$4 sm:$0xff]   ;;  %v7729_v21 = vld [vmem:[%s8421_s30 + $0x28c] ss:$16 sps:$4 sm:$0xff]  }
 0xc24   : > { %v7766_v22 = vld [vmem:[%s8973_s24 + $0x78] sm:$0xff]  }
 0xc25   : > { %v5062_v9 = vpack.c.bf16 %v5058_v2, %v5058_v2  ;;  %v7767_v26 = vld [vmem:[%s8973_s24 + $0x38] sm:$0xff]   ;;  %v7768_v2 = vld [vmem:[%s8973_s24 + $0x70] sm:$0xff]  }
 0xc27   : > { %5887 = vmatprep.mubr.bf16.mxu0 %v5062_v9 }
 0xc28   : > { %5888 = vmatmul.mubr.bf16.vlgmr.msra.gmra.mxu0 %v10311_v17 }
 0xc29   : > { %5938 = vmatpush1.bf16.msra.mxu0 %v7625_v57  ;;  %5969 = vmatprep.mubr.bf16.mxu0 %v5062_v9  ;;  %v7727_v9 = vld [vmem:[%s8421_s30 + $0x288] ss:$16 sps:$4 sm:$0xff]   ;;  %v7769_v57 = vld [vmem:[%s8973_s24 + $0x30] sm:$0xff]  }
 0xc2a   : > { %5939 = vmatprep.subr.bf16.mxu0 %v7633_v10  ;;  %v7770_v10 = vld [vmem:[%s8973_s24 + $0x68] sm:$0xff]  }
 0xc2d   : > { %5940 = vmatpush1.bf16.msra.mxu0 %v7631_v11  ;;  %v7730_v11 = vld [vmem:[%s8421_s30 + $0x268] ss:$16 sps:$4 sm:$0xff]  }
 0xc2e   : > { %5941 = vmatprep.subr.bf16.mxu0 %v7639_v50  ;;  %v7771_v50 = vld [vmem:[%s8973_s24 + $0x28] sm:$0xff]  }
 0xc31   : > { %5942 = vmatpush1.bf16.msra.mxu0 %v7637_v24  ;;  %v7735_v24 = vld [vmem:[%s8421_s30 + $0x24c] ss:$16 sps:$4 sm:$0xff]  }
 0xc32   : > { %5943 = vmatprep.subr.bf16.mxu0 %v7645_v8  ;;  %v7772_v8 = vld [vmem:[%s8973_s24 + $0x60] sm:$0xff]  }
 0xc35   : > { %5944 = vmatpush1.bf16.msra.mxu0 %v7643_v47  ;;  %v7733_v47 = vld [vmem:[%s8421_s30 + $0x248] ss:$16 sps:$4 sm:$0xff]  }
 0xc36   : > { %5945 = vmatprep.subr.bf16.mxu0 %v7651_v20  ;;  %v7773_v20 = vld [vmem:[%s8973_s24 + $0x20] sm:$0xff]  }
 0xc39   : > { %5946 = vmatpush1.bf16.msra.mxu0 %v7649_v58  ;;  %v7738_v58 = vld [vmem:[%s8421_s30 + $0x22c] ss:$16 sps:$4 sm:$0xff]  }
 0xc3a   : > { %5947 = vmatprep.subr.bf16.mxu0 %v7657_v63  ;;  %v7774_v63 = vld [vmem:[%s8973_s24 + $0x58] sm:$0xff]  }
 0xc3d   : > { %5948 = vmatpush1.bf16.msra.mxu0 %v7655_v27  ;;  %v7736_v27 = vld [vmem:[%s8421_s30 + $0x228] ss:$16 sps:$4 sm:$0xff]  }
 0xc3e   : > { %5949 = vmatprep.subr.bf16.mxu0 %v7663_v12  ;;  %v7775_v12 = vld [vmem:[%s8973_s24 + $0x18] sm:$0xff]  }
 0xc41   : > { %5950 = vmatpush1.bf16.msra.mxu0 %v7661_v14  ;;  %v7741_v14 = vld [vmem:[%s8421_s30 + $0x20c] ss:$16 sps:$4 sm:$0xff]  }
 0xc42   : > { %5951 = vmatprep.subr.bf16.mxu0 %v7669_v18  ;;  %v7776_v18 = vld [vmem:[%s8973_s24 + $0x50] sm:$0xff]  }
 0xc45   : > { %5952 = vmatpush1.bf16.msra.mxu0 %v7667_v19  ;;  %v7739_v19 = vld [vmem:[%s8421_s30 + $0x208] ss:$16 sps:$4 sm:$0xff]  }
 0xc46   : > { %5953 = vmatprep.subr.bf16.mxu0 %v7675_v6  ;;  %v7777_v6 = vld [vmem:[%s8973_s24 + $0x10] sm:$0xff]  }
 0xc49   : > { %5954 = vmatpush2.bf16.msra.mxu0 %v7673_v49  ;;  %v7744_v49 = vld [vmem:[%s8421_s30 + $0x3ec] ss:$16 sps:$4 sm:$0xff]  }
 0xc4a   : > { %5955 = vmatprep.subr.bf16.mxu0 %v7681_v13  ;;  %v7742_v13 = vld [vmem:[%s8421_s30 + $0x3e8] ss:$16 sps:$4 sm:$0xff]  }
 0xc4d   : > { %5956 = vmatpush2.bf16.msra.mxu0 %v7679_v4  ;;  %v7747_v4 = vld [vmem:[%s8421_s30 + $0x3cc] ss:$16 sps:$4 sm:$0xff]  }
 0xc4e   : > { %5957 = vmatprep.subr.bf16.mxu0 %v7687_v0  ;;  %v7745_v0 = vld [vmem:[%s8421_s30 + $0x3c8] ss:$16 sps:$4 sm:$0xff]  }
 0xc51   : > { %5958 = vmatpush2.bf16.msra.mxu0 %v7685_v25  ;;  %v7750_v25 = vld [vmem:[%s8421_s30 + $0x3ac] ss:$16 sps:$4 sm:$0xff]  }
 0xc52   : > { %5959 = vmatprep.subr.bf16.mxu0 %v7693_v42  ;;  %v7748_v42 = vld [vmem:[%s8421_s30 + $0x3a8] ss:$16 sps:$4 sm:$0xff]  }
 0xc55   : > { %5960 = vmatpush2.bf16.msra.mxu0 %v7691_v52  ;;  %v7753_v52 = vld [vmem:[%s8421_s30 + $0x38c] ss:$16 sps:$4 sm:$0xff]  }
 0xc56   : > { %5961 = vmatprep.subr.bf16.mxu0 %v7699_v46  ;;  %v7751_v46 = vld [vmem:[%s8421_s30 + $0x388] ss:$16 sps:$4 sm:$0xff]  }
 0xc59   : > { %5962 = vmatpush2.bf16.msra.mxu0 %v7697_v15  ;;  %v7756_v15 = vld [vmem:[%s8421_s30 + $0x36c] ss:$16 sps:$4 sm:$0xff]  }
 0xc5a   : > { %5963 = vmatprep.subr.bf16.mxu0 %v7705_v32  ;;  %v7754_v32 = vld [vmem:[%s8421_s30 + $0x368] ss:$16 sps:$4 sm:$0xff]  }
 0xc5c   : > { %v5009_v40 = vpop.f32.mrf.mxu0  ;;  %v5050_v56 = vpop.f32.mrf.mxu1 }
 0xc5d   : > { %v5010_v53 = vadd.f32 %v5009_v40, %v4244_v1  ;;  %5964 = vmatpush2.bf16.msra.mxu0 %v7703_v23  ;;  %v7759_v1 = vld [vmem:[%s8421_s30 + $0x34c] ss:$16 sps:$4 sm:$0xff]   ;;  %v7757_v23 = vld [vmem:[%s8421_s30 + $0x348] ss:$16 sps:$4 sm:$0xff]  }
 0xc5e   : > { %v5011_v16 = vpop.f32.mrf.mxu0  ;;  %v5052_v62 = vpop.f32.mrf.mxu1  ;;  %5965 = vmatprep.subr.bf16.mxu0 %v7711_v41  ;;  %v7762_v41 = vld [vmem:[%s8421_s30 + $0x32c] ss:$16 sps:$4 sm:$0xff]  }
 0xc5f   : > { %v5051_v35 = vadd.f32 %v5050_v56, %v5010_v53  ;;  %v5012_v5 = vadd.f32 %v5011_v16, %v4248_v39  ;;  %v7760_v39 = vld [vmem:[%s8421_s30 + $0x328] ss:$16 sps:$4 sm:$0xff]   ;;  %v7765_v40 = vld [vmem:[%s8421_s30 + $0x30c] ss:$16 sps:$4 sm:$0xff]   ;;  %v7780_v16 = vld [vmem:[%s8973_s24 + $0x40] sm:$0xff]  }
 0xc60   : > { %v5013_v51 = vpop.f32.mrf.mxu0  ;;  %v5054_v48 = vpop.f32.mrf.mxu1  ;;  %v7763_v56 = vld [vmem:[%s8421_s30 + $0x308] ss:$16 sps:$4 sm:$0xff]  }
 0xc61   : > { %v5053_v54 = vadd.f32 %v5052_v62, %v5012_v5  ;;  %5966 = vmatpush2.bf16.msra.mxu0 %v7709_v34  ;;  %v5059_v30 = vmax.f32 %v5051_v35, 0.0  ;;  %v7778_v53 = vld [vmem:[%s8973_s24 + $0x48] sm:$0xff]   ;;  %v7781_v62 = vld [vmem:[%s8973_s24] sm:$0xff]   ;;  %v7783_v35 = vld [vmem:[%s8973_s24 + $0xb8] sm:$0xff]  }
 0xc62   : > { %v5014_v60 = vpop.f32.mrf.mxu0  ;;  %v5055_v7 = vpop.f32.mrf.mxu1  ;;  %5967 = vmatprep.subr.bf16.mxu0 %v7717_v36  ;;  %v7779_v34 = vld [vmem:[%s8973_s24 + $0x8] sm:$0xff]   ;;  %v7782_v36 = vld [vmem:[%s8973_s24 + $0xf8] sm:$0xff]   ;;  %v7784_v5 = vld [vmem:[%s8973_s24 + $0xf0] sm:$0xff]  }
 0xc63   : > { %v5060_v44 = vmax.f32 %v5053_v54, 0.0  ;;  %v10349_v61 = vpack.c.bf16 %v5059_v30, %v5059_v30  ;;  %v7785_v51 = vld [vmem:[%s8973_s24 + $0xb0] sm:$0xff]   ;;  %v7786_v48 = vld [vmem:[%s8973_s24 + $0xe8] sm:$0xff]   ;;  %v7789_v30 = vld [vmem:[%s8973_s24 + $0xa0] sm:$0xff]  }
 0xc64   : > { %v7787_v54 = vld [vmem:[%s8973_s24 + $0xa8] sm:$0xff]   ;;  %v7790_v60 = vld [vmem:[%s8973_s24 + $0xd8] sm:$0xff]  }
 0xc65   : > { %v5064_v43 = vpack.c.bf16 %v5060_v44, %v5060_v44  ;;  %5968 = vmatpush2.bf16.msra.mxu0 %v7715_v59  ;;  %v7788_v59 = vld [vmem:[%s8973_s24 + $0xe0] sm:$0xff]   ;;  %v7791_v7 = vld [vmem:[%s8973_s24 + $0x98] sm:$0xff]   ;;  %v7792_v44 = vld [vmem:[%s8973_s24 + $0xd0] sm:$0xff]  }
 0xc66   : > { %7171 = vmatprep.subr.bf16.mxu0 %v7766_v22 }
 0xc67   : > { %5928 = vmatprep.mubr.bf16.mxu1 %v5064_v43 }
 0xc68   : > { %5929 = vmatmul.mubr.bf16.vlgmr.msra.gmra.mxu1 %v10349_v61  ;;  %5970 = vmatmul.mubr.bf16.vlgmr.msra.gmra.mxu0 %v10311_v17  ;;  %v7732_v17 = vld [vmem:[%s8421_s30 + $0x26c] ss:$16 sps:$4 sm:$0xff]   ;;  %s8044_s30 = scalar_lea.vmem %s8043_s3, 64 }
 0xc69   : > { %5979 = vmatpush1.bf16.msra.mxu1 %v7718_v38  ;;  %6010 = vmatprep.mubr.bf16.mxu1 %v5064_v43  ;;  %v7793_v43 = vld [vmem:[%s8973_s24 + $0x90] sm:$0xff]  }
 0xc6a   : > { %5980 = vmatprep.subr.bf16.mxu1 %v7723_v31  ;;  %7172 = vmatpush3.bf16.msra.mxu0 %v7767_v26  ;;  %v7795_v31 = vld [vmem:[%s8973_s24 + $0x88] sm:$0xff]   ;;  %v5193_v26 = vld [vmem:[%s665_s12] sm:$0xf] }
 0xc6b   : > { %7173 = vmatprep.subr.bf16.mxu0 %v7768_v2  ;;  %v5198_v2 = vrot.slane %v5193_v26, %v10145_v3  ;;  %v5206_v3 = vrot.slane %v5193_v26, %v10148_v55 }
 0xc6d   : > { %5981 = vmatpush1.bf16.msra.mxu1 %v7721_v29 }
 0xc6e   : > { %5982 = vmatprep.subr.bf16.mxu1 %v7726_v28  ;;  %7174 = vmatpush3.bf16.msra.mxu0 %v7769_v57 }
 0xc6f   : > { %7175 = vmatprep.subr.bf16.mxu0 %v7770_v10 }
 0xc71   : > { %5983 = vmatpush1.bf16.msra.mxu1 %v7724_v45  ;;  %v7796_v45 = vld [vmem:[%s8973_s24 + $0xc0] sm:$0xff]  }
 0xc72   : > { %5984 = vmatprep.subr.bf16.mxu1 %v7729_v21  ;;  %7176 = vmatpush3.bf16.msra.mxu0 %v7771_v50  ;;  %v7797_v21 = vld [vmem:[%s8973_s24 + $0x80] sm:$0xff]  }
 0xc73   : > { %7177 = vmatprep.subr.bf16.mxu0 %v7772_v8 }
 0xc75   : > { %5985 = vmatpush1.bf16.msra.mxu1 %v7727_v9  ;;  %v5202_v9 = vrot.slane %v5193_v26, %v10151_v33  ;;  %v5210_v33 = vrot.slane %v5193_v26, %v10154_v37 }
 0xc76   : > { %5986 = vmatprep.subr.bf16.mxu1 %v7732_v17  ;;  %7178 = vmatpush3.bf16.msra.mxu0 %v7773_v20 }
 0xc77   : > { %7179 = vmatprep.subr.bf16.mxu0 %v7774_v63 }
 0xc79   : > { %5987 = vmatpush1.bf16.msra.mxu1 %v7730_v11 }
 0xc7a   : > { %5988 = vmatprep.subr.bf16.mxu1 %v7735_v24  ;;  %7180 = vmatpush3.bf16.msra.mxu0 %v7775_v12 }
 0xc7b   : > { %7181 = vmatprep.subr.bf16.mxu0 %v7776_v18 }
 0xc7d   : > { %5989 = vmatpush1.bf16.msra.mxu1 %v7733_v47 }
 0xc7e   : > { %5990 = vmatprep.subr.bf16.mxu1 %v7738_v58  ;;  %7182 = vmatpush3.bf16.msra.mxu0 %v7777_v6 }
 0xc7f   : > { %7183 = vmatprep.subr.bf16.mxu0 %v7778_v53 }
 0xc81   : > { %5991 = vmatpush1.bf16.msra.mxu1 %v7736_v27 }
 0xc82   : > { %5992 = vmatprep.subr.bf16.mxu1 %v7741_v14  ;;  %7184 = vmatpush3.bf16.msra.mxu0 %v7779_v34 }
 0xc83   : > { %7185 = vmatprep.subr.bf16.mxu0 %v7780_v16 }
 0xc85   : > { %5993 = vmatpush1.bf16.msra.mxu1 %v7739_v19 }
 0xc86   : > { %5994 = vmatprep.subr.bf16.mxu1 %v7744_v49  ;;  %7186 = vmatpush3.bf16.msra.mxu0 %v7781_v62 }
 0xc89   : > { %5995 = vmatpush2.bf16.msra.mxu1 %v7742_v13 }
 0xc8a   : > { %5996 = vmatprep.subr.bf16.mxu1 %v7747_v4 }
 0xc8d   : > { %5997 = vmatpush2.bf16.msra.mxu1 %v7745_v0 }
 0xc8e   : > { %5998 = vmatprep.subr.bf16.mxu1 %v7750_v25 }
 0xc91   : > { %5999 = vmatpush2.bf16.msra.mxu1 %v7748_v42 }
 0xc92   : > { %6000 = vmatprep.subr.bf16.mxu1 %v7753_v52 }
 0xc95   : > { %6001 = vmatpush2.bf16.msra.mxu1 %v7751_v46 }
 0xc96   : > { %6002 = vmatprep.subr.bf16.mxu1 %v7756_v15 }
 0xc99   : > { %6003 = vmatpush2.bf16.msra.mxu1 %v7754_v32 }
 0xc9a   : > { %6004 = vmatprep.subr.bf16.mxu1 %v7759_v1 }
 0xc9d   : > { %6005 = vmatpush2.bf16.msra.mxu1 %v7757_v23 }
 0xc9e   : > { %6006 = vmatprep.subr.bf16.mxu1 %v7762_v41 }
 0xca1   : > { %6007 = vmatpush2.bf16.msra.mxu1 %v7760_v39 }
 0xca2   : > { %6008 = vmatprep.subr.bf16.mxu1 %v7765_v40  ;;  %v7127_v40 = vld [vmem:[%s673_s29] ss:$0 sm:$0xff] }
 0xca5   : > { %6009 = vmatpush2.bf16.msra.mxu1 %v7763_v56 }
 0xca6   : > { %7193 = vmatprep.subr.bf16.mxu1 %v7782_v36 }
 0xca8   : > { %6011 = vmatmul.mubr.bf16.vlgmr.msra.gmra.mxu1 %v10349_v61  ;;  %v7794_v61 = vld [vmem:[%s8973_s24 + $0xc8] sm:$0xff]   ;;  %s6623_s24 = sshll.u32 %s8400_s21, 1 }
 0xca9   : > { %7194 = vmatpush3.bf16.msra.mxu1 %v7783_v35  ;;  %s643_s28 = scalar_lea.vmem [#allocation10], %s6623_s24 }
 0xcaa   : > { %7195 = vmatprep.subr.bf16.mxu1 %v7784_v5  ;;  %s6386_s2 = sshll.u32 %s643_s28, 4  ;;  %s6387_s2 = int_to_ptr.vmem [resolvable:$true] %s6386_s2 }
 0xcab   : > { %s8038_s27 = scalar_lea.vmem %s6387_s2, 32  ;;  %p8045_p6 = scmp.lt.s32.totalorder %s6387_s2, %s8043_s3 }
 0xcac   : > { %p8039_p10 = scmp.ne.s32.totalorder %s6387_s2, %s8038_s27  ;;  %p8046_p12 = scmp.lt.s32.totalorder %s8044_s30, %s8038_s27 }
 0xcad   : > { %7196 = vmatpush3.bf16.msra.mxu1 %v7785_v51 }
 0xcae   : > { %7197 = vmatprep.subr.bf16.mxu1 %v7786_v48  ;;  %p8040_p3 = pnand %p8039_p10, %p11492_p1  ;;  %p8047_p0 = por %p8046_p12, %p8045_p6 }
 0xcb0   : > { %p8041_p9 = pneg %p8040_p3 }
 0xcb1   : > { %7198 = vmatpush3.bf16.msra.mxu1 %v7787_v54 }
 0xcb2   : > { %7199 = vmatprep.subr.bf16.mxu1 %v7788_v59  ;;  %p8048_p11 = pnand %p8047_p0, %p8041_p9 }
 0xcb5   : > { %7200 = vmatpush3.bf16.msra.mxu1 %v7789_v30 }
 0xcb6   : > { %7201 = vmatprep.subr.bf16.mxu1 %v7790_v60 }
 0xcb9   : > { %7202 = vmatpush3.bf16.msra.mxu1 %v7791_v7 }
 0xcba   : > { %7203 = vmatprep.subr.bf16.mxu1 %v7792_v44 }
 0xcbd   : > { %7204 = vmatpush3.bf16.msra.mxu1 %v7793_v43 }
 0xcbe   : > { %7205 = vmatprep.subr.bf16.mxu1 %v7794_v61 }
 0xcc1   : > { %7206 = vmatpush3.bf16.msra.mxu1 %v7795_v31 }
 0xcc2   : > { %7207 = vmatprep.subr.bf16.mxu1 %v7796_v45 }
 0xcc5   : > { %7208 = vmatpush3.bf16.msra.mxu1 %v7797_v21 }
 0xce8   : > { %v5889_v38 = vpop.f32.mrf.mxu0 }
 0xce9   : > { %v5890_v57 = vadd.f32 %v5889_v38, %v5198_v2 }
 0xcea   : > { %v5891_v29 = vpop.f32.mrf.mxu0 }
 0xceb   : > { %v5892_v11 = vadd.f32 %v5891_v29, %v5202_v9 }
 0xcec   : > { %v5893_v28 = vpop.f32.mrf.mxu0 }
 0xcee   : > { %v5894_v22 = vpop.f32.mrf.mxu0 }
 0xd28   : > { %v5930_v17 = vpop.f32.mrf.mxu1  ;;  %v5971_v10 = vpop.f32.mrf.mxu0 }
 0xd29   : > { %v5931_v50 = vadd.f32 %v5930_v17, %v5890_v57  ;;  %v5972_v6 = vadd.f32 %v5971_v10, %v5206_v3 }
 0xd2a   : > { %v5932_v24 = vpop.f32.mrf.mxu1  ;;  %v5973_v8 = vpop.f32.mrf.mxu0 }
 0xd2b   : > { %v5933_v47 = vadd.f32 %v5932_v24, %v5892_v11  ;;  %v6019_v20 = vmax.f32 %v5931_v50, 0.0  ;;  %v5974_v13 = vadd.f32 %v5973_v8, %v5210_v33 }
 0xd2c   : > { %v5934_v58 = vpop.f32.mrf.mxu1  ;;  %v5975_v63 = vpop.f32.mrf.mxu0 }
 0xd2d   : > { %v6020_v27 = vmax.f32 %v5933_v47, 0.0  ;;  %v6023_v19 = vpack.c.bf16 %v6019_v20, %v6019_v20 }
 0xd2e   : > { %v5935_v12 = vpop.f32.mrf.mxu1  ;;  %v5976_v14 = vpop.f32.mrf.mxu0 }
 0xd2f   : > { %v6024_v18 = vpack.c.bf16 %v6020_v27, %v6020_v27 }
 0xd31   : > { %6322 = vmatprep.mubr.bf16.mxu0 %v6024_v18 }
 0xd32   : > { %6323 = vmatmul.mubr.bf16.vlgmr.msra.gmra.mxu0 %v6023_v19 }
 0xd68   : > { %v6012_v49 = vpop.f32.mrf.mxu1 }
 0xd69   : > { %v6013_v4 = vadd.f32 %v6012_v49, %v5972_v6 }
 0xd6a   : > { %v6014_v0 = vpop.f32.mrf.mxu1 }
 0xd6b   : > { %v6015_v25 = vadd.f32 %v6014_v0, %v5974_v13  ;;  %v6021_v42 = vmax.f32 %v6013_v4, 0.0 }
 0xd6c   : > { %v6016_v52 = vpop.f32.mrf.mxu1 }
 0xd6d   : > { %v6022_v46 = vmax.f32 %v6015_v25, 0.0  ;;  %v6025_v1 = vpack.c.bf16 %v6021_v42, %v6021_v42 }
 0xd6e   : > { %v6017_v15 = vpop.f32.mrf.mxu1 }
 0xd6f   : > { %v6026_v32 = vpack.c.bf16 %v6022_v46, %v6022_v46 }
 0xd71   : > { %6362 = vmatprep.mubr.bf16.mxu1 %v6026_v32 }
 0xd72   : > { %6363 = vmatmul.mubr.bf16.vlgmr.msra.gmra.mxu1 %v6025_v1 }
 0xdf2   : > { %v7187_v55 = vpop.f32.mrf.mxu0 }
 0xdf4   : > { %v7188_v23 = vpop.f32.mrf.mxu0 }
 0xdf5   : > { %v7189_v39 = vadd.f32 %v7188_v23, %v7187_v55 }
 0xdf6   : > { %v7190_v37 = vpop.f32.mrf.mxu0 }
 0xdf7   : > { %v6325_v34 = vadd.f32 %v7189_v39, %v7127_v40 }
 0xdf8   : > { %v7191_v41 = vpop.f32.mrf.mxu0 }
 0xe32   : > { %v7209_v56 = vpop.f32.mrf.mxu1 }
 0xe34   : > { %v7210_v53 = vpop.f32.mrf.mxu1 }
 0xe35   : > { %v7211_v16 = vadd.f32 %v7210_v53, %v7209_v56 }
 0xe36   : > { %v7212_v62 = vpop.f32.mrf.mxu1 }
 0xe37   : > { %v6365_v36 = vadd.f32 %v7211_v16, %v6325_v34 }
 0xe38   : > { %v7213_v35 = vpop.f32.mrf.mxu1 }
 0xe39   : > { %6371 = vst.msk [vmem:[%s643_s28] sm:$0x3] %vm6370_vm2, %v6365_v36 }
 0xe3a   : > { %8051 = shalt.err (!%p8048_p11)
}
 0xe3b   : > { %s8052_s19 = scalar_lea.hbm %s10433_s26, 32  ;;  %s8056_s12 = scalar_lea.hbm %s11491_s15, 64 }
 0xe3c   : > { %p8053_p4 = scmp.ne.s32.totalorder %s10433_s26, %s8052_s19  ;;  %p8057_p2 = scmp.lt.s32.totalorder %s10433_s26, %s11491_s15 }
 0xe3d   : > { %p8058_p8 = scmp.lt.s32.totalorder %s8056_s12, %s8052_s19 }
 0xe3e   : > { %p8054_p5 = pnand %p8053_p4, %p11492_p1 }
 0xe3f   : > { %p8059_p13 = por %p8058_p8, %p8057_p2 }
 0xe40   : > { %p8055_p7 = pneg %p8054_p5 }
 0xe42   : > { %p8060_p10 = pnand %p8059_p13, %p8055_p7 }
 0xe44   : > { %8063 = shalt.err (!%p8060_p10)
}
 0xe45   : > { %7223 = dma.vmem_to_hbm [thread:$0]  (%p11492_p1), %s6387_s2, 32, %s10433_s26, %s6373_s13  }
 0xe46 PF: > { %s11493_s11 = sld [smem:[#allocation15_spill]] }
 0xe47   : > { %s11494_s23 = sld [smem:[#allocation21_spill]] }
 0xe48   : > { %s11495_s29 = sld [smem:[#allocation17_spill]] }
 0xe4c   : > { %s6398_s17 = sand.u32 1, %s11493_s11  }
 0xe4d   : > { %p11496_p3 = scmp.ne.s32.totalorder %s11494_s23, 0  ;;  %s6399_s28 = scalar_lea.sflag [#allocation4], %s6398_s17 }
 0xe4e   : > { %p11497_p9 = scmp.ge.s32.totalorder %s11495_s29, 2 }
 0xe50   : > { %p7239_p6 = pnand %p11497_p9, %p11496_p3 }
 0xe52   : > { %p7240_p12 = pneg %p7239_p6 }
 0xe54   : > { %8093 = dma.done.wait (%p7240_p12), %s6399_s28, 32  }
 0xe55   : > { %8095 = vsyncadd (%p7240_p12), %s6399_s28, 4294967264  ;;  %s11498_s24 = sld [smem:[#allocation18_spill]]  ;;  %s11501_s21 = smov %s8102_s22 }
 0xe56   : > { %s11499_s9 = sld [smem:[#allocation16_spill]] }
 0xe57   : > { %s11500_s23 = sld [smem:[#allocation19_spill]] }
 0xe5b   : > { %p31_p0 = scmp.ge.s32.totalorder %s11498_s24, 4  }
 0xe5c   : > { %s11502_s22 = smov %s11499_s9 }
 0xe5d   :  { %33 = sbr.rel (!%p31_p0) target bundleno = 15 (0xf), region = 178 }
 0xe62   :  { %6404 = vsyncpa [#allocation3], 1 }
 0xe63   :  { %6406 = vsyncpa [#allocation3 + $0x1], 1 }
 0xe64   :  { %6407 = vsyncpa [#allocation6], 1 }
 0xe65   :  { %6409 = vsyncpa [#allocation6 + $0x1], 1 }
 0xe66   :  { %6410 = vsyncpa [#allocation9], 1 }
 0xe67   :  { %6412 = vsyncpa [#allocation9 + $0x1], 1 }
 0xe68   :  { %6413 = vsyncpa [#allocation4], 1 }
 0xe69   :  { %6415 = vsyncpa [#allocation4 + $0x1], 1 }

</bundles_post_ra>
